<compile_context>
chip_gen: v7x
topology: tpu7x:2x2x1
jax: 0.10.0
libtpu: 0.0.40
codegen_flags: <defaults>
</compile_context>

<pallas_src>
import functools

import jax
import jax.numpy as jnp
from jax.experimental import pallas as pl
from jax.experimental.pallas import tpu as pltpu


def _round_up(x, m):
    return (x + m - 1) // m * m


# --------------------------------------------------------------------------
# Pallas kernels
# --------------------------------------------------------------------------

def _matmul_relu_bn_kernel(x_ref, w_ref, s_ref, t_ref, o_ref):
    # MXU matmul (bf16 in / f32 acc), then fused ReLU, then folded BatchNorm.
    acc = jnp.dot(x_ref[...], w_ref[...], preferred_element_type=jnp.float32)
    acc = jnp.maximum(acc, 0.0)                      # ReLU (applied before BN, as in Meso4)
    o_ref[...] = (acc * s_ref[...] + t_ref[...]).astype(o_ref.dtype)


def matmul_relu_bn(x, w, scale, shift, *, tile_m=1024, out_dtype=jnp.bfloat16):
    """(relu(x @ w)) * scale + shift, tiled over M.  x:(M,K)  w:(K,N)  scale/shift:(N,)."""
    M, K = x.shape
    N = w.shape[1]
    tm = min(tile_m, _round_up(M, 8))
    Mp = _round_up(M, tm)
    Kp = _round_up(K, 128)
    Np = _round_up(N, 128)
    xp = jnp.pad(x, ((0, Mp - M), (0, Kp - K)))
    wp = jnp.pad(w, ((0, Kp - K), (0, Np - N)))
    sp = jnp.pad(scale.astype(jnp.float32), (0, Np - N)).reshape(1, Np)
    tp = jnp.pad(shift.astype(jnp.float32), (0, Np - N)).reshape(1, Np)

    out = pl.pallas_call(
        _matmul_relu_bn_kernel,
        out_shape=jax.ShapeDtypeStruct((Mp, Np), out_dtype),
        grid_spec=pltpu.PrefetchScalarGridSpec(
            num_scalar_prefetch=0,
            grid=(Mp // tm,),
            in_specs=[
                pl.BlockSpec((tm, Kp), lambda i: (i, 0)),   # streamed activation tiles
                pl.BlockSpec((Kp, Np), lambda i: (0, 0)),   # weights stay resident
                pl.BlockSpec((1, Np), lambda i: (0, 0)),    # folded BN scale
                pl.BlockSpec((1, Np), lambda i: (0, 0)),    # folded BN shift
            ],
            out_specs=pl.BlockSpec((tm, Np), lambda i: (i, 0)),
        ),
        compiler_params=pltpu.CompilerParams(
            dimension_semantics=("parallel",),
            vmem_limit_bytes=32 * 1024 * 1024,
        ),
    )(xp, wp, sp, tp)
    return out[:M, :N]


def _head_kernel(x_ref, w1_ref, b1_ref, w2_ref, b2_ref, o_ref):
    # flatten -> (dropout: eval identity) -> fc1 -> LeakyReLU(0.1) -> (dropout) -> fc2
    h = jnp.dot(x_ref[...], w1_ref[...], preferred_element_type=jnp.float32)
    h = h + b1_ref[...]
    h = jnp.where(h > 0.0, h, 0.1 * h)               # LeakyReLU(0.1)
    out = jnp.dot(h, w2_ref[...], preferred_element_type=jnp.float32)
    o_ref[...] = out + b2_ref[...]


def classifier_head(x, w1, b1, w2, b2, num_classes):
    """x:(B, 1024) flattened features; w1:(16,1024) b1:(16,) w2:(nc,16) b2:(nc,)."""
    B, K = x.shape
    H1 = w1.shape[0]
    Bp = _round_up(B, 8)
    Kp = _round_up(K, 128)
    H1p = _round_up(H1, 128)
    Ncp = _round_up(num_classes, 128)
    xp = jnp.pad(x, ((0, Bp - B), (0, Kp - K))).astype(jnp.bfloat16)
    w1m = jnp.pad(w1.T, ((0, Kp - K), (0, H1p - H1))).astype(jnp.bfloat16)
    b1p = jnp.pad(b1, (0, H1p - H1)).reshape(1, H1p).astype(jnp.float32)
    w2m = jnp.pad(w2.T, ((0, H1p - H1), (0, Ncp - num_classes))).astype(jnp.float32)
    b2p = jnp.pad(b2, (0, Ncp - num_classes)).reshape(1, Ncp).astype(jnp.float32)

    out = pl.pallas_call(
        _head_kernel,
        out_shape=jax.ShapeDtypeStruct((Bp, Ncp), jnp.float32),
        in_specs=[pl.BlockSpec(memory_space=pltpu.MemorySpace.VMEM)] * 5,
        out_specs=pl.BlockSpec(memory_space=pltpu.MemorySpace.VMEM),
    )(xp, w1m, b1p, w2m, b2p)
    return out[:B, :num_classes]


# --------------------------------------------------------------------------
# Conv / pool wrappers (glue in plain JAX, hot path inside the Pallas matmul)
# --------------------------------------------------------------------------

def conv_relu_bn(x, w, bn_scale, bn_shift, *, padding, tile_m=1024):
    """NHWC conv (stride 1, "same" padding) + ReLU + folded eval-mode BatchNorm.
    x:(B,H,W,Cin) bf16; w:(Cout,Cin,kh,kw) PyTorch layout (no conv bias in Meso4)."""
    B, H, W_, Cin = x.shape
    Cout, _, kh, kw = w.shape
    xpad = jnp.pad(x, ((0, 0), (padding, padding), (padding, padding), (0, 0))) if padding else x
    cols = [xpad[:, i:i + H, j:j + W_, :] for i in range(kh) for j in range(kw)]
    patches = jnp.stack(cols, axis=3).reshape(B * H * W_, kh * kw * Cin)       # bf16
    wm = jnp.transpose(w, (2, 3, 1, 0)).reshape(kh * kw * Cin, Cout).astype(x.dtype)
    y = matmul_relu_bn(patches, wm, bn_scale, bn_shift, tile_m=tile_m)
    return y.reshape(B, H, W_, Cout)


def maxpool(x, k):
    # TODO(synk): max-pool stays in plain JAX (reshape + max); only the conv
    # matmuls and the FC head run inside Pallas kernels.
    B, H, W_, C = x.shape
    return x.reshape(B, H // k, k, W_ // k, k, C).max(axis=(2, 4))


def _bn_fold(bn, eps=1e-5):
    # Eval-mode BatchNorm: y = gamma*(z-mean)/sqrt(var+eps) + beta = z*s + t
    s = bn["gamma"] / jnp.sqrt(bn["var"] + eps)
    t = bn["beta"] - bn["mean"] * s
    return s, t


# --------------------------------------------------------------------------
# Parameters (deterministic synthetic init; same shapes as the PyTorch module)
# --------------------------------------------------------------------------

def init_params(key, num_classes=2):
    ks = jax.random.split(key, 8)

    def conv(k, cout, cin, kh, kw):
        fan_in = cin * kh * kw
        return jax.random.normal(k, (cout, cin, kh, kw), jnp.float32) * jnp.sqrt(2.0 / fan_in)

    def bn(k, c):
        k1, k2, k3 = jax.random.split(k, 3)
        return {
            "gamma": 1.0 + 0.1 * jax.random.normal(k1, (c,), jnp.float32),
            "beta": 0.1 * jax.random.normal(k2, (c,), jnp.float32),
            "mean": 0.1 * jax.random.normal(k3, (c,), jnp.float32),
            "var": jnp.ones((c,), jnp.float32),
        }

    def linear(k, cout, cin):
        k1, k2 = jax.random.split(k)
        w = jax.random.normal(k1, (cout, cin), jnp.float32) * jnp.sqrt(1.0 / cin)
        b = 0.01 * jax.random.normal(k2, (cout,), jnp.float32)
        return w, b

    params = {
        "conv1_w": conv(ks[0], 8, 3, 3, 3),      # Conv2d(3, 8, 3, padding=1, bias=False)
        "conv2_w": conv(ks[1], 8, 8, 5, 5),      # Conv2d(8, 8, 5, padding=2, bias=False)
        "conv3_w": conv(ks[2], 16, 8, 5, 5),     # Conv2d(8, 16, 5, padding=2, bias=False)
        "conv4_w": conv(ks[3], 16, 16, 5, 5),    # Conv2d(16, 16, 5, padding=2, bias=False)
        "bn1": bn(ks[4], 8),
        "bn2": bn(ks[5], 16),
    }
    params["fc1_w"], params["fc1_b"] = linear(ks[6], 16, 16 * 8 * 8)
    params["fc2_w"], params["fc2_b"] = linear(ks[7], num_classes, 16)
    return params


# --------------------------------------------------------------------------
# Forward pass (mirrors Meso4.forward, eval mode)
# --------------------------------------------------------------------------

def meso4_forward(params, x_nchw, num_classes=2):
    # NCHW (PyTorch) -> NHWC, bf16 activations internally.
    x = jnp.transpose(x_nchw, (0, 2, 3, 1)).astype(jnp.bfloat16)
    s1, t1 = _bn_fold(params["bn1"])
    s2, t2 = _bn_fold(params["bn2"])

    x = conv_relu_bn(x, params["conv1_w"], s1, t1, padding=1)   # conv1 -> ReLU -> bn1
    x = maxpool(x, 2)
    x = conv_relu_bn(x, params["conv2_w"], s1, t1, padding=2)   # conv2 -> ReLU -> bn1
    x = maxpool(x, 2)
    x = conv_relu_bn(x, params["conv3_w"], s2, t2, padding=2)   # conv3 -> ReLU -> bn2
    x = maxpool(x, 2)
    x = conv_relu_bn(x, params["conv4_w"], s2, t2, padding=2)   # conv4 -> ReLU -> bn2
    x = maxpool(x, 4)                                           # (B, 8, 8, 16)

    B = x.shape[0]
    xf = jnp.transpose(x, (0, 3, 1, 2)).reshape(B, -1)          # x.view(B, -1) in NCHW order
    # TODO(synk): Dropout/Dropout2d(0.5) are eval-mode identities; BatchNorm uses running stats.
    return classifier_head(xf, params["fc1_w"], params["fc1_b"],
                           params["fc2_w"], params["fc2_b"], num_classes)


if __name__ == "__main__":
    key = jax.random.PRNGKey(0)
    pkey, xkey = jax.random.split(key)
    num_classes = 2
    params = init_params(pkey, num_classes)
    # fc1 = Linear(16*8*8, 16) fixes the input spatial size at 256x256 (3 pools of 2 + one of 4).
    x = jax.random.normal(xkey, (2, 3, 256, 256), jnp.float32)   # NCHW like PyTorch
    fwd = jax.jit(functools.partial(meso4_forward, num_classes=num_classes))
    out = fwd(params, x)
    jax.block_until_ready(out)
    assert out.shape == (2, num_classes), out.shape
    assert bool(jnp.all(jnp.isfinite(out)))
    print("KERNEL_OK")
</pallas_src>

<mosaic_0001>
module attributes {stable_mosaic.version = 11 : i64} {
  func.func @_matmul_relu_bn_kernel(%arg0: i32, %arg1: memref<1024x128xbf16, #tpu.memory_space<vmem>>, %arg2: memref<128x128xbf16, #tpu.memory_space<vmem>>, %arg3: memref<1x128xf32, #tpu.memory_space<vmem>>, %arg4: memref<1x128xf32, #tpu.memory_space<vmem>>, %arg5: memref<1024x128xbf16, #tpu.memory_space<vmem>>) attributes {dimension_semantics = [#tpu.dimension_semantics<parallel>], iteration_bounds = array<i64: 128>, scalar_prefetch = 0 : i64, scratch_operands = 0 : i64, tpu.core_type = #tpu.core_type<tc>, window_params = [{transform_indices = @transform_0, window_bounds = array<i64: 1024, 128>}, {pipeline_mode = #tpu.pipeline_mode<synchronous>, transform_indices = @transform_1, window_bounds = array<i64: 128, 128>}, {pipeline_mode = #tpu.pipeline_mode<synchronous>, transform_indices = @transform_2, window_bounds = array<i64: 1, 128>}, {pipeline_mode = #tpu.pipeline_mode<synchronous>, transform_indices = @transform_3, window_bounds = array<i64: 1, 128>}, {transform_indices = @transform_4, window_bounds = array<i64: 1024, 128>}]} {
    %c0 = arith.constant 0 : index
    %c0_0 = arith.constant 0 : index
    %0 = vector.load %arg1[%c0, %c0_0] : memref<1024x128xbf16, #tpu.memory_space<vmem>>, vector<1024x128xbf16>
    %c0_1 = arith.constant 0 : index
    %c0_2 = arith.constant 0 : index
    %1 = vector.load %arg2[%c0_1, %c0_2] : memref<128x128xbf16, #tpu.memory_space<vmem>>, vector<128x128xbf16>
    %cst = arith.constant dense<0.000000e+00> : vector<1024x128xf32>
    %2 = tpu.matmul %0, %1, %cst {dimension_numbers = #tpu.dot_dimension_numbers<[1], [0], [0], [1], [0, 0, 1, 1], [], []>} : vector<1024x128xbf16>, vector<128x128xbf16>, vector<1024x128xf32> -> vector<1024x128xf32>
    %cst_3 = arith.constant 0.000000e+00 : f32
    %3 = vector.broadcast %cst_3 : f32 to vector<1024x128xf32>
    %4 = arith.maximumf %2, %3 : vector<1024x128xf32>
    %c0_4 = arith.constant 0 : index
    %c0_5 = arith.constant 0 : index
    %5 = vector.load %arg3[%c0_4, %c0_5] : memref<1x128xf32, #tpu.memory_space<vmem>>, vector<1x128xf32>
    %6 = vector.broadcast %5 : vector<1x128xf32> to vector<1024x128xf32>
    %7 = arith.mulf %4, %6 : vector<1024x128xf32>
    %c0_6 = arith.constant 0 : index
    %c0_7 = arith.constant 0 : index
    %8 = vector.load %arg4[%c0_6, %c0_7] : memref<1x128xf32, #tpu.memory_space<vmem>>, vector<1x128xf32>
    %9 = vector.broadcast %8 : vector<1x128xf32> to vector<1024x128xf32>
    %10 = arith.addf %7, %9 : vector<1024x128xf32>
    %11 = arith.truncf %10 : vector<1024x128xf32> to vector<1024x128xbf16>
    %c0_8 = arith.constant 0 : index
    %c0_9 = arith.constant 0 : index
    %12 = vector.load %arg5[%c0_8, %c0_9] : memref<1024x128xbf16, #tpu.memory_space<vmem>>, vector<1024x128xbf16>
    tpu.vector_store %arg5[%c0_8, %c0_9], %11 {strides = array<i32>} : memref<1024x128xbf16, #tpu.memory_space<vmem>>, vector<1024x128xbf16>,
    return
  }
  func.func @transform_0(%arg0: i32) -> (i32, i32) {
    %c0_i32 = arith.constant 0 : i32
    %c0_i32_0 = arith.constant 0 : i32
    return %arg0, %c0_i32 : i32, i32
  }
  func.func @transform_1(%arg0: i32) -> (i32, i32) {
    %c0_i32 = arith.constant 0 : i32
    %c0_i32_0 = arith.constant 0 : i32
    %c0_i32_1 = arith.constant 0 : i32
    return %c0_i32, %c0_i32_0 : i32, i32
  }
  func.func @transform_2(%arg0: i32) -> (i32, i32) {
    %c0_i32 = arith.constant 0 : i32
    %c0_i32_0 = arith.constant 0 : i32
    %c0_i32_1 = arith.constant 0 : i32
    return %c0_i32, %c0_i32_0 : i32, i32
  }
  func.func @transform_3(%arg0: i32) -> (i32, i32) {
    %c0_i32 = arith.constant 0 : i32
    %c0_i32_0 = arith.constant 0 : i32
    %c0_i32_1 = arith.constant 0 : i32
    return %c0_i32, %c0_i32_0 : i32, i32
  }
  func.func @transform_4(%arg0: i32) -> (i32, i32) {
    %c0_i32 = arith.constant 0 : i32
    %c0_i32_0 = arith.constant 0 : i32
    return %arg0, %c0_i32 : i32, i32
  }
}

module attributes {stable_mosaic.version = 11 : i64} {
  func.func @_matmul_relu_bn_kernel(%arg0: i32, %arg1: memref<1024x256xbf16, #tpu.memory_space<vmem>>, %arg2: memref<256x128xbf16, #tpu.memory_space<vmem>>, %arg3: memref<1x128xf32, #tpu.memory_space<vmem>>, %arg4: memref<1x128xf32, #tpu.memory_space<vmem>>, %arg5: memref<1024x128xbf16, #tpu.memory_space<vmem>>) attributes {dimension_semantics = [#tpu.dimension_semantics<parallel>], iteration_bounds = array<i64: 32>, scalar_prefetch = 0 : i64, scratch_operands = 0 : i64, tpu.core_type = #tpu.core_type<tc>, window_params = [{transform_indices = @transform_0, window_bounds = array<i64: 1024, 256>}, {pipeline_mode = #tpu.pipeline_mode<synchronous>, transform_indices = @transform_1, window_bounds = array<i64: 256, 128>}, {pipeline_mode = #tpu.pipeline_mode<synchronous>, transform_indices = @transform_2, window_bounds = array<i64: 1, 128>}, {pipeline_mode = #tpu.pipeline_mode<synchronous>, transform_indices = @transform_3, window_bounds = array<i64: 1, 128>}, {transform_indices = @transform_4, window_bounds = array<i64: 1024, 128>}]} {
    %c0 = arith.constant 0 : index
    %c0_0 = arith.constant 0 : index
    %0 = vector.load %arg1[%c0, %c0_0] : memref<1024x256xbf16, #tpu.memory_space<vmem>>, vector<1024x256xbf16>
    %c0_1 = arith.constant 0 : index
    %c0_2 = arith.constant 0 : index
    %1 = vector.load %arg2[%c0_1, %c0_2] : memref<256x128xbf16, #tpu.memory_space<vmem>>, vector<256x128xbf16>
    %cst = arith.constant dense<0.000000e+00> : vector<1024x128xf32>
    %2 = tpu.matmul %0, %1, %cst {dimension_numbers = #tpu.dot_dimension_numbers<[1], [0], [0], [1], [0, 0, 1, 1], [], []>} : vector<1024x256xbf16>, vector<256x128xbf16>, vector<1024x128xf32> -> vector<1024x128xf32>
    %cst_3 = arith.constant 0.000000e+00 : f32
    %3 = vector.broadcast %cst_3 : f32 to vector<1024x128xf32>
    %4 = arith.maximumf %2, %3 : vector<1024x128xf32>
    %c0_4 = arith.constant 0 : index
    %c0_5 = arith.constant 0 : index
    %5 = vector.load %arg3[%c0_4, %c0_5] : memref<1x128xf32, #tpu.memory_space<vmem>>, vector<1x128xf32>
    %6 = vector.broadcast %5 : vector<1x128xf32> to vector<1024x128xf32>
    %7 = arith.mulf %4, %6 : vector<1024x128xf32>
    %c0_6 = arith.constant 0 : index
    %c0_7 = arith.constant 0 : index
    %8 = vector.load %arg4[%c0_6, %c0_7] : memref<1x128xf32, #tpu.memory_space<vmem>>, vector<1x128xf32>
    %9 = vector.broadcast %8 : vector<1x128xf32> to vector<1024x128xf32>
    %10 = arith.addf %7, %9 : vector<1024x128xf32>
    %11 = arith.truncf %10 : vector<1024x128xf32> to vector<1024x128xbf16>
    %c0_8 = arith.constant 0 : index
    %c0_9 = arith.constant 0 : index
    %12 = vector.load %arg5[%c0_8, %c0_9] : memref<1024x128xbf16, #tpu.memory_space<vmem>>, vector<1024x128xbf16>
    tpu.vector_store %arg5[%c0_8, %c0_9], %11 {strides = array<i32>} : memref<1024x128xbf16, #tpu.memory_space<vmem>>, vector<1024x128xbf16>,
    return
  }
  func.func @transform_0(%arg0: i32) -> (i32, i32) {
    %c0_i32 = arith.constant 0 : i32
    %c0_i32_0 = arith.constant 0 : i32
    return %arg0, %c0_i32 : i32, i32
  }
  func.func @transform_1(%arg0: i32) -> (i32, i32) {
    %c0_i32 = arith.constant 0 : i32
    %c0_i32_0 = arith.constant 0 : i32
    %c0_i32_1 = arith.constant 0 : i32
    return %c0_i32, %c0_i32_0 : i32, i32
  }
  func.func @transform_2(%arg0: i32) -> (i32, i32) {
    %c0_i32 = arith.constant 0 : i32
    %c0_i32_0 = arith.constant 0 : i32
    %c0_i32_1 = arith.constant 0 : i32
    return %c0_i32, %c0_i32_0 : i32, i32
  }
  func.func @transform_3(%arg0: i32) -> (i32, i32) {
    %c0_i32 = arith.constant 0 : i32
    %c0_i32_0 = arith.constant 0 : i32
    %c0_i32_1 = arith.constant 0 : i32
    return %c0_i32, %c0_i32_0 : i32, i32
  }
  func.func @transform_4(%arg0: i32) -> (i32, i32) {
    %c0_i32 = arith.constant 0 : i32
    %c0_i32_0 = arith.constant 0 : i32
    return %arg0, %c0_i32 : i32, i32
  }
}

module attributes {stable_mosaic.version = 11 : i64} {
  func.func @_matmul_relu_bn_kernel(%arg0: i32, %arg1: memref<1024x256xbf16, #tpu.memory_space<vmem>>, %arg2: memref<256x128xbf16, #tpu.memory_space<vmem>>, %arg3: memref<1x128xf32, #tpu.memory_space<vmem>>, %arg4: memref<1x128xf32, #tpu.memory_space<vmem>>, %arg5: memref<1024x128xbf16, #tpu.memory_space<vmem>>) attributes {dimension_semantics = [#tpu.dimension_semantics<parallel>], iteration_bounds = array<i64: 8>, scalar_prefetch = 0 : i64, scratch_operands = 0 : i64, tpu.core_type = #tpu.core_type<tc>, window_params = [{transform_indices = @transform_0, window_bounds = array<i64: 1024, 256>}, {pipeline_mode = #tpu.pipeline_mode<synchronous>, transform_indices = @transform_1, window_bounds = array<i64: 256, 128>}, {pipeline_mode = #tpu.pipeline_mode<synchronous>, transform_indices = @transform_2, window_bounds = array<i64: 1, 128>}, {pipeline_mode = #tpu.pipeline_mode<synchronous>, transform_indices = @transform_3, window_bounds = array<i64: 1, 128>}, {transform_indices = @transform_4, window_bounds = array<i64: 1024, 128>}]} {
    %c0 = arith.constant 0 : index
    %c0_0 = arith.constant 0 : index
    %0 = vector.load %arg1[%c0, %c0_0] : memref<1024x256xbf16, #tpu.memory_space<vmem>>, vector<1024x256xbf16>
    %c0_1 = arith.constant 0 : index
    %c0_2 = arith.constant 0 : index
    %1 = vector.load %arg2[%c0_1, %c0_2] : memref<256x128xbf16, #tpu.memory_space<vmem>>, vector<256x128xbf16>
    %cst = arith.constant dense<0.000000e+00> : vector<1024x128xf32>
    %2 = tpu.matmul %0, %1, %cst {dimension_numbers = #tpu.dot_dimension_numbers<[1], [0], [0], [1], [0, 0, 1, 1], [], []>} : vector<1024x256xbf16>, vector<256x128xbf16>, vector<1024x128xf32> -> vector<1024x128xf32>
    %cst_3 = arith.constant 0.000000e+00 : f32
    %3 = vector.broadcast %cst_3 : f32 to vector<1024x128xf32>
    %4 = arith.maximumf %2, %3 : vector<1024x128xf32>
    %c0_4 = arith.constant 0 : index
    %c0_5 = arith.constant 0 : index
    %5 = vector.load %arg3[%c0_4, %c0_5] : memref<1x128xf32, #tpu.memory_space<vmem>>, vector<1x128xf32>
    %6 = vector.broadcast %5 : vector<1x128xf32> to vector<1024x128xf32>
    %7 = arith.mulf %4, %6 : vector<1024x128xf32>
    %c0_6 = arith.constant 0 : index
    %c0_7 = arith.constant 0 : index
    %8 = vector.load %arg4[%c0_6, %c0_7] : memref<1x128xf32, #tpu.memory_space<vmem>>, vector<1x128xf32>
    %9 = vector.broadcast %8 : vector<1x128xf32> to vector<1024x128xf32>
    %10 = arith.addf %7, %9 : vector<1024x128xf32>
    %11 = arith.truncf %10 : vector<1024x128xf32> to vector<1024x128xbf16>
    %c0_8 = arith.constant 0 : index
    %c0_9 = arith.constant 0 : index
    %12 = vector.load %arg5[%c0_8, %c0_9] : memref<1024x128xbf16, #tpu.memory_space<vmem>>, vector<1024x128xbf16>
    tpu.vector_store %arg5[%c0_8, %c0_9], %11 {strides = array<i32>} : memref<1024x128xbf16, #tpu.memory_space<vmem>>, vector<1024x128xbf16>,
    return
  }
  func.func @transform_0(%arg0: i32) -> (i32, i32) {
    %c0_i32 = arith.constant 0 : i32
    %c0_i32_0 = arith.constant 0 : i32
    return %arg0, %c0_i32 : i32, i32
  }
  func.func @transform_1(%arg0: i32) -> (i32, i32) {
    %c0_i32 = arith.constant 0 : i32
    %c0_i32_0 = arith.constant 0 : i32
    %c0_i32_1 = arith.constant 0 : i32
    return %c0_i32, %c0_i32_0 : i32, i32
  }
  func.func @transform_2(%arg0: i32) -> (i32, i32) {
    %c0_i32 = arith.constant 0 : i32
    %c0_i32_0 = arith.constant 0 : i32
    %c0_i32_1 = arith.constant 0 : i32
    return %c0_i32, %c0_i32_0 : i32, i32
  }
  func.func @transform_3(%arg0: i32) -> (i32, i32) {
    %c0_i32 = arith.constant 0 : i32
    %c0_i32_0 = arith.constant 0 : i32
    %c0_i32_1 = arith.constant 0 : i32
    return %c0_i32, %c0_i32_0 : i32, i32
  }
  func.func @transform_4(%arg0: i32) -> (i32, i32) {
    %c0_i32 = arith.constant 0 : i32
    %c0_i32_0 = arith.constant 0 : i32
    return %arg0, %c0_i32 : i32, i32
  }
}

module attributes {stable_mosaic.version = 11 : i64} {
  func.func @_matmul_relu_bn_kernel(%arg0: i32, %arg1: memref<1024x512xbf16, #tpu.memory_space<vmem>>, %arg2: memref<512x128xbf16, #tpu.memory_space<vmem>>, %arg3: memref<1x128xf32, #tpu.memory_space<vmem>>, %arg4: memref<1x128xf32, #tpu.memory_space<vmem>>, %arg5: memref<1024x128xbf16, #tpu.memory_space<vmem>>) attributes {dimension_semantics = [#tpu.dimension_semantics<parallel>], iteration_bounds = array<i64: 2>, scalar_prefetch = 0 : i64, scratch_operands = 0 : i64, tpu.core_type = #tpu.core_type<tc>, window_params = [{transform_indices = @transform_0, window_bounds = array<i64: 1024, 512>}, {pipeline_mode = #tpu.pipeline_mode<synchronous>, transform_indices = @transform_1, window_bounds = array<i64: 512, 128>}, {pipeline_mode = #tpu.pipeline_mode<synchronous>, transform_indices = @transform_2, window_bounds = array<i64: 1, 128>}, {pipeline_mode = #tpu.pipeline_mode<synchronous>, transform_indices = @transform_3, window_bounds = array<i64: 1, 128>}, {transform_indices = @transform_4, window_bounds = array<i64: 1024, 128>}]} {
    %c0 = arith.constant 0 : index
    %c0_0 = arith.constant 0 : index
    %0 = vector.load %arg1[%c0, %c0_0] : memref<1024x512xbf16, #tpu.memory_space<vmem>>, vector<1024x512xbf16>
    %c0_1 = arith.constant 0 : index
    %c0_2 = arith.constant 0 : index
    %1 = vector.load %arg2[%c0_1, %c0_2] : memref<512x128xbf16, #tpu.memory_space<vmem>>, vector<512x128xbf16>
    %cst = arith.constant dense<0.000000e+00> : vector<1024x128xf32>
    %2 = tpu.matmul %0, %1, %cst {dimension_numbers = #tpu.dot_dimension_numbers<[1], [0], [0], [1], [0, 0, 1, 1], [], []>} : vector<1024x512xbf16>, vector<512x128xbf16>, vector<1024x128xf32> -> vector<1024x128xf32>
    %cst_3 = arith.constant 0.000000e+00 : f32
    %3 = vector.broadcast %cst_3 : f32 to vector<1024x128xf32>
    %4 = arith.maximumf %2, %3 : vector<1024x128xf32>
    %c0_4 = arith.constant 0 : index
    %c0_5 = arith.constant 0 : index
    %5 = vector.load %arg3[%c0_4, %c0_5] : memref<1x128xf32, #tpu.memory_space<vmem>>, vector<1x128xf32>
    %6 = vector.broadcast %5 : vector<1x128xf32> to vector<1024x128xf32>
    %7 = arith.mulf %4, %6 : vector<1024x128xf32>
    %c0_6 = arith.constant 0 : index
    %c0_7 = arith.constant 0 : index
    %8 = vector.load %arg4[%c0_6, %c0_7] : memref<1x128xf32, #tpu.memory_space<vmem>>, vector<1x128xf32>
    %9 = vector.broadcast %8 : vector<1x128xf32> to vector<1024x128xf32>
    %10 = arith.addf %7, %9 : vector<1024x128xf32>
    %11 = arith.truncf %10 : vector<1024x128xf32> to vector<1024x128xbf16>
    %c0_8 = arith.constant 0 : index
    %c0_9 = arith.constant 0 : index
    %12 = vector.load %arg5[%c0_8, %c0_9] : memref<1024x128xbf16, #tpu.memory_space<vmem>>, vector<1024x128xbf16>
    tpu.vector_store %arg5[%c0_8, %c0_9], %11 {strides = array<i32>} : memref<1024x128xbf16, #tpu.memory_space<vmem>>, vector<1024x128xbf16>,
    return
  }
  func.func @transform_0(%arg0: i32) -> (i32, i32) {
    %c0_i32 = arith.constant 0 : i32
    %c0_i32_0 = arith.constant 0 : i32
    return %arg0, %c0_i32 : i32, i32
  }
  func.func @transform_1(%arg0: i32) -> (i32, i32) {
    %c0_i32 = arith.constant 0 : i32
    %c0_i32_0 = arith.constant 0 : i32
    %c0_i32_1 = arith.constant 0 : i32
    return %c0_i32, %c0_i32_0 : i32, i32
  }
  func.func @transform_2(%arg0: i32) -> (i32, i32) {
    %c0_i32 = arith.constant 0 : i32
    %c0_i32_0 = arith.constant 0 : i32
    %c0_i32_1 = arith.constant 0 : i32
    return %c0_i32, %c0_i32_0 : i32, i32
  }
  func.func @transform_3(%arg0: i32) -> (i32, i32) {
    %c0_i32 = arith.constant 0 : i32
    %c0_i32_0 = arith.constant 0 : i32
    %c0_i32_1 = arith.constant 0 : i32
    return %c0_i32, %c0_i32_0 : i32, i32
  }
  func.func @transform_4(%arg0: i32) -> (i32, i32) {
    %c0_i32 = arith.constant 0 : i32
    %c0_i32_0 = arith.constant 0 : i32
    return %arg0, %c0_i32 : i32, i32
  }
}

module attributes {stable_mosaic.version = 11 : i64} {
  func.func @_head_kernel(%arg0: memref<8x1024xbf16, #tpu.memory_space<vmem>>, %arg1: memref<1024x128xbf16, #tpu.memory_space<vmem>>, %arg2: memref<1x128xf32, #tpu.memory_space<vmem>>, %arg3: memref<128x128xf32, #tpu.memory_space<vmem>>, %arg4: memref<1x128xf32, #tpu.memory_space<vmem>>, %arg5: memref<8x128xf32, #tpu.memory_space<vmem>>) attributes {dimension_semantics = [], scalar_prefetch = 0 : i64, scratch_operands = 0 : i64, tpu.core_type = #tpu.core_type<tc>} {
    %c0 = arith.constant 0 : index
    %c0_0 = arith.constant 0 : index
    %0 = vector.load %arg0[%c0, %c0_0] : memref<8x1024xbf16, #tpu.memory_space<vmem>>, vector<8x1024xbf16>
    %c0_1 = arith.constant 0 : index
    %c0_2 = arith.constant 0 : index
    %1 = vector.load %arg1[%c0_1, %c0_2] : memref<1024x128xbf16, #tpu.memory_space<vmem>>, vector<1024x128xbf16>
    %cst = arith.constant dense<0.000000e+00> : vector<8x128xf32>
    %2 = tpu.matmul %0, %1, %cst {dimension_numbers = #tpu.dot_dimension_numbers<[1], [0], [0], [1], [0, 0, 1, 1], [], []>} : vector<8x1024xbf16>, vector<1024x128xbf16>, vector<8x128xf32> -> vector<8x128xf32>
    %c0_3 = arith.constant 0 : index
    %c0_4 = arith.constant 0 : index
    %3 = vector.load %arg2[%c0_3, %c0_4] : memref<1x128xf32, #tpu.memory_space<vmem>>, vector<1x128xf32>
    %4 = vector.broadcast %3 : vector<1x128xf32> to vector<8x128xf32>
    %5 = arith.addf %2, %4 : vector<8x128xf32>
    %cst_5 = arith.constant 0.000000e+00 : f32
    %6 = vector.broadcast %cst_5 : f32 to vector<8x128xf32>
    %7 = arith.cmpf ogt, %5, %6 : vector<8x128xf32>
    %cst_6 = arith.constant 1.000000e-01 : f32
    %8 = vector.broadcast %cst_6 : f32 to vector<8x128xf32>
    %9 = arith.mulf %8, %5 : vector<8x128xf32>
    %10 = arith.select %7, %5, %9 : vector<8x128xi1>, vector<8x128xf32>
    %c0_7 = arith.constant 0 : index
    %c0_8 = arith.constant 0 : index
    %11 = vector.load %arg3[%c0_7, %c0_8] : memref<128x128xf32, #tpu.memory_space<vmem>>, vector<128x128xf32>
    %cst_9 = arith.constant dense<0.000000e+00> : vector<8x128xf32>
    %12 = tpu.matmul %10, %11, %cst_9 {dimension_numbers = #tpu.dot_dimension_numbers<[1], [0], [0], [1], [0, 0, 1, 1], [], []>} : vector<8x128xf32>, vector<128x128xf32>, vector<8x128xf32> -> vector<8x128xf32>
    %c0_10 = arith.constant 0 : index
    %c0_11 = arith.constant 0 : index
    %13 = vector.load %arg4[%c0_10, %c0_11] : memref<1x128xf32, #tpu.memory_space<vmem>>, vector<1x128xf32>
    %14 = vector.broadcast %13 : vector<1x128xf32> to vector<8x128xf32>
    %15 = arith.addf %12, %14 : vector<8x128xf32>
    %c0_12 = arith.constant 0 : index
    %c0_13 = arith.constant 0 : index
    %16 = vector.load %arg5[%c0_12, %c0_13] : memref<8x128xf32, #tpu.memory_space<vmem>>, vector<8x128xf32>
    tpu.vector_store %arg5[%c0_12, %c0_13], %15 {strides = array<i32>} : memref<8x128xf32, #tpu.memory_space<vmem>>, vector<8x128xf32>,
    return
  }
}

</mosaic_0001>

<bundles_post_ra>
// kernel: meso4_forward.5
= control target key start
LH: loop header
LB: loop body
LE: loop exit
PB: predicated region body
PF: predicated region fallthrough
CT: control target
= control target key end

     0   :  { %9 = vsyncpa [#allocation3], 0  ;;  %s4276_s0 = inlined_call_operand.hbm [shape: bf16[131072,128], index: 0, kind: input, shape index: {}]   ;;  %s4277_s1 = inlined_call_operand.vmem [shape: bf16[128,128], index: 1, kind: input, shape index: {}]   ;;  %s4278_s2 = inlined_call_operand.vmem [shape: f32[1,128], index: 2, kind: input, shape index: {}]   ;;  %s4279_s3 = inlined_call_operand.vmem [shape: f32[1,128], index: 3, kind: input, shape index: {}]   ;;  %s4280_s4 = inlined_call_operand.hbm [shape: bf16[131072,128], index: 4, kind: output, shape index: {}]  }
   0x1   :  { %11 = vsyncpa [#allocation3 + $0x1], 0 }
   0x2   :  { %12 = vsyncpa [#allocation4], 0 }
   0x3   :  { %14 = vsyncpa [#allocation4 + $0x1], 0  ;;  %s3679_s15 = smov 0   ;;  %s3681_s16 = smov 0  }
   0x4   :  { %s3683_s17 = smov 0   ;;  %s3685_s18 = smov 0  }
   0x5 LB: > { %s3700_s19 = sadd.s32 4294967295, %s3646_s18   ;;  %s2465_s20 = sadd.s32 4294967294, %s3646_s18   ;;  %s3646_s18 = sphi %s3685_s18, %s4292_s18   ;;  %s3642_s17 = sphi %s3683_s17, %s4291_s17   ;;  %s3638_s16 = sphi %s3681_s16, %s4290_s16   ;;  %s3634_s15 = sphi %s3679_s15, %s4289_s15  }
   0x6   : > { %s3704_s21 = sadd.s32 1, %s3646_s18   ;;  %s27_s22 = sadd.s32 1, %s3642_s17 }
   0x7   : > { %s24_s23 = ssub.s32 %s3646_s18, %s3704_s21  ;;  %p34_p0 = scmp.ne.s32.totalorder %s3642_s17, %s3638_s16 }
   0x8   : > { %p25_p1 = scmp.eq.s32.totalorder %s24_s23, 0  ;;  %p35_p2 = scmp.eq.s32.totalorder %s3646_s18, 0 }
   0x9   : > { %p40_p3 = scmp.ne.s32.totalorder %s3638_s16, %s3634_s15  ;;  %p41_p4 = scmp.eq.s32.totalorder %s3700_s19, 0 }
   0xa   : > { %s3716_s24 = scalar_select %p25_p1, %s3642_s17, %s27_s22  }
   0xb   : > { %p3718_p5 = por %p35_p2, %p34_p0  ;;  %p3722_p6 = por %p41_p4, %p40_p3 }
   0xc   : > { %p127_p7 = scmp.eq.s32.totalorder %s3700_s19, 127  ;;  %p133_p8 = scmp.eq.s32.totalorder %s2465_s20, 127 }
   0xd   : > { %p3438_p9 = scmp.lt.s32.totalorder %s3646_s18, 128  ;;  %s162_s29 = sand.u32 1, %s3642_s17  }
   0xe   : > { %p3728_p10 = por %p127_p7, %p34_p0  ;;  %p3732_p11 = por %p133_p8, %p40_p3 }
   0xf   : > { %s2681_s30 = sshll.u32 %s3646_s18, 13  ;;  %s2468_s5 = sshll.u32 %s162_s29, 9 }
  0x10   : > { %s4284_s27 = scalar_select %p3728_p10, 1, 0 }
  0x11   : > { %s4285_s28 = scalar_select %p3732_p11, 1, 0 }
  0x12   : > { %s3741_s8 = scalar_lea.hbm %s4276_s0, %s2681_s30  ;;  %s166_s9 = scalar_lea.vmem [#allocation2], %s2468_s5 }
  0x13   : > { %s173_s10 = sshll.u32 %s166_s9, 4  ;;  %p3745_p12 = pnand %p3438_p9, %p3718_p5  ;;  %s3749_s10 = int_to_ptr.vmem [resolvable:$true] %s173_s10 }
  0x14   : > { %s3751_s12 = scalar_lea.sflag [#allocation3], %s162_s29  ;;  %s3550_s13 = scalar_lea.hbm %s3741_s8, 8192 }
  0x15   : > { %p3551_p13 = scmp.ne.s32.totalorder %s3741_s8, %s3550_s13  ;;  %p3552_p0 = pneg %p3745_p12 }
  0x16   : > { %s3555_s22 = scalar_lea.hbm %s4276_s0, 1048576  ;;  %p3556_p3 = scmp.lt.u32.totalorder %s3741_s8, %s4276_s0 }
  0x17   : > { %p3553_p1 = pnand %p3552_p0, %p3551_p13  ;;  %p3557_p4 = scmp.lt.u32.totalorder %s3555_s22, %s3550_s13 }
  0x18   : > { %p3559_p7 = scmp.lt.u32.totalorder %s3550_s13, %s3741_s8 }
  0x19   : > { %p3554_p2 = pneg %p3553_p1  ;;  %p3558_p5 = por %p3557_p4, %p3556_p3 }
  0x1b   : > { %p3560_p8 = por %p3559_p7, %p3558_p5 }
  0x1d   : > { %p3561_p9 = pnand %p3560_p8, %p3554_p2 }
  0x1f   : > { %3564 = shalt.err (!%p3561_p9)
}
  0x20   : > { %s3565_s29 = scalar_lea.vmem %s3749_s10, 8192  ;;  %s3648_s30 = smov [#allocation2]  }
  0x21   : > { %p3566_p13 = scmp.ne.s32.totalorder %s3749_s10, %s3565_s29  ;;  %s3570_s5 = sshll.u32 %s3648_s30, 4  ;;  %s3571_s5 = int_to_ptr.vmem [resolvable:$false] %s3570_s5 }
  0x22   : > { %s3572_s6 = scalar_lea.vmem %s3571_s5, 16384  ;;  %p3573_p10 = scmp.lt.s32.totalorder %s3749_s10, %s3571_s5 }
  0x23   : > { %p3568_p1 = pnand %p3566_p13, %p3552_p0  ;;  %p3574_p3 = scmp.lt.s32.totalorder %s3572_s6, %s3565_s29 }
  0x25   : > { %p3569_p11 = pneg %p3568_p1  ;;  %p3575_p4 = por %p3574_p3, %p3573_p10 }
  0x27   : > { %p3576_p5 = pnand %p3575_p4, %p3569_p11 }
  0x29   : > { %3579 = shalt.err (!%p3576_p5)
}
  0x2a   : > { %s3649_s7 = smov 64   ;;  %s3650_s9 = smov 4  }
  0x2b   : > { %3433 = dma.hbm_to_vmem [thread:$0]  (!%p3745_p12), %s3741_s8, 8192, %s3749_s10, %s3751_s12, %s3649_s7, %s3649_s7, %s3650_s9  }
  0x2c   : > { %p2471_p0 = scmp.ge.s32.totalorder %s3646_s18, 1  ;;  %p181_p2 = scmp.lt.s32.totalorder %s3646_s18, 129 }
  0x2e   : > { %p182_p7 = pnand %p2471_p0, %p181_p2 }
  0x2f   : > { %s3782_s13 = sand.u32 (!%p182_p7), 1, %s3638_s16  }
  0x30   : > { %185 = sbr.rel (%p182_p7) target bundleno = 447 (0x1bf), region = 36  ;;  %s2472_s14 = sshll.u32 (!%p182_p7), %s3782_s13, 9 }
  0x31   : > { %s188_s20 = scalar_lea.sflag (!%p182_p7), [#allocation3], %s3782_s13  ;;  %s3788_s22 = scalar_lea.vmem (!%p182_p7), [#allocation2], %s2472_s14 }
  0x37   : > { %3625 = dma.done.wait (%p3722_p6), %s188_s20, 8192  }
  0x38   : > { %3627 = vsyncadd (%p3722_p6), %s188_s20, 4294959104  ;;  %v3476_v0 = vld [vmem:[%s4277_s1] sm:$0xff]   ;;  %v3477_v1 = vld [vmem:[%s4277_s1 + $0x8] sm:$0xff]   ;;  %s3910_s25 = scalar_lea.vmem [#allocation5], %s2472_s14  ;;  %s2810_s5 = sshll.u32 %s3700_s19, 13 }
  0x39   : > { %3266 = vmatprep.subr.bf16.mxu0 %v3476_v0  ;;  %3410 = vmatprep.subr.bf16.mxu1 %v3476_v0  ;;  %v3478_v2 = vld [vmem:[%s4277_s1 + $0x10] sm:$0xff]   ;;  %v3479_v3 = vld [vmem:[%s4277_s1 + $0x18] sm:$0xff]   ;;  %v3484_v4 = vld [vmem:[%s3788_s22] sm:$0xff]   ;;  %s2392_s6 = sshll.u32 %s3910_s25, 4  ;;  %s4227_s9 = scalar_lea.hbm %s4280_s4, %s2810_s5  ;;  %s4229_s6 = int_to_ptr.vmem [resolvable:$true] %s2392_s6 }
  0x3a   : > { %3267 = vmatpush3.bf16.msra.mxu0 %v3476_v0  ;;  %3418 = vmatpush3.bf16.msra.mxu1 %v3476_v0  ;;  %v3485_v5 = vld [vmem:[%s3788_s22 + $0x100] sm:$0xff]   ;;  %v3481_v7 = vld [vmem:[%s4277_s1 + $0x28] sm:$0xff]   ;;  %v3482_v8 = vld [vmem:[%s4277_s1 + $0x30] sm:$0xff]   ;;  %s2379_s20 = scalar_lea.sflag [#allocation4], %s3782_s13  ;;  %s3580_s8 = scalar_lea.vmem %s4229_s6, 8192 }
  0x3b   : > { %3268 = vmatprep.subr.bf16.mxu0 %v3477_v1  ;;  %3411 = vmatprep.subr.bf16.mxu1 %v3477_v1  ;;  %v3480_v6 = vld [vmem:[%s4277_s1 + $0x20] sm:$0xff]   ;;  %v3483_v9 = vld [vmem:[%s4277_s1 + $0x38] sm:$0xff]   ;;  %v3486_v10 = vld [vmem:[%s3788_s22 + $0x8] sm:$0xff]   ;;  %p3581_p6 = scmp.ne.s32.totalorder %s4229_s6, %s3580_s8  ;;  %p4287_p10 = scmp.ne.s32.totalorder %s4284_s27, 0 }
  0x3c   : > { %3282 = vmatprep.mubr.bf16.mxu0 %v3484_v4  ;;  %3346 = vmatprep.mubr.bf16.mxu1 %v3485_v5  ;;  %v3487_v11 = vld [vmem:[%s3788_s22 + $0x108] sm:$0xff]   ;;  %v3488_v12 = vld [vmem:[%s3788_s22 + $0x10] sm:$0xff]   ;;  %v3490_v14 = vld [vmem:[%s3788_s22 + $0x18] sm:$0xff]   ;;  %s3651_s10 = smov [#allocation5]  }
  0x3d   : > { %v3489_v13 = vld [vmem:[%s3788_s22 + $0x110] sm:$0xff]   ;;  %v3491_v15 = vld [vmem:[%s3788_s22 + $0x118] sm:$0xff]   ;;  %v3492_v16 = vld [vmem:[%s3788_s22 + $0x20] sm:$0xff]   ;;  %p3582_p11 = pnand %p3581_p6, %p4287_p10  ;;  %s3584_s11 = sshll.u32 %s3651_s10, 4  ;;  %s3585_s11 = int_to_ptr.vmem [resolvable:$false] %s3584_s11 }
  0x3e   : > { %3269 = vmatpush3.bf16.msra.mxu0 %v3477_v1  ;;  %3419 = vmatpush3.bf16.msra.mxu1 %v3477_v1  ;;  %v3493_v17 = vld [vmem:[%s3788_s22 + $0x120] sm:$0xff]   ;;  %v3494_v18 = vld [vmem:[%s3788_s22 + $0x28] sm:$0xff]   ;;  %v3496_v20 = vld [vmem:[%s3788_s22 + $0x30] sm:$0xff]   ;;  %s3586_s12 = scalar_lea.vmem %s3585_s11, 16384  ;;  %p3587_p8 = scmp.lt.s32.totalorder %s4229_s6, %s3585_s11 }
  0x3f   : > { %3270 = vmatprep.subr.bf16.mxu0 %v3478_v2  ;;  %3412 = vmatprep.subr.bf16.mxu1 %v3478_v2  ;;  %v3495_v19 = vld [vmem:[%s3788_s22 + $0x128] sm:$0xff]   ;;  %v3497_v21 = vld [vmem:[%s3788_s22 + $0x130] sm:$0xff]   ;;  %v3498_v22 = vld [vmem:[%s3788_s22 + $0x38] sm:$0xff]   ;;  %p3583_p12 = pneg %p3582_p11  ;;  %p3588_p9 = scmp.lt.s32.totalorder %s3586_s12, %s3580_s8 }
  0x40   : > { %v3499_v23 = vld [vmem:[%s3788_s22 + $0x138] sm:$0xff]   ;;  %v3500_v24 = vld [vmem:[%s3788_s22 + $0x40] sm:$0xff]   ;;  %v3502_v26 = vld [vmem:[%s3788_s22 + $0x48] sm:$0xff]  }
  0x41   : > { %v3501_v25 = vld [vmem:[%s3788_s22 + $0x140] sm:$0xff]   ;;  %v3503_v27 = vld [vmem:[%s3788_s22 + $0x148] sm:$0xff]   ;;  %v3504_v28 = vld [vmem:[%s3788_s22 + $0x50] sm:$0xff]   ;;  %p3589_p13 = por %p3588_p9, %p3587_p8 }
  0x42   : > { %3271 = vmatpush3.bf16.msra.mxu0 %v3478_v2  ;;  %3420 = vmatpush3.bf16.msra.mxu1 %v3478_v2  ;;  %v3505_v29 = vld [vmem:[%s3788_s22 + $0x150] sm:$0xff]   ;;  %v3506_v30 = vld [vmem:[%s3788_s22 + $0x58] sm:$0xff]   ;;  %v3508_v32 = vld [vmem:[%s3788_s22 + $0x60] sm:$0xff]  }
  0x43   : > { %3272 = vmatprep.subr.bf16.mxu0 %v3479_v3  ;;  %3413 = vmatprep.subr.bf16.mxu1 %v3479_v3  ;;  %v3507_v31 = vld [vmem:[%s3788_s22 + $0x158] sm:$0xff]   ;;  %v3509_v33 = vld [vmem:[%s3788_s22 + $0x160] sm:$0xff]   ;;  %v3510_v34 = vld [vmem:[%s3788_s22 + $0x68] sm:$0xff]   ;;  %p3590_p1 = pnand %p3589_p13, %p3583_p12 }
  0x44   : > { %v3511_v35 = vld [vmem:[%s3788_s22 + $0x168] sm:$0xff]   ;;  %v3512_v36 = vld [vmem:[%s3788_s22 + $0x70] sm:$0xff]   ;;  %v3514_v38 = vld [vmem:[%s3788_s22 + $0x78] sm:$0xff]  }
  0x45   : > { %v3513_v37 = vld [vmem:[%s3788_s22 + $0x170] sm:$0xff]   ;;  %v3515_v39 = vld [vmem:[%s3788_s22 + $0x178] sm:$0xff]   ;;  %v3516_v40 = vld [vmem:[%s3788_s22 + $0x80] sm:$0xff]  }
  0x46   : > { %3273 = vmatpush3.bf16.msra.mxu0 %v3479_v3  ;;  %3421 = vmatpush3.bf16.msra.mxu1 %v3479_v3  ;;  %v3517_v41 = vld [vmem:[%s3788_s22 + $0x180] sm:$0xff]   ;;  %v3518_v42 = vld [vmem:[%s3788_s22 + $0x88] sm:$0xff]   ;;  %v3520_v44 = vld [vmem:[%s3788_s22 + $0x90] sm:$0xff]  }
  0x47   : > { %3274 = vmatprep.subr.bf16.mxu0 %v3480_v6  ;;  %3414 = vmatprep.subr.bf16.mxu1 %v3480_v6  ;;  %v3519_v43 = vld [vmem:[%s3788_s22 + $0x188] sm:$0xff]   ;;  %v3521_v45 = vld [vmem:[%s3788_s22 + $0x190] sm:$0xff]   ;;  %v3522_v46 = vld [vmem:[%s3788_s22 + $0x98] sm:$0xff]  }
  0x48   : > { %v3523_v47 = vld [vmem:[%s3788_s22 + $0x198] sm:$0xff]   ;;  %v3524_v48 = vld [vmem:[%s3788_s22 + $0xa0] sm:$0xff]   ;;  %v3526_v50 = vld [vmem:[%s3788_s22 + $0xa8] sm:$0xff]  }
  0x49   : > { %v3525_v49 = vld [vmem:[%s3788_s22 + $0x1a0] sm:$0xff]   ;;  %v3527_v51 = vld [vmem:[%s3788_s22 + $0x1a8] sm:$0xff]   ;;  %v3528_v52 = vld [vmem:[%s3788_s22 + $0xb0] sm:$0xff]  }
  0x4a   : > { %3275 = vmatpush3.bf16.msra.mxu0 %v3480_v6  ;;  %3422 = vmatpush3.bf16.msra.mxu1 %v3480_v6  ;;  %v3529_v53 = vld [vmem:[%s3788_s22 + $0x1b0] sm:$0xff]   ;;  %v3530_v54 = vld [vmem:[%s3788_s22 + $0xb8] sm:$0xff]   ;;  %v3532_v56 = vld [vmem:[%s3788_s22 + $0xc0] sm:$0xff]  }
  0x4b   : > { %3276 = vmatprep.subr.bf16.mxu0 %v3481_v7  ;;  %3415 = vmatprep.subr.bf16.mxu1 %v3481_v7  ;;  %v3531_v55 = vld [vmem:[%s3788_s22 + $0x1b8] sm:$0xff]   ;;  %v3533_v57 = vld [vmem:[%s3788_s22 + $0x1c0] sm:$0xff]   ;;  %v3534_v58 = vld [vmem:[%s3788_s22 + $0xc8] sm:$0xff]  }
  0x4c   : > { %v3535_v59 = vld [vmem:[%s3788_s22 + $0x1c8] sm:$0xff]   ;;  %v3536_v60 = vld [vmem:[%s3788_s22 + $0xd0] sm:$0xff]   ;;  %v3538_v62 = vld [vmem:[%s3788_s22 + $0xd8] sm:$0xff]  }
  0x4d   : > { %v3537_v61 = vld [vmem:[%s3788_s22 + $0x1d0] sm:$0xff]   ;;  %v3539_v63 = vld [vmem:[%s3788_s22 + $0x1d8] sm:$0xff]   ;;  %v3540_v0 = vld [vmem:[%s3788_s22 + $0xe0] sm:$0xff]  }
  0x4e   : > { %3277 = vmatpush3.bf16.msra.mxu0 %v3481_v7  ;;  %3423 = vmatpush3.bf16.msra.mxu1 %v3481_v7  ;;  %v3541_v1 = vld [vmem:[%s3788_s22 + $0x1e0] sm:$0xff]   ;;  %v3542_v2 = vld [vmem:[%s3788_s22 + $0xe8] sm:$0xff]   ;;  %v3544_v4 = vld [vmem:[%s3788_s22 + $0xf0] sm:$0xff]  }
  0x4f   : > { %3278 = vmatprep.subr.bf16.mxu0 %v3482_v8  ;;  %3416 = vmatprep.subr.bf16.mxu1 %v3482_v8  ;;  %v3543_v3 = vld [vmem:[%s3788_s22 + $0x1e8] sm:$0xff]   ;;  %v3545_v5 = vld [vmem:[%s3788_s22 + $0x1f0] sm:$0xff]   ;;  %v3546_v6 = vld [vmem:[%s3788_s22 + $0xf8] sm:$0xff]  }
  0x50   : > { %v3547_v7 = vld [vmem:[%s3788_s22 + $0x1f8] sm:$0xff]  }
  0x52   : > { %3279 = vmatpush3.bf16.msra.mxu0 %v3482_v8  ;;  %3424 = vmatpush3.bf16.msra.mxu1 %v3482_v8 }
  0x53   : > { %3280 = vmatprep.subr.bf16.mxu0 %v3483_v9  ;;  %3417 = vmatprep.subr.bf16.mxu1 %v3483_v9 }
  0x56   : > { %3281 = vmatpush3.bf16.msra.mxu0 %v3483_v9  ;;  %3425 = vmatpush3.bf16.msra.mxu1 %v3483_v9  ;;  %v3885_v9 = vld [vmem:[%s4278_s2] ss:$0 sm:$0xff] }
  0x59   : > { %3283 = vmatmul.mubr.bf16.vlgmr.msra.gmra.mrb[0].mxu0 %v3486_v10  ;;  %3347 = vmatmul.mubr.bf16.vlgmr.msra.gmra.mrb[0].mxu1 %v3487_v11 }
  0x5a   : > { %3286 = vmatprep.mubr.bf16.mxu0 %v3488_v12  ;;  %3350 = vmatprep.mubr.bf16.mxu1 %v3489_v13 }
  0x61   : > { %3287 = vmatmul.mubr.bf16.gmra.mrb[4].mxu0 %v3490_v14  ;;  %3351 = vmatmul.mubr.bf16.gmra.mrb[4].mxu1 %v3491_v15 }
  0x62   : > { %3290 = vmatprep.mubr.bf16.mxu0 %v3492_v16  ;;  %3354 = vmatprep.mubr.bf16.mxu1 %v3493_v17 }
  0x69   : > { %3291 = vmatmul.mubr.bf16.gmra.mrb[8].mxu0 %v3494_v18  ;;  %3355 = vmatmul.mubr.bf16.gmra.mrb[8].mxu1 %v3495_v19 }
  0x6a   : > { %3294 = vmatprep.mubr.bf16.mxu0 %v3496_v20  ;;  %3358 = vmatprep.mubr.bf16.mxu1 %v3497_v21 }
  0x71   : > { %3295 = vmatmul.mubr.bf16.gmra.mrb[12].mxu0 %v3498_v22  ;;  %3359 = vmatmul.mubr.bf16.gmra.mrb[12].mxu1 %v3499_v23 }
  0x72   : > { %3298 = vmatprep.mubr.bf16.mxu0 %v3500_v24  ;;  %3362 = vmatprep.mubr.bf16.mxu1 %v3501_v25  ;;  %v3892_v25 = vld [vmem:[%s4279_s3] ss:$0 sm:$0xff] }
  0x79   : > { %3299 = vmatmul.mubr.bf16.gmra.mrb[16].mxu0 %v3502_v26  ;;  %3363 = vmatmul.mubr.bf16.gmra.mrb[16].mxu1 %v3503_v27 }
  0x7a   : > { %3302 = vmatprep.mubr.bf16.mxu0 %v3504_v28  ;;  %3366 = vmatprep.mubr.bf16.mxu1 %v3505_v29 }
  0x81   : > { %3303 = vmatmul.mubr.bf16.gmra.mrb[20].mxu0 %v3506_v30  ;;  %3367 = vmatmul.mubr.bf16.gmra.mrb[20].mxu1 %v3507_v31 }
  0x82   : > { %3306 = vmatprep.mubr.bf16.mxu0 %v3508_v32  ;;  %3370 = vmatprep.mubr.bf16.mxu1 %v3509_v33 }
  0x89   : > { %3307 = vmatmul.mubr.bf16.gmra.mrb[24].mxu0 %v3510_v34  ;;  %3371 = vmatmul.mubr.bf16.gmra.mrb[24].mxu1 %v3511_v35 }
  0x8a   : > { %3310 = vmatprep.mubr.bf16.mxu0 %v3512_v36  ;;  %3374 = vmatprep.mubr.bf16.mxu1 %v3513_v37 }
  0x91   : > { %3311 = vmatmul.mubr.bf16.gmra.mrb[28].mxu0 %v3514_v38  ;;  %3375 = vmatmul.mubr.bf16.gmra.mrb[28].mxu1 %v3515_v39 }
  0x92   : > { %3314 = vmatprep.mubr.bf16.mxu0 %v3516_v40  ;;  %3378 = vmatprep.mubr.bf16.mxu1 %v3517_v41 }
  0x99   : > { %3315 = vmatmul.mubr.bf16.gmra.mrb[32].mxu0 %v3518_v42  ;;  %3379 = vmatmul.mubr.bf16.gmra.mrb[32].mxu1 %v3519_v43 }
  0x9a   : > { %3318 = vmatprep.mubr.bf16.mxu0 %v3520_v44  ;;  %3382 = vmatprep.mubr.bf16.mxu1 %v3521_v45 }
  0xa1   : > { %3319 = vmatmul.mubr.bf16.gmra.mrb[36].mxu0 %v3522_v46  ;;  %3383 = vmatmul.mubr.bf16.gmra.mrb[36].mxu1 %v3523_v47 }
  0xa2   : > { %3322 = vmatprep.mubr.bf16.mxu0 %v3524_v48  ;;  %3386 = vmatprep.mubr.bf16.mxu1 %v3525_v49 }
  0xa9   : > { %3323 = vmatmul.mubr.bf16.gmra.mrb[40].mxu0 %v3526_v50  ;;  %3387 = vmatmul.mubr.bf16.gmra.mrb[40].mxu1 %v3527_v51 }
  0xaa   : > { %3326 = vmatprep.mubr.bf16.mxu0 %v3528_v52  ;;  %3390 = vmatprep.mubr.bf16.mxu1 %v3529_v53 }
  0xb1   : > { %3327 = vmatmul.mubr.bf16.gmra.mrb[44].mxu0 %v3530_v54  ;;  %3391 = vmatmul.mubr.bf16.gmra.mrb[44].mxu1 %v3531_v55 }
  0xb2   : > { %3330 = vmatprep.mubr.bf16.mxu0 %v3532_v56  ;;  %3394 = vmatprep.mubr.bf16.mxu1 %v3533_v57 }
  0xb9   : > { %3331 = vmatmul.mubr.bf16.gmra.mrb[48].mxu0 %v3534_v58  ;;  %3395 = vmatmul.mubr.bf16.gmra.mrb[48].mxu1 %v3535_v59 }
  0xba   : > { %3334 = vmatprep.mubr.bf16.mxu0 %v3536_v60  ;;  %3398 = vmatprep.mubr.bf16.mxu1 %v3537_v61 }
  0xc1   : > { %3335 = vmatmul.mubr.bf16.gmra.mrb[52].mxu0 %v3538_v62  ;;  %3399 = vmatmul.mubr.bf16.gmra.mrb[52].mxu1 %v3539_v63 }
  0xc2   : > { %3338 = vmatprep.mubr.bf16.mxu0 %v3540_v0  ;;  %3402 = vmatprep.mubr.bf16.mxu1 %v3541_v1 }
  0xc9   : > { %3339 = vmatmul.mubr.bf16.gmra.mrb[56].mxu0 %v3542_v2  ;;  %3403 = vmatmul.mubr.bf16.gmra.mrb[56].mxu1 %v3543_v3 }
  0xca   : > { %3342 = vmatprep.mubr.bf16.mxu0 %v3544_v4  ;;  %3406 = vmatprep.mubr.bf16.mxu1 %v3545_v5 }
  0xd1   : > { %3343 = vmatmul.mubr.bf16.gmra.mrb[60].mxu0 %v3546_v6  ;;  %3407 = vmatmul.mubr.bf16.gmra.mrb[60].mxu1 %v3547_v7 }
 0x12c   : > { %v3284_v8 = vpop.f32.mrb[0].mxu0  ;;  %v3348_v10 = vpop.f32.mrb[0].mxu1 }
 0x12d   : > { %v1342_v11 = vmax.f32 %v3284_v8, 0.0  ;;  %v1406_v12 = vmax.f32 %v3348_v10, 0.0  ;;  %v829_v13 = vpop.f32.mrb[1].mxu0  ;;  %v1085_v14 = vpop.f32.mrb[1].mxu1 }
 0x12e   : > { %v1340_v15 = vmax.f32 %v829_v13, 0.0  ;;  %v1404_v16 = vmax.f32 %v1085_v14, 0.0  ;;  %v3285_v17 = vpop.f32.mrb[2].mxu0  ;;  %v3349_v18 = vpop.f32.mrb[2].mxu1 }
 0x12f   : > { %v1477_v19 = vmul.f32 %v3885_v9, %v1342_v11  ;;  %v1541_v20 = vmul.f32 %v3885_v9, %v1406_v12  ;;  %v1343_v21 = vmax.f32 %v3285_v17, 0.0  ;;  %v1407_v22 = vmax.f32 %v3349_v18, 0.0  ;;  %v832_v23 = vpop.f32.mrb[3].mxu0  ;;  %v1088_v24 = vpop.f32.mrb[3].mxu1 }
 0x130   : > { %v1475_v26 = vmul.f32 %v3885_v9, %v1340_v15  ;;  %v1539_v27 = vmul.f32 %v3885_v9, %v1404_v16  ;;  %v1341_v28 = vmax.f32 %v832_v23, 0.0  ;;  %v1405_v29 = vmax.f32 %v1088_v24, 0.0 }
 0x131   : > { %v1478_v30 = vmul.f32 %v3885_v9, %v1343_v21  ;;  %v1542_v31 = vmul.f32 %v3885_v9, %v1407_v22  ;;  %v1612_v34 = vadd.f32 %v3892_v25, %v1477_v19  ;;  %v1676_v35 = vadd.f32 %v3892_v25, %v1541_v20 }
 0x132   : > { %v1476_v32 = vmul.f32 %v3885_v9, %v1341_v28  ;;  %v1540_v33 = vmul.f32 %v3885_v9, %v1405_v29  ;;  %v1610_v38 = vadd.f32 %v3892_v25, %v1475_v26  ;;  %v1674_v39 = vadd.f32 %v3892_v25, %v1539_v27 }
 0x133   : > { %v1613_v36 = vadd.f32 %v3892_v25, %v1478_v30  ;;  %v1677_v37 = vadd.f32 %v3892_v25, %v1542_v31 }
 0x134   : > { %v1611_v40 = vadd.f32 %v3892_v25, %v1476_v32  ;;  %v1675_v41 = vadd.f32 %v3892_v25, %v1540_v33  ;;  %v3288_v42 = vpop.f32.mrb[4].mxu0  ;;  %v3352_v43 = vpop.f32.mrb[4].mxu1 }
 0x135   : > { %v2819_v44 = vpack.c.bf16 %v1613_v36, %v1612_v34  ;;  %v2979_v45 = vpack.c.bf16 %v1677_v37, %v1676_v35  ;;  %v1346_v46 = vmax.f32 %v3288_v42, 0.0  ;;  %v1410_v47 = vmax.f32 %v3352_v43, 0.0  ;;  %v845_v48 = vpop.f32.mrb[5].mxu0  ;;  %v1101_v49 = vpop.f32.mrb[5].mxu1 }
 0x136   : > { %v2814_v50 = vpack.c.bf16 %v1611_v40, %v1610_v38  ;;  %v2974_v51 = vpack.c.bf16 %v1675_v41, %v1674_v39  ;;  %v1344_v52 = vmax.f32 %v845_v48, 0.0  ;;  %v1408_v53 = vmax.f32 %v1101_v49, 0.0  ;;  %v3289_v54 = vpop.f32.mrb[6].mxu0  ;;  %v3353_v55 = vpop.f32.mrb[6].mxu1 }
 0x137   : > { %3131 = vst [vmem:[%s3910_s25 + $0x8] sm:$0xff] %v2819_v44   ;;  %3163 = vst [vmem:[%s3910_s25 + $0x108] sm:$0xff] %v2979_v45   ;;  %v1481_v56 = vmul.f32 %v3885_v9, %v1346_v46  ;;  %v1545_v57 = vmul.f32 %v3885_v9, %v1410_v47  ;;  %v1347_v58 = vmax.f32 %v3289_v54, 0.0  ;;  %v1411_v59 = vmax.f32 %v3353_v55, 0.0  ;;  %v848_v60 = vpop.f32.mrb[7].mxu0  ;;  %v1104_v61 = vpop.f32.mrb[7].mxu1 }
 0x138   : > { %2815 = vst [vmem:[%s3910_s25] sm:$0xff] %v2814_v50   ;;  %3162 = vst [vmem:[%s3910_s25 + $0x100] sm:$0xff] %v2974_v51   ;;  %v1479_v62 = vmul.f32 %v3885_v9, %v1344_v52  ;;  %v1543_v63 = vmul.f32 %v3885_v9, %v1408_v53  ;;  %v1345_v0 = vmax.f32 %v848_v60, 0.0  ;;  %v1409_v1 = vmax.f32 %v1104_v61, 0.0 }
 0x139   : > { %v1482_v2 = vmul.f32 %v3885_v9, %v1347_v58  ;;  %v1546_v3 = vmul.f32 %v3885_v9, %v1411_v59  ;;  %v1616_v6 = vadd.f32 %v3892_v25, %v1481_v56  ;;  %v1680_v7 = vadd.f32 %v3892_v25, %v1545_v57 }
 0x13a   : > { %v1480_v4 = vmul.f32 %v3885_v9, %v1345_v0  ;;  %v1544_v5 = vmul.f32 %v3885_v9, %v1409_v1  ;;  %v1614_v11 = vadd.f32 %v3892_v25, %v1479_v62  ;;  %v1678_v12 = vadd.f32 %v3892_v25, %v1543_v63 }
 0x13b   : > { %v1617_v8 = vadd.f32 %v3892_v25, %v1482_v2  ;;  %v1681_v10 = vadd.f32 %v3892_v25, %v1546_v3 }
 0x13c   : > { %v1615_v13 = vadd.f32 %v3892_v25, %v1480_v4  ;;  %v1679_v14 = vadd.f32 %v3892_v25, %v1544_v5  ;;  %v3292_v15 = vpop.f32.mrb[8].mxu0  ;;  %v3356_v16 = vpop.f32.mrb[8].mxu1 }
 0x13d   : > { %v2829_v17 = vpack.c.bf16 %v1617_v8, %v1616_v6  ;;  %v2989_v18 = vpack.c.bf16 %v1681_v10, %v1680_v7  ;;  %v1350_v19 = vmax.f32 %v3292_v15, 0.0  ;;  %v1414_v20 = vmax.f32 %v3356_v16, 0.0  ;;  %v861_v21 = vpop.f32.mrb[9].mxu0  ;;  %v1117_v22 = vpop.f32.mrb[9].mxu1 }
 0x13e   : > { %v2824_v23 = vpack.c.bf16 %v1615_v13, %v1614_v11  ;;  %v2984_v24 = vpack.c.bf16 %v1679_v14, %v1678_v12  ;;  %v1348_v26 = vmax.f32 %v861_v21, 0.0  ;;  %v1412_v27 = vmax.f32 %v1117_v22, 0.0  ;;  %v3293_v28 = vpop.f32.mrb[10].mxu0  ;;  %v3357_v29 = vpop.f32.mrb[10].mxu1 }
 0x13f   : > { %3133 = vst [vmem:[%s3910_s25 + $0x18] sm:$0xff] %v2829_v17   ;;  %3165 = vst [vmem:[%s3910_s25 + $0x118] sm:$0xff] %v2989_v18   ;;  %v1485_v30 = vmul.f32 %v3885_v9, %v1350_v19  ;;  %v1549_v31 = vmul.f32 %v3885_v9, %v1414_v20  ;;  %v1351_v32 = vmax.f32 %v3293_v28, 0.0  ;;  %v1415_v33 = vmax.f32 %v3357_v29, 0.0  ;;  %v864_v34 = vpop.f32.mrb[11].mxu0  ;;  %v1120_v35 = vpop.f32.mrb[11].mxu1 }
 0x140   : > { %3132 = vst [vmem:[%s3910_s25 + $0x10] sm:$0xff] %v2824_v23   ;;  %3164 = vst [vmem:[%s3910_s25 + $0x110] sm:$0xff] %v2984_v24   ;;  %v1483_v36 = vmul.f32 %v3885_v9, %v1348_v26  ;;  %v1547_v37 = vmul.f32 %v3885_v9, %v1412_v27  ;;  %v1349_v38 = vmax.f32 %v864_v34, 0.0  ;;  %v1413_v39 = vmax.f32 %v1120_v35, 0.0 }
 0x141   : > { %v1486_v40 = vmul.f32 %v3885_v9, %v1351_v32  ;;  %v1550_v41 = vmul.f32 %v3885_v9, %v1415_v33  ;;  %v1620_v44 = vadd.f32 %v3892_v25, %v1485_v30  ;;  %v1684_v45 = vadd.f32 %v3892_v25, %v1549_v31 }
 0x142   : > { %v1484_v42 = vmul.f32 %v3885_v9, %v1349_v38  ;;  %v1548_v43 = vmul.f32 %v3885_v9, %v1413_v39  ;;  %v1618_v48 = vadd.f32 %v3892_v25, %v1483_v36  ;;  %v1682_v49 = vadd.f32 %v3892_v25, %v1547_v37 }
 0x143   : > { %v1621_v46 = vadd.f32 %v3892_v25, %v1486_v40  ;;  %v1685_v47 = vadd.f32 %v3892_v25, %v1550_v41 }
 0x144   : > { %v1619_v50 = vadd.f32 %v3892_v25, %v1484_v42  ;;  %v1683_v51 = vadd.f32 %v3892_v25, %v1548_v43  ;;  %v3296_v52 = vpop.f32.mrb[12].mxu0  ;;  %v3360_v53 = vpop.f32.mrb[12].mxu1 }
 0x145   : > { %v2839_v54 = vpack.c.bf16 %v1621_v46, %v1620_v44  ;;  %v2999_v55 = vpack.c.bf16 %v1685_v47, %v1684_v45  ;;  %v1354_v56 = vmax.f32 %v3296_v52, 0.0  ;;  %v1418_v57 = vmax.f32 %v3360_v53, 0.0  ;;  %v877_v58 = vpop.f32.mrb[13].mxu0  ;;  %v1133_v59 = vpop.f32.mrb[13].mxu1 }
 0x146   : > { %v2834_v60 = vpack.c.bf16 %v1619_v50, %v1618_v48  ;;  %v2994_v61 = vpack.c.bf16 %v1683_v51, %v1682_v49  ;;  %v1352_v62 = vmax.f32 %v877_v58, 0.0  ;;  %v1416_v63 = vmax.f32 %v1133_v59, 0.0  ;;  %v3297_v0 = vpop.f32.mrb[14].mxu0  ;;  %v3361_v1 = vpop.f32.mrb[14].mxu1 }
 0x147   : > { %3135 = vst [vmem:[%s3910_s25 + $0x28] sm:$0xff] %v2839_v54   ;;  %3167 = vst [vmem:[%s3910_s25 + $0x128] sm:$0xff] %v2999_v55   ;;  %v1489_v2 = vmul.f32 %v3885_v9, %v1354_v56  ;;  %v1553_v3 = vmul.f32 %v3885_v9, %v1418_v57  ;;  %v1355_v4 = vmax.f32 %v3297_v0, 0.0  ;;  %v1419_v5 = vmax.f32 %v3361_v1, 0.0  ;;  %v880_v6 = vpop.f32.mrb[15].mxu0  ;;  %v1136_v7 = vpop.f32.mrb[15].mxu1 }
 0x148   : > { %3134 = vst [vmem:[%s3910_s25 + $0x20] sm:$0xff] %v2834_v60   ;;  %3166 = vst [vmem:[%s3910_s25 + $0x120] sm:$0xff] %v2994_v61   ;;  %v1487_v8 = vmul.f32 %v3885_v9, %v1352_v62  ;;  %v1551_v10 = vmul.f32 %v3885_v9, %v1416_v63  ;;  %v1353_v11 = vmax.f32 %v880_v6, 0.0  ;;  %v1417_v12 = vmax.f32 %v1136_v7, 0.0 }
 0x149   : > { %v1490_v13 = vmul.f32 %v3885_v9, %v1355_v4  ;;  %v1554_v14 = vmul.f32 %v3885_v9, %v1419_v5  ;;  %v1624_v17 = vadd.f32 %v3892_v25, %v1489_v2  ;;  %v1688_v18 = vadd.f32 %v3892_v25, %v1553_v3 }
 0x14a   : > { %v1488_v15 = vmul.f32 %v3885_v9, %v1353_v11  ;;  %v1552_v16 = vmul.f32 %v3885_v9, %v1417_v12  ;;  %v1622_v21 = vadd.f32 %v3892_v25, %v1487_v8  ;;  %v1686_v22 = vadd.f32 %v3892_v25, %v1551_v10 }
 0x14b   : > { %v1625_v19 = vadd.f32 %v3892_v25, %v1490_v13  ;;  %v1689_v20 = vadd.f32 %v3892_v25, %v1554_v14 }
 0x14c   : > { %v1623_v23 = vadd.f32 %v3892_v25, %v1488_v15  ;;  %v1687_v24 = vadd.f32 %v3892_v25, %v1552_v16  ;;  %v3300_v26 = vpop.f32.mrb[16].mxu0  ;;  %v3364_v27 = vpop.f32.mrb[16].mxu1 }
 0x14d   : > { %v2849_v28 = vpack.c.bf16 %v1625_v19, %v1624_v17  ;;  %v3009_v29 = vpack.c.bf16 %v1689_v20, %v1688_v18  ;;  %v1358_v30 = vmax.f32 %v3300_v26, 0.0  ;;  %v1422_v31 = vmax.f32 %v3364_v27, 0.0  ;;  %v893_v32 = vpop.f32.mrb[17].mxu0  ;;  %v1149_v33 = vpop.f32.mrb[17].mxu1 }
 0x14e   : > { %v2844_v34 = vpack.c.bf16 %v1623_v23, %v1622_v21  ;;  %v3004_v35 = vpack.c.bf16 %v1687_v24, %v1686_v22  ;;  %v1356_v36 = vmax.f32 %v893_v32, 0.0  ;;  %v1420_v37 = vmax.f32 %v1149_v33, 0.0  ;;  %v3301_v38 = vpop.f32.mrb[18].mxu0  ;;  %v3365_v39 = vpop.f32.mrb[18].mxu1 }
 0x14f   : > { %3137 = vst [vmem:[%s3910_s25 + $0x38] sm:$0xff] %v2849_v28   ;;  %3169 = vst [vmem:[%s3910_s25 + $0x138] sm:$0xff] %v3009_v29   ;;  %v1493_v40 = vmul.f32 %v3885_v9, %v1358_v30  ;;  %v1557_v41 = vmul.f32 %v3885_v9, %v1422_v31  ;;  %v1359_v42 = vmax.f32 %v3301_v38, 0.0  ;;  %v1423_v43 = vmax.f32 %v3365_v39, 0.0  ;;  %v896_v44 = vpop.f32.mrb[19].mxu0  ;;  %v1152_v45 = vpop.f32.mrb[19].mxu1 }
 0x150   : > { %3136 = vst [vmem:[%s3910_s25 + $0x30] sm:$0xff] %v2844_v34   ;;  %3168 = vst [vmem:[%s3910_s25 + $0x130] sm:$0xff] %v3004_v35   ;;  %v1491_v46 = vmul.f32 %v3885_v9, %v1356_v36  ;;  %v1555_v47 = vmul.f32 %v3885_v9, %v1420_v37  ;;  %v1357_v48 = vmax.f32 %v896_v44, 0.0  ;;  %v1421_v49 = vmax.f32 %v1152_v45, 0.0 }
 0x151   : > { %v1494_v50 = vmul.f32 %v3885_v9, %v1359_v42  ;;  %v1558_v51 = vmul.f32 %v3885_v9, %v1423_v43  ;;  %v1628_v54 = vadd.f32 %v3892_v25, %v1493_v40  ;;  %v1692_v55 = vadd.f32 %v3892_v25, %v1557_v41 }
 0x152   : > { %v1492_v52 = vmul.f32 %v3885_v9, %v1357_v48  ;;  %v1556_v53 = vmul.f32 %v3885_v9, %v1421_v49  ;;  %v1626_v58 = vadd.f32 %v3892_v25, %v1491_v46  ;;  %v1690_v59 = vadd.f32 %v3892_v25, %v1555_v47 }
 0x153   : > { %v1629_v56 = vadd.f32 %v3892_v25, %v1494_v50  ;;  %v1693_v57 = vadd.f32 %v3892_v25, %v1558_v51 }
 0x154   : > { %v1627_v60 = vadd.f32 %v3892_v25, %v1492_v52  ;;  %v1691_v61 = vadd.f32 %v3892_v25, %v1556_v53  ;;  %v3304_v62 = vpop.f32.mrb[20].mxu0  ;;  %v3368_v63 = vpop.f32.mrb[20].mxu1 }
 0x155   : > { %v2859_v0 = vpack.c.bf16 %v1629_v56, %v1628_v54  ;;  %v3019_v1 = vpack.c.bf16 %v1693_v57, %v1692_v55  ;;  %v1362_v2 = vmax.f32 %v3304_v62, 0.0  ;;  %v1426_v3 = vmax.f32 %v3368_v63, 0.0  ;;  %v909_v4 = vpop.f32.mrb[21].mxu0  ;;  %v1165_v5 = vpop.f32.mrb[21].mxu1 }
 0x156   : > { %v2854_v6 = vpack.c.bf16 %v1627_v60, %v1626_v58  ;;  %v3014_v7 = vpack.c.bf16 %v1691_v61, %v1690_v59  ;;  %v1360_v8 = vmax.f32 %v909_v4, 0.0  ;;  %v1424_v10 = vmax.f32 %v1165_v5, 0.0  ;;  %v3305_v11 = vpop.f32.mrb[22].mxu0  ;;  %v3369_v12 = vpop.f32.mrb[22].mxu1 }
 0x157   : > { %3139 = vst [vmem:[%s3910_s25 + $0x48] sm:$0xff] %v2859_v0   ;;  %3171 = vst [vmem:[%s3910_s25 + $0x148] sm:$0xff] %v3019_v1   ;;  %v1497_v13 = vmul.f32 %v3885_v9, %v1362_v2  ;;  %v1561_v14 = vmul.f32 %v3885_v9, %v1426_v3  ;;  %v1363_v15 = vmax.f32 %v3305_v11, 0.0  ;;  %v1427_v16 = vmax.f32 %v3369_v12, 0.0  ;;  %v912_v17 = vpop.f32.mrb[23].mxu0  ;;  %v1168_v18 = vpop.f32.mrb[23].mxu1 }
 0x158   : > { %3138 = vst [vmem:[%s3910_s25 + $0x40] sm:$0xff] %v2854_v6   ;;  %3170 = vst [vmem:[%s3910_s25 + $0x140] sm:$0xff] %v3014_v7   ;;  %v1495_v19 = vmul.f32 %v3885_v9, %v1360_v8  ;;  %v1559_v20 = vmul.f32 %v3885_v9, %v1424_v10  ;;  %v1361_v21 = vmax.f32 %v912_v17, 0.0  ;;  %v1425_v22 = vmax.f32 %v1168_v18, 0.0 }
 0x159   : > { %v1498_v23 = vmul.f32 %v3885_v9, %v1363_v15  ;;  %v1562_v24 = vmul.f32 %v3885_v9, %v1427_v16  ;;  %v1632_v28 = vadd.f32 %v3892_v25, %v1497_v13  ;;  %v1696_v29 = vadd.f32 %v3892_v25, %v1561_v14 }
 0x15a   : > { %v1496_v26 = vmul.f32 %v3885_v9, %v1361_v21  ;;  %v1560_v27 = vmul.f32 %v3885_v9, %v1425_v22  ;;  %v1630_v32 = vadd.f32 %v3892_v25, %v1495_v19  ;;  %v1694_v33 = vadd.f32 %v3892_v25, %v1559_v20 }
 0x15b   : > { %v1633_v30 = vadd.f32 %v3892_v25, %v1498_v23  ;;  %v1697_v31 = vadd.f32 %v3892_v25, %v1562_v24 }
 0x15c   : > { %v1631_v34 = vadd.f32 %v3892_v25, %v1496_v26  ;;  %v1695_v35 = vadd.f32 %v3892_v25, %v1560_v27  ;;  %v3308_v36 = vpop.f32.mrb[24].mxu0  ;;  %v3372_v37 = vpop.f32.mrb[24].mxu1 }
 0x15d   : > { %v2869_v38 = vpack.c.bf16 %v1633_v30, %v1632_v28  ;;  %v3029_v39 = vpack.c.bf16 %v1697_v31, %v1696_v29  ;;  %v1366_v40 = vmax.f32 %v3308_v36, 0.0  ;;  %v1430_v41 = vmax.f32 %v3372_v37, 0.0  ;;  %v925_v42 = vpop.f32.mrb[25].mxu0  ;;  %v1181_v43 = vpop.f32.mrb[25].mxu1 }
 0x15e   : > { %v2864_v44 = vpack.c.bf16 %v1631_v34, %v1630_v32  ;;  %v3024_v45 = vpack.c.bf16 %v1695_v35, %v1694_v33  ;;  %v1364_v46 = vmax.f32 %v925_v42, 0.0  ;;  %v1428_v47 = vmax.f32 %v1181_v43, 0.0  ;;  %v3309_v48 = vpop.f32.mrb[26].mxu0  ;;  %v3373_v49 = vpop.f32.mrb[26].mxu1 }
 0x15f   : > { %3141 = vst [vmem:[%s3910_s25 + $0x58] sm:$0xff] %v2869_v38   ;;  %3173 = vst [vmem:[%s3910_s25 + $0x158] sm:$0xff] %v3029_v39   ;;  %v1501_v50 = vmul.f32 %v3885_v9, %v1366_v40  ;;  %v1565_v51 = vmul.f32 %v3885_v9, %v1430_v41  ;;  %v1367_v52 = vmax.f32 %v3309_v48, 0.0  ;;  %v1431_v53 = vmax.f32 %v3373_v49, 0.0  ;;  %v928_v54 = vpop.f32.mrb[27].mxu0  ;;  %v1184_v55 = vpop.f32.mrb[27].mxu1 }
 0x160   : > { %3140 = vst [vmem:[%s3910_s25 + $0x50] sm:$0xff] %v2864_v44   ;;  %3172 = vst [vmem:[%s3910_s25 + $0x150] sm:$0xff] %v3024_v45   ;;  %v1499_v56 = vmul.f32 %v3885_v9, %v1364_v46  ;;  %v1563_v57 = vmul.f32 %v3885_v9, %v1428_v47  ;;  %v1365_v58 = vmax.f32 %v928_v54, 0.0  ;;  %v1429_v59 = vmax.f32 %v1184_v55, 0.0 }
 0x161   : > { %v1502_v60 = vmul.f32 %v3885_v9, %v1367_v52  ;;  %v1566_v61 = vmul.f32 %v3885_v9, %v1431_v53  ;;  %v1636_v0 = vadd.f32 %v3892_v25, %v1501_v50  ;;  %v1700_v1 = vadd.f32 %v3892_v25, %v1565_v51 }
 0x162   : > { %v1500_v62 = vmul.f32 %v3885_v9, %v1365_v58  ;;  %v1564_v63 = vmul.f32 %v3885_v9, %v1429_v59  ;;  %v1634_v4 = vadd.f32 %v3892_v25, %v1499_v56  ;;  %v1698_v5 = vadd.f32 %v3892_v25, %v1563_v57 }
 0x163   : > { %v1637_v2 = vadd.f32 %v3892_v25, %v1502_v60  ;;  %v1701_v3 = vadd.f32 %v3892_v25, %v1566_v61 }
 0x164   : > { %v1635_v6 = vadd.f32 %v3892_v25, %v1500_v62  ;;  %v1699_v7 = vadd.f32 %v3892_v25, %v1564_v63  ;;  %v3312_v8 = vpop.f32.mrb[28].mxu0  ;;  %v3376_v10 = vpop.f32.mrb[28].mxu1 }
 0x165   : > { %v2879_v11 = vpack.c.bf16 %v1637_v2, %v1636_v0  ;;  %v3039_v12 = vpack.c.bf16 %v1701_v3, %v1700_v1  ;;  %v1370_v13 = vmax.f32 %v3312_v8, 0.0  ;;  %v1434_v14 = vmax.f32 %v3376_v10, 0.0  ;;  %v941_v15 = vpop.f32.mrb[29].mxu0  ;;  %v1197_v16 = vpop.f32.mrb[29].mxu1 }
 0x166   : > { %v2874_v17 = vpack.c.bf16 %v1635_v6, %v1634_v4  ;;  %v3034_v18 = vpack.c.bf16 %v1699_v7, %v1698_v5  ;;  %v1368_v19 = vmax.f32 %v941_v15, 0.0  ;;  %v1432_v20 = vmax.f32 %v1197_v16, 0.0  ;;  %v3313_v21 = vpop.f32.mrb[30].mxu0  ;;  %v3377_v22 = vpop.f32.mrb[30].mxu1 }
 0x167   : > { %3143 = vst [vmem:[%s3910_s25 + $0x68] sm:$0xff] %v2879_v11   ;;  %3175 = vst [vmem:[%s3910_s25 + $0x168] sm:$0xff] %v3039_v12   ;;  %v1505_v23 = vmul.f32 %v3885_v9, %v1370_v13  ;;  %v1569_v24 = vmul.f32 %v3885_v9, %v1434_v14  ;;  %v1371_v26 = vmax.f32 %v3313_v21, 0.0  ;;  %v1435_v27 = vmax.f32 %v3377_v22, 0.0  ;;  %v944_v28 = vpop.f32.mrb[31].mxu0  ;;  %v1200_v29 = vpop.f32.mrb[31].mxu1 }
 0x168   : > { %3142 = vst [vmem:[%s3910_s25 + $0x60] sm:$0xff] %v2874_v17   ;;  %3174 = vst [vmem:[%s3910_s25 + $0x160] sm:$0xff] %v3034_v18   ;;  %v1503_v30 = vmul.f32 %v3885_v9, %v1368_v19  ;;  %v1567_v31 = vmul.f32 %v3885_v9, %v1432_v20  ;;  %v1369_v32 = vmax.f32 %v944_v28, 0.0  ;;  %v1433_v33 = vmax.f32 %v1200_v29, 0.0 }
 0x169   : > { %v1506_v34 = vmul.f32 %v3885_v9, %v1371_v26  ;;  %v1570_v35 = vmul.f32 %v3885_v9, %v1435_v27  ;;  %v1640_v38 = vadd.f32 %v3892_v25, %v1505_v23  ;;  %v1704_v39 = vadd.f32 %v3892_v25, %v1569_v24 }
 0x16a   : > { %v1504_v36 = vmul.f32 %v3885_v9, %v1369_v32  ;;  %v1568_v37 = vmul.f32 %v3885_v9, %v1433_v33  ;;  %v1638_v42 = vadd.f32 %v3892_v25, %v1503_v30  ;;  %v1702_v43 = vadd.f32 %v3892_v25, %v1567_v31 }
 0x16b   : > { %v1641_v40 = vadd.f32 %v3892_v25, %v1506_v34  ;;  %v1705_v41 = vadd.f32 %v3892_v25, %v1570_v35 }
 0x16c   : > { %v1639_v44 = vadd.f32 %v3892_v25, %v1504_v36  ;;  %v1703_v45 = vadd.f32 %v3892_v25, %v1568_v37  ;;  %v3316_v46 = vpop.f32.mrb[32].mxu0  ;;  %v3380_v47 = vpop.f32.mrb[32].mxu1 }
 0x16d   : > { %v2889_v48 = vpack.c.bf16 %v1641_v40, %v1640_v38  ;;  %v3049_v49 = vpack.c.bf16 %v1705_v41, %v1704_v39  ;;  %v1374_v50 = vmax.f32 %v3316_v46, 0.0  ;;  %v1438_v51 = vmax.f32 %v3380_v47, 0.0  ;;  %v957_v52 = vpop.f32.mrb[33].mxu0  ;;  %v1213_v53 = vpop.f32.mrb[33].mxu1 }
 0x16e   : > { %v2884_v54 = vpack.c.bf16 %v1639_v44, %v1638_v42  ;;  %v3044_v55 = vpack.c.bf16 %v1703_v45, %v1702_v43  ;;  %v1372_v56 = vmax.f32 %v957_v52, 0.0  ;;  %v1436_v57 = vmax.f32 %v1213_v53, 0.0  ;;  %v3317_v58 = vpop.f32.mrb[34].mxu0  ;;  %v3381_v59 = vpop.f32.mrb[34].mxu1 }
 0x16f   : > { %3145 = vst [vmem:[%s3910_s25 + $0x78] sm:$0xff] %v2889_v48   ;;  %3177 = vst [vmem:[%s3910_s25 + $0x178] sm:$0xff] %v3049_v49   ;;  %v1509_v60 = vmul.f32 %v3885_v9, %v1374_v50  ;;  %v1573_v61 = vmul.f32 %v3885_v9, %v1438_v51  ;;  %v1375_v62 = vmax.f32 %v3317_v58, 0.0  ;;  %v1439_v63 = vmax.f32 %v3381_v59, 0.0  ;;  %v960_v0 = vpop.f32.mrb[35].mxu0  ;;  %v1216_v1 = vpop.f32.mrb[35].mxu1 }
 0x170   : > { %3144 = vst [vmem:[%s3910_s25 + $0x70] sm:$0xff] %v2884_v54   ;;  %3176 = vst [vmem:[%s3910_s25 + $0x170] sm:$0xff] %v3044_v55   ;;  %v1507_v2 = vmul.f32 %v3885_v9, %v1372_v56  ;;  %v1571_v3 = vmul.f32 %v3885_v9, %v1436_v57  ;;  %v1373_v4 = vmax.f32 %v960_v0, 0.0  ;;  %v1437_v5 = vmax.f32 %v1216_v1, 0.0 }
 0x171   : > { %v1510_v6 = vmul.f32 %v3885_v9, %v1375_v62  ;;  %v1574_v7 = vmul.f32 %v3885_v9, %v1439_v63  ;;  %v1644_v11 = vadd.f32 %v3892_v25, %v1509_v60  ;;  %v1708_v12 = vadd.f32 %v3892_v25, %v1573_v61 }
 0x172   : > { %v1508_v8 = vmul.f32 %v3885_v9, %v1373_v4  ;;  %v1572_v10 = vmul.f32 %v3885_v9, %v1437_v5  ;;  %v1642_v15 = vadd.f32 %v3892_v25, %v1507_v2  ;;  %v1706_v16 = vadd.f32 %v3892_v25, %v1571_v3 }
 0x173   : > { %v1645_v13 = vadd.f32 %v3892_v25, %v1510_v6  ;;  %v1709_v14 = vadd.f32 %v3892_v25, %v1574_v7 }
 0x174   : > { %v1643_v17 = vadd.f32 %v3892_v25, %v1508_v8  ;;  %v1707_v18 = vadd.f32 %v3892_v25, %v1572_v10  ;;  %v3320_v19 = vpop.f32.mrb[36].mxu0  ;;  %v3384_v20 = vpop.f32.mrb[36].mxu1 }
 0x175   : > { %v2899_v21 = vpack.c.bf16 %v1645_v13, %v1644_v11  ;;  %v3059_v22 = vpack.c.bf16 %v1709_v14, %v1708_v12  ;;  %v1378_v23 = vmax.f32 %v3320_v19, 0.0  ;;  %v1442_v24 = vmax.f32 %v3384_v20, 0.0  ;;  %v973_v26 = vpop.f32.mrb[37].mxu0  ;;  %v1229_v27 = vpop.f32.mrb[37].mxu1 }
 0x176   : > { %v2894_v28 = vpack.c.bf16 %v1643_v17, %v1642_v15  ;;  %v3054_v29 = vpack.c.bf16 %v1707_v18, %v1706_v16  ;;  %v1376_v30 = vmax.f32 %v973_v26, 0.0  ;;  %v1440_v31 = vmax.f32 %v1229_v27, 0.0  ;;  %v3321_v32 = vpop.f32.mrb[38].mxu0  ;;  %v3385_v33 = vpop.f32.mrb[38].mxu1 }
 0x177   : > { %3147 = vst [vmem:[%s3910_s25 + $0x88] sm:$0xff] %v2899_v21   ;;  %3179 = vst [vmem:[%s3910_s25 + $0x188] sm:$0xff] %v3059_v22   ;;  %v1513_v34 = vmul.f32 %v3885_v9, %v1378_v23  ;;  %v1577_v35 = vmul.f32 %v3885_v9, %v1442_v24  ;;  %v1379_v36 = vmax.f32 %v3321_v32, 0.0  ;;  %v1443_v37 = vmax.f32 %v3385_v33, 0.0  ;;  %v976_v38 = vpop.f32.mrb[39].mxu0  ;;  %v1232_v39 = vpop.f32.mrb[39].mxu1 }
 0x178   : > { %3146 = vst [vmem:[%s3910_s25 + $0x80] sm:$0xff] %v2894_v28   ;;  %3178 = vst [vmem:[%s3910_s25 + $0x180] sm:$0xff] %v3054_v29   ;;  %v1511_v40 = vmul.f32 %v3885_v9, %v1376_v30  ;;  %v1575_v41 = vmul.f32 %v3885_v9, %v1440_v31  ;;  %v1377_v42 = vmax.f32 %v976_v38, 0.0  ;;  %v1441_v43 = vmax.f32 %v1232_v39, 0.0 }
 0x179   : > { %v1514_v44 = vmul.f32 %v3885_v9, %v1379_v36  ;;  %v1578_v45 = vmul.f32 %v3885_v9, %v1443_v37  ;;  %v1648_v48 = vadd.f32 %v3892_v25, %v1513_v34  ;;  %v1712_v49 = vadd.f32 %v3892_v25, %v1577_v35 }
 0x17a   : > { %v1512_v46 = vmul.f32 %v3885_v9, %v1377_v42  ;;  %v1576_v47 = vmul.f32 %v3885_v9, %v1441_v43  ;;  %v1646_v52 = vadd.f32 %v3892_v25, %v1511_v40  ;;  %v1710_v53 = vadd.f32 %v3892_v25, %v1575_v41 }
 0x17b   : > { %v1649_v50 = vadd.f32 %v3892_v25, %v1514_v44  ;;  %v1713_v51 = vadd.f32 %v3892_v25, %v1578_v45 }
 0x17c   : > { %v1647_v54 = vadd.f32 %v3892_v25, %v1512_v46  ;;  %v1711_v55 = vadd.f32 %v3892_v25, %v1576_v47  ;;  %v3324_v56 = vpop.f32.mrb[40].mxu0  ;;  %v3388_v57 = vpop.f32.mrb[40].mxu1 }
 0x17d   : > { %v2909_v58 = vpack.c.bf16 %v1649_v50, %v1648_v48  ;;  %v3069_v59 = vpack.c.bf16 %v1713_v51, %v1712_v49  ;;  %v1382_v60 = vmax.f32 %v3324_v56, 0.0  ;;  %v1446_v61 = vmax.f32 %v3388_v57, 0.0  ;;  %v989_v62 = vpop.f32.mrb[41].mxu0  ;;  %v1245_v63 = vpop.f32.mrb[41].mxu1 }
 0x17e   : > { %v2904_v0 = vpack.c.bf16 %v1647_v54, %v1646_v52  ;;  %v3064_v1 = vpack.c.bf16 %v1711_v55, %v1710_v53  ;;  %v1380_v2 = vmax.f32 %v989_v62, 0.0  ;;  %v1444_v3 = vmax.f32 %v1245_v63, 0.0  ;;  %v3325_v4 = vpop.f32.mrb[42].mxu0  ;;  %v3389_v5 = vpop.f32.mrb[42].mxu1 }
 0x17f   : > { %3149 = vst [vmem:[%s3910_s25 + $0x98] sm:$0xff] %v2909_v58   ;;  %3181 = vst [vmem:[%s3910_s25 + $0x198] sm:$0xff] %v3069_v59   ;;  %v1517_v6 = vmul.f32 %v3885_v9, %v1382_v60  ;;  %v1581_v7 = vmul.f32 %v3885_v9, %v1446_v61  ;;  %v1383_v8 = vmax.f32 %v3325_v4, 0.0  ;;  %v1447_v10 = vmax.f32 %v3389_v5, 0.0  ;;  %v992_v11 = vpop.f32.mrb[43].mxu0  ;;  %v1248_v12 = vpop.f32.mrb[43].mxu1 }
 0x180   : > { %3148 = vst [vmem:[%s3910_s25 + $0x90] sm:$0xff] %v2904_v0   ;;  %3180 = vst [vmem:[%s3910_s25 + $0x190] sm:$0xff] %v3064_v1   ;;  %v1515_v13 = vmul.f32 %v3885_v9, %v1380_v2  ;;  %v1579_v14 = vmul.f32 %v3885_v9, %v1444_v3  ;;  %v1381_v15 = vmax.f32 %v992_v11, 0.0  ;;  %v1445_v16 = vmax.f32 %v1248_v12, 0.0 }
 0x181   : > { %v1518_v17 = vmul.f32 %v3885_v9, %v1383_v8  ;;  %v1582_v18 = vmul.f32 %v3885_v9, %v1447_v10  ;;  %v1652_v21 = vadd.f32 %v3892_v25, %v1517_v6  ;;  %v1716_v22 = vadd.f32 %v3892_v25, %v1581_v7 }
 0x182   : > { %v1516_v19 = vmul.f32 %v3885_v9, %v1381_v15  ;;  %v1580_v20 = vmul.f32 %v3885_v9, %v1445_v16  ;;  %v1650_v26 = vadd.f32 %v3892_v25, %v1515_v13  ;;  %v1714_v27 = vadd.f32 %v3892_v25, %v1579_v14 }
 0x183   : > { %v1653_v23 = vadd.f32 %v3892_v25, %v1518_v17  ;;  %v1717_v24 = vadd.f32 %v3892_v25, %v1582_v18 }
 0x184   : > { %v1651_v28 = vadd.f32 %v3892_v25, %v1516_v19  ;;  %v1715_v29 = vadd.f32 %v3892_v25, %v1580_v20  ;;  %v3328_v30 = vpop.f32.mrb[44].mxu0  ;;  %v3392_v31 = vpop.f32.mrb[44].mxu1 }
 0x185   : > { %v2919_v32 = vpack.c.bf16 %v1653_v23, %v1652_v21  ;;  %v3079_v33 = vpack.c.bf16 %v1717_v24, %v1716_v22  ;;  %v1386_v34 = vmax.f32 %v3328_v30, 0.0  ;;  %v1450_v35 = vmax.f32 %v3392_v31, 0.0  ;;  %v1005_v36 = vpop.f32.mrb[45].mxu0  ;;  %v1261_v37 = vpop.f32.mrb[45].mxu1 }
 0x186   : > { %v2914_v38 = vpack.c.bf16 %v1651_v28, %v1650_v26  ;;  %v3074_v39 = vpack.c.bf16 %v1715_v29, %v1714_v27  ;;  %v1384_v40 = vmax.f32 %v1005_v36, 0.0  ;;  %v1448_v41 = vmax.f32 %v1261_v37, 0.0  ;;  %v3329_v42 = vpop.f32.mrb[46].mxu0  ;;  %v3393_v43 = vpop.f32.mrb[46].mxu1 }
 0x187   : > { %3151 = vst [vmem:[%s3910_s25 + $0xa8] sm:$0xff] %v2919_v32   ;;  %3183 = vst [vmem:[%s3910_s25 + $0x1a8] sm:$0xff] %v3079_v33   ;;  %v1521_v44 = vmul.f32 %v3885_v9, %v1386_v34  ;;  %v1585_v45 = vmul.f32 %v3885_v9, %v1450_v35  ;;  %v1387_v46 = vmax.f32 %v3329_v42, 0.0  ;;  %v1451_v47 = vmax.f32 %v3393_v43, 0.0  ;;  %v1008_v48 = vpop.f32.mrb[47].mxu0  ;;  %v1264_v49 = vpop.f32.mrb[47].mxu1 }
 0x188   : > { %3150 = vst [vmem:[%s3910_s25 + $0xa0] sm:$0xff] %v2914_v38   ;;  %3182 = vst [vmem:[%s3910_s25 + $0x1a0] sm:$0xff] %v3074_v39   ;;  %v1519_v50 = vmul.f32 %v3885_v9, %v1384_v40  ;;  %v1583_v51 = vmul.f32 %v3885_v9, %v1448_v41  ;;  %v1385_v52 = vmax.f32 %v1008_v48, 0.0  ;;  %v1449_v53 = vmax.f32 %v1264_v49, 0.0 }
 0x189   : > { %v1522_v54 = vmul.f32 %v3885_v9, %v1387_v46  ;;  %v1586_v55 = vmul.f32 %v3885_v9, %v1451_v47  ;;  %v1656_v58 = vadd.f32 %v3892_v25, %v1521_v44  ;;  %v1720_v59 = vadd.f32 %v3892_v25, %v1585_v45 }
 0x18a   : > { %v1520_v56 = vmul.f32 %v3885_v9, %v1385_v52  ;;  %v1584_v57 = vmul.f32 %v3885_v9, %v1449_v53  ;;  %v1654_v62 = vadd.f32 %v3892_v25, %v1519_v50  ;;  %v1718_v63 = vadd.f32 %v3892_v25, %v1583_v51 }
 0x18b   : > { %v1657_v60 = vadd.f32 %v3892_v25, %v1522_v54  ;;  %v1721_v61 = vadd.f32 %v3892_v25, %v1586_v55 }
 0x18c   : > { %v1655_v0 = vadd.f32 %v3892_v25, %v1520_v56  ;;  %v1719_v1 = vadd.f32 %v3892_v25, %v1584_v57  ;;  %v3332_v2 = vpop.f32.mrb[48].mxu0  ;;  %v3396_v3 = vpop.f32.mrb[48].mxu1 }
 0x18d   : > { %v2929_v4 = vpack.c.bf16 %v1657_v60, %v1656_v58  ;;  %v3089_v5 = vpack.c.bf16 %v1721_v61, %v1720_v59  ;;  %v1390_v6 = vmax.f32 %v3332_v2, 0.0  ;;  %v1454_v7 = vmax.f32 %v3396_v3, 0.0  ;;  %v1021_v8 = vpop.f32.mrb[49].mxu0  ;;  %v1277_v10 = vpop.f32.mrb[49].mxu1  ;;  %v4172_v3 = vld [vmem:[%s4279_s3] ss:$0 sm:$0xff] }
 0x18e   : > { %v2924_v11 = vpack.c.bf16 %v1655_v0, %v1654_v62  ;;  %v3084_v12 = vpack.c.bf16 %v1719_v1, %v1718_v63  ;;  %v1388_v13 = vmax.f32 %v1021_v8, 0.0  ;;  %v1452_v14 = vmax.f32 %v1277_v10, 0.0  ;;  %v3333_v15 = vpop.f32.mrb[50].mxu0  ;;  %v3397_v16 = vpop.f32.mrb[50].mxu1 }
 0x18f   : > { %3153 = vst [vmem:[%s3910_s25 + $0xb8] sm:$0xff] %v2929_v4   ;;  %3185 = vst [vmem:[%s3910_s25 + $0x1b8] sm:$0xff] %v3089_v5   ;;  %v1525_v17 = vmul.f32 %v3885_v9, %v1390_v6  ;;  %v1589_v18 = vmul.f32 %v3885_v9, %v1454_v7  ;;  %v1391_v19 = vmax.f32 %v3333_v15, 0.0  ;;  %v1455_v20 = vmax.f32 %v3397_v16, 0.0  ;;  %v1024_v21 = vpop.f32.mrb[51].mxu0  ;;  %v1280_v22 = vpop.f32.mrb[51].mxu1 }
 0x190   : > { %3152 = vst [vmem:[%s3910_s25 + $0xb0] sm:$0xff] %v2924_v11   ;;  %3184 = vst [vmem:[%s3910_s25 + $0x1b0] sm:$0xff] %v3084_v12   ;;  %v1523_v23 = vmul.f32 %v3885_v9, %v1388_v13  ;;  %v1587_v24 = vmul.f32 %v3885_v9, %v1452_v14  ;;  %v1389_v26 = vmax.f32 %v1024_v21, 0.0  ;;  %v1453_v27 = vmax.f32 %v1280_v22, 0.0 }
 0x191   : > { %v1526_v28 = vmul.f32 %v3885_v9, %v1391_v19  ;;  %v1590_v29 = vmul.f32 %v3885_v9, %v1455_v20  ;;  %v1660_v32 = vadd.f32 %v3892_v25, %v1525_v17  ;;  %v1724_v33 = vadd.f32 %v3892_v25, %v1589_v18 }
 0x192   : > { %v1524_v30 = vmul.f32 %v3885_v9, %v1389_v26  ;;  %v1588_v31 = vmul.f32 %v3885_v9, %v1453_v27  ;;  %v1658_v36 = vadd.f32 %v3892_v25, %v1523_v23  ;;  %v1722_v37 = vadd.f32 %v3892_v25, %v1587_v24 }
 0x193   : > { %v1661_v34 = vadd.f32 %v3892_v25, %v1526_v28  ;;  %v1725_v35 = vadd.f32 %v3892_v25, %v1590_v29 }
 0x194   : > { %v1659_v38 = vadd.f32 %v3892_v25, %v1524_v30  ;;  %v1723_v39 = vadd.f32 %v3892_v25, %v1588_v31  ;;  %v3336_v40 = vpop.f32.mrb[52].mxu0  ;;  %v3400_v9 = vpop.f32.mrb[52].mxu1  ;;  %v4157_v25 = vld [vmem:[%s4278_s2] ss:$0 sm:$0xff] }
 0x195   : > { %v2939_v41 = vpack.c.bf16 %v1661_v34, %v1660_v32  ;;  %v3099_v42 = vpack.c.bf16 %v1725_v35, %v1724_v33  ;;  %v1394_v43 = vmax.f32 %v3336_v40, 0.0  ;;  %v1458_v44 = vmax.f32 %v3400_v9, 0.0  ;;  %v1037_v45 = vpop.f32.mrb[53].mxu0  ;;  %v1293_v46 = vpop.f32.mrb[53].mxu1 }
 0x196   : > { %v2934_v47 = vpack.c.bf16 %v1659_v38, %v1658_v36  ;;  %v3094_v48 = vpack.c.bf16 %v1723_v39, %v1722_v37  ;;  %v1392_v49 = vmax.f32 %v1037_v45, 0.0  ;;  %v1456_v50 = vmax.f32 %v1293_v46, 0.0  ;;  %v3337_v51 = vpop.f32.mrb[54].mxu0  ;;  %v3401_v52 = vpop.f32.mrb[54].mxu1 }
 0x197   : > { %3155 = vst [vmem:[%s3910_s25 + $0xc8] sm:$0xff] %v2939_v41   ;;  %3187 = vst [vmem:[%s3910_s25 + $0x1c8] sm:$0xff] %v3099_v42   ;;  %v1529_v53 = vmul.f32 %v4157_v25, %v1394_v43  ;;  %v1593_v54 = vmul.f32 %v4157_v25, %v1458_v44  ;;  %v1395_v55 = vmax.f32 %v3337_v51, 0.0  ;;  %v1459_v56 = vmax.f32 %v3401_v52, 0.0  ;;  %v1040_v57 = vpop.f32.mrb[55].mxu0  ;;  %v1296_v58 = vpop.f32.mrb[55].mxu1 }
 0x198   : > { %3154 = vst [vmem:[%s3910_s25 + $0xc0] sm:$0xff] %v2934_v47   ;;  %3186 = vst [vmem:[%s3910_s25 + $0x1c0] sm:$0xff] %v3094_v48   ;;  %v1527_v59 = vmul.f32 %v4157_v25, %v1392_v49  ;;  %v1591_v60 = vmul.f32 %v4157_v25, %v1456_v50  ;;  %v1393_v61 = vmax.f32 %v1040_v57, 0.0  ;;  %v1457_v62 = vmax.f32 %v1296_v58, 0.0 }
 0x199   : > { %v1530_v63 = vmul.f32 %v4157_v25, %v1395_v55  ;;  %v1594_v0 = vmul.f32 %v4157_v25, %v1459_v56  ;;  %v1664_v4 = vadd.f32 %v4172_v3, %v1529_v53  ;;  %v1728_v5 = vadd.f32 %v4172_v3, %v1593_v54 }
 0x19a   : > { %v1528_v1 = vmul.f32 %v4157_v25, %v1393_v61  ;;  %v1592_v2 = vmul.f32 %v4157_v25, %v1457_v62  ;;  %v1662_v8 = vadd.f32 %v4172_v3, %v1527_v59  ;;  %v1726_v10 = vadd.f32 %v4172_v3, %v1591_v60 }
 0x19b   : > { %v1665_v6 = vadd.f32 %v4172_v3, %v1530_v63  ;;  %v1729_v7 = vadd.f32 %v4172_v3, %v1594_v0 }
 0x19c   : > { %v1663_v11 = vadd.f32 %v4172_v3, %v1528_v1  ;;  %v1727_v12 = vadd.f32 %v4172_v3, %v1592_v2  ;;  %v3340_v13 = vpop.f32.mrb[56].mxu0  ;;  %v3404_v14 = vpop.f32.mrb[56].mxu1 }
 0x19d   : > { %v2949_v15 = vpack.c.bf16 %v1665_v6, %v1664_v4  ;;  %v3109_v16 = vpack.c.bf16 %v1729_v7, %v1728_v5  ;;  %v1398_v17 = vmax.f32 %v3340_v13, 0.0  ;;  %v1462_v18 = vmax.f32 %v3404_v14, 0.0  ;;  %v1053_v19 = vpop.f32.mrb[57].mxu0  ;;  %v1309_v20 = vpop.f32.mrb[57].mxu1 }
 0x19e   : > { %v2944_v21 = vpack.c.bf16 %v1663_v11, %v1662_v8  ;;  %v3104_v22 = vpack.c.bf16 %v1727_v12, %v1726_v10  ;;  %v1396_v23 = vmax.f32 %v1053_v19, 0.0  ;;  %v1460_v24 = vmax.f32 %v1309_v20, 0.0  ;;  %v3341_v26 = vpop.f32.mrb[58].mxu0  ;;  %v3405_v27 = vpop.f32.mrb[58].mxu1 }
 0x19f   : > { %3157 = vst [vmem:[%s3910_s25 + $0xd8] sm:$0xff] %v2949_v15   ;;  %3189 = vst [vmem:[%s3910_s25 + $0x1d8] sm:$0xff] %v3109_v16   ;;  %v1533_v28 = vmul.f32 %v4157_v25, %v1398_v17  ;;  %v1597_v29 = vmul.f32 %v4157_v25, %v1462_v18  ;;  %v1399_v30 = vmax.f32 %v3341_v26, 0.0  ;;  %v1463_v31 = vmax.f32 %v3405_v27, 0.0  ;;  %v1056_v32 = vpop.f32.mrb[59].mxu0  ;;  %v1312_v33 = vpop.f32.mrb[59].mxu1 }
 0x1a0   : > { %3156 = vst [vmem:[%s3910_s25 + $0xd0] sm:$0xff] %v2944_v21   ;;  %3188 = vst [vmem:[%s3910_s25 + $0x1d0] sm:$0xff] %v3104_v22   ;;  %v1531_v34 = vmul.f32 %v4157_v25, %v1396_v23  ;;  %v1595_v35 = vmul.f32 %v4157_v25, %v1460_v24  ;;  %v1397_v36 = vmax.f32 %v1056_v32, 0.0  ;;  %v1461_v37 = vmax.f32 %v1312_v33, 0.0 }
 0x1a1   : > { %v1534_v38 = vmul.f32 %v4157_v25, %v1399_v30  ;;  %v1598_v39 = vmul.f32 %v4157_v25, %v1463_v31  ;;  %v1668_v41 = vadd.f32 %v4172_v3, %v1533_v28  ;;  %v1732_v42 = vadd.f32 %v4172_v3, %v1597_v29 }
 0x1a2   : > { %v1532_v40 = vmul.f32 %v4157_v25, %v1397_v36  ;;  %v1596_v9 = vmul.f32 %v4157_v25, %v1461_v37  ;;  %v1666_v45 = vadd.f32 %v4172_v3, %v1531_v34  ;;  %v1730_v46 = vadd.f32 %v4172_v3, %v1595_v35 }
 0x1a3   : > { %v1669_v43 = vadd.f32 %v4172_v3, %v1534_v38  ;;  %v1733_v44 = vadd.f32 %v4172_v3, %v1598_v39 }
 0x1a4   : > { %v1667_v47 = vadd.f32 %v4172_v3, %v1532_v40  ;;  %v1731_v48 = vadd.f32 %v4172_v3, %v1596_v9  ;;  %v3344_v49 = vpop.f32.mrb[60].mxu0  ;;  %v3408_v50 = vpop.f32.mrb[60].mxu1 }
 0x1a5   : > { %v2959_v51 = vpack.c.bf16 %v1669_v43, %v1668_v41  ;;  %v3119_v52 = vpack.c.bf16 %v1733_v44, %v1732_v42  ;;  %v1402_v53 = vmax.f32 %v3344_v49, 0.0  ;;  %v1466_v54 = vmax.f32 %v3408_v50, 0.0  ;;  %v1069_v55 = vpop.f32.mrb[61].mxu0  ;;  %v1325_v56 = vpop.f32.mrb[61].mxu1 }
 0x1a6   : > { %v2954_v57 = vpack.c.bf16 %v1667_v47, %v1666_v45  ;;  %v3114_v58 = vpack.c.bf16 %v1731_v48, %v1730_v46  ;;  %v1400_v59 = vmax.f32 %v1069_v55, 0.0  ;;  %v1464_v60 = vmax.f32 %v1325_v56, 0.0  ;;  %v3345_v61 = vpop.f32.mrb[62].mxu0  ;;  %v3409_v62 = vpop.f32.mrb[62].mxu1 }
 0x1a7   : > { %3159 = vst [vmem:[%s3910_s25 + $0xe8] sm:$0xff] %v2959_v51   ;;  %3191 = vst [vmem:[%s3910_s25 + $0x1e8] sm:$0xff] %v3119_v52   ;;  %v1537_v63 = vmul.f32 %v4157_v25, %v1402_v53  ;;  %v1601_v0 = vmul.f32 %v4157_v25, %v1466_v54  ;;  %v1403_v1 = vmax.f32 %v3345_v61, 0.0  ;;  %v1467_v2 = vmax.f32 %v3409_v62, 0.0  ;;  %v1072_v4 = vpop.f32.mrb[63].mxu0  ;;  %v1328_v5 = vpop.f32.mrb[63].mxu1 }
 0x1a8   : > { %3158 = vst [vmem:[%s3910_s25 + $0xe0] sm:$0xff] %v2954_v57   ;;  %3190 = vst [vmem:[%s3910_s25 + $0x1e0] sm:$0xff] %v3114_v58   ;;  %v1535_v6 = vmul.f32 %v4157_v25, %v1400_v59  ;;  %v1599_v7 = vmul.f32 %v4157_v25, %v1464_v60  ;;  %v1401_v8 = vmax.f32 %v1072_v4, 0.0  ;;  %v1465_v10 = vmax.f32 %v1328_v5, 0.0 }
 0x1a9   : > { %v1538_v11 = vmul.f32 %v4157_v25, %v1403_v1  ;;  %v1602_v12 = vmul.f32 %v4157_v25, %v1467_v2  ;;  %v1672_v15 = vadd.f32 %v4172_v3, %v1537_v63  ;;  %v1736_v16 = vadd.f32 %v4172_v3, %v1601_v0 }
 0x1aa   : > { %v1536_v13 = vmul.f32 %v4157_v25, %v1401_v8  ;;  %v1600_v14 = vmul.f32 %v4157_v25, %v1465_v10  ;;  %v1670_v19 = vadd.f32 %v4172_v3, %v1535_v6  ;;  %v1734_v20 = vadd.f32 %v4172_v3, %v1599_v7 }
 0x1ab   : > { %v1673_v17 = vadd.f32 %v4172_v3, %v1538_v11  ;;  %v1737_v18 = vadd.f32 %v4172_v3, %v1602_v12 }
 0x1ac   : > { %v1671_v25 = vadd.f32 %v4172_v3, %v1536_v13  ;;  %v1735_v21 = vadd.f32 %v4172_v3, %v1600_v14 }
 0x1ad   : > { %v2969_v22 = vpack.c.bf16 %v1673_v17, %v1672_v15  ;;  %v3129_v23 = vpack.c.bf16 %v1737_v18, %v1736_v16 }
 0x1ae   : > { %v2964_v24 = vpack.c.bf16 %v1671_v25, %v1670_v19  ;;  %v3124_v26 = vpack.c.bf16 %v1735_v21, %v1734_v20 }
 0x1af   : > { %3161 = vst [vmem:[%s3910_s25 + $0xf8] sm:$0xff] %v2969_v22   ;;  %3193 = vst [vmem:[%s3910_s25 + $0x1f8] sm:$0xff] %v3129_v23  }
 0x1b0   : > { %3160 = vst [vmem:[%s3910_s25 + $0xf0] sm:$0xff] %v2964_v24   ;;  %3192 = vst [vmem:[%s3910_s25 + $0x1f0] sm:$0xff] %v3124_v26  }
 0x1b1   : > { %3593 = shalt.err (!%p3590_p1)
}
 0x1b2   : > { %s3594_s22 = scalar_lea.hbm %s4227_s9, 8192  ;;  %s3598_s14 = scalar_lea.hbm %s4280_s4, 1048576 }
 0x1b3   : > { %p3595_p3 = scmp.ne.s32.totalorder %s4227_s9, %s3594_s22  ;;  %p3599_p0 = scmp.lt.u32.totalorder %s4227_s9, %s4280_s4 }
 0x1b4   : > { %p3600_p2 = scmp.lt.u32.totalorder %s3598_s14, %s3594_s22  ;;  %p3602_p6 = scmp.lt.u32.totalorder %s3594_s22, %s4227_s9 }
 0x1b5   : > { %p3596_p4 = pnand %p3595_p3, %p4287_p10 }
 0x1b6   : > { %p3601_p7 = por %p3600_p2, %p3599_p0 }
 0x1b7   : > { %p3597_p5 = pneg %p3596_p4 }
 0x1b8   : > { %p3603_p11 = por %p3602_p6, %p3601_p7 }
 0x1ba   : > { %p3604_p12 = pnand %p3603_p11, %p3597_p5 }
 0x1bc   : > { %3607 = shalt.err (!%p3604_p12)
}
 0x1bd   : > { %s3652_s30 = smov 64   ;;  %s3653_s5 = smov 4  }
 0x1be   : > { %3428 = dma.vmem_to_hbm [thread:$0]  (%p4287_p10), %s4229_s6, 8192, %s4227_s9, %s2379_s20, %s3652_s30, %s3652_s30, %s3653_s5  }
 0x1bf PF: > { %p3439_p8 = scmp.ge.s32.totalorder %s3646_s18, 2  ;;  %s2407_s19 = sand.u32 1, %s3634_s15  }
 0x1c0   : > { %p4288_p9 = scmp.ne.s32.totalorder %s4285_s28, 0  ;;  %s2408_s7 = scalar_lea.sflag [#allocation4], %s2407_s19 }
 0x1c2   : > { %p3435_p13 = pnand %p3439_p8, %p4288_p9 }
 0x1c4   : > { %3629 = dma.done.wait (!%p3435_p13), %s2408_s7, 8192  }
 0x1c5   : > { %3631 = vsyncadd (!%p3435_p13), %s2408_s7, 4294959104  ;;  %p17_p1 = scmp.ge.s32.totalorder %s3704_s21, 130   ;;  %s4289_s15 = smov %s3638_s16 }
 0x1c6   : > { %s4290_s16 = smov %s3642_s17  ;;  %s4291_s17 = smov %s3716_s24 }
 0x1c7   : > { %s4292_s18 = smov %s3704_s21  ;;  %19 = sbr.rel (!%p17_p1) target bundleno = 5 (0x5), region = 81 }
 0x1ce   :  { %2413 = vsyncpa [#allocation3], 1 }
 0x1cf   :  { %2415 = vsyncpa [#allocation3 + $0x1], 1 }
 0x1d0   :  { %2416 = vsyncpa [#allocation4], 1 }
 0x1d1   :  { %2418 = vsyncpa [#allocation4 + $0x1], 1 }

// kernel: meso4_forward.6
= control target key start
LH: loop header
LB: loop body
LE: loop exit
PB: predicated region body
PF: predicated region fallthrough
CT: control target
= control target key end

     0   :  { %9 = vsyncpa [#allocation3], 0  ;;  %s4603_s0 = inlined_call_operand.vmem [shape: bf16[32768,256], index: 0, kind: input, shape index: {}]   ;;  %s4604_s1 = inlined_call_operand.vmem [shape: bf16[256,128], index: 1, kind: input, shape index: {}]   ;;  %s4605_s2 = inlined_call_operand.hbm [shape: f32[1,128], index: 2, kind: input, shape index: {}]   ;;  %s4606_s3 = inlined_call_operand.hbm [shape: f32[1,128], index: 3, kind: input, shape index: {}]   ;;  %s4607_s4 = inlined_call_operand.vmem [shape: bf16[32768,128], index: 4, kind: output, shape index: {}]  }
   0x1   :  { %10 = vsyncpa [#allocation5], 0  ;;  %s3962_s15 = smov 0  }
   0x2 LB: > { %s2788_s16 = sadd.s32 4294967295, %s3932_s15   ;;  %p2790_p0 = scmp.ge.s32.totalorder %s3932_s15, 1  ;;  %s3932_s15 = sphi %s3962_s15, %s16_s15  }
   0x3   : > { %p136_p1 = scmp.lt.s32.totalorder %s3932_s15, 33  ;;  %p3972_p2 = scmp.eq.s32.totalorder %s2788_s16, 0 }
   0x4   : > { %s3934_s19 = smov [#allocation2]   ;;  %s3935_s21 = smov [#allocation4]  }
   0x5   : > { %s4611_s17 = scalar_select %p3972_p2, 1, 0 }
   0x6   : > { %p3976_p3 = pnand %p2790_p0, %p136_p1  ;;  %s152_s20 = sshll.u32 %s3934_s19, 4  ;;  %s153_s20 = int_to_ptr.vmem [resolvable:$true] %s152_s20 }
   0x7   : > { %s163_s22 = sshll.u32 %s3935_s21, 4  ;;  %s3862_s26 = scalar_lea.hbm %s4605_s2, 16  ;;  %s3988_s22 = int_to_ptr.vmem [resolvable:$true] %s163_s22 }
   0x8   : > { %s4612_s18 = scalar_select %p3976_p3, 1, 0 }
   0x9   : > { %p3630_p4 = pneg %p3976_p3  ;;  %p3863_p6 = scmp.ne.s32.totalorder %s4605_s2, %s3862_s26 }
   0xa   : > { %p3869_p10 = scmp.lt.u32.totalorder %s3862_s26, %s4605_s2 }
   0xb   : > { %p3984_p5 = pnand %p3972_p2, %p3630_p4 }
   0xd   : > { %p3864_p7 = pneg %p3984_p5 }
   0xf   : > { %p3865_p8 = pnand %p3864_p7, %p3863_p6 }
  0x11   : > { %p3866_p9 = pneg %p3865_p8 }
  0x13   : > { %p3871_p11 = pnand %p3869_p10, %p3866_p9 }
  0x15   : > { %3874 = shalt.err (!%p3871_p11)
}
  0x16   : > { %s3875_s5 = scalar_lea.vmem %s153_s20, 16  ;;  %s3882_s6 = scalar_lea.vmem %s153_s20, 32 }
  0x17   : > { %p3876_p12 = scmp.ne.s32.totalorder %s153_s20, %s3875_s5  ;;  %p3883_p1 = scmp.lt.s32.totalorder %s153_s20, %s153_s20 }
  0x18   : > { %p3884_p4 = scmp.lt.s32.totalorder %s3882_s6, %s3875_s5 }
  0x19   : > { %p3878_p13 = pnand %p3876_p12, %p3864_p7 }
  0x1a   : > { %p3885_p2 = por %p3884_p4, %p3883_p1 }
  0x1b   : > { %p3879_p0 = pneg %p3878_p13 }
  0x1d   : > { %p3886_p3 = pnand %p3885_p2, %p3879_p0 }
  0x1f   : > { %3889 = shalt.err (!%p3886_p3)
}
  0x20   : > { %3633 = dma.hbm_to_vmem [thread:$0]  (!%p3984_p5), %s4605_s2, 16, %s153_s20, [#allocation3]  }
  0x21   : > { %s3890_s11 = scalar_lea.hbm %s4606_s3, 16 }
  0x22   : > { %p3891_p6 = scmp.ne.s32.totalorder %s4606_s3, %s3890_s11  ;;  %p3897_p3 = scmp.lt.u32.totalorder %s3890_s11, %s4606_s3 }
  0x24   : > { %p3893_p8 = pnand %p3891_p6, %p3864_p7 }
  0x26   : > { %p3894_p2 = pneg %p3893_p8 }
  0x28   : > { %p3899_p9 = pnand %p3897_p3, %p3894_p2 }
  0x2a   : > { %3902 = shalt.err (!%p3899_p9)
}
  0x2b   : > { %s3903_s20 = scalar_lea.vmem %s3988_s22, 16  ;;  %s3910_s21 = scalar_lea.vmem %s3988_s22, 32 }
  0x2c   : > { %p3904_p10 = scmp.ne.s32.totalorder %s3988_s22, %s3903_s20  ;;  %p3911_p13 = scmp.lt.s32.totalorder %s3988_s22, %s3988_s22 }
  0x2d   : > { %p3912_p0 = scmp.lt.s32.totalorder %s3910_s21, %s3903_s20 }
  0x2e   : > { %p3906_p11 = pnand %p3904_p10, %p3864_p7 }
  0x2f   : > { %p3913_p1 = por %p3912_p0, %p3911_p13 }
  0x30   : > { %p3907_p12 = pneg %p3906_p11 }
  0x32   : > { %p3914_p4 = pnand %p3913_p1, %p3907_p12 }
  0x34   : > { %3917 = shalt.err (!%p3914_p4)
}
  0x35   : > { %3636 = dma.hbm_to_vmem [thread:$0]  (!%p3984_p5), %s4606_s3, 16, %s3988_s22, [#allocation5]  }
  0x36   : > { %p4614_p6 = scmp.ne.s32.totalorder %s4612_s18, 0 }
  0x37   : > { %p4615_p7 = scmp.ne.s32.totalorder (!%p4614_p6), %s4611_s17, 0 }
  0x38   : > { %186 = sbr.rel (%p4614_p6) target bundleno = 602 (0x25a), region = 36 }
  0x3f   : > { %3923 = dma.done.wait (%p4615_p7), [#allocation3], 16  }
  0x40   : > { %3925 = vsyncadd (%p4615_p7), [#allocation3], 4294967280 }
  0x41   : > { %3927 = dma.done.wait (%p4615_p7), [#allocation5], 16  }
  0x42   : > { %3929 = vsyncadd (%p4615_p7), [#allocation5], 4294967280  ;;  %v3936_v0 = vmov 0   ;;  %v3652_v1 = vld [vmem:[%s4604_s1] sm:$0xff]   ;;  %s2797_s23 = sshll.u32 %s2788_s16, 7  ;;  %v3653_v2 = vld [vmem:[%s4604_s1 + $0x8] sm:$0xff]  }
  0x43   : > { %1127 = vmatprep.subr.bf16.mxu0 %v3936_v0  ;;  %3590 = vmatprep.subr.bf16.mxu1 %v3936_v0  ;;  %p218_p5 = scmp.lt.s32.totalorder %s2797_s23, 4095  ;;  %v3654_v3 = vld [vmem:[%s4604_s1 + $0x10] sm:$0xff]   ;;  %v3655_v4 = vld [vmem:[%s4604_s1 + $0x18] sm:$0xff]   ;;  %v3656_v5 = vld [vmem:[%s4604_s1 + $0x20] sm:$0xff]  }
  0x44   : > { %1128 = vmatpush1.bf16.msra.mxu0 %v3652_v1  ;;  %3606 = vmatpush1.bf16.msra.mxu1 %v3652_v1  ;;  %v3657_v7 = vld [vmem:[%s4604_s1 + $0x28] sm:$0xff]   ;;  %v3658_v9 = vld [vmem:[%s4604_s1 + $0x30] sm:$0xff]   ;;  %v3659_v10 = vld [vmem:[%s4604_s1 + $0x38] sm:$0xff]  }
  0x45   : > { %1129 = vmatprep.subr.bf16.mxu0 %v3936_v0  ;;  %3591 = vmatprep.subr.bf16.mxu1 %v3936_v0  ;;  %s4617_s23 = smov (!%p218_p5, %s2797_s23), 4095  ;;  %v3660_v11 = vld [vmem:[%s4604_s1 + $0x40] sm:$0xff]   ;;  %v3661_v12 = vld [vmem:[%s4604_s1 + $0x48] sm:$0xff]   ;;  %v3662_v13 = vld [vmem:[%s4604_s1 + $0x50] sm:$0xff]  }
  0x46   : > { %s3078_s30 = sshll.u32 %s4617_s23, 3  ;;  %v3663_v14 = vld [vmem:[%s4604_s1 + $0x58] sm:$0xff]   ;;  %v3664_v15 = vld [vmem:[%s4604_s1 + $0x60] sm:$0xff]   ;;  %v3665_v16 = vld [vmem:[%s4604_s1 + $0x68] sm:$0xff]   ;;  %s2801_s8 = sshll.u32 %s4617_s23, 2 }
  0x47   : > { %s4079_s9 = scalar_lea.vmem %s4603_s0, %s3078_s30  ;;  %v3666_v17 = vld [vmem:[%s4604_s1 + $0x70] sm:$0xff]   ;;  %v3667_v18 = vld [vmem:[%s4604_s1 + $0x78] sm:$0xff]   ;;  %s4268_s11 = scalar_lea.vmem %s4607_s4, %s2801_s8 }
  0x48   : > { %1130 = vmatpush1.bf16.msra.mxu0 %v3653_v2  ;;  %3607 = vmatpush1.bf16.msra.mxu1 %v3653_v2  ;;  %v3670_v6 = vld [vmem:[%s4079_s9 + $0x4] ss:$8 sps:$4 sm:$0xff]   ;;  %v3668_v19 = vld [vmem:[%s4079_s9] ss:$8 sps:$4 sm:$0xff]   ;;  %v3674_v21 = vld [vmem:[%s4079_s9 + $0x14] ss:$8 sps:$4 sm:$0xff]  }
  0x49   : > { %1131 = vmatprep.subr.bf16.mxu0 %v3936_v0  ;;  %3592 = vmatprep.subr.bf16.mxu1 %v3936_v0  ;;  %v3673_v8 = vld [vmem:[%s4079_s9 + $0x204] ss:$8 sps:$4 sm:$0xff]   ;;  %v3671_v20 = vld [vmem:[%s4079_s9 + $0x200] ss:$8 sps:$4 sm:$0xff]   ;;  %v3676_v22 = vld [vmem:[%s4079_s9 + $0x214] ss:$8 sps:$4 sm:$0xff]  }
  0x4a   : > { %1159 = vmatprep.mubr.bf16.mxu0 %v3670_v6  ;;  %1415 = vmatprep.mubr.bf16.mxu1 %v3673_v8  ;;  %v3678_v23 = vld [vmem:[%s4079_s9 + $0x10] ss:$8 sps:$4 sm:$0xff]   ;;  %v3680_v25 = vld [vmem:[%s4079_s9 + $0x24] ss:$8 sps:$4 sm:$0xff]   ;;  %v3684_v27 = vld [vmem:[%s4079_s9 + $0x20] ss:$8 sps:$4 sm:$0xff]  }
  0x4b   : > { %v3679_v24 = vld [vmem:[%s4079_s9 + $0x210] ss:$8 sps:$4 sm:$0xff]   ;;  %v3682_v26 = vld [vmem:[%s4079_s9 + $0x224] ss:$8 sps:$4 sm:$0xff]   ;;  %v3685_v28 = vld [vmem:[%s4079_s9 + $0x220] ss:$8 sps:$4 sm:$0xff]  }
  0x4c   : > { %1132 = vmatpush1.bf16.msra.mxu0 %v3654_v3  ;;  %3608 = vmatpush1.bf16.msra.mxu1 %v3654_v3  ;;  %v3686_v29 = vld [vmem:[%s4079_s9 + $0x34] ss:$8 sps:$4 sm:$0xff]   ;;  %v3690_v31 = vld [vmem:[%s4079_s9 + $0x30] ss:$8 sps:$4 sm:$0xff]   ;;  %v3692_v33 = vld [vmem:[%s4079_s9 + $0x44] ss:$8 sps:$4 sm:$0xff]  }
  0x4d   : > { %1133 = vmatprep.subr.bf16.mxu0 %v3936_v0  ;;  %3593 = vmatprep.subr.bf16.mxu1 %v3936_v0  ;;  %v3688_v30 = vld [vmem:[%s4079_s9 + $0x234] ss:$8 sps:$4 sm:$0xff]   ;;  %v3691_v32 = vld [vmem:[%s4079_s9 + $0x230] ss:$8 sps:$4 sm:$0xff]   ;;  %v3694_v34 = vld [vmem:[%s4079_s9 + $0x244] ss:$8 sps:$4 sm:$0xff]  }
  0x4e   : > { %v3696_v35 = vld [vmem:[%s4079_s9 + $0x40] ss:$8 sps:$4 sm:$0xff]   ;;  %v3698_v37 = vld [vmem:[%s4079_s9 + $0x54] ss:$8 sps:$4 sm:$0xff]   ;;  %v3702_v39 = vld [vmem:[%s4079_s9 + $0x50] ss:$8 sps:$4 sm:$0xff]  }
  0x4f   : > { %v3697_v36 = vld [vmem:[%s4079_s9 + $0x240] ss:$8 sps:$4 sm:$0xff]   ;;  %v3700_v38 = vld [vmem:[%s4079_s9 + $0x254] ss:$8 sps:$4 sm:$0xff]   ;;  %v3703_v40 = vld [vmem:[%s4079_s9 + $0x250] ss:$8 sps:$4 sm:$0xff]  }
  0x50   : > { %1134 = vmatpush1.bf16.msra.mxu0 %v3655_v4  ;;  %3609 = vmatpush1.bf16.msra.mxu1 %v3655_v4  ;;  %v3704_v41 = vld [vmem:[%s4079_s9 + $0x64] ss:$8 sps:$4 sm:$0xff]   ;;  %v3708_v43 = vld [vmem:[%s4079_s9 + $0x60] ss:$8 sps:$4 sm:$0xff]   ;;  %v3710_v45 = vld [vmem:[%s4079_s9 + $0x74] ss:$8 sps:$4 sm:$0xff]  }
  0x51   : > { %1135 = vmatprep.subr.bf16.mxu0 %v3936_v0  ;;  %3594 = vmatprep.subr.bf16.mxu1 %v3936_v0  ;;  %v3706_v42 = vld [vmem:[%s4079_s9 + $0x264] ss:$8 sps:$4 sm:$0xff]   ;;  %v3709_v44 = vld [vmem:[%s4079_s9 + $0x260] ss:$8 sps:$4 sm:$0xff]   ;;  %v3712_v46 = vld [vmem:[%s4079_s9 + $0x274] ss:$8 sps:$4 sm:$0xff]  }
  0x52   : > { %v3714_v47 = vld [vmem:[%s4079_s9 + $0x70] ss:$8 sps:$4 sm:$0xff]   ;;  %v3716_v49 = vld [vmem:[%s4079_s9 + $0x84] ss:$8 sps:$4 sm:$0xff]   ;;  %v3720_v51 = vld [vmem:[%s4079_s9 + $0x80] ss:$8 sps:$4 sm:$0xff]  }
  0x53   : > { %v3715_v48 = vld [vmem:[%s4079_s9 + $0x270] ss:$8 sps:$4 sm:$0xff]   ;;  %v3718_v50 = vld [vmem:[%s4079_s9 + $0x284] ss:$8 sps:$4 sm:$0xff]   ;;  %v3721_v52 = vld [vmem:[%s4079_s9 + $0x280] ss:$8 sps:$4 sm:$0xff]  }
  0x54   : > { %1136 = vmatpush1.bf16.msra.mxu0 %v3656_v5  ;;  %3610 = vmatpush1.bf16.msra.mxu1 %v3656_v5  ;;  %v3722_v53 = vld [vmem:[%s4079_s9 + $0x94] ss:$8 sps:$4 sm:$0xff]   ;;  %v3726_v55 = vld [vmem:[%s4079_s9 + $0x90] ss:$8 sps:$4 sm:$0xff]   ;;  %v3728_v57 = vld [vmem:[%s4079_s9 + $0xa4] ss:$8 sps:$4 sm:$0xff]  }
  0x55   : > { %1137 = vmatprep.subr.bf16.mxu0 %v3936_v0  ;;  %3595 = vmatprep.subr.bf16.mxu1 %v3936_v0  ;;  %v3724_v54 = vld [vmem:[%s4079_s9 + $0x294] ss:$8 sps:$4 sm:$0xff]   ;;  %v3727_v56 = vld [vmem:[%s4079_s9 + $0x290] ss:$8 sps:$4 sm:$0xff]   ;;  %v3730_v58 = vld [vmem:[%s4079_s9 + $0x2a4] ss:$8 sps:$4 sm:$0xff]  }
  0x56   : > { %v3732_v59 = vld [vmem:[%s4079_s9 + $0xa0] ss:$8 sps:$4 sm:$0xff]   ;;  %v3734_v61 = vld [vmem:[%s4079_s9 + $0xb4] ss:$8 sps:$4 sm:$0xff]   ;;  %v3738_v63 = vld [vmem:[%s4079_s9 + $0xb0] ss:$8 sps:$4 sm:$0xff]  }
  0x57   : > { %v3733_v60 = vld [vmem:[%s4079_s9 + $0x2a0] ss:$8 sps:$4 sm:$0xff]   ;;  %v3736_v62 = vld [vmem:[%s4079_s9 + $0x2b4] ss:$8 sps:$4 sm:$0xff]   ;;  %v3740_v1 = vld [vmem:[%s4079_s9 + $0xc4] ss:$8 sps:$4 sm:$0xff]  }
  0x58   : > { %1138 = vmatpush1.bf16.msra.mxu0 %v3657_v7  ;;  %3611 = vmatpush1.bf16.msra.mxu1 %v3657_v7  ;;  %v3742_v2 = vld [vmem:[%s4079_s9 + $0x2c4] ss:$8 sps:$4 sm:$0xff]   ;;  %v3744_v3 = vld [vmem:[%s4079_s9 + $0xc0] ss:$8 sps:$4 sm:$0xff]   ;;  %v3746_v5 = vld [vmem:[%s4079_s9 + $0xd4] ss:$8 sps:$4 sm:$0xff]  }
  0x59   : > { %1139 = vmatprep.subr.bf16.mxu0 %v3936_v0  ;;  %3596 = vmatprep.subr.bf16.mxu1 %v3936_v0  ;;  %v3745_v4 = vld [vmem:[%s4079_s9 + $0x2c0] ss:$8 sps:$4 sm:$0xff]   ;;  %v3748_v6 = vld [vmem:[%s4079_s9 + $0x2d4] ss:$8 sps:$4 sm:$0xff]   ;;  %v3750_v7 = vld [vmem:[%s4079_s9 + $0xd0] ss:$8 sps:$4 sm:$0xff]  }
  0x5a   : > { %v3751_v8 = vld [vmem:[%s4079_s9 + $0x2d0] ss:$8 sps:$4 sm:$0xff]  }
  0x5c   : > { %1140 = vmatpush1.bf16.msra.mxu0 %v3658_v9  ;;  %3612 = vmatpush1.bf16.msra.mxu1 %v3658_v9  ;;  %v3752_v9 = vld [vmem:[%s4079_s9 + $0xe4] ss:$8 sps:$4 sm:$0xff]  }
  0x5d   : > { %1141 = vmatprep.subr.bf16.mxu0 %v3936_v0  ;;  %3597 = vmatprep.subr.bf16.mxu1 %v3936_v0 }
  0x60   : > { %1142 = vmatpush1.bf16.msra.mxu0 %v3659_v10  ;;  %3613 = vmatpush1.bf16.msra.mxu1 %v3659_v10  ;;  %v3754_v10 = vld [vmem:[%s4079_s9 + $0x2e4] ss:$8 sps:$4 sm:$0xff]  }
  0x61   : > { %1143 = vmatprep.subr.bf16.mxu0 %v3936_v0  ;;  %3598 = vmatprep.subr.bf16.mxu1 %v3936_v0 }
  0x64   : > { %1144 = vmatpush1.bf16.msra.mxu0 %v3660_v11  ;;  %3614 = vmatpush1.bf16.msra.mxu1 %v3660_v11  ;;  %v3756_v11 = vld [vmem:[%s4079_s9 + $0xe0] ss:$8 sps:$4 sm:$0xff]  }
  0x65   : > { %1145 = vmatprep.subr.bf16.mxu0 %v3936_v0  ;;  %3599 = vmatprep.subr.bf16.mxu1 %v3936_v0 }
  0x68   : > { %1146 = vmatpush1.bf16.msra.mxu0 %v3661_v12  ;;  %3615 = vmatpush1.bf16.msra.mxu1 %v3661_v12  ;;  %v3757_v12 = vld [vmem:[%s4079_s9 + $0x2e0] ss:$8 sps:$4 sm:$0xff]  }
  0x69   : > { %1147 = vmatprep.subr.bf16.mxu0 %v3936_v0  ;;  %3600 = vmatprep.subr.bf16.mxu1 %v3936_v0 }
  0x6c   : > { %1148 = vmatpush1.bf16.msra.mxu0 %v3662_v13  ;;  %3616 = vmatpush1.bf16.msra.mxu1 %v3662_v13  ;;  %v3758_v13 = vld [vmem:[%s4079_s9 + $0xf4] ss:$8 sps:$4 sm:$0xff]  }
  0x6d   : > { %1149 = vmatprep.subr.bf16.mxu0 %v3936_v0  ;;  %3601 = vmatprep.subr.bf16.mxu1 %v3936_v0 }
  0x70   : > { %1150 = vmatpush1.bf16.msra.mxu0 %v3663_v14  ;;  %3617 = vmatpush1.bf16.msra.mxu1 %v3663_v14  ;;  %v3760_v14 = vld [vmem:[%s4079_s9 + $0x2f4] ss:$8 sps:$4 sm:$0xff]  }
  0x71   : > { %1151 = vmatprep.subr.bf16.mxu0 %v3936_v0  ;;  %3602 = vmatprep.subr.bf16.mxu1 %v3936_v0 }
  0x74   : > { %1152 = vmatpush1.bf16.msra.mxu0 %v3664_v15  ;;  %3618 = vmatpush1.bf16.msra.mxu1 %v3664_v15  ;;  %v3762_v15 = vld [vmem:[%s4079_s9 + $0xf0] ss:$8 sps:$4 sm:$0xff]  }
  0x75   : > { %1153 = vmatprep.subr.bf16.mxu0 %v3936_v0  ;;  %3603 = vmatprep.subr.bf16.mxu1 %v3936_v0 }
  0x78   : > { %1154 = vmatpush1.bf16.msra.mxu0 %v3665_v16  ;;  %3619 = vmatpush1.bf16.msra.mxu1 %v3665_v16  ;;  %v3763_v16 = vld [vmem:[%s4079_s9 + $0x2f0] ss:$8 sps:$4 sm:$0xff]  }
  0x79   : > { %1155 = vmatprep.subr.bf16.mxu0 %v3936_v0  ;;  %3604 = vmatprep.subr.bf16.mxu1 %v3936_v0 }
  0x7c   : > { %1156 = vmatpush1.bf16.msra.mxu0 %v3666_v17  ;;  %3620 = vmatpush1.bf16.msra.mxu1 %v3666_v17  ;;  %v3764_v17 = vld [vmem:[%s4079_s9 + $0x104] ss:$8 sps:$4 sm:$0xff]  }
  0x7d   : > { %1157 = vmatprep.subr.bf16.mxu0 %v3936_v0  ;;  %3605 = vmatprep.subr.bf16.mxu1 %v3936_v0  ;;  %v3739_v0 = vld [vmem:[%s4079_s9 + $0x2b0] ss:$8 sps:$4 sm:$0xff]  }
  0x80   : > { %1158 = vmatpush1.bf16.msra.mxu0 %v3667_v18  ;;  %3621 = vmatpush1.bf16.msra.mxu1 %v3667_v18  ;;  %v3766_v18 = vld [vmem:[%s4079_s9 + $0x304] ss:$8 sps:$4 sm:$0xff]  }
  0x83   : > { %1160 = vmatmul.mubr.bf16.vlgmr.msra.gmra.mrb[0].mxu0 %v3668_v19  ;;  %1416 = vmatmul.mubr.bf16.vlgmr.msra.gmra.mrb[0].mxu1 %v3671_v20  ;;  %v3768_v19 = vld [vmem:[%s4079_s9 + $0x100] ss:$8 sps:$4 sm:$0xff]  }
  0x84   : > { %1167 = vmatprep.mubr.bf16.mxu0 %v3674_v21  ;;  %1423 = vmatprep.mubr.bf16.mxu1 %v3676_v22  ;;  %v3769_v20 = vld [vmem:[%s4079_s9 + $0x300] ss:$8 sps:$4 sm:$0xff]   ;;  %v3770_v21 = vld [vmem:[%s4079_s9 + $0x114] ss:$8 sps:$4 sm:$0xff]  }
  0x85   : > { %v3772_v22 = vld [vmem:[%s4079_s9 + $0x314] ss:$8 sps:$4 sm:$0xff]  }
  0x8b   : > { %1168 = vmatmul.mubr.bf16.gmra.mrb[4].mxu0 %v3678_v23  ;;  %1424 = vmatmul.mubr.bf16.gmra.mrb[4].mxu1 %v3679_v24  ;;  %v3774_v23 = vld [vmem:[%s4079_s9 + $0x110] ss:$8 sps:$4 sm:$0xff]  }
  0x8c   : > { %1175 = vmatprep.mubr.bf16.mxu0 %v3680_v25  ;;  %1431 = vmatprep.mubr.bf16.mxu1 %v3682_v26  ;;  %v3775_v24 = vld [vmem:[%s4079_s9 + $0x310] ss:$8 sps:$4 sm:$0xff]   ;;  %v3776_v25 = vld [vmem:[%s4079_s9 + $0x124] ss:$8 sps:$4 sm:$0xff]  }
  0x8d   : > { %v3778_v26 = vld [vmem:[%s4079_s9 + $0x324] ss:$8 sps:$4 sm:$0xff]  }
  0x93   : > { %1176 = vmatmul.mubr.bf16.gmra.mrb[8].mxu0 %v3684_v27  ;;  %1432 = vmatmul.mubr.bf16.gmra.mrb[8].mxu1 %v3685_v28  ;;  %v3780_v27 = vld [vmem:[%s4079_s9 + $0x120] ss:$8 sps:$4 sm:$0xff]  }
  0x94   : > { %1183 = vmatprep.mubr.bf16.mxu0 %v3686_v29  ;;  %1439 = vmatprep.mubr.bf16.mxu1 %v3688_v30  ;;  %v3781_v28 = vld [vmem:[%s4079_s9 + $0x320] ss:$8 sps:$4 sm:$0xff]   ;;  %v3782_v29 = vld [vmem:[%s4079_s9 + $0x134] ss:$8 sps:$4 sm:$0xff]  }
  0x95   : > { %v3784_v30 = vld [vmem:[%s4079_s9 + $0x334] ss:$8 sps:$4 sm:$0xff]  }
  0x9b   : > { %1184 = vmatmul.mubr.bf16.gmra.mrb[12].mxu0 %v3690_v31  ;;  %1440 = vmatmul.mubr.bf16.gmra.mrb[12].mxu1 %v3691_v32  ;;  %v3786_v31 = vld [vmem:[%s4079_s9 + $0x130] ss:$8 sps:$4 sm:$0xff]  }
  0x9c   : > { %1191 = vmatprep.mubr.bf16.mxu0 %v3692_v33  ;;  %1447 = vmatprep.mubr.bf16.mxu1 %v3694_v34  ;;  %v3787_v32 = vld [vmem:[%s4079_s9 + $0x330] ss:$8 sps:$4 sm:$0xff]   ;;  %v3788_v33 = vld [vmem:[%s4079_s9 + $0x144] ss:$8 sps:$4 sm:$0xff]  }
  0x9d   : > { %v3790_v34 = vld [vmem:[%s4079_s9 + $0x344] ss:$8 sps:$4 sm:$0xff]  }
  0xa3   : > { %1192 = vmatmul.mubr.bf16.gmra.mrb[16].mxu0 %v3696_v35  ;;  %1448 = vmatmul.mubr.bf16.gmra.mrb[16].mxu1 %v3697_v36  ;;  %v3792_v35 = vld [vmem:[%s4079_s9 + $0x140] ss:$8 sps:$4 sm:$0xff]  }
  0xa4   : > { %1199 = vmatprep.mubr.bf16.mxu0 %v3698_v37  ;;  %1455 = vmatprep.mubr.bf16.mxu1 %v3700_v38  ;;  %v3793_v36 = vld [vmem:[%s4079_s9 + $0x340] ss:$8 sps:$4 sm:$0xff]   ;;  %v3794_v37 = vld [vmem:[%s4079_s9 + $0x154] ss:$8 sps:$4 sm:$0xff]  }
  0xa5   : > { %v3796_v38 = vld [vmem:[%s4079_s9 + $0x354] ss:$8 sps:$4 sm:$0xff]  }
  0xab   : > { %1200 = vmatmul.mubr.bf16.gmra.mrb[20].mxu0 %v3702_v39  ;;  %1456 = vmatmul.mubr.bf16.gmra.mrb[20].mxu1 %v3703_v40  ;;  %v3798_v39 = vld [vmem:[%s4079_s9 + $0x150] ss:$8 sps:$4 sm:$0xff]  }
  0xac   : > { %1207 = vmatprep.mubr.bf16.mxu0 %v3704_v41  ;;  %1463 = vmatprep.mubr.bf16.mxu1 %v3706_v42  ;;  %v3799_v40 = vld [vmem:[%s4079_s9 + $0x350] ss:$8 sps:$4 sm:$0xff]   ;;  %v3800_v41 = vld [vmem:[%s4079_s9 + $0x164] ss:$8 sps:$4 sm:$0xff]  }
  0xad   : > { %v3802_v42 = vld [vmem:[%s4079_s9 + $0x364] ss:$8 sps:$4 sm:$0xff]  }
  0xb3   : > { %1208 = vmatmul.mubr.bf16.gmra.mrb[24].mxu0 %v3708_v43  ;;  %1464 = vmatmul.mubr.bf16.gmra.mrb[24].mxu1 %v3709_v44  ;;  %v3804_v43 = vld [vmem:[%s4079_s9 + $0x160] ss:$8 sps:$4 sm:$0xff]  }
  0xb4   : > { %1215 = vmatprep.mubr.bf16.mxu0 %v3710_v45  ;;  %1471 = vmatprep.mubr.bf16.mxu1 %v3712_v46  ;;  %v3805_v44 = vld [vmem:[%s4079_s9 + $0x360] ss:$8 sps:$4 sm:$0xff]   ;;  %v3806_v45 = vld [vmem:[%s4079_s9 + $0x174] ss:$8 sps:$4 sm:$0xff]  }
  0xb5   : > { %v3808_v46 = vld [vmem:[%s4079_s9 + $0x374] ss:$8 sps:$4 sm:$0xff]  }
  0xbb   : > { %1216 = vmatmul.mubr.bf16.gmra.mrb[28].mxu0 %v3714_v47  ;;  %1472 = vmatmul.mubr.bf16.gmra.mrb[28].mxu1 %v3715_v48  ;;  %v3810_v47 = vld [vmem:[%s4079_s9 + $0x170] ss:$8 sps:$4 sm:$0xff]  }
  0xbc   : > { %1223 = vmatprep.mubr.bf16.mxu0 %v3716_v49  ;;  %1479 = vmatprep.mubr.bf16.mxu1 %v3718_v50  ;;  %v3811_v48 = vld [vmem:[%s4079_s9 + $0x370] ss:$8 sps:$4 sm:$0xff]   ;;  %v3812_v49 = vld [vmem:[%s4079_s9 + $0x184] ss:$8 sps:$4 sm:$0xff]  }
  0xbd   : > { %v3814_v50 = vld [vmem:[%s4079_s9 + $0x384] ss:$8 sps:$4 sm:$0xff]  }
  0xc3   : > { %1224 = vmatmul.mubr.bf16.gmra.mrb[32].mxu0 %v3720_v51  ;;  %1480 = vmatmul.mubr.bf16.gmra.mrb[32].mxu1 %v3721_v52  ;;  %v3816_v51 = vld [vmem:[%s4079_s9 + $0x180] ss:$8 sps:$4 sm:$0xff]  }
  0xc4   : > { %1231 = vmatprep.mubr.bf16.mxu0 %v3722_v53  ;;  %1487 = vmatprep.mubr.bf16.mxu1 %v3724_v54  ;;  %v3817_v52 = vld [vmem:[%s4079_s9 + $0x380] ss:$8 sps:$4 sm:$0xff]   ;;  %v3818_v53 = vld [vmem:[%s4079_s9 + $0x194] ss:$8 sps:$4 sm:$0xff]  }
  0xc5   : > { %v3820_v54 = vld [vmem:[%s4079_s9 + $0x394] ss:$8 sps:$4 sm:$0xff]  }
  0xcb   : > { %1232 = vmatmul.mubr.bf16.gmra.mrb[36].mxu0 %v3726_v55  ;;  %1488 = vmatmul.mubr.bf16.gmra.mrb[36].mxu1 %v3727_v56  ;;  %v3822_v55 = vld [vmem:[%s4079_s9 + $0x190] ss:$8 sps:$4 sm:$0xff]  }
  0xcc   : > { %1239 = vmatprep.mubr.bf16.mxu0 %v3728_v57  ;;  %1495 = vmatprep.mubr.bf16.mxu1 %v3730_v58  ;;  %v3823_v56 = vld [vmem:[%s4079_s9 + $0x390] ss:$8 sps:$4 sm:$0xff]   ;;  %v3824_v57 = vld [vmem:[%s4079_s9 + $0x1a4] ss:$8 sps:$4 sm:$0xff]  }
  0xcd   : > { %v3826_v58 = vld [vmem:[%s4079_s9 + $0x3a4] ss:$8 sps:$4 sm:$0xff]  }
  0xd3   : > { %1240 = vmatmul.mubr.bf16.gmra.mrb[40].mxu0 %v3732_v59  ;;  %1496 = vmatmul.mubr.bf16.gmra.mrb[40].mxu1 %v3733_v60  ;;  %v3828_v59 = vld [vmem:[%s4079_s9 + $0x1a0] ss:$8 sps:$4 sm:$0xff]  }
  0xd4   : > { %1247 = vmatprep.mubr.bf16.mxu0 %v3734_v61  ;;  %1503 = vmatprep.mubr.bf16.mxu1 %v3736_v62  ;;  %v3829_v60 = vld [vmem:[%s4079_s9 + $0x3a0] ss:$8 sps:$4 sm:$0xff]   ;;  %v3830_v61 = vld [vmem:[%s4079_s9 + $0x1b4] ss:$8 sps:$4 sm:$0xff]  }
  0xd5   : > { %v3832_v62 = vld [vmem:[%s4079_s9 + $0x3b4] ss:$8 sps:$4 sm:$0xff]  }
  0xdb   : > { %1248 = vmatmul.mubr.bf16.gmra.mrb[44].mxu0 %v3738_v63  ;;  %1504 = vmatmul.mubr.bf16.gmra.mrb[44].mxu1 %v3739_v0  ;;  %v4248_v0 = vld [vmem:[#allocation2] ss:$0 sm:$0xff] }
  0xdc   : > { %1255 = vmatprep.mubr.bf16.mxu0 %v3740_v1  ;;  %1511 = vmatprep.mubr.bf16.mxu1 %v3742_v2 }
  0xe3   : > { %1256 = vmatmul.mubr.bf16.gmra.mrb[48].mxu0 %v3744_v3  ;;  %1512 = vmatmul.mubr.bf16.gmra.mrb[48].mxu1 %v3745_v4 }
  0xe4   : > { %1263 = vmatprep.mubr.bf16.mxu0 %v3746_v5  ;;  %1519 = vmatprep.mubr.bf16.mxu1 %v3748_v6  ;;  %v3834_v6 = vld [vmem:[%s4079_s9 + $0x1b0] ss:$8 sps:$4 sm:$0xff]  }
  0xeb   : > { %1264 = vmatmul.mubr.bf16.gmra.mrb[52].mxu0 %v3750_v7  ;;  %1520 = vmatmul.mubr.bf16.gmra.mrb[52].mxu1 %v3751_v8 }
  0xec   : > { %1271 = vmatprep.mubr.bf16.mxu0 %v3752_v9  ;;  %1527 = vmatprep.mubr.bf16.mxu1 %v3754_v10  ;;  %v3835_v9 = vld [vmem:[%s4079_s9 + $0x3b0] ss:$8 sps:$4 sm:$0xff]   ;;  %v3836_v10 = vld [vmem:[%s4079_s9 + $0x1c4] ss:$8 sps:$4 sm:$0xff]  }
  0xf3   : > { %1272 = vmatmul.mubr.bf16.gmra.mrb[56].mxu0 %v3756_v11  ;;  %1528 = vmatmul.mubr.bf16.gmra.mrb[56].mxu1 %v3757_v12 }
  0xf4   : > { %1279 = vmatprep.mubr.bf16.mxu0 %v3758_v13  ;;  %1535 = vmatprep.mubr.bf16.mxu1 %v3760_v14 }
  0xfb   : > { %1280 = vmatmul.mubr.bf16.gmra.mrb[60].mxu0 %v3762_v15  ;;  %1536 = vmatmul.mubr.bf16.gmra.mrb[60].mxu1 %v3763_v16 }
  0xfc   : > { %1287 = vmatprep.mubr.bf16.mxu0 %v3764_v17  ;;  %1543 = vmatprep.mubr.bf16.mxu1 %v3766_v18  ;;  %v3838_v17 = vld [vmem:[%s4079_s9 + $0x3c4] ss:$8 sps:$4 sm:$0xff]   ;;  %v4256_v18 = vld [vmem:[#allocation4] ss:$0 sm:$0xff] }
 0x103   : > { %1288 = vmatmul.mubr.bf16.gmra.mrb[64].mxu0 %v3768_v19  ;;  %1544 = vmatmul.mubr.bf16.gmra.mrb[64].mxu1 %v3769_v20 }
 0x104   : > { %1295 = vmatprep.mubr.bf16.mxu0 %v3770_v21  ;;  %1551 = vmatprep.mubr.bf16.mxu1 %v3772_v22 }
 0x10b   : > { %1296 = vmatmul.mubr.bf16.gmra.mrb[68].mxu0 %v3774_v23  ;;  %1552 = vmatmul.mubr.bf16.gmra.mrb[68].mxu1 %v3775_v24 }
 0x10c   : > { %1303 = vmatprep.mubr.bf16.mxu0 %v3776_v25  ;;  %1559 = vmatprep.mubr.bf16.mxu1 %v3778_v26 }
 0x113   : > { %1304 = vmatmul.mubr.bf16.gmra.mrb[72].mxu0 %v3780_v27  ;;  %1560 = vmatmul.mubr.bf16.gmra.mrb[72].mxu1 %v3781_v28 }
 0x114   : > { %1311 = vmatprep.mubr.bf16.mxu0 %v3782_v29  ;;  %1567 = vmatprep.mubr.bf16.mxu1 %v3784_v30 }
 0x11b   : > { %1312 = vmatmul.mubr.bf16.gmra.mrb[76].mxu0 %v3786_v31  ;;  %1568 = vmatmul.mubr.bf16.gmra.mrb[76].mxu1 %v3787_v32 }
 0x11c   : > { %1319 = vmatprep.mubr.bf16.mxu0 %v3788_v33  ;;  %1575 = vmatprep.mubr.bf16.mxu1 %v3790_v34  ;;  %v3840_v33 = vld [vmem:[%s4079_s9 + $0x1c0] ss:$8 sps:$4 sm:$0xff]  }
 0x123   : > { %1320 = vmatmul.mubr.bf16.gmra.mrb[80].mxu0 %v3792_v35  ;;  %1576 = vmatmul.mubr.bf16.gmra.mrb[80].mxu1 %v3793_v36  ;;  %v3841_v36 = vld [vmem:[%s4079_s9 + $0x3c0] ss:$8 sps:$4 sm:$0xff]  }
 0x124   : > { %1327 = vmatprep.mubr.bf16.mxu0 %v3794_v37  ;;  %1583 = vmatprep.mubr.bf16.mxu1 %v3796_v38  ;;  %v3842_v37 = vld [vmem:[%s4079_s9 + $0x1d4] ss:$8 sps:$4 sm:$0xff]  }
 0x12b   : > { %1328 = vmatmul.mubr.bf16.gmra.mrb[84].mxu0 %v3798_v39  ;;  %1584 = vmatmul.mubr.bf16.gmra.mrb[84].mxu1 %v3799_v40 }
 0x12c   : > { %1335 = vmatprep.mubr.bf16.mxu0 %v3800_v41  ;;  %1591 = vmatprep.mubr.bf16.mxu1 %v3802_v42 }
 0x133   : > { %1336 = vmatmul.mubr.bf16.gmra.mrb[88].mxu0 %v3804_v43  ;;  %1592 = vmatmul.mubr.bf16.gmra.mrb[88].mxu1 %v3805_v44  ;;  %v3844_v44 = vld [vmem:[%s4079_s9 + $0x3d4] ss:$8 sps:$4 sm:$0xff]  }
 0x134   : > { %1343 = vmatprep.mubr.bf16.mxu0 %v3806_v45  ;;  %1599 = vmatprep.mubr.bf16.mxu1 %v3808_v46 }
 0x13b   : > { %1344 = vmatmul.mubr.bf16.gmra.mrb[92].mxu0 %v3810_v47  ;;  %1600 = vmatmul.mubr.bf16.gmra.mrb[92].mxu1 %v3811_v48 }
 0x13c   : > { %1351 = vmatprep.mubr.bf16.mxu0 %v3812_v49  ;;  %1607 = vmatprep.mubr.bf16.mxu1 %v3814_v50 }
 0x143   : > { %1352 = vmatmul.mubr.bf16.gmra.mrb[96].mxu0 %v3816_v51  ;;  %1608 = vmatmul.mubr.bf16.gmra.mrb[96].mxu1 %v3817_v52 }
 0x144   : > { %1359 = vmatprep.mubr.bf16.mxu0 %v3818_v53  ;;  %1615 = vmatprep.mubr.bf16.mxu1 %v3820_v54 }
 0x14b   : > { %1360 = vmatmul.mubr.bf16.gmra.mrb[100].mxu0 %v3822_v55  ;;  %1616 = vmatmul.mubr.bf16.gmra.mrb[100].mxu1 %v3823_v56 }
 0x14c   : > { %1367 = vmatprep.mubr.bf16.mxu0 %v3824_v57  ;;  %1623 = vmatprep.mubr.bf16.mxu1 %v3826_v58 }
 0x153   : > { %1368 = vmatmul.mubr.bf16.gmra.mrb[104].mxu0 %v3828_v59  ;;  %1624 = vmatmul.mubr.bf16.gmra.mrb[104].mxu1 %v3829_v60  ;;  %v3846_v59 = vld [vmem:[%s4079_s9 + $0x1d0] ss:$8 sps:$4 sm:$0xff]  }
 0x154   : > { %1375 = vmatprep.mubr.bf16.mxu0 %v3830_v61  ;;  %1631 = vmatprep.mubr.bf16.mxu1 %v3832_v62  ;;  %v3847_v62 = vld [vmem:[%s4079_s9 + $0x3d0] ss:$8 sps:$4 sm:$0xff]  }
 0x156   : > { %v1161_v63 = vpop.f32.mrb[0].mxu0  ;;  %v1417_v1 = vpop.f32.mrb[0].mxu1 }
 0x157   : > { %v1672_v2 = vmax.f32 %v1161_v63, 0.0  ;;  %v1736_v3 = vmax.f32 %v1417_v1, 0.0  ;;  %v1163_v4 = vpop.f32.mrb[1].mxu0  ;;  %v1419_v5 = vpop.f32.mrb[1].mxu1  ;;  %v3848_v63 = vld [vmem:[%s4079_s9 + $0x1e4] ss:$8 sps:$4 sm:$0xff]  }
 0x158   : > { %v1164_v7 = vpop.f32.mrb[2].mxu0  ;;  %v1420_v8 = vpop.f32.mrb[2].mxu1 }
 0x159   : > { %v1807_v11 = vmul.f32 %v4248_v0, %v1672_v2  ;;  %v1871_v12 = vmul.f32 %v4248_v0, %v1736_v3  ;;  %v1673_v13 = vmax.f32 %v1164_v7, 0.0  ;;  %v1737_v14 = vmax.f32 %v1420_v8, 0.0  ;;  %v1166_v15 = vpop.f32.mrb[3].mxu0  ;;  %v1422_v16 = vpop.f32.mrb[3].mxu1  ;;  %v3850_v7 = vld [vmem:[%s4079_s9 + $0x3e4] ss:$8 sps:$4 sm:$0xff]  }
 0x15b   : > { %v1808_v19 = vmul.f32 %v4248_v0, %v1673_v13  ;;  %v1872_v20 = vmul.f32 %v4248_v0, %v1737_v14  ;;  %1376 = vmatmul.mubr.bf16.gmra.mrb[108].mxu0 %v3834_v6  ;;  %1632 = vmatmul.mubr.bf16.gmra.mrb[108].mxu1 %v3835_v9  ;;  %v1942_v21 = vadd.f32 %v4256_v18, %v1807_v11 }
 0x15c   : > { %1383 = vmatprep.mubr.bf16.mxu0 %v3836_v10  ;;  %v2006_v22 = vadd.f32 %v4256_v18, %v1871_v12  ;;  %1639 = vmatprep.mubr.bf16.mxu1 %v3838_v17 }
 0x15d   : > { %v1943_v23 = vadd.f32 %v4256_v18, %v1808_v19  ;;  %v2007_v24 = vadd.f32 %v4256_v18, %v1872_v20 }
 0x15e   : > { %v1169_v25 = vpop.f32.mrb[4].mxu0  ;;  %v1425_v26 = vpop.f32.mrb[4].mxu1 }
 0x15f   : > { %v3210_v27 = vpack.c.bf16 %v1943_v23, %v1942_v21  ;;  %v3370_v28 = vpack.c.bf16 %v2007_v24, %v2006_v22  ;;  %v1674_v29 = vmax.f32 %v1169_v25, 0.0  ;;  %v1738_v30 = vmax.f32 %v1425_v26, 0.0  ;;  %v1171_v31 = vpop.f32.mrb[5].mxu0  ;;  %v1427_v32 = vpop.f32.mrb[5].mxu1  ;;  %v3852_v23 = vld [vmem:[%s4079_s9 + $0x1e0] ss:$8 sps:$4 sm:$0xff]  }
 0x160   : > { %v1172_v34 = vpop.f32.mrb[6].mxu0  ;;  %v1428_v35 = vpop.f32.mrb[6].mxu1  ;;  %v3853_v26 = vld [vmem:[%s4079_s9 + $0x3e0] ss:$8 sps:$4 sm:$0xff]  }
 0x161   : > { %3211 = vst [vmem:[%s4268_s11] sm:$0xff] %v3210_v27   ;;  %3558 = vst [vmem:[%s4268_s11 + $0x100] sm:$0xff] %v3370_v28   ;;  %v1809_v38 = vmul.f32 %v4248_v0, %v1674_v29  ;;  %v1873_v39 = vmul.f32 %v4248_v0, %v1738_v30  ;;  %v1675_v40 = vmax.f32 %v1172_v34, 0.0  ;;  %v1739_v41 = vmax.f32 %v1428_v35, 0.0  ;;  %v1174_v42 = vpop.f32.mrb[7].mxu0  ;;  %v1430_v43 = vpop.f32.mrb[7].mxu1 }
 0x162   : > { %v3854_v27 = vld [vmem:[%s4079_s9 + $0x1f4] ss:$8 sps:$4 sm:$0xff]  }
 0x163   : > { %v1810_v45 = vmul.f32 %v4248_v0, %v1675_v40  ;;  %v1874_v46 = vmul.f32 %v4248_v0, %v1739_v41  ;;  %1384 = vmatmul.mubr.bf16.gmra.mrb[112].mxu0 %v3840_v33  ;;  %1640 = vmatmul.mubr.bf16.gmra.mrb[112].mxu1 %v3841_v36  ;;  %v1944_v47 = vadd.f32 %v4256_v18, %v1809_v38  ;;  %v3856_v34 = vld [vmem:[%s4079_s9 + $0x3f4] ss:$8 sps:$4 sm:$0xff]  }
 0x164   : > { %1391 = vmatprep.mubr.bf16.mxu0 %v3842_v37  ;;  %v2008_v48 = vadd.f32 %v4256_v18, %v1873_v39  ;;  %1647 = vmatprep.mubr.bf16.mxu1 %v3844_v44 }
 0x165   : > { %v1945_v49 = vadd.f32 %v4256_v18, %v1810_v45  ;;  %v2009_v50 = vadd.f32 %v4256_v18, %v1874_v46 }
 0x166   : > { %v1177_v51 = vpop.f32.mrb[8].mxu0  ;;  %v1433_v52 = vpop.f32.mrb[8].mxu1 }
 0x167   : > { %v3215_v53 = vpack.c.bf16 %v1945_v49, %v1944_v47  ;;  %v3375_v54 = vpack.c.bf16 %v2009_v50, %v2008_v48  ;;  %v1676_v55 = vmax.f32 %v1177_v51, 0.0  ;;  %v1740_v56 = vmax.f32 %v1433_v52, 0.0  ;;  %v1179_v57 = vpop.f32.mrb[9].mxu0  ;;  %v1435_v58 = vpop.f32.mrb[9].mxu1  ;;  %v3858_v49 = vld [vmem:[%s4079_s9 + $0x1f0] ss:$8 sps:$4 sm:$0xff]  }
 0x168   : > { %v1180_v60 = vpop.f32.mrb[10].mxu0  ;;  %v1436_v61 = vpop.f32.mrb[10].mxu1  ;;  %v3859_v52 = vld [vmem:[%s4079_s9 + $0x3f0] ss:$8 sps:$4 sm:$0xff]  }
 0x169   : > { %3527 = vst [vmem:[%s4268_s11 + $0x8] sm:$0xff] %v3215_v53   ;;  %3559 = vst [vmem:[%s4268_s11 + $0x108] sm:$0xff] %v3375_v54   ;;  %v1811_v1 = vmul.f32 %v4248_v0, %v1676_v55  ;;  %v1875_v2 = vmul.f32 %v4248_v0, %v1740_v56  ;;  %v1677_v3 = vmax.f32 %v1180_v60, 0.0  ;;  %v1741_v4 = vmax.f32 %v1436_v61, 0.0  ;;  %v1182_v5 = vpop.f32.mrb[11].mxu0  ;;  %v1438_v6 = vpop.f32.mrb[11].mxu1 }
 0x16b   : > { %v1812_v8 = vmul.f32 %v4248_v0, %v1677_v3  ;;  %v1876_v9 = vmul.f32 %v4248_v0, %v1741_v4  ;;  %1392 = vmatmul.mubr.bf16.gmra.mrb[116].mxu0 %v3846_v59  ;;  %1648 = vmatmul.mubr.bf16.gmra.mrb[116].mxu1 %v3847_v62  ;;  %v1946_v10 = vadd.f32 %v4256_v18, %v1811_v1 }
 0x16c   : > { %1399 = vmatprep.mubr.bf16.mxu0 %v3848_v63  ;;  %v2010_v11 = vadd.f32 %v4256_v18, %v1875_v2  ;;  %1655 = vmatprep.mubr.bf16.mxu1 %v3850_v7 }
 0x16d   : > { %v1947_v12 = vadd.f32 %v4256_v18, %v1812_v8  ;;  %v2011_v13 = vadd.f32 %v4256_v18, %v1876_v9 }
 0x16e   : > { %v1185_v14 = vpop.f32.mrb[12].mxu0  ;;  %v1441_v15 = vpop.f32.mrb[12].mxu1 }
 0x16f   : > { %v3220_v16 = vpack.c.bf16 %v1947_v12, %v1946_v10  ;;  %v3380_v17 = vpack.c.bf16 %v2011_v13, %v2010_v11  ;;  %v1678_v19 = vmax.f32 %v1185_v14, 0.0  ;;  %v1742_v20 = vmax.f32 %v1441_v15, 0.0  ;;  %v1187_v21 = vpop.f32.mrb[13].mxu0  ;;  %v1443_v22 = vpop.f32.mrb[13].mxu1 }
 0x170   : > { %v1188_v24 = vpop.f32.mrb[14].mxu0  ;;  %v1444_v25 = vpop.f32.mrb[14].mxu1 }
 0x171   : > { %3528 = vst [vmem:[%s4268_s11 + $0x10] sm:$0xff] %v3220_v16   ;;  %3560 = vst [vmem:[%s4268_s11 + $0x110] sm:$0xff] %v3380_v17   ;;  %v1813_v28 = vmul.f32 %v4248_v0, %v1678_v19  ;;  %v1877_v29 = vmul.f32 %v4248_v0, %v1742_v20  ;;  %v1679_v30 = vmax.f32 %v1188_v24, 0.0  ;;  %v1743_v31 = vmax.f32 %v1444_v25, 0.0  ;;  %v1190_v32 = vpop.f32.mrb[15].mxu0  ;;  %v1446_v33 = vpop.f32.mrb[15].mxu1 }
 0x173   : > { %v1814_v35 = vmul.f32 %v4248_v0, %v1679_v30  ;;  %v1878_v36 = vmul.f32 %v4248_v0, %v1743_v31  ;;  %1400 = vmatmul.mubr.bf16.gmra.mrb[120].mxu0 %v3852_v23  ;;  %1656 = vmatmul.mubr.bf16.gmra.mrb[120].mxu1 %v3853_v26  ;;  %v1948_v37 = vadd.f32 %v4256_v18, %v1813_v28 }
 0x174   : > { %1407 = vmatprep.mubr.bf16.mxu0 %v3854_v27  ;;  %v2012_v38 = vadd.f32 %v4256_v18, %v1877_v29  ;;  %1663 = vmatprep.mubr.bf16.mxu1 %v3856_v34 }
 0x175   : > { %v1949_v39 = vadd.f32 %v4256_v18, %v1814_v35  ;;  %v2013_v40 = vadd.f32 %v4256_v18, %v1878_v36 }
 0x176   : > { %v1193_v41 = vpop.f32.mrb[16].mxu0  ;;  %v1449_v42 = vpop.f32.mrb[16].mxu1 }
 0x177   : > { %v3225_v43 = vpack.c.bf16 %v1949_v39, %v1948_v37  ;;  %v3385_v44 = vpack.c.bf16 %v2013_v40, %v2012_v38  ;;  %v1680_v45 = vmax.f32 %v1193_v41, 0.0  ;;  %v1744_v46 = vmax.f32 %v1449_v42, 0.0  ;;  %v1195_v47 = vpop.f32.mrb[17].mxu0  ;;  %v1451_v48 = vpop.f32.mrb[17].mxu1 }
 0x178   : > { %v1196_v50 = vpop.f32.mrb[18].mxu0  ;;  %v1452_v51 = vpop.f32.mrb[18].mxu1 }
 0x179   : > { %3529 = vst [vmem:[%s4268_s11 + $0x18] sm:$0xff] %v3225_v43   ;;  %3561 = vst [vmem:[%s4268_s11 + $0x118] sm:$0xff] %v3385_v44   ;;  %v1815_v53 = vmul.f32 %v4248_v0, %v1680_v45  ;;  %v1879_v54 = vmul.f32 %v4248_v0, %v1744_v46  ;;  %v1681_v55 = vmax.f32 %v1196_v50, 0.0  ;;  %v1745_v56 = vmax.f32 %v1452_v51, 0.0  ;;  %v1198_v57 = vpop.f32.mrb[19].mxu0  ;;  %v1454_v58 = vpop.f32.mrb[19].mxu1 }
 0x17b   : > { %v1816_v59 = vmul.f32 %v4248_v0, %v1681_v55  ;;  %v1880_v60 = vmul.f32 %v4248_v0, %v1745_v56  ;;  %1408 = vmatmul.mubr.bf16.gmra.mrb[124].mxu0 %v3858_v49  ;;  %1664 = vmatmul.mubr.bf16.gmra.mrb[124].mxu1 %v3859_v52  ;;  %v1950_v61 = vadd.f32 %v4256_v18, %v1815_v53 }
 0x17c   : > { %v2014_v62 = vadd.f32 %v4256_v18, %v1879_v54 }
 0x17d   : > { %v1951_v63 = vadd.f32 %v4256_v18, %v1816_v59  ;;  %v2015_v1 = vadd.f32 %v4256_v18, %v1880_v60 }
 0x17e   : > { %v1201_v2 = vpop.f32.mrb[20].mxu0  ;;  %v1457_v3 = vpop.f32.mrb[20].mxu1 }
 0x17f   : > { %v3230_v4 = vpack.c.bf16 %v1951_v63, %v1950_v61  ;;  %v3390_v5 = vpack.c.bf16 %v2015_v1, %v2014_v62  ;;  %v1682_v6 = vmax.f32 %v1201_v2, 0.0  ;;  %v1746_v7 = vmax.f32 %v1457_v3, 0.0  ;;  %v1203_v8 = vpop.f32.mrb[21].mxu0  ;;  %v1459_v9 = vpop.f32.mrb[21].mxu1 }
 0x180   : > { %v1204_v10 = vpop.f32.mrb[22].mxu0  ;;  %v1460_v11 = vpop.f32.mrb[22].mxu1 }
 0x181   : > { %3530 = vst [vmem:[%s4268_s11 + $0x20] sm:$0xff] %v3230_v4   ;;  %3562 = vst [vmem:[%s4268_s11 + $0x120] sm:$0xff] %v3390_v5   ;;  %v1817_v12 = vmul.f32 %v4248_v0, %v1682_v6  ;;  %v1881_v13 = vmul.f32 %v4248_v0, %v1746_v7  ;;  %v1683_v14 = vmax.f32 %v1204_v10, 0.0  ;;  %v1747_v15 = vmax.f32 %v1460_v11, 0.0  ;;  %v1206_v16 = vpop.f32.mrb[23].mxu0  ;;  %v1462_v17 = vpop.f32.mrb[23].mxu1 }
 0x183   : > { %v1818_v19 = vmul.f32 %v4248_v0, %v1683_v14  ;;  %v1882_v20 = vmul.f32 %v4248_v0, %v1747_v15  ;;  %v1952_v21 = vadd.f32 %v4256_v18, %v1817_v12  ;;  %v2016_v22 = vadd.f32 %v4256_v18, %v1881_v13 }
 0x185   : > { %v1953_v23 = vadd.f32 %v4256_v18, %v1818_v19  ;;  %v2017_v24 = vadd.f32 %v4256_v18, %v1882_v20 }
 0x186   : > { %v1209_v25 = vpop.f32.mrb[24].mxu0  ;;  %v1465_v26 = vpop.f32.mrb[24].mxu1 }
 0x187   : > { %v3235_v27 = vpack.c.bf16 %v1953_v23, %v1952_v21  ;;  %v3395_v28 = vpack.c.bf16 %v2017_v24, %v2016_v22  ;;  %v1684_v29 = vmax.f32 %v1209_v25, 0.0  ;;  %v1748_v30 = vmax.f32 %v1465_v26, 0.0  ;;  %v1211_v31 = vpop.f32.mrb[25].mxu0  ;;  %v1467_v32 = vpop.f32.mrb[25].mxu1 }
 0x188   : > { %v1212_v33 = vpop.f32.mrb[26].mxu0  ;;  %v1468_v34 = vpop.f32.mrb[26].mxu1 }
 0x189   : > { %3531 = vst [vmem:[%s4268_s11 + $0x28] sm:$0xff] %v3235_v27   ;;  %3563 = vst [vmem:[%s4268_s11 + $0x128] sm:$0xff] %v3395_v28   ;;  %v1819_v35 = vmul.f32 %v4248_v0, %v1684_v29  ;;  %v1883_v36 = vmul.f32 %v4248_v0, %v1748_v30  ;;  %v1685_v37 = vmax.f32 %v1212_v33, 0.0  ;;  %v1749_v38 = vmax.f32 %v1468_v34, 0.0  ;;  %v1214_v39 = vpop.f32.mrb[27].mxu0  ;;  %v1470_v40 = vpop.f32.mrb[27].mxu1 }
 0x18b   : > { %v1820_v41 = vmul.f32 %v4248_v0, %v1685_v37  ;;  %v1884_v42 = vmul.f32 %v4248_v0, %v1749_v38  ;;  %v1954_v43 = vadd.f32 %v4256_v18, %v1819_v35  ;;  %v2018_v44 = vadd.f32 %v4256_v18, %v1883_v36 }
 0x18d   : > { %v1955_v45 = vadd.f32 %v4256_v18, %v1820_v41  ;;  %v2019_v46 = vadd.f32 %v4256_v18, %v1884_v42 }
 0x18e   : > { %v1217_v47 = vpop.f32.mrb[28].mxu0  ;;  %v1473_v48 = vpop.f32.mrb[28].mxu1 }
 0x18f   : > { %v3240_v49 = vpack.c.bf16 %v1955_v45, %v1954_v43  ;;  %v3400_v50 = vpack.c.bf16 %v2019_v46, %v2018_v44  ;;  %v1686_v51 = vmax.f32 %v1217_v47, 0.0  ;;  %v1750_v52 = vmax.f32 %v1473_v48, 0.0  ;;  %v1219_v53 = vpop.f32.mrb[29].mxu0  ;;  %v1475_v54 = vpop.f32.mrb[29].mxu1 }
 0x190   : > { %v1220_v55 = vpop.f32.mrb[30].mxu0  ;;  %v1476_v56 = vpop.f32.mrb[30].mxu1 }
 0x191   : > { %3532 = vst [vmem:[%s4268_s11 + $0x30] sm:$0xff] %v3240_v49   ;;  %3564 = vst [vmem:[%s4268_s11 + $0x130] sm:$0xff] %v3400_v50   ;;  %v1821_v57 = vmul.f32 %v4248_v0, %v1686_v51  ;;  %v1885_v58 = vmul.f32 %v4248_v0, %v1750_v52  ;;  %v1687_v59 = vmax.f32 %v1220_v55, 0.0  ;;  %v1751_v60 = vmax.f32 %v1476_v56, 0.0  ;;  %v1222_v61 = vpop.f32.mrb[31].mxu0  ;;  %v1478_v62 = vpop.f32.mrb[31].mxu1 }
 0x193   : > { %v1822_v63 = vmul.f32 %v4248_v0, %v1687_v59  ;;  %v1886_v1 = vmul.f32 %v4248_v0, %v1751_v60  ;;  %v1956_v2 = vadd.f32 %v4256_v18, %v1821_v57  ;;  %v2020_v3 = vadd.f32 %v4256_v18, %v1885_v58 }
 0x195   : > { %v1957_v4 = vadd.f32 %v4256_v18, %v1822_v63  ;;  %v2021_v5 = vadd.f32 %v4256_v18, %v1886_v1 }
 0x196   : > { %v1225_v6 = vpop.f32.mrb[32].mxu0  ;;  %v1481_v7 = vpop.f32.mrb[32].mxu1 }
 0x197   : > { %v3245_v8 = vpack.c.bf16 %v1957_v4, %v1956_v2  ;;  %v3405_v9 = vpack.c.bf16 %v2021_v5, %v2020_v3  ;;  %v1688_v10 = vmax.f32 %v1225_v6, 0.0  ;;  %v1752_v11 = vmax.f32 %v1481_v7, 0.0  ;;  %v1227_v12 = vpop.f32.mrb[33].mxu0  ;;  %v1483_v13 = vpop.f32.mrb[33].mxu1 }
 0x198   : > { %v1228_v14 = vpop.f32.mrb[34].mxu0  ;;  %v1484_v15 = vpop.f32.mrb[34].mxu1 }
 0x199   : > { %3533 = vst [vmem:[%s4268_s11 + $0x38] sm:$0xff] %v3245_v8   ;;  %3565 = vst [vmem:[%s4268_s11 + $0x138] sm:$0xff] %v3405_v9   ;;  %v1823_v16 = vmul.f32 %v4248_v0, %v1688_v10  ;;  %v1887_v17 = vmul.f32 %v4248_v0, %v1752_v11  ;;  %v1689_v19 = vmax.f32 %v1228_v14, 0.0  ;;  %v1753_v20 = vmax.f32 %v1484_v15, 0.0  ;;  %v1230_v21 = vpop.f32.mrb[35].mxu0  ;;  %v1486_v22 = vpop.f32.mrb[35].mxu1 }
 0x19b   : > { %v1824_v23 = vmul.f32 %v4248_v0, %v1689_v19  ;;  %v1888_v24 = vmul.f32 %v4248_v0, %v1753_v20  ;;  %v1958_v25 = vadd.f32 %v4256_v18, %v1823_v16  ;;  %v2022_v26 = vadd.f32 %v4256_v18, %v1887_v17 }
 0x19d   : > { %v1959_v27 = vadd.f32 %v4256_v18, %v1824_v23  ;;  %v2023_v28 = vadd.f32 %v4256_v18, %v1888_v24 }
 0x19e   : > { %v1233_v29 = vpop.f32.mrb[36].mxu0  ;;  %v1489_v30 = vpop.f32.mrb[36].mxu1 }
 0x19f   : > { %v3250_v31 = vpack.c.bf16 %v1959_v27, %v1958_v25  ;;  %v3410_v32 = vpack.c.bf16 %v2023_v28, %v2022_v26  ;;  %v1690_v33 = vmax.f32 %v1233_v29, 0.0  ;;  %v1754_v34 = vmax.f32 %v1489_v30, 0.0  ;;  %v1235_v35 = vpop.f32.mrb[37].mxu0  ;;  %v1491_v36 = vpop.f32.mrb[37].mxu1 }
 0x1a0   : > { %v1236_v37 = vpop.f32.mrb[38].mxu0  ;;  %v1492_v38 = vpop.f32.mrb[38].mxu1 }
 0x1a1   : > { %3534 = vst [vmem:[%s4268_s11 + $0x40] sm:$0xff] %v3250_v31   ;;  %3566 = vst [vmem:[%s4268_s11 + $0x140] sm:$0xff] %v3410_v32   ;;  %v1825_v39 = vmul.f32 %v4248_v0, %v1690_v33  ;;  %v1889_v40 = vmul.f32 %v4248_v0, %v1754_v34  ;;  %v1691_v41 = vmax.f32 %v1236_v37, 0.0  ;;  %v1755_v42 = vmax.f32 %v1492_v38, 0.0  ;;  %v1238_v43 = vpop.f32.mrb[39].mxu0  ;;  %v1494_v44 = vpop.f32.mrb[39].mxu1 }
 0x1a3   : > { %v1826_v45 = vmul.f32 %v4248_v0, %v1691_v41  ;;  %v1890_v46 = vmul.f32 %v4248_v0, %v1755_v42  ;;  %v1960_v47 = vadd.f32 %v4256_v18, %v1825_v39  ;;  %v2024_v48 = vadd.f32 %v4256_v18, %v1889_v40 }
 0x1a5   : > { %v1961_v49 = vadd.f32 %v4256_v18, %v1826_v45  ;;  %v2025_v50 = vadd.f32 %v4256_v18, %v1890_v46 }
 0x1a6   : > { %v1241_v51 = vpop.f32.mrb[40].mxu0  ;;  %v1497_v52 = vpop.f32.mrb[40].mxu1 }
 0x1a7   : > { %v3255_v53 = vpack.c.bf16 %v1961_v49, %v1960_v47  ;;  %v3415_v54 = vpack.c.bf16 %v2025_v50, %v2024_v48  ;;  %v1692_v55 = vmax.f32 %v1241_v51, 0.0  ;;  %v1756_v56 = vmax.f32 %v1497_v52, 0.0  ;;  %v1243_v57 = vpop.f32.mrb[41].mxu0  ;;  %v1499_v58 = vpop.f32.mrb[41].mxu1 }
 0x1a8   : > { %v1244_v59 = vpop.f32.mrb[42].mxu0  ;;  %v1500_v60 = vpop.f32.mrb[42].mxu1 }
 0x1a9   : > { %3535 = vst [vmem:[%s4268_s11 + $0x48] sm:$0xff] %v3255_v53   ;;  %3567 = vst [vmem:[%s4268_s11 + $0x148] sm:$0xff] %v3415_v54   ;;  %v1827_v61 = vmul.f32 %v4248_v0, %v1692_v55  ;;  %v1891_v62 = vmul.f32 %v4248_v0, %v1756_v56  ;;  %v1693_v63 = vmax.f32 %v1244_v59, 0.0  ;;  %v1757_v1 = vmax.f32 %v1500_v60, 0.0  ;;  %v1246_v2 = vpop.f32.mrb[43].mxu0  ;;  %v1502_v3 = vpop.f32.mrb[43].mxu1 }
 0x1ab   : > { %v1828_v4 = vmul.f32 %v4248_v0, %v1693_v63  ;;  %v1892_v5 = vmul.f32 %v4248_v0, %v1757_v1  ;;  %v1962_v6 = vadd.f32 %v4256_v18, %v1827_v61  ;;  %v2026_v7 = vadd.f32 %v4256_v18, %v1891_v62 }
 0x1ad   : > { %v1963_v8 = vadd.f32 %v4256_v18, %v1828_v4  ;;  %v2027_v9 = vadd.f32 %v4256_v18, %v1892_v5 }
 0x1ae   : > { %v1249_v10 = vpop.f32.mrb[44].mxu0  ;;  %v1505_v11 = vpop.f32.mrb[44].mxu1 }
 0x1af   : > { %v3260_v12 = vpack.c.bf16 %v1963_v8, %v1962_v6  ;;  %v3420_v13 = vpack.c.bf16 %v2027_v9, %v2026_v7  ;;  %v1694_v14 = vmax.f32 %v1249_v10, 0.0  ;;  %v1758_v15 = vmax.f32 %v1505_v11, 0.0  ;;  %v1251_v16 = vpop.f32.mrb[45].mxu0  ;;  %v1507_v17 = vpop.f32.mrb[45].mxu1 }
 0x1b0   : > { %v1252_v19 = vpop.f32.mrb[46].mxu0  ;;  %v1508_v20 = vpop.f32.mrb[46].mxu1 }
 0x1b1   : > { %3536 = vst [vmem:[%s4268_s11 + $0x50] sm:$0xff] %v3260_v12   ;;  %3568 = vst [vmem:[%s4268_s11 + $0x150] sm:$0xff] %v3420_v13   ;;  %v1829_v21 = vmul.f32 %v4248_v0, %v1694_v14  ;;  %v1893_v22 = vmul.f32 %v4248_v0, %v1758_v15  ;;  %v1695_v23 = vmax.f32 %v1252_v19, 0.0  ;;  %v1759_v24 = vmax.f32 %v1508_v20, 0.0  ;;  %v1254_v25 = vpop.f32.mrb[47].mxu0  ;;  %v1510_v26 = vpop.f32.mrb[47].mxu1 }
 0x1b3   : > { %v1830_v27 = vmul.f32 %v4248_v0, %v1695_v23  ;;  %v1894_v28 = vmul.f32 %v4248_v0, %v1759_v24  ;;  %v1964_v29 = vadd.f32 %v4256_v18, %v1829_v21  ;;  %v2028_v30 = vadd.f32 %v4256_v18, %v1893_v22 }
 0x1b5   : > { %v1965_v31 = vadd.f32 %v4256_v18, %v1830_v27  ;;  %v2029_v32 = vadd.f32 %v4256_v18, %v1894_v28 }
 0x1b6   : > { %v1257_v33 = vpop.f32.mrb[48].mxu0  ;;  %v1513_v34 = vpop.f32.mrb[48].mxu1 }
 0x1b7   : > { %v3265_v35 = vpack.c.bf16 %v1965_v31, %v1964_v29  ;;  %v3425_v36 = vpack.c.bf16 %v2029_v32, %v2028_v30  ;;  %v1696_v37 = vmax.f32 %v1257_v33, 0.0  ;;  %v1760_v38 = vmax.f32 %v1513_v34, 0.0  ;;  %v1259_v39 = vpop.f32.mrb[49].mxu0  ;;  %v1515_v40 = vpop.f32.mrb[49].mxu1 }
 0x1b8   : > { %v1260_v41 = vpop.f32.mrb[50].mxu0  ;;  %v1516_v42 = vpop.f32.mrb[50].mxu1 }
 0x1b9   : > { %3537 = vst [vmem:[%s4268_s11 + $0x58] sm:$0xff] %v3265_v35   ;;  %3569 = vst [vmem:[%s4268_s11 + $0x158] sm:$0xff] %v3425_v36   ;;  %v1831_v43 = vmul.f32 %v4248_v0, %v1696_v37  ;;  %v1895_v44 = vmul.f32 %v4248_v0, %v1760_v38  ;;  %v1697_v45 = vmax.f32 %v1260_v41, 0.0  ;;  %v1761_v46 = vmax.f32 %v1516_v42, 0.0  ;;  %v1262_v47 = vpop.f32.mrb[51].mxu0  ;;  %v1518_v48 = vpop.f32.mrb[51].mxu1 }
 0x1bb   : > { %v1832_v49 = vmul.f32 %v4248_v0, %v1697_v45  ;;  %v1896_v50 = vmul.f32 %v4248_v0, %v1761_v46  ;;  %v1966_v51 = vadd.f32 %v4256_v18, %v1831_v43  ;;  %v2030_v52 = vadd.f32 %v4256_v18, %v1895_v44 }
 0x1bd   : > { %v1967_v53 = vadd.f32 %v4256_v18, %v1832_v49  ;;  %v2031_v54 = vadd.f32 %v4256_v18, %v1896_v50 }
 0x1be   : > { %v1265_v55 = vpop.f32.mrb[52].mxu0  ;;  %v1521_v56 = vpop.f32.mrb[52].mxu1 }
 0x1bf   : > { %v3270_v57 = vpack.c.bf16 %v1967_v53, %v1966_v51  ;;  %v3430_v58 = vpack.c.bf16 %v2031_v54, %v2030_v52  ;;  %v1698_v59 = vmax.f32 %v1265_v55, 0.0  ;;  %v1762_v60 = vmax.f32 %v1521_v56, 0.0  ;;  %v1267_v61 = vpop.f32.mrb[53].mxu0  ;;  %v1523_v62 = vpop.f32.mrb[53].mxu1 }
 0x1c0   : > { %v1268_v63 = vpop.f32.mrb[54].mxu0  ;;  %v1524_v1 = vpop.f32.mrb[54].mxu1 }
 0x1c1   : > { %3538 = vst [vmem:[%s4268_s11 + $0x60] sm:$0xff] %v3270_v57   ;;  %3570 = vst [vmem:[%s4268_s11 + $0x160] sm:$0xff] %v3430_v58   ;;  %v1833_v2 = vmul.f32 %v4248_v0, %v1698_v59  ;;  %v1897_v3 = vmul.f32 %v4248_v0, %v1762_v60  ;;  %v1699_v4 = vmax.f32 %v1268_v63, 0.0  ;;  %v1763_v5 = vmax.f32 %v1524_v1, 0.0  ;;  %v1270_v6 = vpop.f32.mrb[55].mxu0  ;;  %v1526_v7 = vpop.f32.mrb[55].mxu1 }
 0x1c3   : > { %v1834_v8 = vmul.f32 %v4248_v0, %v1699_v4  ;;  %v1898_v9 = vmul.f32 %v4248_v0, %v1763_v5  ;;  %v1968_v10 = vadd.f32 %v4256_v18, %v1833_v2  ;;  %v2032_v11 = vadd.f32 %v4256_v18, %v1897_v3 }
 0x1c5   : > { %v1969_v12 = vadd.f32 %v4256_v18, %v1834_v8  ;;  %v2033_v13 = vadd.f32 %v4256_v18, %v1898_v9 }
 0x1c6   : > { %v1273_v14 = vpop.f32.mrb[56].mxu0  ;;  %v1529_v15 = vpop.f32.mrb[56].mxu1 }
 0x1c7   : > { %v3275_v16 = vpack.c.bf16 %v1969_v12, %v1968_v10  ;;  %v3435_v17 = vpack.c.bf16 %v2033_v13, %v2032_v11  ;;  %v1700_v19 = vmax.f32 %v1273_v14, 0.0  ;;  %v1764_v20 = vmax.f32 %v1529_v15, 0.0  ;;  %v1275_v21 = vpop.f32.mrb[57].mxu0  ;;  %v1531_v22 = vpop.f32.mrb[57].mxu1 }
 0x1c8   : > { %v1276_v23 = vpop.f32.mrb[58].mxu0  ;;  %v1532_v24 = vpop.f32.mrb[58].mxu1 }
 0x1c9   : > { %3539 = vst [vmem:[%s4268_s11 + $0x68] sm:$0xff] %v3275_v16   ;;  %3571 = vst [vmem:[%s4268_s11 + $0x168] sm:$0xff] %v3435_v17   ;;  %v1835_v25 = vmul.f32 %v4248_v0, %v1700_v19  ;;  %v1899_v26 = vmul.f32 %v4248_v0, %v1764_v20  ;;  %v1701_v27 = vmax.f32 %v1276_v23, 0.0  ;;  %v1765_v28 = vmax.f32 %v1532_v24, 0.0  ;;  %v1278_v29 = vpop.f32.mrb[59].mxu0  ;;  %v1534_v30 = vpop.f32.mrb[59].mxu1 }
 0x1cb   : > { %v1836_v31 = vmul.f32 %v4248_v0, %v1701_v27  ;;  %v1900_v32 = vmul.f32 %v4248_v0, %v1765_v28  ;;  %v1970_v33 = vadd.f32 %v4256_v18, %v1835_v25  ;;  %v2034_v34 = vadd.f32 %v4256_v18, %v1899_v26 }
 0x1cd   : > { %v1971_v35 = vadd.f32 %v4256_v18, %v1836_v31  ;;  %v2035_v36 = vadd.f32 %v4256_v18, %v1900_v32 }
 0x1ce   : > { %v1281_v37 = vpop.f32.mrb[60].mxu0  ;;  %v1537_v38 = vpop.f32.mrb[60].mxu1 }
 0x1cf   : > { %v3280_v39 = vpack.c.bf16 %v1971_v35, %v1970_v33  ;;  %v3440_v40 = vpack.c.bf16 %v2035_v36, %v2034_v34  ;;  %v1702_v41 = vmax.f32 %v1281_v37, 0.0  ;;  %v1766_v42 = vmax.f32 %v1537_v38, 0.0  ;;  %v1283_v43 = vpop.f32.mrb[61].mxu0  ;;  %v1539_v44 = vpop.f32.mrb[61].mxu1 }
 0x1d0   : > { %v1284_v45 = vpop.f32.mrb[62].mxu0  ;;  %v1540_v46 = vpop.f32.mrb[62].mxu1 }
 0x1d1   : > { %3540 = vst [vmem:[%s4268_s11 + $0x70] sm:$0xff] %v3280_v39   ;;  %3572 = vst [vmem:[%s4268_s11 + $0x170] sm:$0xff] %v3440_v40   ;;  %v1837_v47 = vmul.f32 %v4248_v0, %v1702_v41  ;;  %v1901_v48 = vmul.f32 %v4248_v0, %v1766_v42  ;;  %v1703_v49 = vmax.f32 %v1284_v45, 0.0  ;;  %v1767_v50 = vmax.f32 %v1540_v46, 0.0  ;;  %v1286_v51 = vpop.f32.mrb[63].mxu0  ;;  %v1542_v52 = vpop.f32.mrb[63].mxu1 }
 0x1d3   : > { %v1838_v53 = vmul.f32 %v4248_v0, %v1703_v49  ;;  %v1902_v54 = vmul.f32 %v4248_v0, %v1767_v50  ;;  %v1972_v55 = vadd.f32 %v4256_v18, %v1837_v47  ;;  %v2036_v56 = vadd.f32 %v4256_v18, %v1901_v48 }
 0x1d5   : > { %v1973_v57 = vadd.f32 %v4256_v18, %v1838_v53  ;;  %v2037_v58 = vadd.f32 %v4256_v18, %v1902_v54 }
 0x1d6   : > { %v1289_v59 = vpop.f32.mrb[64].mxu0  ;;  %v1545_v60 = vpop.f32.mrb[64].mxu1 }
 0x1d7   : > { %v3285_v61 = vpack.c.bf16 %v1973_v57, %v1972_v55  ;;  %v3445_v62 = vpack.c.bf16 %v2037_v58, %v2036_v56  ;;  %v1704_v63 = vmax.f32 %v1289_v59, 0.0  ;;  %v1768_v1 = vmax.f32 %v1545_v60, 0.0  ;;  %v1291_v2 = vpop.f32.mrb[65].mxu0  ;;  %v1547_v3 = vpop.f32.mrb[65].mxu1 }
 0x1d8   : > { %v1292_v4 = vpop.f32.mrb[66].mxu0  ;;  %v1548_v5 = vpop.f32.mrb[66].mxu1 }
 0x1d9   : > { %3541 = vst [vmem:[%s4268_s11 + $0x78] sm:$0xff] %v3285_v61   ;;  %3573 = vst [vmem:[%s4268_s11 + $0x178] sm:$0xff] %v3445_v62   ;;  %v1839_v6 = vmul.f32 %v4248_v0, %v1704_v63  ;;  %v1903_v7 = vmul.f32 %v4248_v0, %v1768_v1  ;;  %v1705_v8 = vmax.f32 %v1292_v4, 0.0  ;;  %v1769_v9 = vmax.f32 %v1548_v5, 0.0  ;;  %v1294_v10 = vpop.f32.mrb[67].mxu0  ;;  %v1550_v11 = vpop.f32.mrb[67].mxu1 }
 0x1db   : > { %v1840_v12 = vmul.f32 %v4248_v0, %v1705_v8  ;;  %v1904_v13 = vmul.f32 %v4248_v0, %v1769_v9  ;;  %v1974_v14 = vadd.f32 %v4256_v18, %v1839_v6  ;;  %v2038_v15 = vadd.f32 %v4256_v18, %v1903_v7 }
 0x1dd   : > { %v1975_v16 = vadd.f32 %v4256_v18, %v1840_v12  ;;  %v2039_v17 = vadd.f32 %v4256_v18, %v1904_v13 }
 0x1de   : > { %v1297_v19 = vpop.f32.mrb[68].mxu0  ;;  %v1553_v20 = vpop.f32.mrb[68].mxu1 }
 0x1df   : > { %v3290_v21 = vpack.c.bf16 %v1975_v16, %v1974_v14  ;;  %v3450_v22 = vpack.c.bf16 %v2039_v17, %v2038_v15  ;;  %v1706_v23 = vmax.f32 %v1297_v19, 0.0  ;;  %v1770_v24 = vmax.f32 %v1553_v20, 0.0  ;;  %v1299_v25 = vpop.f32.mrb[69].mxu0  ;;  %v1555_v26 = vpop.f32.mrb[69].mxu1 }
 0x1e0   : > { %v1300_v27 = vpop.f32.mrb[70].mxu0  ;;  %v1556_v28 = vpop.f32.mrb[70].mxu1 }
 0x1e1   : > { %3542 = vst [vmem:[%s4268_s11 + $0x80] sm:$0xff] %v3290_v21   ;;  %3574 = vst [vmem:[%s4268_s11 + $0x180] sm:$0xff] %v3450_v22   ;;  %v1841_v29 = vmul.f32 %v4248_v0, %v1706_v23  ;;  %v1905_v30 = vmul.f32 %v4248_v0, %v1770_v24  ;;  %v1707_v31 = vmax.f32 %v1300_v27, 0.0  ;;  %v1771_v32 = vmax.f32 %v1556_v28, 0.0  ;;  %v1302_v33 = vpop.f32.mrb[71].mxu0  ;;  %v1558_v34 = vpop.f32.mrb[71].mxu1 }
 0x1e3   : > { %v1842_v35 = vmul.f32 %v4248_v0, %v1707_v31  ;;  %v1906_v36 = vmul.f32 %v4248_v0, %v1771_v32  ;;  %v1976_v37 = vadd.f32 %v4256_v18, %v1841_v29  ;;  %v2040_v38 = vadd.f32 %v4256_v18, %v1905_v30 }
 0x1e5   : > { %v1977_v39 = vadd.f32 %v4256_v18, %v1842_v35  ;;  %v2041_v40 = vadd.f32 %v4256_v18, %v1906_v36 }
 0x1e6   : > { %v1305_v41 = vpop.f32.mrb[72].mxu0  ;;  %v1561_v42 = vpop.f32.mrb[72].mxu1 }
 0x1e7   : > { %v3295_v43 = vpack.c.bf16 %v1977_v39, %v1976_v37  ;;  %v3455_v44 = vpack.c.bf16 %v2041_v40, %v2040_v38  ;;  %v1708_v45 = vmax.f32 %v1305_v41, 0.0  ;;  %v1772_v46 = vmax.f32 %v1561_v42, 0.0  ;;  %v1307_v47 = vpop.f32.mrb[73].mxu0  ;;  %v1563_v48 = vpop.f32.mrb[73].mxu1  ;;  %v4482_v40 = vld [vmem:[#allocation4] ss:$0 sm:$0xff] }
 0x1e8   : > { %v1308_v49 = vpop.f32.mrb[74].mxu0  ;;  %v1564_v50 = vpop.f32.mrb[74].mxu1 }
 0x1e9   : > { %3543 = vst [vmem:[%s4268_s11 + $0x88] sm:$0xff] %v3295_v43   ;;  %3575 = vst [vmem:[%s4268_s11 + $0x188] sm:$0xff] %v3455_v44   ;;  %v1843_v51 = vmul.f32 %v4248_v0, %v1708_v45  ;;  %v1907_v52 = vmul.f32 %v4248_v0, %v1772_v46  ;;  %v1709_v53 = vmax.f32 %v1308_v49, 0.0  ;;  %v1773_v54 = vmax.f32 %v1564_v50, 0.0  ;;  %v1310_v55 = vpop.f32.mrb[75].mxu0  ;;  %v1566_v56 = vpop.f32.mrb[75].mxu1 }
 0x1eb   : > { %v1844_v57 = vmul.f32 %v4248_v0, %v1709_v53  ;;  %v1908_v58 = vmul.f32 %v4248_v0, %v1773_v54  ;;  %v1978_v59 = vadd.f32 %v4256_v18, %v1843_v51  ;;  %v2042_v60 = vadd.f32 %v4256_v18, %v1907_v52 }
 0x1ed   : > { %v1979_v61 = vadd.f32 %v4256_v18, %v1844_v57  ;;  %v2043_v62 = vadd.f32 %v4256_v18, %v1908_v58 }
 0x1ee   : > { %v1313_v63 = vpop.f32.mrb[76].mxu0  ;;  %v1569_v1 = vpop.f32.mrb[76].mxu1 }
 0x1ef   : > { %v3300_v2 = vpack.c.bf16 %v1979_v61, %v1978_v59  ;;  %v3460_v3 = vpack.c.bf16 %v2043_v62, %v2042_v60  ;;  %v1710_v4 = vmax.f32 %v1313_v63, 0.0  ;;  %v1774_v5 = vmax.f32 %v1569_v1, 0.0  ;;  %v1315_v6 = vpop.f32.mrb[77].mxu0  ;;  %v1571_v7 = vpop.f32.mrb[77].mxu1 }
 0x1f0   : > { %v1316_v8 = vpop.f32.mrb[78].mxu0  ;;  %v1572_v9 = vpop.f32.mrb[78].mxu1 }
 0x1f1   : > { %3544 = vst [vmem:[%s4268_s11 + $0x90] sm:$0xff] %v3300_v2   ;;  %3576 = vst [vmem:[%s4268_s11 + $0x190] sm:$0xff] %v3460_v3   ;;  %v1845_v10 = vmul.f32 %v4248_v0, %v1710_v4  ;;  %v1909_v11 = vmul.f32 %v4248_v0, %v1774_v5  ;;  %v1711_v12 = vmax.f32 %v1316_v8, 0.0  ;;  %v1775_v13 = vmax.f32 %v1572_v9, 0.0  ;;  %v1318_v14 = vpop.f32.mrb[79].mxu0  ;;  %v1574_v15 = vpop.f32.mrb[79].mxu1 }
 0x1f3   : > { %v1846_v16 = vmul.f32 %v4248_v0, %v1711_v12  ;;  %v1910_v17 = vmul.f32 %v4248_v0, %v1775_v13  ;;  %v1980_v19 = vadd.f32 %v4256_v18, %v1845_v10  ;;  %v2044_v20 = vadd.f32 %v4256_v18, %v1909_v11  ;;  %v4476_v0 = vld [vmem:[#allocation2] ss:$0 sm:$0xff] }
 0x1f5   : > { %v1981_v21 = vadd.f32 %v4256_v18, %v1846_v16  ;;  %v2045_v22 = vadd.f32 %v4256_v18, %v1910_v17 }
 0x1f6   : > { %v1321_v23 = vpop.f32.mrb[80].mxu0  ;;  %v1577_v24 = vpop.f32.mrb[80].mxu1 }
 0x1f7   : > { %v3305_v25 = vpack.c.bf16 %v1981_v21, %v1980_v19  ;;  %v3465_v26 = vpack.c.bf16 %v2045_v22, %v2044_v20  ;;  %v1712_v27 = vmax.f32 %v1321_v23, 0.0  ;;  %v1776_v28 = vmax.f32 %v1577_v24, 0.0  ;;  %v1323_v29 = vpop.f32.mrb[81].mxu0  ;;  %v1579_v30 = vpop.f32.mrb[81].mxu1 }
 0x1f8   : > { %v1324_v31 = vpop.f32.mrb[82].mxu0  ;;  %v1580_v32 = vpop.f32.mrb[82].mxu1 }
 0x1f9   : > { %3545 = vst [vmem:[%s4268_s11 + $0x98] sm:$0xff] %v3305_v25   ;;  %3577 = vst [vmem:[%s4268_s11 + $0x198] sm:$0xff] %v3465_v26   ;;  %v1847_v33 = vmul.f32 %v4476_v0, %v1712_v27  ;;  %v1911_v34 = vmul.f32 %v4476_v0, %v1776_v28  ;;  %v1713_v35 = vmax.f32 %v1324_v31, 0.0  ;;  %v1777_v18 = vmax.f32 %v1580_v32, 0.0  ;;  %v1326_v36 = vpop.f32.mrb[83].mxu0  ;;  %v1582_v37 = vpop.f32.mrb[83].mxu1 }
 0x1fb   : > { %v1848_v38 = vmul.f32 %v4476_v0, %v1713_v35  ;;  %v1912_v39 = vmul.f32 %v4476_v0, %v1777_v18  ;;  %v1982_v41 = vadd.f32 %v4482_v40, %v1847_v33  ;;  %v2046_v42 = vadd.f32 %v4482_v40, %v1911_v34 }
 0x1fd   : > { %v1983_v43 = vadd.f32 %v4482_v40, %v1848_v38  ;;  %v2047_v44 = vadd.f32 %v4482_v40, %v1912_v39 }
 0x1fe   : > { %v1329_v45 = vpop.f32.mrb[84].mxu0  ;;  %v1585_v46 = vpop.f32.mrb[84].mxu1 }
 0x1ff   : > { %v3310_v47 = vpack.c.bf16 %v1983_v43, %v1982_v41  ;;  %v3470_v48 = vpack.c.bf16 %v2047_v44, %v2046_v42  ;;  %v1714_v49 = vmax.f32 %v1329_v45, 0.0  ;;  %v1778_v50 = vmax.f32 %v1585_v46, 0.0  ;;  %v1331_v51 = vpop.f32.mrb[85].mxu0  ;;  %v1587_v52 = vpop.f32.mrb[85].mxu1 }
 0x200   : > { %v1332_v53 = vpop.f32.mrb[86].mxu0  ;;  %v1588_v54 = vpop.f32.mrb[86].mxu1 }
 0x201   : > { %3546 = vst [vmem:[%s4268_s11 + $0xa0] sm:$0xff] %v3310_v47   ;;  %3578 = vst [vmem:[%s4268_s11 + $0x1a0] sm:$0xff] %v3470_v48   ;;  %v1849_v55 = vmul.f32 %v4476_v0, %v1714_v49  ;;  %v1913_v56 = vmul.f32 %v4476_v0, %v1778_v50  ;;  %v1715_v57 = vmax.f32 %v1332_v53, 0.0  ;;  %v1779_v58 = vmax.f32 %v1588_v54, 0.0  ;;  %v1334_v59 = vpop.f32.mrb[87].mxu0  ;;  %v1590_v60 = vpop.f32.mrb[87].mxu1 }
 0x203   : > { %v1850_v61 = vmul.f32 %v4476_v0, %v1715_v57  ;;  %v1914_v62 = vmul.f32 %v4476_v0, %v1779_v58  ;;  %v1984_v63 = vadd.f32 %v4482_v40, %v1849_v55  ;;  %v2048_v1 = vadd.f32 %v4482_v40, %v1913_v56 }
 0x205   : > { %v1985_v2 = vadd.f32 %v4482_v40, %v1850_v61  ;;  %v2049_v3 = vadd.f32 %v4482_v40, %v1914_v62 }
 0x206   : > { %v1337_v4 = vpop.f32.mrb[88].mxu0  ;;  %v1593_v5 = vpop.f32.mrb[88].mxu1 }
 0x207   : > { %v3315_v6 = vpack.c.bf16 %v1985_v2, %v1984_v63  ;;  %v3475_v7 = vpack.c.bf16 %v2049_v3, %v2048_v1  ;;  %v1716_v8 = vmax.f32 %v1337_v4, 0.0  ;;  %v1780_v9 = vmax.f32 %v1593_v5, 0.0  ;;  %v1339_v10 = vpop.f32.mrb[89].mxu0  ;;  %v1595_v11 = vpop.f32.mrb[89].mxu1 }
 0x208   : > { %v1340_v12 = vpop.f32.mrb[90].mxu0  ;;  %v1596_v13 = vpop.f32.mrb[90].mxu1 }
 0x209   : > { %3547 = vst [vmem:[%s4268_s11 + $0xa8] sm:$0xff] %v3315_v6   ;;  %3579 = vst [vmem:[%s4268_s11 + $0x1a8] sm:$0xff] %v3475_v7   ;;  %v1851_v14 = vmul.f32 %v4476_v0, %v1716_v8  ;;  %v1915_v15 = vmul.f32 %v4476_v0, %v1780_v9  ;;  %v1717_v16 = vmax.f32 %v1340_v12, 0.0  ;;  %v1781_v17 = vmax.f32 %v1596_v13, 0.0  ;;  %v1342_v19 = vpop.f32.mrb[91].mxu0  ;;  %v1598_v20 = vpop.f32.mrb[91].mxu1 }
 0x20b   : > { %v1852_v21 = vmul.f32 %v4476_v0, %v1717_v16  ;;  %v1916_v22 = vmul.f32 %v4476_v0, %v1781_v17  ;;  %v1986_v23 = vadd.f32 %v4482_v40, %v1851_v14  ;;  %v2050_v24 = vadd.f32 %v4482_v40, %v1915_v15 }
 0x20d   : > { %v1987_v25 = vadd.f32 %v4482_v40, %v1852_v21  ;;  %v2051_v26 = vadd.f32 %v4482_v40, %v1916_v22 }
 0x20e   : > { %v1345_v27 = vpop.f32.mrb[92].mxu0  ;;  %v1601_v28 = vpop.f32.mrb[92].mxu1 }
 0x20f   : > { %v3320_v29 = vpack.c.bf16 %v1987_v25, %v1986_v23  ;;  %v3480_v30 = vpack.c.bf16 %v2051_v26, %v2050_v24  ;;  %v1718_v31 = vmax.f32 %v1345_v27, 0.0  ;;  %v1782_v32 = vmax.f32 %v1601_v28, 0.0  ;;  %v1347_v33 = vpop.f32.mrb[93].mxu0  ;;  %v1603_v34 = vpop.f32.mrb[93].mxu1 }
 0x210   : > { %v1348_v35 = vpop.f32.mrb[94].mxu0  ;;  %v1604_v18 = vpop.f32.mrb[94].mxu1 }
 0x211   : > { %3548 = vst [vmem:[%s4268_s11 + $0xb0] sm:$0xff] %v3320_v29   ;;  %3580 = vst [vmem:[%s4268_s11 + $0x1b0] sm:$0xff] %v3480_v30   ;;  %v1853_v36 = vmul.f32 %v4476_v0, %v1718_v31  ;;  %v1917_v37 = vmul.f32 %v4476_v0, %v1782_v32  ;;  %v1719_v38 = vmax.f32 %v1348_v35, 0.0  ;;  %v1783_v39 = vmax.f32 %v1604_v18, 0.0  ;;  %v1350_v41 = vpop.f32.mrb[95].mxu0  ;;  %v1606_v42 = vpop.f32.mrb[95].mxu1 }
 0x213   : > { %v1854_v43 = vmul.f32 %v4476_v0, %v1719_v38  ;;  %v1918_v44 = vmul.f32 %v4476_v0, %v1783_v39  ;;  %v1988_v45 = vadd.f32 %v4482_v40, %v1853_v36  ;;  %v2052_v46 = vadd.f32 %v4482_v40, %v1917_v37 }
 0x215   : > { %v1989_v47 = vadd.f32 %v4482_v40, %v1854_v43  ;;  %v2053_v48 = vadd.f32 %v4482_v40, %v1918_v44 }
 0x216   : > { %v1353_v49 = vpop.f32.mrb[96].mxu0  ;;  %v1609_v50 = vpop.f32.mrb[96].mxu1 }
 0x217   : > { %v3325_v51 = vpack.c.bf16 %v1989_v47, %v1988_v45  ;;  %v3485_v52 = vpack.c.bf16 %v2053_v48, %v2052_v46  ;;  %v1720_v53 = vmax.f32 %v1353_v49, 0.0  ;;  %v1784_v54 = vmax.f32 %v1609_v50, 0.0  ;;  %v1355_v55 = vpop.f32.mrb[97].mxu0  ;;  %v1611_v56 = vpop.f32.mrb[97].mxu1 }
 0x218   : > { %v1356_v57 = vpop.f32.mrb[98].mxu0  ;;  %v1612_v58 = vpop.f32.mrb[98].mxu1 }
 0x219   : > { %3549 = vst [vmem:[%s4268_s11 + $0xb8] sm:$0xff] %v3325_v51   ;;  %3581 = vst [vmem:[%s4268_s11 + $0x1b8] sm:$0xff] %v3485_v52   ;;  %v1855_v59 = vmul.f32 %v4476_v0, %v1720_v53  ;;  %v1919_v60 = vmul.f32 %v4476_v0, %v1784_v54  ;;  %v1721_v61 = vmax.f32 %v1356_v57, 0.0  ;;  %v1785_v62 = vmax.f32 %v1612_v58, 0.0  ;;  %v1358_v63 = vpop.f32.mrb[99].mxu0  ;;  %v1614_v1 = vpop.f32.mrb[99].mxu1 }
 0x21b   : > { %v1856_v2 = vmul.f32 %v4476_v0, %v1721_v61  ;;  %v1920_v3 = vmul.f32 %v4476_v0, %v1785_v62  ;;  %v1990_v4 = vadd.f32 %v4482_v40, %v1855_v59  ;;  %v2054_v5 = vadd.f32 %v4482_v40, %v1919_v60 }
 0x21d   : > { %v1991_v6 = vadd.f32 %v4482_v40, %v1856_v2  ;;  %v2055_v7 = vadd.f32 %v4482_v40, %v1920_v3 }
 0x21e   : > { %v1361_v8 = vpop.f32.mrb[100].mxu0  ;;  %v1617_v9 = vpop.f32.mrb[100].mxu1 }
 0x21f   : > { %v3330_v10 = vpack.c.bf16 %v1991_v6, %v1990_v4  ;;  %v3490_v11 = vpack.c.bf16 %v2055_v7, %v2054_v5  ;;  %v1722_v12 = vmax.f32 %v1361_v8, 0.0  ;;  %v1786_v13 = vmax.f32 %v1617_v9, 0.0  ;;  %v1363_v14 = vpop.f32.mrb[101].mxu0  ;;  %v1619_v15 = vpop.f32.mrb[101].mxu1 }
 0x220   : > { %v1364_v16 = vpop.f32.mrb[102].mxu0  ;;  %v1620_v17 = vpop.f32.mrb[102].mxu1 }
 0x221   : > { %3550 = vst [vmem:[%s4268_s11 + $0xc0] sm:$0xff] %v3330_v10   ;;  %3582 = vst [vmem:[%s4268_s11 + $0x1c0] sm:$0xff] %v3490_v11   ;;  %v1857_v19 = vmul.f32 %v4476_v0, %v1722_v12  ;;  %v1921_v20 = vmul.f32 %v4476_v0, %v1786_v13  ;;  %v1723_v21 = vmax.f32 %v1364_v16, 0.0  ;;  %v1787_v22 = vmax.f32 %v1620_v17, 0.0  ;;  %v1366_v23 = vpop.f32.mrb[103].mxu0  ;;  %v1622_v24 = vpop.f32.mrb[103].mxu1 }
 0x223   : > { %v1858_v25 = vmul.f32 %v4476_v0, %v1723_v21  ;;  %v1922_v26 = vmul.f32 %v4476_v0, %v1787_v22  ;;  %v1992_v27 = vadd.f32 %v4482_v40, %v1857_v19  ;;  %v2056_v28 = vadd.f32 %v4482_v40, %v1921_v20 }
 0x225   : > { %v1993_v29 = vadd.f32 %v4482_v40, %v1858_v25  ;;  %v2057_v30 = vadd.f32 %v4482_v40, %v1922_v26 }
 0x226   : > { %v1369_v31 = vpop.f32.mrb[104].mxu0  ;;  %v1625_v32 = vpop.f32.mrb[104].mxu1 }
 0x227   : > { %v3335_v33 = vpack.c.bf16 %v1993_v29, %v1992_v27  ;;  %v3495_v34 = vpack.c.bf16 %v2057_v30, %v2056_v28  ;;  %v1724_v35 = vmax.f32 %v1369_v31, 0.0  ;;  %v1788_v18 = vmax.f32 %v1625_v32, 0.0  ;;  %v1371_v36 = vpop.f32.mrb[105].mxu0  ;;  %v1627_v37 = vpop.f32.mrb[105].mxu1 }
 0x228   : > { %v1372_v38 = vpop.f32.mrb[106].mxu0  ;;  %v1628_v39 = vpop.f32.mrb[106].mxu1 }
 0x229   : > { %3551 = vst [vmem:[%s4268_s11 + $0xc8] sm:$0xff] %v3335_v33   ;;  %3583 = vst [vmem:[%s4268_s11 + $0x1c8] sm:$0xff] %v3495_v34   ;;  %v1859_v41 = vmul.f32 %v4476_v0, %v1724_v35  ;;  %v1923_v42 = vmul.f32 %v4476_v0, %v1788_v18  ;;  %v1725_v43 = vmax.f32 %v1372_v38, 0.0  ;;  %v1789_v44 = vmax.f32 %v1628_v39, 0.0  ;;  %v1374_v45 = vpop.f32.mrb[107].mxu0  ;;  %v1630_v46 = vpop.f32.mrb[107].mxu1 }
 0x22b   : > { %v1860_v47 = vmul.f32 %v4476_v0, %v1725_v43  ;;  %v1924_v48 = vmul.f32 %v4476_v0, %v1789_v44  ;;  %v1994_v49 = vadd.f32 %v4482_v40, %v1859_v41  ;;  %v2058_v50 = vadd.f32 %v4482_v40, %v1923_v42 }
 0x22d   : > { %v1995_v51 = vadd.f32 %v4482_v40, %v1860_v47  ;;  %v2059_v52 = vadd.f32 %v4482_v40, %v1924_v48 }
 0x22e   : > { %v1377_v53 = vpop.f32.mrb[108].mxu0  ;;  %v1633_v57 = vpop.f32.mrb[108].mxu1 }
 0x22f   : > { %v3340_v54 = vpack.c.bf16 %v1995_v51, %v1994_v49  ;;  %v3500_v55 = vpack.c.bf16 %v2059_v52, %v2058_v50  ;;  %v1726_v56 = vmax.f32 %v1377_v53, 0.0  ;;  %v1379_v58 = vpop.f32.mrb[109].mxu0  ;;  %v1790_v59 = vmax.f32 %v1633_v57, 0.0  ;;  %v1635_v60 = vpop.f32.mrb[109].mxu1 }
 0x230   : > { %v1380_v61 = vpop.f32.mrb[110].mxu0  ;;  %v1636_v1 = vpop.f32.mrb[110].mxu1 }
 0x231   : > { %3552 = vst [vmem:[%s4268_s11 + $0xd0] sm:$0xff] %v3340_v54   ;;  %3584 = vst [vmem:[%s4268_s11 + $0x1d0] sm:$0xff] %v3500_v55   ;;  %v1861_v62 = vmul.f32 %v4476_v0, %v1726_v56  ;;  %v1727_v63 = vmax.f32 %v1380_v61, 0.0  ;;  %v1382_v2 = vpop.f32.mrb[111].mxu0  ;;  %v1925_v3 = vmul.f32 %v4476_v0, %v1790_v59  ;;  %v1791_v4 = vmax.f32 %v1636_v1, 0.0  ;;  %v1638_v5 = vpop.f32.mrb[111].mxu1 }
 0x233   : > { %v1862_v6 = vmul.f32 %v4476_v0, %v1727_v63  ;;  %v1926_v7 = vmul.f32 %v4476_v0, %v1791_v4  ;;  %v1996_v8 = vadd.f32 %v4482_v40, %v1861_v62  ;;  %v2060_v10 = vadd.f32 %v4482_v40, %v1925_v3 }
 0x235   : > { %v1997_v9 = vadd.f32 %v4482_v40, %v1862_v6  ;;  %v2061_v11 = vadd.f32 %v4482_v40, %v1926_v7 }
 0x236   : > { %v1385_v12 = vpop.f32.mrb[112].mxu0  ;;  %v1641_v15 = vpop.f32.mrb[112].mxu1 }
 0x237   : > { %v3345_v13 = vpack.c.bf16 %v1997_v9, %v1996_v8  ;;  %v1728_v14 = vmax.f32 %v1385_v12, 0.0  ;;  %v1387_v16 = vpop.f32.mrb[113].mxu0  ;;  %v3505_v17 = vpack.c.bf16 %v2061_v11, %v2060_v10  ;;  %v1792_v19 = vmax.f32 %v1641_v15, 0.0  ;;  %v1643_v20 = vpop.f32.mrb[113].mxu1 }
 0x238   : > { %v1388_v21 = vpop.f32.mrb[114].mxu0  ;;  %v1644_v24 = vpop.f32.mrb[114].mxu1 }
 0x239   : > { %3553 = vst [vmem:[%s4268_s11 + $0xd8] sm:$0xff] %v3345_v13   ;;  %v1863_v22 = vmul.f32 %v4476_v0, %v1728_v14  ;;  %v1729_v23 = vmax.f32 %v1388_v21, 0.0  ;;  %v1390_v25 = vpop.f32.mrb[115].mxu0  ;;  %3585 = vst [vmem:[%s4268_s11 + $0x1d8] sm:$0xff] %v3505_v17   ;;  %v1927_v26 = vmul.f32 %v4476_v0, %v1792_v19  ;;  %v1793_v27 = vmax.f32 %v1644_v24, 0.0  ;;  %v1646_v28 = vpop.f32.mrb[115].mxu1 }
 0x23b   : > { %v1864_v29 = vmul.f32 %v4476_v0, %v1729_v23  ;;  %v1928_v30 = vmul.f32 %v4476_v0, %v1793_v27  ;;  %v1998_v31 = vadd.f32 %v4482_v40, %v1863_v22  ;;  %v2062_v33 = vadd.f32 %v4482_v40, %v1927_v26 }
 0x23d   : > { %v1999_v32 = vadd.f32 %v4482_v40, %v1864_v29  ;;  %v2063_v34 = vadd.f32 %v4482_v40, %v1928_v30 }
 0x23e   : > { %v1393_v35 = vpop.f32.mrb[116].mxu0  ;;  %v1649_v37 = vpop.f32.mrb[116].mxu1 }
 0x23f   : > { %v3350_v18 = vpack.c.bf16 %v1999_v32, %v1998_v31  ;;  %v1730_v36 = vmax.f32 %v1393_v35, 0.0  ;;  %v1395_v38 = vpop.f32.mrb[117].mxu0  ;;  %v3510_v39 = vpack.c.bf16 %v2063_v34, %v2062_v33  ;;  %v1794_v41 = vmax.f32 %v1649_v37, 0.0  ;;  %v1651_v42 = vpop.f32.mrb[117].mxu1 }
 0x240   : > { %v1396_v43 = vpop.f32.mrb[118].mxu0  ;;  %v1652_v46 = vpop.f32.mrb[118].mxu1 }
 0x241   : > { %3554 = vst [vmem:[%s4268_s11 + $0xe0] sm:$0xff] %v3350_v18   ;;  %v1865_v44 = vmul.f32 %v4476_v0, %v1730_v36  ;;  %v1731_v45 = vmax.f32 %v1396_v43, 0.0  ;;  %v1398_v47 = vpop.f32.mrb[119].mxu0  ;;  %3586 = vst [vmem:[%s4268_s11 + $0x1e0] sm:$0xff] %v3510_v39   ;;  %v1929_v48 = vmul.f32 %v4476_v0, %v1794_v41  ;;  %v1795_v49 = vmax.f32 %v1652_v46, 0.0  ;;  %v1654_v50 = vpop.f32.mrb[119].mxu1 }
 0x243   : > { %v1866_v51 = vmul.f32 %v4476_v0, %v1731_v45  ;;  %v1930_v52 = vmul.f32 %v4476_v0, %v1795_v49  ;;  %v2000_v53 = vadd.f32 %v4482_v40, %v1865_v44  ;;  %v2064_v55 = vadd.f32 %v4482_v40, %v1929_v48 }
 0x245   : > { %v2001_v54 = vadd.f32 %v4482_v40, %v1866_v51  ;;  %v2065_v56 = vadd.f32 %v4482_v40, %v1930_v52 }
 0x246   : > { %v1401_v57 = vpop.f32.mrb[120].mxu0  ;;  %v1657_v60 = vpop.f32.mrb[120].mxu1 }
 0x247   : > { %v3355_v58 = vpack.c.bf16 %v2001_v54, %v2000_v53  ;;  %v1732_v59 = vmax.f32 %v1401_v57, 0.0  ;;  %v1403_v61 = vpop.f32.mrb[121].mxu0  ;;  %v3515_v62 = vpack.c.bf16 %v2065_v56, %v2064_v55  ;;  %v1796_v63 = vmax.f32 %v1657_v60, 0.0  ;;  %v1659_v1 = vpop.f32.mrb[121].mxu1 }
 0x248   : > { %v1404_v2 = vpop.f32.mrb[122].mxu0  ;;  %v1660_v5 = vpop.f32.mrb[122].mxu1 }
 0x249   : > { %3555 = vst [vmem:[%s4268_s11 + $0xe8] sm:$0xff] %v3355_v58   ;;  %v1867_v3 = vmul.f32 %v4476_v0, %v1732_v59  ;;  %v1733_v4 = vmax.f32 %v1404_v2, 0.0  ;;  %v1406_v6 = vpop.f32.mrb[123].mxu0  ;;  %3587 = vst [vmem:[%s4268_s11 + $0x1e8] sm:$0xff] %v3515_v62   ;;  %v1931_v7 = vmul.f32 %v4476_v0, %v1796_v63  ;;  %v1797_v8 = vmax.f32 %v1660_v5, 0.0  ;;  %v1662_v9 = vpop.f32.mrb[123].mxu1 }
 0x24b   : > { %v1868_v10 = vmul.f32 %v4476_v0, %v1733_v4  ;;  %v1932_v11 = vmul.f32 %v4476_v0, %v1797_v8  ;;  %v2002_v12 = vadd.f32 %v4482_v40, %v1867_v3  ;;  %v2066_v14 = vadd.f32 %v4482_v40, %v1931_v7 }
 0x24d   : > { %v2003_v13 = vadd.f32 %v4482_v40, %v1868_v10  ;;  %v2067_v15 = vadd.f32 %v4482_v40, %v1932_v11 }
 0x24e   : > { %v1409_v16 = vpop.f32.mrb[124].mxu0  ;;  %v1665_v20 = vpop.f32.mrb[124].mxu1 }
 0x24f   : > { %v3360_v17 = vpack.c.bf16 %v2003_v13, %v2002_v12  ;;  %v1734_v19 = vmax.f32 %v1409_v16, 0.0  ;;  %v1411_v21 = vpop.f32.mrb[125].mxu0  ;;  %v3520_v22 = vpack.c.bf16 %v2067_v15, %v2066_v14  ;;  %v1798_v23 = vmax.f32 %v1665_v20, 0.0  ;;  %v1667_v24 = vpop.f32.mrb[125].mxu1 }
 0x250   : > { %v1412_v25 = vpop.f32.mrb[126].mxu0  ;;  %v1668_v28 = vpop.f32.mrb[126].mxu1 }
 0x251   : > { %3556 = vst [vmem:[%s4268_s11 + $0xf0] sm:$0xff] %v3360_v17   ;;  %v1869_v26 = vmul.f32 %v4476_v0, %v1734_v19  ;;  %v1735_v27 = vmax.f32 %v1412_v25, 0.0  ;;  %v1414_v29 = vpop.f32.mrb[127].mxu0  ;;  %3588 = vst [vmem:[%s4268_s11 + $0x1f0] sm:$0xff] %v3520_v22   ;;  %v1933_v30 = vmul.f32 %v4476_v0, %v1798_v23  ;;  %v1799_v31 = vmax.f32 %v1668_v28, 0.0  ;;  %v1670_v32 = vpop.f32.mrb[127].mxu1 }
 0x253   : > { %v1870_v33 = vmul.f32 %v4476_v0, %v1735_v27  ;;  %v1934_v34 = vmul.f32 %v4476_v0, %v1799_v31  ;;  %v2004_v35 = vadd.f32 %v4482_v40, %v1869_v26  ;;  %v2068_v36 = vadd.f32 %v4482_v40, %v1933_v30 }
 0x255   : > { %v2005_v18 = vadd.f32 %v4482_v40, %v1870_v33  ;;  %v2069_v37 = vadd.f32 %v4482_v40, %v1934_v34 }
 0x257   : > { %v3365_v38 = vpack.c.bf16 %v2005_v18, %v2004_v35  ;;  %v3525_v39 = vpack.c.bf16 %v2069_v37, %v2068_v36 }
 0x259   : > { %3557 = vst [vmem:[%s4268_s11 + $0xf8] sm:$0xff] %v3365_v38   ;;  %3589 = vst [vmem:[%s4268_s11 + $0x1f8] sm:$0xff] %v3525_v39  }
 0x25a PF: > { %s16_s15 = sadd.s32 1, %s3932_s15  }
 0x25b   : > { %p13_p8 = scmp.ge.s32.totalorder %s16_s15, 34  }
 0x25d   :  { %15 = sbr.rel (!%p13_p8) target bundleno = 2 (0x2), region = 75 }
 0x264   :  { %2732 = vsyncpa [#allocation3], 1 }
 0x265   :  { %2734 = vsyncpa [#allocation3 + $0x1], 1 }
 0x266   :  { %2735 = vsyncpa [#allocation5], 1 }

// kernel: meso4_forward.7
= control target key start
LH: loop header
LB: loop body
LE: loop exit
PB: predicated region body
PF: predicated region fallthrough
CT: control target
= control target key end

     0   :  { %s3823_s15 = smov 0   ;;  %s4396_s0 = inlined_call_operand.vmem [shape: bf16[8192,256], index: 0, kind: input, shape index: {}]   ;;  %s4397_s1 = inlined_call_operand.vmem [shape: bf16[256,128], index: 1, kind: input, shape index: {}]   ;;  %s4398_s2 = inlined_call_operand.vmem [shape: f32[1,128], index: 2, kind: input, shape index: {}]   ;;  %s4399_s3 = inlined_call_operand.vmem [shape: f32[1,128], index: 3, kind: input, shape index: {}]   ;;  %s4400_s4 = inlined_call_operand.vmem [shape: bf16[8192,128], index: 4, kind: output, shape index: {}]  }
   0x1 LB: > { %s2740_s16 = sadd.s32 4294967295, %s3795_s15   ;;  %p2744_p0 = scmp.ge.s32.totalorder %s3795_s15, 1  ;;  %s3795_s15 = sphi %s3823_s15, %s14_s15  }
   0x2   : > { %p164_p1 = scmp.lt.s32.totalorder %s3795_s15, 9 }
   0x4   : > { %p165_p2 = pnand %p2744_p0, %p164_p1 }
   0x5   : > { %v3579_v0 = vld [vmem:[%s4397_s1] sm:$0xff] (!%p165_p2)   ;;  %v3797_v1 = vmov (!%p165_p2), 0   ;;  %s2745_s19 = sshll.u32 (!%p165_p2), %s2740_s16, 7  ;;  %v3580_v2 = vld [vmem:[%s4397_s1 + $0x8] sm:$0xff] (!%p165_p2)   ;;  %v3581_v3 = vld [vmem:[%s4397_s1 + $0x10] sm:$0xff] (!%p165_p2)  }
   0x6   : > { %168 = sbr.rel (%p165_p2) target bundleno = 541 (0x21d), region = 36  ;;  %1101 = vmatprep.subr.bf16.mxu0 (!%p165_p2), %v3797_v1  ;;  %3538 = vmatprep.subr.bf16.mxu1 (!%p165_p2), %v3797_v1  ;;  %p192_p3 = scmp.lt.s32.totalorder (!%p165_p2), %s2745_s19, 1023  ;;  %v3582_v4 = vld [vmem:[%s4397_s1 + $0x18] sm:$0xff] (!%p165_p2)   ;;  %v3583_v5 = vld [vmem:[%s4397_s1 + $0x20] sm:$0xff] (!%p165_p2)   ;;  %v3584_v7 = vld [vmem:[%s4397_s1 + $0x28] sm:$0xff] (!%p165_p2)  }
   0x7   : > { %1102 = vmatpush1.bf16.msra.mxu0 (!%p165_p2), %v3579_v0  ;;  %3554 = vmatpush1.bf16.msra.mxu1 (!%p165_p2), %v3579_v0  ;;  %v3585_v9 = vld [vmem:[%s4397_s1 + $0x30] sm:$0xff] (!%p165_p2)   ;;  %v3586_v10 = vld [vmem:[%s4397_s1 + $0x38] sm:$0xff] (!%p165_p2)   ;;  %v3587_v11 = vld [vmem:[%s4397_s1 + $0x40] sm:$0xff] (!%p165_p2)  }
   0x8   : > { %1103 = vmatprep.subr.bf16.mxu0 (!%p165_p2), %v3797_v1  ;;  %3539 = vmatprep.subr.bf16.mxu1 (!%p165_p2), %v3797_v1  ;;  %v3588_v12 = vld [vmem:[%s4397_s1 + $0x48] sm:$0xff] (!%p165_p2)   ;;  %v3589_v13 = vld [vmem:[%s4397_s1 + $0x50] sm:$0xff] (!%p165_p2)   ;;  %v3590_v14 = vld [vmem:[%s4397_s1 + $0x58] sm:$0xff] (!%p165_p2)  }
   0x9   : > { %v3591_v15 = vld [vmem:[%s4397_s1 + $0x60] sm:$0xff] (!%p165_p2)   ;;  %v3592_v16 = vld [vmem:[%s4397_s1 + $0x68] sm:$0xff] (!%p165_p2)   ;;  %v3593_v17 = vld [vmem:[%s4397_s1 + $0x70] sm:$0xff] (!%p165_p2)  }
   0xa   : > { %v3594_v18 = vld [vmem:[%s4397_s1 + $0x78] sm:$0xff] (!%p165_p2)  }
   0xb   : > { %1104 = vmatpush1.bf16.msra.mxu0 (!%p165_p2), %v3580_v2  ;;  %3555 = vmatpush1.bf16.msra.mxu1 (!%p165_p2), %v3580_v2 }
   0xc   : > { %1105 = vmatprep.subr.bf16.mxu0 (!%p165_p2), %v3797_v1  ;;  %3540 = vmatprep.subr.bf16.mxu1 (!%p165_p2), %v3797_v1 }
   0xd   : > { %s4402_s19 = smov (!%p192_p3, %s2745_s19), 1023 }
   0xe   : > { %s3026_s26 = sshll.u32 %s4402_s19, 3  ;;  %s2749_s9 = sshll.u32 %s4402_s19, 2 }
   0xf   : > { %1106 = vmatpush1.bf16.msra.mxu0 %v3581_v3  ;;  %3556 = vmatpush1.bf16.msra.mxu1 %v3581_v3  ;;  %s3860_s5 = scalar_lea.vmem %s4396_s0, %s3026_s26  ;;  %s4055_s11 = scalar_lea.vmem %s4400_s4, %s2749_s9 }
  0x10   : > { %1107 = vmatprep.subr.bf16.mxu0 %v3797_v1  ;;  %3541 = vmatprep.subr.bf16.mxu1 %v3797_v1  ;;  %v3597_v6 = vld [vmem:[%s3860_s5 + $0x4] ss:$8 sps:$4 sm:$0xff]   ;;  %v3595_v19 = vld [vmem:[%s3860_s5] ss:$8 sps:$4 sm:$0xff]   ;;  %v3601_v21 = vld [vmem:[%s3860_s5 + $0x14] ss:$8 sps:$4 sm:$0xff]  }
  0x11   : > { %v3600_v8 = vld [vmem:[%s3860_s5 + $0x204] ss:$8 sps:$4 sm:$0xff]   ;;  %1133 = vmatprep.mubr.bf16.mxu0 %v3597_v6  ;;  %v3598_v20 = vld [vmem:[%s3860_s5 + $0x200] ss:$8 sps:$4 sm:$0xff]   ;;  %v3603_v22 = vld [vmem:[%s3860_s5 + $0x214] ss:$8 sps:$4 sm:$0xff]  }
  0x12   : > { %1389 = vmatprep.mubr.bf16.mxu1 %v3600_v8  ;;  %v3605_v23 = vld [vmem:[%s3860_s5 + $0x10] ss:$8 sps:$4 sm:$0xff]   ;;  %v3607_v25 = vld [vmem:[%s3860_s5 + $0x24] ss:$8 sps:$4 sm:$0xff]   ;;  %v3611_v27 = vld [vmem:[%s3860_s5 + $0x20] ss:$8 sps:$4 sm:$0xff]  }
  0x13   : > { %1108 = vmatpush1.bf16.msra.mxu0 %v3582_v4  ;;  %3557 = vmatpush1.bf16.msra.mxu1 %v3582_v4  ;;  %v3606_v24 = vld [vmem:[%s3860_s5 + $0x210] ss:$8 sps:$4 sm:$0xff]   ;;  %v3609_v26 = vld [vmem:[%s3860_s5 + $0x224] ss:$8 sps:$4 sm:$0xff]   ;;  %v3612_v28 = vld [vmem:[%s3860_s5 + $0x220] ss:$8 sps:$4 sm:$0xff]  }
  0x14   : > { %1109 = vmatprep.subr.bf16.mxu0 %v3797_v1  ;;  %3542 = vmatprep.subr.bf16.mxu1 %v3797_v1  ;;  %v3613_v29 = vld [vmem:[%s3860_s5 + $0x34] ss:$8 sps:$4 sm:$0xff]   ;;  %v3617_v31 = vld [vmem:[%s3860_s5 + $0x30] ss:$8 sps:$4 sm:$0xff]   ;;  %v3619_v33 = vld [vmem:[%s3860_s5 + $0x44] ss:$8 sps:$4 sm:$0xff]  }
  0x15   : > { %v3615_v30 = vld [vmem:[%s3860_s5 + $0x234] ss:$8 sps:$4 sm:$0xff]   ;;  %v3618_v32 = vld [vmem:[%s3860_s5 + $0x230] ss:$8 sps:$4 sm:$0xff]   ;;  %v3621_v34 = vld [vmem:[%s3860_s5 + $0x244] ss:$8 sps:$4 sm:$0xff]  }
  0x16   : > { %v3623_v35 = vld [vmem:[%s3860_s5 + $0x40] ss:$8 sps:$4 sm:$0xff]   ;;  %v3625_v37 = vld [vmem:[%s3860_s5 + $0x54] ss:$8 sps:$4 sm:$0xff]   ;;  %v3629_v39 = vld [vmem:[%s3860_s5 + $0x50] ss:$8 sps:$4 sm:$0xff]  }
  0x17   : > { %1110 = vmatpush1.bf16.msra.mxu0 %v3583_v5  ;;  %3558 = vmatpush1.bf16.msra.mxu1 %v3583_v5  ;;  %v3624_v36 = vld [vmem:[%s3860_s5 + $0x240] ss:$8 sps:$4 sm:$0xff]   ;;  %v3627_v38 = vld [vmem:[%s3860_s5 + $0x254] ss:$8 sps:$4 sm:$0xff]   ;;  %v3630_v40 = vld [vmem:[%s3860_s5 + $0x250] ss:$8 sps:$4 sm:$0xff]  }
  0x18   : > { %1111 = vmatprep.subr.bf16.mxu0 %v3797_v1  ;;  %3543 = vmatprep.subr.bf16.mxu1 %v3797_v1  ;;  %v3631_v41 = vld [vmem:[%s3860_s5 + $0x64] ss:$8 sps:$4 sm:$0xff]   ;;  %v3635_v43 = vld [vmem:[%s3860_s5 + $0x60] ss:$8 sps:$4 sm:$0xff]   ;;  %v3637_v45 = vld [vmem:[%s3860_s5 + $0x74] ss:$8 sps:$4 sm:$0xff]  }
  0x19   : > { %v3633_v42 = vld [vmem:[%s3860_s5 + $0x264] ss:$8 sps:$4 sm:$0xff]   ;;  %v3636_v44 = vld [vmem:[%s3860_s5 + $0x260] ss:$8 sps:$4 sm:$0xff]   ;;  %v3639_v46 = vld [vmem:[%s3860_s5 + $0x274] ss:$8 sps:$4 sm:$0xff]  }
  0x1a   : > { %v3641_v47 = vld [vmem:[%s3860_s5 + $0x70] ss:$8 sps:$4 sm:$0xff]   ;;  %v3643_v49 = vld [vmem:[%s3860_s5 + $0x84] ss:$8 sps:$4 sm:$0xff]   ;;  %v3647_v51 = vld [vmem:[%s3860_s5 + $0x80] ss:$8 sps:$4 sm:$0xff]  }
  0x1b   : > { %1112 = vmatpush1.bf16.msra.mxu0 %v3584_v7  ;;  %3559 = vmatpush1.bf16.msra.mxu1 %v3584_v7  ;;  %v3642_v48 = vld [vmem:[%s3860_s5 + $0x270] ss:$8 sps:$4 sm:$0xff]   ;;  %v3645_v50 = vld [vmem:[%s3860_s5 + $0x284] ss:$8 sps:$4 sm:$0xff]   ;;  %v3648_v52 = vld [vmem:[%s3860_s5 + $0x280] ss:$8 sps:$4 sm:$0xff]  }
  0x1c   : > { %1113 = vmatprep.subr.bf16.mxu0 %v3797_v1  ;;  %3544 = vmatprep.subr.bf16.mxu1 %v3797_v1  ;;  %v3649_v53 = vld [vmem:[%s3860_s5 + $0x94] ss:$8 sps:$4 sm:$0xff]   ;;  %v3653_v55 = vld [vmem:[%s3860_s5 + $0x90] ss:$8 sps:$4 sm:$0xff]   ;;  %v3655_v57 = vld [vmem:[%s3860_s5 + $0xa4] ss:$8 sps:$4 sm:$0xff]  }
  0x1d   : > { %v3651_v54 = vld [vmem:[%s3860_s5 + $0x294] ss:$8 sps:$4 sm:$0xff]   ;;  %v3654_v56 = vld [vmem:[%s3860_s5 + $0x290] ss:$8 sps:$4 sm:$0xff]   ;;  %v3657_v58 = vld [vmem:[%s3860_s5 + $0x2a4] ss:$8 sps:$4 sm:$0xff]  }
  0x1e   : > { %v3659_v59 = vld [vmem:[%s3860_s5 + $0xa0] ss:$8 sps:$4 sm:$0xff]   ;;  %v3661_v61 = vld [vmem:[%s3860_s5 + $0xb4] ss:$8 sps:$4 sm:$0xff]   ;;  %v3665_v63 = vld [vmem:[%s3860_s5 + $0xb0] ss:$8 sps:$4 sm:$0xff]  }
  0x1f   : > { %1114 = vmatpush1.bf16.msra.mxu0 %v3585_v9  ;;  %3560 = vmatpush1.bf16.msra.mxu1 %v3585_v9  ;;  %v3660_v60 = vld [vmem:[%s3860_s5 + $0x2a0] ss:$8 sps:$4 sm:$0xff]   ;;  %v3663_v62 = vld [vmem:[%s3860_s5 + $0x2b4] ss:$8 sps:$4 sm:$0xff]   ;;  %v3666_v0 = vld [vmem:[%s3860_s5 + $0x2b0] ss:$8 sps:$4 sm:$0xff]  }
  0x20   : > { %1115 = vmatprep.subr.bf16.mxu0 %v3797_v1  ;;  %3545 = vmatprep.subr.bf16.mxu1 %v3797_v1  ;;  %v3669_v2 = vld [vmem:[%s3860_s5 + $0x2c4] ss:$8 sps:$4 sm:$0xff]   ;;  %v3671_v3 = vld [vmem:[%s3860_s5 + $0xc0] ss:$8 sps:$4 sm:$0xff]   ;;  %v3673_v5 = vld [vmem:[%s3860_s5 + $0xd4] ss:$8 sps:$4 sm:$0xff]  }
  0x21   : > { %v3672_v4 = vld [vmem:[%s3860_s5 + $0x2c0] ss:$8 sps:$4 sm:$0xff]   ;;  %v3675_v6 = vld [vmem:[%s3860_s5 + $0x2d4] ss:$8 sps:$4 sm:$0xff]   ;;  %v3677_v7 = vld [vmem:[%s3860_s5 + $0xd0] ss:$8 sps:$4 sm:$0xff]  }
  0x22   : > { %v3678_v8 = vld [vmem:[%s3860_s5 + $0x2d0] ss:$8 sps:$4 sm:$0xff]   ;;  %v3679_v9 = vld [vmem:[%s3860_s5 + $0xe4] ss:$8 sps:$4 sm:$0xff]  }
  0x23   : > { %1116 = vmatpush1.bf16.msra.mxu0 %v3586_v10  ;;  %3561 = vmatpush1.bf16.msra.mxu1 %v3586_v10  ;;  %v3681_v10 = vld [vmem:[%s3860_s5 + $0x2e4] ss:$8 sps:$4 sm:$0xff]  }
  0x24   : > { %1117 = vmatprep.subr.bf16.mxu0 %v3797_v1  ;;  %3546 = vmatprep.subr.bf16.mxu1 %v3797_v1 }
  0x27   : > { %1118 = vmatpush1.bf16.msra.mxu0 %v3587_v11  ;;  %3562 = vmatpush1.bf16.msra.mxu1 %v3587_v11  ;;  %v3683_v11 = vld [vmem:[%s3860_s5 + $0xe0] ss:$8 sps:$4 sm:$0xff]  }
  0x28   : > { %1119 = vmatprep.subr.bf16.mxu0 %v3797_v1  ;;  %3547 = vmatprep.subr.bf16.mxu1 %v3797_v1 }
  0x2b   : > { %1120 = vmatpush1.bf16.msra.mxu0 %v3588_v12  ;;  %3563 = vmatpush1.bf16.msra.mxu1 %v3588_v12  ;;  %v3684_v12 = vld [vmem:[%s3860_s5 + $0x2e0] ss:$8 sps:$4 sm:$0xff]  }
  0x2c   : > { %1121 = vmatprep.subr.bf16.mxu0 %v3797_v1  ;;  %3548 = vmatprep.subr.bf16.mxu1 %v3797_v1 }
  0x2f   : > { %1122 = vmatpush1.bf16.msra.mxu0 %v3589_v13  ;;  %3564 = vmatpush1.bf16.msra.mxu1 %v3589_v13  ;;  %v3685_v13 = vld [vmem:[%s3860_s5 + $0xf4] ss:$8 sps:$4 sm:$0xff]  }
  0x30   : > { %1123 = vmatprep.subr.bf16.mxu0 %v3797_v1  ;;  %3549 = vmatprep.subr.bf16.mxu1 %v3797_v1 }
  0x33   : > { %1124 = vmatpush1.bf16.msra.mxu0 %v3590_v14  ;;  %3565 = vmatpush1.bf16.msra.mxu1 %v3590_v14  ;;  %v3687_v14 = vld [vmem:[%s3860_s5 + $0x2f4] ss:$8 sps:$4 sm:$0xff]  }
  0x34   : > { %1125 = vmatprep.subr.bf16.mxu0 %v3797_v1  ;;  %3550 = vmatprep.subr.bf16.mxu1 %v3797_v1 }
  0x37   : > { %1126 = vmatpush1.bf16.msra.mxu0 %v3591_v15  ;;  %3566 = vmatpush1.bf16.msra.mxu1 %v3591_v15  ;;  %v3689_v15 = vld [vmem:[%s3860_s5 + $0xf0] ss:$8 sps:$4 sm:$0xff]  }
  0x38   : > { %1127 = vmatprep.subr.bf16.mxu0 %v3797_v1  ;;  %3551 = vmatprep.subr.bf16.mxu1 %v3797_v1 }
  0x3b   : > { %1128 = vmatpush1.bf16.msra.mxu0 %v3592_v16  ;;  %3567 = vmatpush1.bf16.msra.mxu1 %v3592_v16  ;;  %v3690_v16 = vld [vmem:[%s3860_s5 + $0x2f0] ss:$8 sps:$4 sm:$0xff]  }
  0x3c   : > { %1129 = vmatprep.subr.bf16.mxu0 %v3797_v1  ;;  %3552 = vmatprep.subr.bf16.mxu1 %v3797_v1 }
  0x3f   : > { %1130 = vmatpush1.bf16.msra.mxu0 %v3593_v17  ;;  %3568 = vmatpush1.bf16.msra.mxu1 %v3593_v17  ;;  %v3691_v17 = vld [vmem:[%s3860_s5 + $0x104] ss:$8 sps:$4 sm:$0xff]  }
  0x40   : > { %1131 = vmatprep.subr.bf16.mxu0 %v3797_v1  ;;  %3553 = vmatprep.subr.bf16.mxu1 %v3797_v1  ;;  %v3667_v1 = vld [vmem:[%s3860_s5 + $0xc4] ss:$8 sps:$4 sm:$0xff]  }
  0x43   : > { %1132 = vmatpush1.bf16.msra.mxu0 %v3594_v18  ;;  %3569 = vmatpush1.bf16.msra.mxu1 %v3594_v18  ;;  %v3693_v18 = vld [vmem:[%s3860_s5 + $0x304] ss:$8 sps:$4 sm:$0xff]  }
  0x46   : > { %1134 = vmatmul.mubr.bf16.vlgmr.msra.gmra.mrb[0].mxu0 %v3595_v19  ;;  %1390 = vmatmul.mubr.bf16.vlgmr.msra.gmra.mrb[0].mxu1 %v3598_v20  ;;  %v3695_v19 = vld [vmem:[%s3860_s5 + $0x100] ss:$8 sps:$4 sm:$0xff]  }
  0x47   : > { %1141 = vmatprep.mubr.bf16.mxu0 %v3601_v21  ;;  %1397 = vmatprep.mubr.bf16.mxu1 %v3603_v22  ;;  %v3696_v20 = vld [vmem:[%s3860_s5 + $0x300] ss:$8 sps:$4 sm:$0xff]   ;;  %v3697_v21 = vld [vmem:[%s3860_s5 + $0x114] ss:$8 sps:$4 sm:$0xff]  }
  0x48   : > { %v3699_v22 = vld [vmem:[%s3860_s5 + $0x314] ss:$8 sps:$4 sm:$0xff]  }
  0x4e   : > { %1142 = vmatmul.mubr.bf16.gmra.mrb[4].mxu0 %v3605_v23  ;;  %1398 = vmatmul.mubr.bf16.gmra.mrb[4].mxu1 %v3606_v24  ;;  %v3701_v23 = vld [vmem:[%s3860_s5 + $0x110] ss:$8 sps:$4 sm:$0xff]  }
  0x4f   : > { %1149 = vmatprep.mubr.bf16.mxu0 %v3607_v25  ;;  %1405 = vmatprep.mubr.bf16.mxu1 %v3609_v26  ;;  %v3702_v24 = vld [vmem:[%s3860_s5 + $0x310] ss:$8 sps:$4 sm:$0xff]   ;;  %v3703_v25 = vld [vmem:[%s3860_s5 + $0x124] ss:$8 sps:$4 sm:$0xff]  }
  0x50   : > { %v3705_v26 = vld [vmem:[%s3860_s5 + $0x324] ss:$8 sps:$4 sm:$0xff]  }
  0x56   : > { %1150 = vmatmul.mubr.bf16.gmra.mrb[8].mxu0 %v3611_v27  ;;  %1406 = vmatmul.mubr.bf16.gmra.mrb[8].mxu1 %v3612_v28  ;;  %v3707_v27 = vld [vmem:[%s3860_s5 + $0x120] ss:$8 sps:$4 sm:$0xff]  }
  0x57   : > { %1157 = vmatprep.mubr.bf16.mxu0 %v3613_v29  ;;  %1413 = vmatprep.mubr.bf16.mxu1 %v3615_v30  ;;  %v3708_v28 = vld [vmem:[%s3860_s5 + $0x320] ss:$8 sps:$4 sm:$0xff]   ;;  %v3709_v29 = vld [vmem:[%s3860_s5 + $0x134] ss:$8 sps:$4 sm:$0xff]  }
  0x58   : > { %v3711_v30 = vld [vmem:[%s3860_s5 + $0x334] ss:$8 sps:$4 sm:$0xff]  }
  0x5e   : > { %1158 = vmatmul.mubr.bf16.gmra.mrb[12].mxu0 %v3617_v31  ;;  %1414 = vmatmul.mubr.bf16.gmra.mrb[12].mxu1 %v3618_v32  ;;  %v3713_v31 = vld [vmem:[%s3860_s5 + $0x130] ss:$8 sps:$4 sm:$0xff]  }
  0x5f   : > { %1165 = vmatprep.mubr.bf16.mxu0 %v3619_v33  ;;  %1421 = vmatprep.mubr.bf16.mxu1 %v3621_v34  ;;  %v3714_v32 = vld [vmem:[%s3860_s5 + $0x330] ss:$8 sps:$4 sm:$0xff]   ;;  %v3715_v33 = vld [vmem:[%s3860_s5 + $0x144] ss:$8 sps:$4 sm:$0xff]  }
  0x60   : > { %v3717_v34 = vld [vmem:[%s3860_s5 + $0x344] ss:$8 sps:$4 sm:$0xff]  }
  0x66   : > { %1166 = vmatmul.mubr.bf16.gmra.mrb[16].mxu0 %v3623_v35  ;;  %1422 = vmatmul.mubr.bf16.gmra.mrb[16].mxu1 %v3624_v36  ;;  %v3719_v35 = vld [vmem:[%s3860_s5 + $0x140] ss:$8 sps:$4 sm:$0xff]  }
  0x67   : > { %1173 = vmatprep.mubr.bf16.mxu0 %v3625_v37  ;;  %1429 = vmatprep.mubr.bf16.mxu1 %v3627_v38  ;;  %v3720_v36 = vld [vmem:[%s3860_s5 + $0x340] ss:$8 sps:$4 sm:$0xff]   ;;  %v3721_v37 = vld [vmem:[%s3860_s5 + $0x154] ss:$8 sps:$4 sm:$0xff]  }
  0x68   : > { %v3723_v38 = vld [vmem:[%s3860_s5 + $0x354] ss:$8 sps:$4 sm:$0xff]  }
  0x6e   : > { %1174 = vmatmul.mubr.bf16.gmra.mrb[20].mxu0 %v3629_v39  ;;  %1430 = vmatmul.mubr.bf16.gmra.mrb[20].mxu1 %v3630_v40  ;;  %v3725_v39 = vld [vmem:[%s3860_s5 + $0x150] ss:$8 sps:$4 sm:$0xff]  }
  0x6f   : > { %1181 = vmatprep.mubr.bf16.mxu0 %v3631_v41  ;;  %1437 = vmatprep.mubr.bf16.mxu1 %v3633_v42  ;;  %v3726_v40 = vld [vmem:[%s3860_s5 + $0x350] ss:$8 sps:$4 sm:$0xff]   ;;  %v3727_v41 = vld [vmem:[%s3860_s5 + $0x164] ss:$8 sps:$4 sm:$0xff]  }
  0x70   : > { %v3729_v42 = vld [vmem:[%s3860_s5 + $0x364] ss:$8 sps:$4 sm:$0xff]  }
  0x76   : > { %1182 = vmatmul.mubr.bf16.gmra.mrb[24].mxu0 %v3635_v43  ;;  %1438 = vmatmul.mubr.bf16.gmra.mrb[24].mxu1 %v3636_v44  ;;  %v3731_v43 = vld [vmem:[%s3860_s5 + $0x160] ss:$8 sps:$4 sm:$0xff]  }
  0x77   : > { %1189 = vmatprep.mubr.bf16.mxu0 %v3637_v45  ;;  %1445 = vmatprep.mubr.bf16.mxu1 %v3639_v46  ;;  %v3732_v44 = vld [vmem:[%s3860_s5 + $0x360] ss:$8 sps:$4 sm:$0xff]   ;;  %v3733_v45 = vld [vmem:[%s3860_s5 + $0x174] ss:$8 sps:$4 sm:$0xff]  }
  0x78   : > { %v3735_v46 = vld [vmem:[%s3860_s5 + $0x374] ss:$8 sps:$4 sm:$0xff]  }
  0x7e   : > { %1190 = vmatmul.mubr.bf16.gmra.mrb[28].mxu0 %v3641_v47  ;;  %1446 = vmatmul.mubr.bf16.gmra.mrb[28].mxu1 %v3642_v48  ;;  %v3737_v47 = vld [vmem:[%s3860_s5 + $0x170] ss:$8 sps:$4 sm:$0xff]  }
  0x7f   : > { %1197 = vmatprep.mubr.bf16.mxu0 %v3643_v49  ;;  %1453 = vmatprep.mubr.bf16.mxu1 %v3645_v50  ;;  %v3738_v48 = vld [vmem:[%s3860_s5 + $0x370] ss:$8 sps:$4 sm:$0xff]   ;;  %v3739_v49 = vld [vmem:[%s3860_s5 + $0x184] ss:$8 sps:$4 sm:$0xff]  }
  0x80   : > { %v3741_v50 = vld [vmem:[%s3860_s5 + $0x384] ss:$8 sps:$4 sm:$0xff]  }
  0x86   : > { %1198 = vmatmul.mubr.bf16.gmra.mrb[32].mxu0 %v3647_v51  ;;  %1454 = vmatmul.mubr.bf16.gmra.mrb[32].mxu1 %v3648_v52  ;;  %v3743_v51 = vld [vmem:[%s3860_s5 + $0x180] ss:$8 sps:$4 sm:$0xff]  }
  0x87   : > { %1205 = vmatprep.mubr.bf16.mxu0 %v3649_v53  ;;  %1461 = vmatprep.mubr.bf16.mxu1 %v3651_v54  ;;  %v3744_v52 = vld [vmem:[%s3860_s5 + $0x380] ss:$8 sps:$4 sm:$0xff]   ;;  %v3745_v53 = vld [vmem:[%s3860_s5 + $0x194] ss:$8 sps:$4 sm:$0xff]  }
  0x88   : > { %v3747_v54 = vld [vmem:[%s3860_s5 + $0x394] ss:$8 sps:$4 sm:$0xff]  }
  0x8e   : > { %1206 = vmatmul.mubr.bf16.gmra.mrb[36].mxu0 %v3653_v55  ;;  %1462 = vmatmul.mubr.bf16.gmra.mrb[36].mxu1 %v3654_v56  ;;  %v3749_v55 = vld [vmem:[%s3860_s5 + $0x190] ss:$8 sps:$4 sm:$0xff]  }
  0x8f   : > { %1213 = vmatprep.mubr.bf16.mxu0 %v3655_v57  ;;  %1469 = vmatprep.mubr.bf16.mxu1 %v3657_v58  ;;  %v3750_v56 = vld [vmem:[%s3860_s5 + $0x390] ss:$8 sps:$4 sm:$0xff]   ;;  %v3751_v57 = vld [vmem:[%s3860_s5 + $0x1a4] ss:$8 sps:$4 sm:$0xff]  }
  0x90   : > { %v3753_v58 = vld [vmem:[%s3860_s5 + $0x3a4] ss:$8 sps:$4 sm:$0xff]  }
  0x96   : > { %1214 = vmatmul.mubr.bf16.gmra.mrb[40].mxu0 %v3659_v59  ;;  %1470 = vmatmul.mubr.bf16.gmra.mrb[40].mxu1 %v3660_v60  ;;  %v3755_v59 = vld [vmem:[%s3860_s5 + $0x1a0] ss:$8 sps:$4 sm:$0xff]  }
  0x97   : > { %1221 = vmatprep.mubr.bf16.mxu0 %v3661_v61  ;;  %1477 = vmatprep.mubr.bf16.mxu1 %v3663_v62  ;;  %v3756_v60 = vld [vmem:[%s3860_s5 + $0x3a0] ss:$8 sps:$4 sm:$0xff]   ;;  %v3757_v61 = vld [vmem:[%s3860_s5 + $0x1b4] ss:$8 sps:$4 sm:$0xff]  }
  0x98   : > { %v3759_v62 = vld [vmem:[%s3860_s5 + $0x3b4] ss:$8 sps:$4 sm:$0xff]  }
  0x9e   : > { %1222 = vmatmul.mubr.bf16.gmra.mrb[44].mxu0 %v3665_v63  ;;  %1478 = vmatmul.mubr.bf16.gmra.mrb[44].mxu1 %v3666_v0  ;;  %v4032_v0 = vld [vmem:[%s4398_s2] ss:$0 sm:$0xff] }
  0x9f   : > { %1229 = vmatprep.mubr.bf16.mxu0 %v3667_v1  ;;  %1485 = vmatprep.mubr.bf16.mxu1 %v3669_v2 }
  0xa6   : > { %1230 = vmatmul.mubr.bf16.gmra.mrb[48].mxu0 %v3671_v3  ;;  %1486 = vmatmul.mubr.bf16.gmra.mrb[48].mxu1 %v3672_v4 }
  0xa7   : > { %1237 = vmatprep.mubr.bf16.mxu0 %v3673_v5  ;;  %1493 = vmatprep.mubr.bf16.mxu1 %v3675_v6  ;;  %v3761_v6 = vld [vmem:[%s3860_s5 + $0x1b0] ss:$8 sps:$4 sm:$0xff]  }
  0xae   : > { %1238 = vmatmul.mubr.bf16.gmra.mrb[52].mxu0 %v3677_v7  ;;  %1494 = vmatmul.mubr.bf16.gmra.mrb[52].mxu1 %v3678_v8 }
  0xaf   : > { %1245 = vmatprep.mubr.bf16.mxu0 %v3679_v9  ;;  %1501 = vmatprep.mubr.bf16.mxu1 %v3681_v10  ;;  %v3762_v9 = vld [vmem:[%s3860_s5 + $0x3b0] ss:$8 sps:$4 sm:$0xff]   ;;  %v3763_v10 = vld [vmem:[%s3860_s5 + $0x1c4] ss:$8 sps:$4 sm:$0xff]  }
  0xb6   : > { %1246 = vmatmul.mubr.bf16.gmra.mrb[56].mxu0 %v3683_v11  ;;  %1502 = vmatmul.mubr.bf16.gmra.mrb[56].mxu1 %v3684_v12 }
  0xb7   : > { %1253 = vmatprep.mubr.bf16.mxu0 %v3685_v13  ;;  %1509 = vmatprep.mubr.bf16.mxu1 %v3687_v14 }
  0xbe   : > { %1254 = vmatmul.mubr.bf16.gmra.mrb[60].mxu0 %v3689_v15  ;;  %1510 = vmatmul.mubr.bf16.gmra.mrb[60].mxu1 %v3690_v16 }
  0xbf   : > { %1261 = vmatprep.mubr.bf16.mxu0 %v3691_v17  ;;  %1517 = vmatprep.mubr.bf16.mxu1 %v3693_v18  ;;  %v3765_v17 = vld [vmem:[%s3860_s5 + $0x3c4] ss:$8 sps:$4 sm:$0xff]   ;;  %v4043_v18 = vld [vmem:[%s4399_s3] ss:$0 sm:$0xff] }
  0xc6   : > { %1262 = vmatmul.mubr.bf16.gmra.mrb[64].mxu0 %v3695_v19  ;;  %1518 = vmatmul.mubr.bf16.gmra.mrb[64].mxu1 %v3696_v20 }
  0xc7   : > { %1269 = vmatprep.mubr.bf16.mxu0 %v3697_v21  ;;  %1525 = vmatprep.mubr.bf16.mxu1 %v3699_v22 }
  0xce   : > { %1270 = vmatmul.mubr.bf16.gmra.mrb[68].mxu0 %v3701_v23  ;;  %1526 = vmatmul.mubr.bf16.gmra.mrb[68].mxu1 %v3702_v24 }
  0xcf   : > { %1277 = vmatprep.mubr.bf16.mxu0 %v3703_v25  ;;  %1533 = vmatprep.mubr.bf16.mxu1 %v3705_v26 }
  0xd6   : > { %1278 = vmatmul.mubr.bf16.gmra.mrb[72].mxu0 %v3707_v27  ;;  %1534 = vmatmul.mubr.bf16.gmra.mrb[72].mxu1 %v3708_v28 }
  0xd7   : > { %1285 = vmatprep.mubr.bf16.mxu0 %v3709_v29  ;;  %1541 = vmatprep.mubr.bf16.mxu1 %v3711_v30 }
  0xde   : > { %1286 = vmatmul.mubr.bf16.gmra.mrb[76].mxu0 %v3713_v31  ;;  %1542 = vmatmul.mubr.bf16.gmra.mrb[76].mxu1 %v3714_v32 }
  0xdf   : > { %1293 = vmatprep.mubr.bf16.mxu0 %v3715_v33  ;;  %1549 = vmatprep.mubr.bf16.mxu1 %v3717_v34  ;;  %v3767_v33 = vld [vmem:[%s3860_s5 + $0x1c0] ss:$8 sps:$4 sm:$0xff]  }
  0xe6   : > { %1294 = vmatmul.mubr.bf16.gmra.mrb[80].mxu0 %v3719_v35  ;;  %1550 = vmatmul.mubr.bf16.gmra.mrb[80].mxu1 %v3720_v36  ;;  %v3768_v36 = vld [vmem:[%s3860_s5 + $0x3c0] ss:$8 sps:$4 sm:$0xff]  }
  0xe7   : > { %1301 = vmatprep.mubr.bf16.mxu0 %v3721_v37  ;;  %1557 = vmatprep.mubr.bf16.mxu1 %v3723_v38  ;;  %v3769_v37 = vld [vmem:[%s3860_s5 + $0x1d4] ss:$8 sps:$4 sm:$0xff]  }
  0xee   : > { %1302 = vmatmul.mubr.bf16.gmra.mrb[84].mxu0 %v3725_v39  ;;  %1558 = vmatmul.mubr.bf16.gmra.mrb[84].mxu1 %v3726_v40 }
  0xef   : > { %1309 = vmatprep.mubr.bf16.mxu0 %v3727_v41  ;;  %1565 = vmatprep.mubr.bf16.mxu1 %v3729_v42 }
  0xf6   : > { %1310 = vmatmul.mubr.bf16.gmra.mrb[88].mxu0 %v3731_v43  ;;  %1566 = vmatmul.mubr.bf16.gmra.mrb[88].mxu1 %v3732_v44  ;;  %v3771_v44 = vld [vmem:[%s3860_s5 + $0x3d4] ss:$8 sps:$4 sm:$0xff]  }
  0xf7   : > { %1317 = vmatprep.mubr.bf16.mxu0 %v3733_v45  ;;  %1573 = vmatprep.mubr.bf16.mxu1 %v3735_v46 }
  0xfe   : > { %1318 = vmatmul.mubr.bf16.gmra.mrb[92].mxu0 %v3737_v47  ;;  %1574 = vmatmul.mubr.bf16.gmra.mrb[92].mxu1 %v3738_v48 }
  0xff   : > { %1325 = vmatprep.mubr.bf16.mxu0 %v3739_v49  ;;  %1581 = vmatprep.mubr.bf16.mxu1 %v3741_v50 }
 0x106   : > { %1326 = vmatmul.mubr.bf16.gmra.mrb[96].mxu0 %v3743_v51  ;;  %1582 = vmatmul.mubr.bf16.gmra.mrb[96].mxu1 %v3744_v52 }
 0x107   : > { %1333 = vmatprep.mubr.bf16.mxu0 %v3745_v53  ;;  %1589 = vmatprep.mubr.bf16.mxu1 %v3747_v54 }
 0x10e   : > { %1334 = vmatmul.mubr.bf16.gmra.mrb[100].mxu0 %v3749_v55  ;;  %1590 = vmatmul.mubr.bf16.gmra.mrb[100].mxu1 %v3750_v56 }
 0x10f   : > { %1341 = vmatprep.mubr.bf16.mxu0 %v3751_v57  ;;  %1597 = vmatprep.mubr.bf16.mxu1 %v3753_v58 }
 0x116   : > { %1342 = vmatmul.mubr.bf16.gmra.mrb[104].mxu0 %v3755_v59  ;;  %1598 = vmatmul.mubr.bf16.gmra.mrb[104].mxu1 %v3756_v60  ;;  %v3773_v59 = vld [vmem:[%s3860_s5 + $0x1d0] ss:$8 sps:$4 sm:$0xff]  }
 0x117   : > { %1349 = vmatprep.mubr.bf16.mxu0 %v3757_v61  ;;  %1605 = vmatprep.mubr.bf16.mxu1 %v3759_v62  ;;  %v3774_v62 = vld [vmem:[%s3860_s5 + $0x3d0] ss:$8 sps:$4 sm:$0xff]  }
 0x119   : > { %v1135_v63 = vpop.f32.mrb[0].mxu0  ;;  %v1391_v1 = vpop.f32.mrb[0].mxu1 }
 0x11a   : > { %v1646_v2 = vmax.f32 %v1135_v63, 0.0  ;;  %v1710_v3 = vmax.f32 %v1391_v1, 0.0  ;;  %v1137_v4 = vpop.f32.mrb[1].mxu0  ;;  %v1393_v5 = vpop.f32.mrb[1].mxu1  ;;  %v3775_v63 = vld [vmem:[%s3860_s5 + $0x1e4] ss:$8 sps:$4 sm:$0xff]  }
 0x11b   : > { %v1138_v7 = vpop.f32.mrb[2].mxu0  ;;  %v1394_v8 = vpop.f32.mrb[2].mxu1 }
 0x11c   : > { %v1781_v11 = vmul.f32 %v4032_v0, %v1646_v2  ;;  %v1845_v12 = vmul.f32 %v4032_v0, %v1710_v3  ;;  %v1647_v13 = vmax.f32 %v1138_v7, 0.0  ;;  %v1711_v14 = vmax.f32 %v1394_v8, 0.0  ;;  %v1140_v15 = vpop.f32.mrb[3].mxu0  ;;  %v1396_v16 = vpop.f32.mrb[3].mxu1  ;;  %v3777_v7 = vld [vmem:[%s3860_s5 + $0x3e4] ss:$8 sps:$4 sm:$0xff]  }
 0x11e   : > { %v1782_v19 = vmul.f32 %v4032_v0, %v1647_v13  ;;  %v1846_v20 = vmul.f32 %v4032_v0, %v1711_v14  ;;  %1350 = vmatmul.mubr.bf16.gmra.mrb[108].mxu0 %v3761_v6  ;;  %1606 = vmatmul.mubr.bf16.gmra.mrb[108].mxu1 %v3762_v9  ;;  %v1916_v21 = vadd.f32 %v4043_v18, %v1781_v11 }
 0x11f   : > { %1357 = vmatprep.mubr.bf16.mxu0 %v3763_v10  ;;  %v1980_v22 = vadd.f32 %v4043_v18, %v1845_v12  ;;  %1613 = vmatprep.mubr.bf16.mxu1 %v3765_v17 }
 0x120   : > { %v1917_v23 = vadd.f32 %v4043_v18, %v1782_v19  ;;  %v1981_v24 = vadd.f32 %v4043_v18, %v1846_v20 }
 0x121   : > { %v1143_v25 = vpop.f32.mrb[4].mxu0  ;;  %v1399_v26 = vpop.f32.mrb[4].mxu1 }
 0x122   : > { %v3158_v27 = vpack.c.bf16 %v1917_v23, %v1916_v21  ;;  %v3318_v28 = vpack.c.bf16 %v1981_v24, %v1980_v22  ;;  %v1648_v29 = vmax.f32 %v1143_v25, 0.0  ;;  %v1712_v30 = vmax.f32 %v1399_v26, 0.0  ;;  %v1145_v31 = vpop.f32.mrb[5].mxu0  ;;  %v1401_v32 = vpop.f32.mrb[5].mxu1  ;;  %v3779_v23 = vld [vmem:[%s3860_s5 + $0x1e0] ss:$8 sps:$4 sm:$0xff]  }
 0x123   : > { %v1146_v34 = vpop.f32.mrb[6].mxu0  ;;  %v1402_v35 = vpop.f32.mrb[6].mxu1  ;;  %v3780_v26 = vld [vmem:[%s3860_s5 + $0x3e0] ss:$8 sps:$4 sm:$0xff]  }
 0x124   : > { %3159 = vst [vmem:[%s4055_s11] sm:$0xff] %v3158_v27   ;;  %3506 = vst [vmem:[%s4055_s11 + $0x100] sm:$0xff] %v3318_v28   ;;  %v1783_v38 = vmul.f32 %v4032_v0, %v1648_v29  ;;  %v1847_v39 = vmul.f32 %v4032_v0, %v1712_v30  ;;  %v1649_v40 = vmax.f32 %v1146_v34, 0.0  ;;  %v1713_v41 = vmax.f32 %v1402_v35, 0.0  ;;  %v1148_v42 = vpop.f32.mrb[7].mxu0  ;;  %v1404_v43 = vpop.f32.mrb[7].mxu1 }
 0x125   : > { %v3781_v27 = vld [vmem:[%s3860_s5 + $0x1f4] ss:$8 sps:$4 sm:$0xff]  }
 0x126   : > { %v1784_v45 = vmul.f32 %v4032_v0, %v1649_v40  ;;  %v1848_v46 = vmul.f32 %v4032_v0, %v1713_v41  ;;  %1358 = vmatmul.mubr.bf16.gmra.mrb[112].mxu0 %v3767_v33  ;;  %1614 = vmatmul.mubr.bf16.gmra.mrb[112].mxu1 %v3768_v36  ;;  %v1918_v47 = vadd.f32 %v4043_v18, %v1783_v38  ;;  %v3783_v34 = vld [vmem:[%s3860_s5 + $0x3f4] ss:$8 sps:$4 sm:$0xff]  }
 0x127   : > { %1365 = vmatprep.mubr.bf16.mxu0 %v3769_v37  ;;  %v1982_v48 = vadd.f32 %v4043_v18, %v1847_v39  ;;  %1621 = vmatprep.mubr.bf16.mxu1 %v3771_v44 }
 0x128   : > { %v1919_v49 = vadd.f32 %v4043_v18, %v1784_v45  ;;  %v1983_v50 = vadd.f32 %v4043_v18, %v1848_v46 }
 0x129   : > { %v1151_v51 = vpop.f32.mrb[8].mxu0  ;;  %v1407_v52 = vpop.f32.mrb[8].mxu1 }
 0x12a   : > { %v3163_v53 = vpack.c.bf16 %v1919_v49, %v1918_v47  ;;  %v3323_v54 = vpack.c.bf16 %v1983_v50, %v1982_v48  ;;  %v1650_v55 = vmax.f32 %v1151_v51, 0.0  ;;  %v1714_v56 = vmax.f32 %v1407_v52, 0.0  ;;  %v1153_v57 = vpop.f32.mrb[9].mxu0  ;;  %v1409_v58 = vpop.f32.mrb[9].mxu1  ;;  %v3785_v49 = vld [vmem:[%s3860_s5 + $0x1f0] ss:$8 sps:$4 sm:$0xff]  }
 0x12b   : > { %v1154_v60 = vpop.f32.mrb[10].mxu0  ;;  %v1410_v61 = vpop.f32.mrb[10].mxu1  ;;  %v3786_v52 = vld [vmem:[%s3860_s5 + $0x3f0] ss:$8 sps:$4 sm:$0xff]  }
 0x12c   : > { %3475 = vst [vmem:[%s4055_s11 + $0x8] sm:$0xff] %v3163_v53   ;;  %3507 = vst [vmem:[%s4055_s11 + $0x108] sm:$0xff] %v3323_v54   ;;  %v1785_v1 = vmul.f32 %v4032_v0, %v1650_v55  ;;  %v1849_v2 = vmul.f32 %v4032_v0, %v1714_v56  ;;  %v1651_v3 = vmax.f32 %v1154_v60, 0.0  ;;  %v1715_v4 = vmax.f32 %v1410_v61, 0.0  ;;  %v1156_v5 = vpop.f32.mrb[11].mxu0  ;;  %v1412_v6 = vpop.f32.mrb[11].mxu1 }
 0x12e   : > { %v1786_v8 = vmul.f32 %v4032_v0, %v1651_v3  ;;  %v1850_v9 = vmul.f32 %v4032_v0, %v1715_v4  ;;  %1366 = vmatmul.mubr.bf16.gmra.mrb[116].mxu0 %v3773_v59  ;;  %1622 = vmatmul.mubr.bf16.gmra.mrb[116].mxu1 %v3774_v62  ;;  %v1920_v10 = vadd.f32 %v4043_v18, %v1785_v1 }
 0x12f   : > { %1373 = vmatprep.mubr.bf16.mxu0 %v3775_v63  ;;  %v1984_v11 = vadd.f32 %v4043_v18, %v1849_v2  ;;  %1629 = vmatprep.mubr.bf16.mxu1 %v3777_v7 }
 0x130   : > { %v1921_v12 = vadd.f32 %v4043_v18, %v1786_v8  ;;  %v1985_v13 = vadd.f32 %v4043_v18, %v1850_v9 }
 0x131   : > { %v1159_v14 = vpop.f32.mrb[12].mxu0  ;;  %v1415_v15 = vpop.f32.mrb[12].mxu1 }
 0x132   : > { %v3168_v16 = vpack.c.bf16 %v1921_v12, %v1920_v10  ;;  %v3328_v17 = vpack.c.bf16 %v1985_v13, %v1984_v11  ;;  %v1652_v19 = vmax.f32 %v1159_v14, 0.0  ;;  %v1716_v20 = vmax.f32 %v1415_v15, 0.0  ;;  %v1161_v21 = vpop.f32.mrb[13].mxu0  ;;  %v1417_v22 = vpop.f32.mrb[13].mxu1 }
 0x133   : > { %v1162_v24 = vpop.f32.mrb[14].mxu0  ;;  %v1418_v25 = vpop.f32.mrb[14].mxu1 }
 0x134   : > { %3476 = vst [vmem:[%s4055_s11 + $0x10] sm:$0xff] %v3168_v16   ;;  %3508 = vst [vmem:[%s4055_s11 + $0x110] sm:$0xff] %v3328_v17   ;;  %v1787_v28 = vmul.f32 %v4032_v0, %v1652_v19  ;;  %v1851_v29 = vmul.f32 %v4032_v0, %v1716_v20  ;;  %v1653_v30 = vmax.f32 %v1162_v24, 0.0  ;;  %v1717_v31 = vmax.f32 %v1418_v25, 0.0  ;;  %v1164_v32 = vpop.f32.mrb[15].mxu0  ;;  %v1420_v33 = vpop.f32.mrb[15].mxu1 }
 0x136   : > { %v1788_v35 = vmul.f32 %v4032_v0, %v1653_v30  ;;  %v1852_v36 = vmul.f32 %v4032_v0, %v1717_v31  ;;  %1374 = vmatmul.mubr.bf16.gmra.mrb[120].mxu0 %v3779_v23  ;;  %1630 = vmatmul.mubr.bf16.gmra.mrb[120].mxu1 %v3780_v26  ;;  %v1922_v37 = vadd.f32 %v4043_v18, %v1787_v28 }
 0x137   : > { %1381 = vmatprep.mubr.bf16.mxu0 %v3781_v27  ;;  %v1986_v38 = vadd.f32 %v4043_v18, %v1851_v29  ;;  %1637 = vmatprep.mubr.bf16.mxu1 %v3783_v34 }
 0x138   : > { %v1923_v39 = vadd.f32 %v4043_v18, %v1788_v35  ;;  %v1987_v40 = vadd.f32 %v4043_v18, %v1852_v36 }
 0x139   : > { %v1167_v41 = vpop.f32.mrb[16].mxu0  ;;  %v1423_v42 = vpop.f32.mrb[16].mxu1 }
 0x13a   : > { %v3173_v43 = vpack.c.bf16 %v1923_v39, %v1922_v37  ;;  %v3333_v44 = vpack.c.bf16 %v1987_v40, %v1986_v38  ;;  %v1654_v45 = vmax.f32 %v1167_v41, 0.0  ;;  %v1718_v46 = vmax.f32 %v1423_v42, 0.0  ;;  %v1169_v47 = vpop.f32.mrb[17].mxu0  ;;  %v1425_v48 = vpop.f32.mrb[17].mxu1 }
 0x13b   : > { %v1170_v50 = vpop.f32.mrb[18].mxu0  ;;  %v1426_v51 = vpop.f32.mrb[18].mxu1 }
 0x13c   : > { %3477 = vst [vmem:[%s4055_s11 + $0x18] sm:$0xff] %v3173_v43   ;;  %3509 = vst [vmem:[%s4055_s11 + $0x118] sm:$0xff] %v3333_v44   ;;  %v1789_v53 = vmul.f32 %v4032_v0, %v1654_v45  ;;  %v1853_v54 = vmul.f32 %v4032_v0, %v1718_v46  ;;  %v1655_v55 = vmax.f32 %v1170_v50, 0.0  ;;  %v1719_v56 = vmax.f32 %v1426_v51, 0.0  ;;  %v1172_v57 = vpop.f32.mrb[19].mxu0  ;;  %v1428_v58 = vpop.f32.mrb[19].mxu1 }
 0x13e   : > { %v1790_v59 = vmul.f32 %v4032_v0, %v1655_v55  ;;  %v1854_v60 = vmul.f32 %v4032_v0, %v1719_v56  ;;  %1382 = vmatmul.mubr.bf16.gmra.mrb[124].mxu0 %v3785_v49  ;;  %1638 = vmatmul.mubr.bf16.gmra.mrb[124].mxu1 %v3786_v52  ;;  %v1924_v61 = vadd.f32 %v4043_v18, %v1789_v53 }
 0x13f   : > { %v1988_v62 = vadd.f32 %v4043_v18, %v1853_v54 }
 0x140   : > { %v1925_v63 = vadd.f32 %v4043_v18, %v1790_v59  ;;  %v1989_v1 = vadd.f32 %v4043_v18, %v1854_v60 }
 0x141   : > { %v1175_v2 = vpop.f32.mrb[20].mxu0  ;;  %v1431_v3 = vpop.f32.mrb[20].mxu1 }
 0x142   : > { %v3178_v4 = vpack.c.bf16 %v1925_v63, %v1924_v61  ;;  %v3338_v5 = vpack.c.bf16 %v1989_v1, %v1988_v62  ;;  %v1656_v6 = vmax.f32 %v1175_v2, 0.0  ;;  %v1720_v7 = vmax.f32 %v1431_v3, 0.0  ;;  %v1177_v8 = vpop.f32.mrb[21].mxu0  ;;  %v1433_v9 = vpop.f32.mrb[21].mxu1 }
 0x143   : > { %v1178_v10 = vpop.f32.mrb[22].mxu0  ;;  %v1434_v11 = vpop.f32.mrb[22].mxu1 }
 0x144   : > { %3478 = vst [vmem:[%s4055_s11 + $0x20] sm:$0xff] %v3178_v4   ;;  %3510 = vst [vmem:[%s4055_s11 + $0x120] sm:$0xff] %v3338_v5   ;;  %v1791_v12 = vmul.f32 %v4032_v0, %v1656_v6  ;;  %v1855_v13 = vmul.f32 %v4032_v0, %v1720_v7  ;;  %v1657_v14 = vmax.f32 %v1178_v10, 0.0  ;;  %v1721_v15 = vmax.f32 %v1434_v11, 0.0  ;;  %v1180_v16 = vpop.f32.mrb[23].mxu0  ;;  %v1436_v17 = vpop.f32.mrb[23].mxu1 }
 0x146   : > { %v1792_v19 = vmul.f32 %v4032_v0, %v1657_v14  ;;  %v1856_v20 = vmul.f32 %v4032_v0, %v1721_v15  ;;  %v1926_v21 = vadd.f32 %v4043_v18, %v1791_v12  ;;  %v1990_v22 = vadd.f32 %v4043_v18, %v1855_v13 }
 0x148   : > { %v1927_v23 = vadd.f32 %v4043_v18, %v1792_v19  ;;  %v1991_v24 = vadd.f32 %v4043_v18, %v1856_v20 }
 0x149   : > { %v1183_v25 = vpop.f32.mrb[24].mxu0  ;;  %v1439_v26 = vpop.f32.mrb[24].mxu1 }
 0x14a   : > { %v3183_v27 = vpack.c.bf16 %v1927_v23, %v1926_v21  ;;  %v3343_v28 = vpack.c.bf16 %v1991_v24, %v1990_v22  ;;  %v1658_v29 = vmax.f32 %v1183_v25, 0.0  ;;  %v1722_v30 = vmax.f32 %v1439_v26, 0.0  ;;  %v1185_v31 = vpop.f32.mrb[25].mxu0  ;;  %v1441_v32 = vpop.f32.mrb[25].mxu1 }
 0x14b   : > { %v1186_v33 = vpop.f32.mrb[26].mxu0  ;;  %v1442_v34 = vpop.f32.mrb[26].mxu1 }
 0x14c   : > { %3479 = vst [vmem:[%s4055_s11 + $0x28] sm:$0xff] %v3183_v27   ;;  %3511 = vst [vmem:[%s4055_s11 + $0x128] sm:$0xff] %v3343_v28   ;;  %v1793_v35 = vmul.f32 %v4032_v0, %v1658_v29  ;;  %v1857_v36 = vmul.f32 %v4032_v0, %v1722_v30  ;;  %v1659_v37 = vmax.f32 %v1186_v33, 0.0  ;;  %v1723_v38 = vmax.f32 %v1442_v34, 0.0  ;;  %v1188_v39 = vpop.f32.mrb[27].mxu0  ;;  %v1444_v40 = vpop.f32.mrb[27].mxu1 }
 0x14e   : > { %v1794_v41 = vmul.f32 %v4032_v0, %v1659_v37  ;;  %v1858_v42 = vmul.f32 %v4032_v0, %v1723_v38  ;;  %v1928_v43 = vadd.f32 %v4043_v18, %v1793_v35  ;;  %v1992_v44 = vadd.f32 %v4043_v18, %v1857_v36 }
 0x150   : > { %v1929_v45 = vadd.f32 %v4043_v18, %v1794_v41  ;;  %v1993_v46 = vadd.f32 %v4043_v18, %v1858_v42 }
 0x151   : > { %v1191_v47 = vpop.f32.mrb[28].mxu0  ;;  %v1447_v48 = vpop.f32.mrb[28].mxu1 }
 0x152   : > { %v3188_v49 = vpack.c.bf16 %v1929_v45, %v1928_v43  ;;  %v3348_v50 = vpack.c.bf16 %v1993_v46, %v1992_v44  ;;  %v1660_v51 = vmax.f32 %v1191_v47, 0.0  ;;  %v1724_v52 = vmax.f32 %v1447_v48, 0.0  ;;  %v1193_v53 = vpop.f32.mrb[29].mxu0  ;;  %v1449_v54 = vpop.f32.mrb[29].mxu1 }
 0x153   : > { %v1194_v55 = vpop.f32.mrb[30].mxu0  ;;  %v1450_v56 = vpop.f32.mrb[30].mxu1 }
 0x154   : > { %3480 = vst [vmem:[%s4055_s11 + $0x30] sm:$0xff] %v3188_v49   ;;  %3512 = vst [vmem:[%s4055_s11 + $0x130] sm:$0xff] %v3348_v50   ;;  %v1795_v57 = vmul.f32 %v4032_v0, %v1660_v51  ;;  %v1859_v58 = vmul.f32 %v4032_v0, %v1724_v52  ;;  %v1661_v59 = vmax.f32 %v1194_v55, 0.0  ;;  %v1725_v60 = vmax.f32 %v1450_v56, 0.0  ;;  %v1196_v61 = vpop.f32.mrb[31].mxu0  ;;  %v1452_v62 = vpop.f32.mrb[31].mxu1 }
 0x156   : > { %v1796_v63 = vmul.f32 %v4032_v0, %v1661_v59  ;;  %v1860_v1 = vmul.f32 %v4032_v0, %v1725_v60  ;;  %v1930_v2 = vadd.f32 %v4043_v18, %v1795_v57  ;;  %v1994_v3 = vadd.f32 %v4043_v18, %v1859_v58 }
 0x158   : > { %v1931_v4 = vadd.f32 %v4043_v18, %v1796_v63  ;;  %v1995_v5 = vadd.f32 %v4043_v18, %v1860_v1 }
 0x159   : > { %v1199_v6 = vpop.f32.mrb[32].mxu0  ;;  %v1455_v7 = vpop.f32.mrb[32].mxu1 }
 0x15a   : > { %v3193_v8 = vpack.c.bf16 %v1931_v4, %v1930_v2  ;;  %v3353_v9 = vpack.c.bf16 %v1995_v5, %v1994_v3  ;;  %v1662_v10 = vmax.f32 %v1199_v6, 0.0  ;;  %v1726_v11 = vmax.f32 %v1455_v7, 0.0  ;;  %v1201_v12 = vpop.f32.mrb[33].mxu0  ;;  %v1457_v13 = vpop.f32.mrb[33].mxu1 }
 0x15b   : > { %v1202_v14 = vpop.f32.mrb[34].mxu0  ;;  %v1458_v15 = vpop.f32.mrb[34].mxu1 }
 0x15c   : > { %3481 = vst [vmem:[%s4055_s11 + $0x38] sm:$0xff] %v3193_v8   ;;  %3513 = vst [vmem:[%s4055_s11 + $0x138] sm:$0xff] %v3353_v9   ;;  %v1797_v16 = vmul.f32 %v4032_v0, %v1662_v10  ;;  %v1861_v17 = vmul.f32 %v4032_v0, %v1726_v11  ;;  %v1663_v19 = vmax.f32 %v1202_v14, 0.0  ;;  %v1727_v20 = vmax.f32 %v1458_v15, 0.0  ;;  %v1204_v21 = vpop.f32.mrb[35].mxu0  ;;  %v1460_v22 = vpop.f32.mrb[35].mxu1 }
 0x15e   : > { %v1798_v23 = vmul.f32 %v4032_v0, %v1663_v19  ;;  %v1862_v24 = vmul.f32 %v4032_v0, %v1727_v20  ;;  %v1932_v25 = vadd.f32 %v4043_v18, %v1797_v16  ;;  %v1996_v26 = vadd.f32 %v4043_v18, %v1861_v17 }
 0x160   : > { %v1933_v27 = vadd.f32 %v4043_v18, %v1798_v23  ;;  %v1997_v28 = vadd.f32 %v4043_v18, %v1862_v24 }
 0x161   : > { %v1207_v29 = vpop.f32.mrb[36].mxu0  ;;  %v1463_v30 = vpop.f32.mrb[36].mxu1 }
 0x162   : > { %v3198_v31 = vpack.c.bf16 %v1933_v27, %v1932_v25  ;;  %v3358_v32 = vpack.c.bf16 %v1997_v28, %v1996_v26  ;;  %v1664_v33 = vmax.f32 %v1207_v29, 0.0  ;;  %v1728_v34 = vmax.f32 %v1463_v30, 0.0  ;;  %v1209_v35 = vpop.f32.mrb[37].mxu0  ;;  %v1465_v36 = vpop.f32.mrb[37].mxu1 }
 0x163   : > { %v1210_v37 = vpop.f32.mrb[38].mxu0  ;;  %v1466_v38 = vpop.f32.mrb[38].mxu1 }
 0x164   : > { %3482 = vst [vmem:[%s4055_s11 + $0x40] sm:$0xff] %v3198_v31   ;;  %3514 = vst [vmem:[%s4055_s11 + $0x140] sm:$0xff] %v3358_v32   ;;  %v1799_v39 = vmul.f32 %v4032_v0, %v1664_v33  ;;  %v1863_v40 = vmul.f32 %v4032_v0, %v1728_v34  ;;  %v1665_v41 = vmax.f32 %v1210_v37, 0.0  ;;  %v1729_v42 = vmax.f32 %v1466_v38, 0.0  ;;  %v1212_v43 = vpop.f32.mrb[39].mxu0  ;;  %v1468_v44 = vpop.f32.mrb[39].mxu1 }
 0x166   : > { %v1800_v45 = vmul.f32 %v4032_v0, %v1665_v41  ;;  %v1864_v46 = vmul.f32 %v4032_v0, %v1729_v42  ;;  %v1934_v47 = vadd.f32 %v4043_v18, %v1799_v39  ;;  %v1998_v48 = vadd.f32 %v4043_v18, %v1863_v40 }
 0x168   : > { %v1935_v49 = vadd.f32 %v4043_v18, %v1800_v45  ;;  %v1999_v50 = vadd.f32 %v4043_v18, %v1864_v46 }
 0x169   : > { %v1215_v51 = vpop.f32.mrb[40].mxu0  ;;  %v1471_v52 = vpop.f32.mrb[40].mxu1 }
 0x16a   : > { %v3203_v53 = vpack.c.bf16 %v1935_v49, %v1934_v47  ;;  %v3363_v54 = vpack.c.bf16 %v1999_v50, %v1998_v48  ;;  %v1666_v55 = vmax.f32 %v1215_v51, 0.0  ;;  %v1730_v56 = vmax.f32 %v1471_v52, 0.0  ;;  %v1217_v57 = vpop.f32.mrb[41].mxu0  ;;  %v1473_v58 = vpop.f32.mrb[41].mxu1 }
 0x16b   : > { %v1218_v59 = vpop.f32.mrb[42].mxu0  ;;  %v1474_v60 = vpop.f32.mrb[42].mxu1 }
 0x16c   : > { %3483 = vst [vmem:[%s4055_s11 + $0x48] sm:$0xff] %v3203_v53   ;;  %3515 = vst [vmem:[%s4055_s11 + $0x148] sm:$0xff] %v3363_v54   ;;  %v1801_v61 = vmul.f32 %v4032_v0, %v1666_v55  ;;  %v1865_v62 = vmul.f32 %v4032_v0, %v1730_v56  ;;  %v1667_v63 = vmax.f32 %v1218_v59, 0.0  ;;  %v1731_v1 = vmax.f32 %v1474_v60, 0.0  ;;  %v1220_v2 = vpop.f32.mrb[43].mxu0  ;;  %v1476_v3 = vpop.f32.mrb[43].mxu1 }
 0x16e   : > { %v1802_v4 = vmul.f32 %v4032_v0, %v1667_v63  ;;  %v1866_v5 = vmul.f32 %v4032_v0, %v1731_v1  ;;  %v1936_v6 = vadd.f32 %v4043_v18, %v1801_v61  ;;  %v2000_v7 = vadd.f32 %v4043_v18, %v1865_v62 }
 0x170   : > { %v1937_v8 = vadd.f32 %v4043_v18, %v1802_v4  ;;  %v2001_v9 = vadd.f32 %v4043_v18, %v1866_v5 }
 0x171   : > { %v1223_v10 = vpop.f32.mrb[44].mxu0  ;;  %v1479_v11 = vpop.f32.mrb[44].mxu1 }
 0x172   : > { %v3208_v12 = vpack.c.bf16 %v1937_v8, %v1936_v6  ;;  %v3368_v13 = vpack.c.bf16 %v2001_v9, %v2000_v7  ;;  %v1668_v14 = vmax.f32 %v1223_v10, 0.0  ;;  %v1732_v15 = vmax.f32 %v1479_v11, 0.0  ;;  %v1225_v16 = vpop.f32.mrb[45].mxu0  ;;  %v1481_v17 = vpop.f32.mrb[45].mxu1 }
 0x173   : > { %v1226_v19 = vpop.f32.mrb[46].mxu0  ;;  %v1482_v20 = vpop.f32.mrb[46].mxu1 }
 0x174   : > { %3484 = vst [vmem:[%s4055_s11 + $0x50] sm:$0xff] %v3208_v12   ;;  %3516 = vst [vmem:[%s4055_s11 + $0x150] sm:$0xff] %v3368_v13   ;;  %v1803_v21 = vmul.f32 %v4032_v0, %v1668_v14  ;;  %v1867_v22 = vmul.f32 %v4032_v0, %v1732_v15  ;;  %v1669_v23 = vmax.f32 %v1226_v19, 0.0  ;;  %v1733_v24 = vmax.f32 %v1482_v20, 0.0  ;;  %v1228_v25 = vpop.f32.mrb[47].mxu0  ;;  %v1484_v26 = vpop.f32.mrb[47].mxu1 }
 0x176   : > { %v1804_v27 = vmul.f32 %v4032_v0, %v1669_v23  ;;  %v1868_v28 = vmul.f32 %v4032_v0, %v1733_v24  ;;  %v1938_v29 = vadd.f32 %v4043_v18, %v1803_v21  ;;  %v2002_v30 = vadd.f32 %v4043_v18, %v1867_v22 }
 0x178   : > { %v1939_v31 = vadd.f32 %v4043_v18, %v1804_v27  ;;  %v2003_v32 = vadd.f32 %v4043_v18, %v1868_v28 }
 0x179   : > { %v1231_v33 = vpop.f32.mrb[48].mxu0  ;;  %v1487_v34 = vpop.f32.mrb[48].mxu1 }
 0x17a   : > { %v3213_v35 = vpack.c.bf16 %v1939_v31, %v1938_v29  ;;  %v3373_v36 = vpack.c.bf16 %v2003_v32, %v2002_v30  ;;  %v1670_v37 = vmax.f32 %v1231_v33, 0.0  ;;  %v1734_v38 = vmax.f32 %v1487_v34, 0.0  ;;  %v1233_v39 = vpop.f32.mrb[49].mxu0  ;;  %v1489_v40 = vpop.f32.mrb[49].mxu1 }
 0x17b   : > { %v1234_v41 = vpop.f32.mrb[50].mxu0  ;;  %v1490_v42 = vpop.f32.mrb[50].mxu1 }
 0x17c   : > { %3485 = vst [vmem:[%s4055_s11 + $0x58] sm:$0xff] %v3213_v35   ;;  %3517 = vst [vmem:[%s4055_s11 + $0x158] sm:$0xff] %v3373_v36   ;;  %v1805_v43 = vmul.f32 %v4032_v0, %v1670_v37  ;;  %v1869_v44 = vmul.f32 %v4032_v0, %v1734_v38  ;;  %v1671_v45 = vmax.f32 %v1234_v41, 0.0  ;;  %v1735_v46 = vmax.f32 %v1490_v42, 0.0  ;;  %v1236_v47 = vpop.f32.mrb[51].mxu0  ;;  %v1492_v48 = vpop.f32.mrb[51].mxu1 }
 0x17e   : > { %v1806_v49 = vmul.f32 %v4032_v0, %v1671_v45  ;;  %v1870_v50 = vmul.f32 %v4032_v0, %v1735_v46  ;;  %v1940_v51 = vadd.f32 %v4043_v18, %v1805_v43  ;;  %v2004_v52 = vadd.f32 %v4043_v18, %v1869_v44 }
 0x180   : > { %v1941_v53 = vadd.f32 %v4043_v18, %v1806_v49  ;;  %v2005_v54 = vadd.f32 %v4043_v18, %v1870_v50 }
 0x181   : > { %v1239_v55 = vpop.f32.mrb[52].mxu0  ;;  %v1495_v56 = vpop.f32.mrb[52].mxu1 }
 0x182   : > { %v3218_v57 = vpack.c.bf16 %v1941_v53, %v1940_v51  ;;  %v3378_v58 = vpack.c.bf16 %v2005_v54, %v2004_v52  ;;  %v1672_v59 = vmax.f32 %v1239_v55, 0.0  ;;  %v1736_v60 = vmax.f32 %v1495_v56, 0.0  ;;  %v1241_v61 = vpop.f32.mrb[53].mxu0  ;;  %v1497_v62 = vpop.f32.mrb[53].mxu1 }
 0x183   : > { %v1242_v63 = vpop.f32.mrb[54].mxu0  ;;  %v1498_v1 = vpop.f32.mrb[54].mxu1 }
 0x184   : > { %3486 = vst [vmem:[%s4055_s11 + $0x60] sm:$0xff] %v3218_v57   ;;  %3518 = vst [vmem:[%s4055_s11 + $0x160] sm:$0xff] %v3378_v58   ;;  %v1807_v2 = vmul.f32 %v4032_v0, %v1672_v59  ;;  %v1871_v3 = vmul.f32 %v4032_v0, %v1736_v60  ;;  %v1673_v4 = vmax.f32 %v1242_v63, 0.0  ;;  %v1737_v5 = vmax.f32 %v1498_v1, 0.0  ;;  %v1244_v6 = vpop.f32.mrb[55].mxu0  ;;  %v1500_v7 = vpop.f32.mrb[55].mxu1 }
 0x186   : > { %v1808_v8 = vmul.f32 %v4032_v0, %v1673_v4  ;;  %v1872_v9 = vmul.f32 %v4032_v0, %v1737_v5  ;;  %v1942_v10 = vadd.f32 %v4043_v18, %v1807_v2  ;;  %v2006_v11 = vadd.f32 %v4043_v18, %v1871_v3 }
 0x188   : > { %v1943_v12 = vadd.f32 %v4043_v18, %v1808_v8  ;;  %v2007_v13 = vadd.f32 %v4043_v18, %v1872_v9 }
 0x189   : > { %v1247_v14 = vpop.f32.mrb[56].mxu0  ;;  %v1503_v15 = vpop.f32.mrb[56].mxu1 }
 0x18a   : > { %v3223_v16 = vpack.c.bf16 %v1943_v12, %v1942_v10  ;;  %v3383_v17 = vpack.c.bf16 %v2007_v13, %v2006_v11  ;;  %v1674_v19 = vmax.f32 %v1247_v14, 0.0  ;;  %v1738_v20 = vmax.f32 %v1503_v15, 0.0  ;;  %v1249_v21 = vpop.f32.mrb[57].mxu0  ;;  %v1505_v22 = vpop.f32.mrb[57].mxu1 }
 0x18b   : > { %v1250_v23 = vpop.f32.mrb[58].mxu0  ;;  %v1506_v24 = vpop.f32.mrb[58].mxu1 }
 0x18c   : > { %3487 = vst [vmem:[%s4055_s11 + $0x68] sm:$0xff] %v3223_v16   ;;  %3519 = vst [vmem:[%s4055_s11 + $0x168] sm:$0xff] %v3383_v17   ;;  %v1809_v25 = vmul.f32 %v4032_v0, %v1674_v19  ;;  %v1873_v26 = vmul.f32 %v4032_v0, %v1738_v20  ;;  %v1675_v27 = vmax.f32 %v1250_v23, 0.0  ;;  %v1739_v28 = vmax.f32 %v1506_v24, 0.0  ;;  %v1252_v29 = vpop.f32.mrb[59].mxu0  ;;  %v1508_v30 = vpop.f32.mrb[59].mxu1 }
 0x18e   : > { %v1810_v31 = vmul.f32 %v4032_v0, %v1675_v27  ;;  %v1874_v32 = vmul.f32 %v4032_v0, %v1739_v28  ;;  %v1944_v33 = vadd.f32 %v4043_v18, %v1809_v25  ;;  %v2008_v34 = vadd.f32 %v4043_v18, %v1873_v26 }
 0x190   : > { %v1945_v35 = vadd.f32 %v4043_v18, %v1810_v31  ;;  %v2009_v36 = vadd.f32 %v4043_v18, %v1874_v32 }
 0x191   : > { %v1255_v37 = vpop.f32.mrb[60].mxu0  ;;  %v1511_v38 = vpop.f32.mrb[60].mxu1 }
 0x192   : > { %v3228_v39 = vpack.c.bf16 %v1945_v35, %v1944_v33  ;;  %v3388_v40 = vpack.c.bf16 %v2009_v36, %v2008_v34  ;;  %v1676_v41 = vmax.f32 %v1255_v37, 0.0  ;;  %v1740_v42 = vmax.f32 %v1511_v38, 0.0  ;;  %v1257_v43 = vpop.f32.mrb[61].mxu0  ;;  %v1513_v44 = vpop.f32.mrb[61].mxu1 }
 0x193   : > { %v1258_v45 = vpop.f32.mrb[62].mxu0  ;;  %v1514_v46 = vpop.f32.mrb[62].mxu1 }
 0x194   : > { %3488 = vst [vmem:[%s4055_s11 + $0x70] sm:$0xff] %v3228_v39   ;;  %3520 = vst [vmem:[%s4055_s11 + $0x170] sm:$0xff] %v3388_v40   ;;  %v1811_v47 = vmul.f32 %v4032_v0, %v1676_v41  ;;  %v1875_v48 = vmul.f32 %v4032_v0, %v1740_v42  ;;  %v1677_v49 = vmax.f32 %v1258_v45, 0.0  ;;  %v1741_v50 = vmax.f32 %v1514_v46, 0.0  ;;  %v1260_v51 = vpop.f32.mrb[63].mxu0  ;;  %v1516_v52 = vpop.f32.mrb[63].mxu1 }
 0x196   : > { %v1812_v53 = vmul.f32 %v4032_v0, %v1677_v49  ;;  %v1876_v54 = vmul.f32 %v4032_v0, %v1741_v50  ;;  %v1946_v55 = vadd.f32 %v4043_v18, %v1811_v47  ;;  %v2010_v56 = vadd.f32 %v4043_v18, %v1875_v48 }
 0x198   : > { %v1947_v57 = vadd.f32 %v4043_v18, %v1812_v53  ;;  %v2011_v58 = vadd.f32 %v4043_v18, %v1876_v54 }
 0x199   : > { %v1263_v59 = vpop.f32.mrb[64].mxu0  ;;  %v1519_v60 = vpop.f32.mrb[64].mxu1 }
 0x19a   : > { %v3233_v61 = vpack.c.bf16 %v1947_v57, %v1946_v55  ;;  %v3393_v62 = vpack.c.bf16 %v2011_v58, %v2010_v56  ;;  %v1678_v63 = vmax.f32 %v1263_v59, 0.0  ;;  %v1742_v1 = vmax.f32 %v1519_v60, 0.0  ;;  %v1265_v2 = vpop.f32.mrb[65].mxu0  ;;  %v1521_v3 = vpop.f32.mrb[65].mxu1 }
 0x19b   : > { %v1266_v4 = vpop.f32.mrb[66].mxu0  ;;  %v1522_v5 = vpop.f32.mrb[66].mxu1 }
 0x19c   : > { %3489 = vst [vmem:[%s4055_s11 + $0x78] sm:$0xff] %v3233_v61   ;;  %3521 = vst [vmem:[%s4055_s11 + $0x178] sm:$0xff] %v3393_v62   ;;  %v1813_v6 = vmul.f32 %v4032_v0, %v1678_v63  ;;  %v1877_v7 = vmul.f32 %v4032_v0, %v1742_v1  ;;  %v1679_v8 = vmax.f32 %v1266_v4, 0.0  ;;  %v1743_v9 = vmax.f32 %v1522_v5, 0.0  ;;  %v1268_v10 = vpop.f32.mrb[67].mxu0  ;;  %v1524_v11 = vpop.f32.mrb[67].mxu1 }
 0x19e   : > { %v1814_v12 = vmul.f32 %v4032_v0, %v1679_v8  ;;  %v1878_v13 = vmul.f32 %v4032_v0, %v1743_v9  ;;  %v1948_v14 = vadd.f32 %v4043_v18, %v1813_v6  ;;  %v2012_v15 = vadd.f32 %v4043_v18, %v1877_v7 }
 0x1a0   : > { %v1949_v16 = vadd.f32 %v4043_v18, %v1814_v12  ;;  %v2013_v17 = vadd.f32 %v4043_v18, %v1878_v13 }
 0x1a1   : > { %v1271_v19 = vpop.f32.mrb[68].mxu0  ;;  %v1527_v20 = vpop.f32.mrb[68].mxu1 }
 0x1a2   : > { %v3238_v21 = vpack.c.bf16 %v1949_v16, %v1948_v14  ;;  %v3398_v22 = vpack.c.bf16 %v2013_v17, %v2012_v15  ;;  %v1680_v23 = vmax.f32 %v1271_v19, 0.0  ;;  %v1744_v24 = vmax.f32 %v1527_v20, 0.0  ;;  %v1273_v25 = vpop.f32.mrb[69].mxu0  ;;  %v1529_v26 = vpop.f32.mrb[69].mxu1 }
 0x1a3   : > { %v1274_v27 = vpop.f32.mrb[70].mxu0  ;;  %v1530_v28 = vpop.f32.mrb[70].mxu1 }
 0x1a4   : > { %3490 = vst [vmem:[%s4055_s11 + $0x80] sm:$0xff] %v3238_v21   ;;  %3522 = vst [vmem:[%s4055_s11 + $0x180] sm:$0xff] %v3398_v22   ;;  %v1815_v29 = vmul.f32 %v4032_v0, %v1680_v23  ;;  %v1879_v30 = vmul.f32 %v4032_v0, %v1744_v24  ;;  %v1681_v31 = vmax.f32 %v1274_v27, 0.0  ;;  %v1745_v32 = vmax.f32 %v1530_v28, 0.0  ;;  %v1276_v33 = vpop.f32.mrb[71].mxu0  ;;  %v1532_v34 = vpop.f32.mrb[71].mxu1 }
 0x1a6   : > { %v1816_v35 = vmul.f32 %v4032_v0, %v1681_v31  ;;  %v1880_v36 = vmul.f32 %v4032_v0, %v1745_v32  ;;  %v1950_v37 = vadd.f32 %v4043_v18, %v1815_v29  ;;  %v2014_v38 = vadd.f32 %v4043_v18, %v1879_v30 }
 0x1a8   : > { %v1951_v39 = vadd.f32 %v4043_v18, %v1816_v35  ;;  %v2015_v40 = vadd.f32 %v4043_v18, %v1880_v36 }
 0x1a9   : > { %v1279_v41 = vpop.f32.mrb[72].mxu0  ;;  %v1535_v42 = vpop.f32.mrb[72].mxu1 }
 0x1aa   : > { %v3243_v43 = vpack.c.bf16 %v1951_v39, %v1950_v37  ;;  %v3403_v44 = vpack.c.bf16 %v2015_v40, %v2014_v38  ;;  %v1682_v45 = vmax.f32 %v1279_v41, 0.0  ;;  %v1746_v46 = vmax.f32 %v1535_v42, 0.0  ;;  %v1281_v47 = vpop.f32.mrb[73].mxu0  ;;  %v1537_v48 = vpop.f32.mrb[73].mxu1  ;;  %v4275_v40 = vld [vmem:[%s4399_s3] ss:$0 sm:$0xff] }
 0x1ab   : > { %v1282_v49 = vpop.f32.mrb[74].mxu0  ;;  %v1538_v50 = vpop.f32.mrb[74].mxu1 }
 0x1ac   : > { %3491 = vst [vmem:[%s4055_s11 + $0x88] sm:$0xff] %v3243_v43   ;;  %3523 = vst [vmem:[%s4055_s11 + $0x188] sm:$0xff] %v3403_v44   ;;  %v1817_v51 = vmul.f32 %v4032_v0, %v1682_v45  ;;  %v1881_v52 = vmul.f32 %v4032_v0, %v1746_v46  ;;  %v1683_v53 = vmax.f32 %v1282_v49, 0.0  ;;  %v1747_v54 = vmax.f32 %v1538_v50, 0.0  ;;  %v1284_v55 = vpop.f32.mrb[75].mxu0  ;;  %v1540_v56 = vpop.f32.mrb[75].mxu1 }
 0x1ae   : > { %v1818_v57 = vmul.f32 %v4032_v0, %v1683_v53  ;;  %v1882_v58 = vmul.f32 %v4032_v0, %v1747_v54  ;;  %v1952_v59 = vadd.f32 %v4043_v18, %v1817_v51  ;;  %v2016_v60 = vadd.f32 %v4043_v18, %v1881_v52 }
 0x1b0   : > { %v1953_v61 = vadd.f32 %v4043_v18, %v1818_v57  ;;  %v2017_v62 = vadd.f32 %v4043_v18, %v1882_v58 }
 0x1b1   : > { %v1287_v63 = vpop.f32.mrb[76].mxu0  ;;  %v1543_v1 = vpop.f32.mrb[76].mxu1 }
 0x1b2   : > { %v3248_v2 = vpack.c.bf16 %v1953_v61, %v1952_v59  ;;  %v3408_v3 = vpack.c.bf16 %v2017_v62, %v2016_v60  ;;  %v1684_v4 = vmax.f32 %v1287_v63, 0.0  ;;  %v1748_v5 = vmax.f32 %v1543_v1, 0.0  ;;  %v1289_v6 = vpop.f32.mrb[77].mxu0  ;;  %v1545_v7 = vpop.f32.mrb[77].mxu1 }
 0x1b3   : > { %v1290_v8 = vpop.f32.mrb[78].mxu0  ;;  %v1546_v9 = vpop.f32.mrb[78].mxu1 }
 0x1b4   : > { %3492 = vst [vmem:[%s4055_s11 + $0x90] sm:$0xff] %v3248_v2   ;;  %3524 = vst [vmem:[%s4055_s11 + $0x190] sm:$0xff] %v3408_v3   ;;  %v1819_v10 = vmul.f32 %v4032_v0, %v1684_v4  ;;  %v1883_v11 = vmul.f32 %v4032_v0, %v1748_v5  ;;  %v1685_v12 = vmax.f32 %v1290_v8, 0.0  ;;  %v1749_v13 = vmax.f32 %v1546_v9, 0.0  ;;  %v1292_v14 = vpop.f32.mrb[79].mxu0  ;;  %v1548_v15 = vpop.f32.mrb[79].mxu1 }
 0x1b6   : > { %v1820_v16 = vmul.f32 %v4032_v0, %v1685_v12  ;;  %v1884_v17 = vmul.f32 %v4032_v0, %v1749_v13  ;;  %v1954_v19 = vadd.f32 %v4043_v18, %v1819_v10  ;;  %v2018_v20 = vadd.f32 %v4043_v18, %v1883_v11  ;;  %v4266_v0 = vld [vmem:[%s4398_s2] ss:$0 sm:$0xff] }
 0x1b8   : > { %v1955_v21 = vadd.f32 %v4043_v18, %v1820_v16  ;;  %v2019_v22 = vadd.f32 %v4043_v18, %v1884_v17 }
 0x1b9   : > { %v1295_v23 = vpop.f32.mrb[80].mxu0  ;;  %v1551_v24 = vpop.f32.mrb[80].mxu1 }
 0x1ba   : > { %v3253_v25 = vpack.c.bf16 %v1955_v21, %v1954_v19  ;;  %v3413_v26 = vpack.c.bf16 %v2019_v22, %v2018_v20  ;;  %v1686_v27 = vmax.f32 %v1295_v23, 0.0  ;;  %v1750_v28 = vmax.f32 %v1551_v24, 0.0  ;;  %v1297_v29 = vpop.f32.mrb[81].mxu0  ;;  %v1553_v30 = vpop.f32.mrb[81].mxu1 }
 0x1bb   : > { %v1298_v31 = vpop.f32.mrb[82].mxu0  ;;  %v1554_v32 = vpop.f32.mrb[82].mxu1 }
 0x1bc   : > { %3493 = vst [vmem:[%s4055_s11 + $0x98] sm:$0xff] %v3253_v25   ;;  %3525 = vst [vmem:[%s4055_s11 + $0x198] sm:$0xff] %v3413_v26   ;;  %v1821_v33 = vmul.f32 %v4266_v0, %v1686_v27  ;;  %v1885_v18 = vmul.f32 %v4266_v0, %v1750_v28  ;;  %v1687_v34 = vmax.f32 %v1298_v31, 0.0  ;;  %v1751_v35 = vmax.f32 %v1554_v32, 0.0  ;;  %v1300_v36 = vpop.f32.mrb[83].mxu0  ;;  %v1556_v37 = vpop.f32.mrb[83].mxu1 }
 0x1be   : > { %v1822_v38 = vmul.f32 %v4266_v0, %v1687_v34  ;;  %v1886_v39 = vmul.f32 %v4266_v0, %v1751_v35  ;;  %v1956_v41 = vadd.f32 %v4275_v40, %v1821_v33  ;;  %v2020_v42 = vadd.f32 %v4275_v40, %v1885_v18 }
 0x1c0   : > { %v1957_v43 = vadd.f32 %v4275_v40, %v1822_v38  ;;  %v2021_v44 = vadd.f32 %v4275_v40, %v1886_v39 }
 0x1c1   : > { %v1303_v45 = vpop.f32.mrb[84].mxu0  ;;  %v1559_v46 = vpop.f32.mrb[84].mxu1 }
 0x1c2   : > { %v3258_v47 = vpack.c.bf16 %v1957_v43, %v1956_v41  ;;  %v3418_v48 = vpack.c.bf16 %v2021_v44, %v2020_v42  ;;  %v1688_v49 = vmax.f32 %v1303_v45, 0.0  ;;  %v1752_v50 = vmax.f32 %v1559_v46, 0.0  ;;  %v1305_v51 = vpop.f32.mrb[85].mxu0  ;;  %v1561_v52 = vpop.f32.mrb[85].mxu1 }
 0x1c3   : > { %v1306_v53 = vpop.f32.mrb[86].mxu0  ;;  %v1562_v54 = vpop.f32.mrb[86].mxu1 }
 0x1c4   : > { %3494 = vst [vmem:[%s4055_s11 + $0xa0] sm:$0xff] %v3258_v47   ;;  %3526 = vst [vmem:[%s4055_s11 + $0x1a0] sm:$0xff] %v3418_v48   ;;  %v1823_v55 = vmul.f32 %v4266_v0, %v1688_v49  ;;  %v1887_v56 = vmul.f32 %v4266_v0, %v1752_v50  ;;  %v1689_v57 = vmax.f32 %v1306_v53, 0.0  ;;  %v1753_v58 = vmax.f32 %v1562_v54, 0.0  ;;  %v1308_v59 = vpop.f32.mrb[87].mxu0  ;;  %v1564_v60 = vpop.f32.mrb[87].mxu1 }
 0x1c6   : > { %v1824_v61 = vmul.f32 %v4266_v0, %v1689_v57  ;;  %v1888_v62 = vmul.f32 %v4266_v0, %v1753_v58  ;;  %v1958_v63 = vadd.f32 %v4275_v40, %v1823_v55  ;;  %v2022_v1 = vadd.f32 %v4275_v40, %v1887_v56 }
 0x1c8   : > { %v1959_v2 = vadd.f32 %v4275_v40, %v1824_v61  ;;  %v2023_v3 = vadd.f32 %v4275_v40, %v1888_v62 }
 0x1c9   : > { %v1311_v4 = vpop.f32.mrb[88].mxu0  ;;  %v1567_v5 = vpop.f32.mrb[88].mxu1 }
 0x1ca   : > { %v3263_v6 = vpack.c.bf16 %v1959_v2, %v1958_v63  ;;  %v3423_v7 = vpack.c.bf16 %v2023_v3, %v2022_v1  ;;  %v1690_v8 = vmax.f32 %v1311_v4, 0.0  ;;  %v1754_v9 = vmax.f32 %v1567_v5, 0.0  ;;  %v1313_v10 = vpop.f32.mrb[89].mxu0  ;;  %v1569_v11 = vpop.f32.mrb[89].mxu1 }
 0x1cb   : > { %v1314_v12 = vpop.f32.mrb[90].mxu0  ;;  %v1570_v13 = vpop.f32.mrb[90].mxu1 }
 0x1cc   : > { %3495 = vst [vmem:[%s4055_s11 + $0xa8] sm:$0xff] %v3263_v6   ;;  %3527 = vst [vmem:[%s4055_s11 + $0x1a8] sm:$0xff] %v3423_v7   ;;  %v1825_v14 = vmul.f32 %v4266_v0, %v1690_v8  ;;  %v1889_v15 = vmul.f32 %v4266_v0, %v1754_v9  ;;  %v1691_v16 = vmax.f32 %v1314_v12, 0.0  ;;  %v1755_v17 = vmax.f32 %v1570_v13, 0.0  ;;  %v1316_v19 = vpop.f32.mrb[91].mxu0  ;;  %v1572_v20 = vpop.f32.mrb[91].mxu1 }
 0x1ce   : > { %v1826_v21 = vmul.f32 %v4266_v0, %v1691_v16  ;;  %v1890_v22 = vmul.f32 %v4266_v0, %v1755_v17  ;;  %v1960_v23 = vadd.f32 %v4275_v40, %v1825_v14  ;;  %v2024_v24 = vadd.f32 %v4275_v40, %v1889_v15 }
 0x1d0   : > { %v1961_v25 = vadd.f32 %v4275_v40, %v1826_v21  ;;  %v2025_v26 = vadd.f32 %v4275_v40, %v1890_v22 }
 0x1d1   : > { %v1319_v27 = vpop.f32.mrb[92].mxu0  ;;  %v1575_v28 = vpop.f32.mrb[92].mxu1 }
 0x1d2   : > { %v3268_v29 = vpack.c.bf16 %v1961_v25, %v1960_v23  ;;  %v3428_v30 = vpack.c.bf16 %v2025_v26, %v2024_v24  ;;  %v1692_v31 = vmax.f32 %v1319_v27, 0.0  ;;  %v1756_v32 = vmax.f32 %v1575_v28, 0.0  ;;  %v1321_v33 = vpop.f32.mrb[93].mxu0  ;;  %v1577_v18 = vpop.f32.mrb[93].mxu1 }
 0x1d3   : > { %v1322_v34 = vpop.f32.mrb[94].mxu0  ;;  %v1578_v35 = vpop.f32.mrb[94].mxu1 }
 0x1d4   : > { %3496 = vst [vmem:[%s4055_s11 + $0xb0] sm:$0xff] %v3268_v29   ;;  %3528 = vst [vmem:[%s4055_s11 + $0x1b0] sm:$0xff] %v3428_v30   ;;  %v1827_v36 = vmul.f32 %v4266_v0, %v1692_v31  ;;  %v1891_v37 = vmul.f32 %v4266_v0, %v1756_v32  ;;  %v1693_v38 = vmax.f32 %v1322_v34, 0.0  ;;  %v1757_v39 = vmax.f32 %v1578_v35, 0.0  ;;  %v1324_v41 = vpop.f32.mrb[95].mxu0  ;;  %v1580_v42 = vpop.f32.mrb[95].mxu1 }
 0x1d6   : > { %v1828_v43 = vmul.f32 %v4266_v0, %v1693_v38  ;;  %v1892_v44 = vmul.f32 %v4266_v0, %v1757_v39  ;;  %v1962_v45 = vadd.f32 %v4275_v40, %v1827_v36  ;;  %v2026_v46 = vadd.f32 %v4275_v40, %v1891_v37 }
 0x1d8   : > { %v1963_v47 = vadd.f32 %v4275_v40, %v1828_v43  ;;  %v2027_v48 = vadd.f32 %v4275_v40, %v1892_v44 }
 0x1d9   : > { %v1327_v49 = vpop.f32.mrb[96].mxu0  ;;  %v1583_v50 = vpop.f32.mrb[96].mxu1 }
 0x1da   : > { %v3273_v51 = vpack.c.bf16 %v1963_v47, %v1962_v45  ;;  %v3433_v52 = vpack.c.bf16 %v2027_v48, %v2026_v46  ;;  %v1694_v53 = vmax.f32 %v1327_v49, 0.0  ;;  %v1758_v54 = vmax.f32 %v1583_v50, 0.0  ;;  %v1329_v55 = vpop.f32.mrb[97].mxu0  ;;  %v1585_v56 = vpop.f32.mrb[97].mxu1 }
 0x1db   : > { %v1330_v57 = vpop.f32.mrb[98].mxu0  ;;  %v1586_v58 = vpop.f32.mrb[98].mxu1 }
 0x1dc   : > { %3497 = vst [vmem:[%s4055_s11 + $0xb8] sm:$0xff] %v3273_v51   ;;  %3529 = vst [vmem:[%s4055_s11 + $0x1b8] sm:$0xff] %v3433_v52   ;;  %v1829_v59 = vmul.f32 %v4266_v0, %v1694_v53  ;;  %v1893_v60 = vmul.f32 %v4266_v0, %v1758_v54  ;;  %v1695_v61 = vmax.f32 %v1330_v57, 0.0  ;;  %v1759_v62 = vmax.f32 %v1586_v58, 0.0  ;;  %v1332_v63 = vpop.f32.mrb[99].mxu0  ;;  %v1588_v1 = vpop.f32.mrb[99].mxu1 }
 0x1de   : > { %v1830_v2 = vmul.f32 %v4266_v0, %v1695_v61  ;;  %v1894_v3 = vmul.f32 %v4266_v0, %v1759_v62  ;;  %v1964_v4 = vadd.f32 %v4275_v40, %v1829_v59  ;;  %v2028_v5 = vadd.f32 %v4275_v40, %v1893_v60 }
 0x1e0   : > { %v1965_v6 = vadd.f32 %v4275_v40, %v1830_v2  ;;  %v2029_v7 = vadd.f32 %v4275_v40, %v1894_v3 }
 0x1e1   : > { %v1335_v8 = vpop.f32.mrb[100].mxu0  ;;  %v1591_v9 = vpop.f32.mrb[100].mxu1 }
 0x1e2   : > { %v3278_v10 = vpack.c.bf16 %v1965_v6, %v1964_v4  ;;  %v3438_v11 = vpack.c.bf16 %v2029_v7, %v2028_v5  ;;  %v1696_v12 = vmax.f32 %v1335_v8, 0.0  ;;  %v1760_v13 = vmax.f32 %v1591_v9, 0.0  ;;  %v1337_v14 = vpop.f32.mrb[101].mxu0  ;;  %v1593_v15 = vpop.f32.mrb[101].mxu1 }
 0x1e3   : > { %v1338_v16 = vpop.f32.mrb[102].mxu0  ;;  %v1594_v17 = vpop.f32.mrb[102].mxu1 }
 0x1e4   : > { %3498 = vst [vmem:[%s4055_s11 + $0xc0] sm:$0xff] %v3278_v10   ;;  %3530 = vst [vmem:[%s4055_s11 + $0x1c0] sm:$0xff] %v3438_v11   ;;  %v1831_v19 = vmul.f32 %v4266_v0, %v1696_v12  ;;  %v1895_v20 = vmul.f32 %v4266_v0, %v1760_v13  ;;  %v1697_v21 = vmax.f32 %v1338_v16, 0.0  ;;  %v1761_v22 = vmax.f32 %v1594_v17, 0.0  ;;  %v1340_v23 = vpop.f32.mrb[103].mxu0  ;;  %v1596_v24 = vpop.f32.mrb[103].mxu1 }
 0x1e6   : > { %v1832_v25 = vmul.f32 %v4266_v0, %v1697_v21  ;;  %v1896_v26 = vmul.f32 %v4266_v0, %v1761_v22  ;;  %v1966_v27 = vadd.f32 %v4275_v40, %v1831_v19  ;;  %v2030_v28 = vadd.f32 %v4275_v40, %v1895_v20 }
 0x1e8   : > { %v1967_v29 = vadd.f32 %v4275_v40, %v1832_v25  ;;  %v2031_v30 = vadd.f32 %v4275_v40, %v1896_v26 }
 0x1e9   : > { %v1343_v31 = vpop.f32.mrb[104].mxu0  ;;  %v1599_v32 = vpop.f32.mrb[104].mxu1 }
 0x1ea   : > { %v3283_v33 = vpack.c.bf16 %v1967_v29, %v1966_v27  ;;  %v3443_v18 = vpack.c.bf16 %v2031_v30, %v2030_v28  ;;  %v1698_v34 = vmax.f32 %v1343_v31, 0.0  ;;  %v1762_v35 = vmax.f32 %v1599_v32, 0.0  ;;  %v1345_v36 = vpop.f32.mrb[105].mxu0  ;;  %v1601_v37 = vpop.f32.mrb[105].mxu1 }
 0x1eb   : > { %v1346_v38 = vpop.f32.mrb[106].mxu0  ;;  %v1602_v39 = vpop.f32.mrb[106].mxu1 }
 0x1ec   : > { %3499 = vst [vmem:[%s4055_s11 + $0xc8] sm:$0xff] %v3283_v33   ;;  %3531 = vst [vmem:[%s4055_s11 + $0x1c8] sm:$0xff] %v3443_v18   ;;  %v1833_v41 = vmul.f32 %v4266_v0, %v1698_v34  ;;  %v1897_v42 = vmul.f32 %v4266_v0, %v1762_v35  ;;  %v1699_v43 = vmax.f32 %v1346_v38, 0.0  ;;  %v1763_v44 = vmax.f32 %v1602_v39, 0.0  ;;  %v1348_v45 = vpop.f32.mrb[107].mxu0  ;;  %v1604_v46 = vpop.f32.mrb[107].mxu1 }
 0x1ee   : > { %v1834_v47 = vmul.f32 %v4266_v0, %v1699_v43  ;;  %v1898_v48 = vmul.f32 %v4266_v0, %v1763_v44  ;;  %v1968_v49 = vadd.f32 %v4275_v40, %v1833_v41  ;;  %v2032_v50 = vadd.f32 %v4275_v40, %v1897_v42 }
 0x1f0   : > { %v1969_v51 = vadd.f32 %v4275_v40, %v1834_v47  ;;  %v2033_v52 = vadd.f32 %v4275_v40, %v1898_v48 }
 0x1f1   : > { %v1351_v53 = vpop.f32.mrb[108].mxu0  ;;  %v1607_v57 = vpop.f32.mrb[108].mxu1 }
 0x1f2   : > { %v3288_v54 = vpack.c.bf16 %v1969_v51, %v1968_v49  ;;  %v3448_v55 = vpack.c.bf16 %v2033_v52, %v2032_v50  ;;  %v1700_v56 = vmax.f32 %v1351_v53, 0.0  ;;  %v1353_v58 = vpop.f32.mrb[109].mxu0  ;;  %v1764_v59 = vmax.f32 %v1607_v57, 0.0  ;;  %v1609_v60 = vpop.f32.mrb[109].mxu1 }
 0x1f3   : > { %v1354_v61 = vpop.f32.mrb[110].mxu0  ;;  %v1610_v1 = vpop.f32.mrb[110].mxu1 }
 0x1f4   : > { %3500 = vst [vmem:[%s4055_s11 + $0xd0] sm:$0xff] %v3288_v54   ;;  %3532 = vst [vmem:[%s4055_s11 + $0x1d0] sm:$0xff] %v3448_v55   ;;  %v1835_v62 = vmul.f32 %v4266_v0, %v1700_v56  ;;  %v1701_v63 = vmax.f32 %v1354_v61, 0.0  ;;  %v1356_v2 = vpop.f32.mrb[111].mxu0  ;;  %v1899_v3 = vmul.f32 %v4266_v0, %v1764_v59  ;;  %v1765_v4 = vmax.f32 %v1610_v1, 0.0  ;;  %v1612_v5 = vpop.f32.mrb[111].mxu1 }
 0x1f6   : > { %v1836_v6 = vmul.f32 %v4266_v0, %v1701_v63  ;;  %v1900_v7 = vmul.f32 %v4266_v0, %v1765_v4  ;;  %v1970_v8 = vadd.f32 %v4275_v40, %v1835_v62  ;;  %v2034_v10 = vadd.f32 %v4275_v40, %v1899_v3 }
 0x1f8   : > { %v1971_v9 = vadd.f32 %v4275_v40, %v1836_v6  ;;  %v2035_v11 = vadd.f32 %v4275_v40, %v1900_v7 }
 0x1f9   : > { %v1359_v12 = vpop.f32.mrb[112].mxu0  ;;  %v1615_v15 = vpop.f32.mrb[112].mxu1 }
 0x1fa   : > { %v3293_v13 = vpack.c.bf16 %v1971_v9, %v1970_v8  ;;  %v1702_v14 = vmax.f32 %v1359_v12, 0.0  ;;  %v1361_v16 = vpop.f32.mrb[113].mxu0  ;;  %v3453_v17 = vpack.c.bf16 %v2035_v11, %v2034_v10  ;;  %v1766_v19 = vmax.f32 %v1615_v15, 0.0  ;;  %v1617_v20 = vpop.f32.mrb[113].mxu1 }
 0x1fb   : > { %v1362_v21 = vpop.f32.mrb[114].mxu0  ;;  %v1618_v24 = vpop.f32.mrb[114].mxu1 }
 0x1fc   : > { %3501 = vst [vmem:[%s4055_s11 + $0xd8] sm:$0xff] %v3293_v13   ;;  %v1837_v22 = vmul.f32 %v4266_v0, %v1702_v14  ;;  %v1703_v23 = vmax.f32 %v1362_v21, 0.0  ;;  %v1364_v25 = vpop.f32.mrb[115].mxu0  ;;  %3533 = vst [vmem:[%s4055_s11 + $0x1d8] sm:$0xff] %v3453_v17   ;;  %v1901_v26 = vmul.f32 %v4266_v0, %v1766_v19  ;;  %v1767_v27 = vmax.f32 %v1618_v24, 0.0  ;;  %v1620_v28 = vpop.f32.mrb[115].mxu1 }
 0x1fe   : > { %v1838_v29 = vmul.f32 %v4266_v0, %v1703_v23  ;;  %v1902_v30 = vmul.f32 %v4266_v0, %v1767_v27  ;;  %v1972_v31 = vadd.f32 %v4275_v40, %v1837_v22  ;;  %v2036_v33 = vadd.f32 %v4275_v40, %v1901_v26 }
 0x200   : > { %v1973_v32 = vadd.f32 %v4275_v40, %v1838_v29  ;;  %v2037_v18 = vadd.f32 %v4275_v40, %v1902_v30 }
 0x201   : > { %v1367_v34 = vpop.f32.mrb[116].mxu0  ;;  %v1623_v37 = vpop.f32.mrb[116].mxu1 }
 0x202   : > { %v3298_v35 = vpack.c.bf16 %v1973_v32, %v1972_v31  ;;  %v1704_v36 = vmax.f32 %v1367_v34, 0.0  ;;  %v1369_v38 = vpop.f32.mrb[117].mxu0  ;;  %v3458_v39 = vpack.c.bf16 %v2037_v18, %v2036_v33  ;;  %v1768_v41 = vmax.f32 %v1623_v37, 0.0  ;;  %v1625_v42 = vpop.f32.mrb[117].mxu1 }
 0x203   : > { %v1370_v43 = vpop.f32.mrb[118].mxu0  ;;  %v1626_v46 = vpop.f32.mrb[118].mxu1 }
 0x204   : > { %3502 = vst [vmem:[%s4055_s11 + $0xe0] sm:$0xff] %v3298_v35   ;;  %v1839_v44 = vmul.f32 %v4266_v0, %v1704_v36  ;;  %v1705_v45 = vmax.f32 %v1370_v43, 0.0  ;;  %v1372_v47 = vpop.f32.mrb[119].mxu0  ;;  %3534 = vst [vmem:[%s4055_s11 + $0x1e0] sm:$0xff] %v3458_v39   ;;  %v1903_v48 = vmul.f32 %v4266_v0, %v1768_v41  ;;  %v1769_v49 = vmax.f32 %v1626_v46, 0.0  ;;  %v1628_v50 = vpop.f32.mrb[119].mxu1 }
 0x206   : > { %v1840_v51 = vmul.f32 %v4266_v0, %v1705_v45  ;;  %v1904_v52 = vmul.f32 %v4266_v0, %v1769_v49  ;;  %v1974_v53 = vadd.f32 %v4275_v40, %v1839_v44  ;;  %v2038_v55 = vadd.f32 %v4275_v40, %v1903_v48 }
 0x208   : > { %v1975_v54 = vadd.f32 %v4275_v40, %v1840_v51  ;;  %v2039_v56 = vadd.f32 %v4275_v40, %v1904_v52 }
 0x209   : > { %v1375_v57 = vpop.f32.mrb[120].mxu0  ;;  %v1631_v60 = vpop.f32.mrb[120].mxu1 }
 0x20a   : > { %v3303_v58 = vpack.c.bf16 %v1975_v54, %v1974_v53  ;;  %v1706_v59 = vmax.f32 %v1375_v57, 0.0  ;;  %v1377_v61 = vpop.f32.mrb[121].mxu0  ;;  %v3463_v62 = vpack.c.bf16 %v2039_v56, %v2038_v55  ;;  %v1770_v63 = vmax.f32 %v1631_v60, 0.0  ;;  %v1633_v1 = vpop.f32.mrb[121].mxu1 }
 0x20b   : > { %v1378_v2 = vpop.f32.mrb[122].mxu0  ;;  %v1634_v5 = vpop.f32.mrb[122].mxu1 }
 0x20c   : > { %3503 = vst [vmem:[%s4055_s11 + $0xe8] sm:$0xff] %v3303_v58   ;;  %v1841_v3 = vmul.f32 %v4266_v0, %v1706_v59  ;;  %v1707_v4 = vmax.f32 %v1378_v2, 0.0  ;;  %v1380_v6 = vpop.f32.mrb[123].mxu0  ;;  %3535 = vst [vmem:[%s4055_s11 + $0x1e8] sm:$0xff] %v3463_v62   ;;  %v1905_v7 = vmul.f32 %v4266_v0, %v1770_v63  ;;  %v1771_v8 = vmax.f32 %v1634_v5, 0.0  ;;  %v1636_v9 = vpop.f32.mrb[123].mxu1 }
 0x20e   : > { %v1842_v10 = vmul.f32 %v4266_v0, %v1707_v4  ;;  %v1906_v11 = vmul.f32 %v4266_v0, %v1771_v8  ;;  %v1976_v12 = vadd.f32 %v4275_v40, %v1841_v3  ;;  %v2040_v14 = vadd.f32 %v4275_v40, %v1905_v7 }
 0x210   : > { %v1977_v13 = vadd.f32 %v4275_v40, %v1842_v10  ;;  %v2041_v15 = vadd.f32 %v4275_v40, %v1906_v11 }
 0x211   : > { %v1383_v16 = vpop.f32.mrb[124].mxu0  ;;  %v1639_v20 = vpop.f32.mrb[124].mxu1 }
 0x212   : > { %v3308_v17 = vpack.c.bf16 %v1977_v13, %v1976_v12  ;;  %v1708_v19 = vmax.f32 %v1383_v16, 0.0  ;;  %v1385_v21 = vpop.f32.mrb[125].mxu0  ;;  %v3468_v22 = vpack.c.bf16 %v2041_v15, %v2040_v14  ;;  %v1772_v23 = vmax.f32 %v1639_v20, 0.0  ;;  %v1641_v24 = vpop.f32.mrb[125].mxu1 }
 0x213   : > { %v1386_v25 = vpop.f32.mrb[126].mxu0  ;;  %v1642_v28 = vpop.f32.mrb[126].mxu1 }
 0x214   : > { %3504 = vst [vmem:[%s4055_s11 + $0xf0] sm:$0xff] %v3308_v17   ;;  %v1843_v26 = vmul.f32 %v4266_v0, %v1708_v19  ;;  %v1709_v27 = vmax.f32 %v1386_v25, 0.0  ;;  %v1388_v29 = vpop.f32.mrb[127].mxu0  ;;  %3536 = vst [vmem:[%s4055_s11 + $0x1f0] sm:$0xff] %v3468_v22   ;;  %v1907_v30 = vmul.f32 %v4266_v0, %v1772_v23  ;;  %v1773_v31 = vmax.f32 %v1642_v28, 0.0  ;;  %v1644_v32 = vpop.f32.mrb[127].mxu1 }
 0x216   : > { %v1844_v33 = vmul.f32 %v4266_v0, %v1709_v27  ;;  %v1908_v18 = vmul.f32 %v4266_v0, %v1773_v31  ;;  %v1978_v34 = vadd.f32 %v4275_v40, %v1843_v26  ;;  %v2042_v36 = vadd.f32 %v4275_v40, %v1907_v30 }
 0x218   : > { %v1979_v35 = vadd.f32 %v4275_v40, %v1844_v33  ;;  %v2043_v37 = vadd.f32 %v4275_v40, %v1908_v18 }
 0x21a   : > { %v3313_v38 = vpack.c.bf16 %v1979_v35, %v1978_v34  ;;  %v3473_v39 = vpack.c.bf16 %v2043_v37, %v2042_v36 }
 0x21c   : > { %3505 = vst [vmem:[%s4055_s11 + $0xf8] sm:$0xff] %v3313_v38   ;;  %3537 = vst [vmem:[%s4055_s11 + $0x1f8] sm:$0xff] %v3473_v39  }
 0x21d PF: > { %s14_s15 = sadd.s32 1, %s3795_s15  }
 0x21e   : > { %p11_p4 = scmp.ge.s32.totalorder %s14_s15, 10  }
 0x220   :  { %13 = sbr.rel (!%p11_p4) target bundleno = 1 (0x1), region = 66 }

// kernel: meso4_forward.8
= control target key start
LH: loop header
LB: loop body
LE: loop exit
PB: predicated region body
PF: predicated region fallthrough
CT: control target
= control target key end

     0   :  { %s5714_s15 = smov 0   ;;  %s6475_s0 = inlined_call_operand.vmem [shape: bf16[2048,512], index: 0, kind: input, shape index: {}]   ;;  %s6476_s1 = inlined_call_operand.vmem [shape: bf16[512,128], index: 1, kind: input, shape index: {}]   ;;  %s6477_s2 = inlined_call_operand.vmem [shape: f32[1,128], index: 2, kind: input, shape index: {}]   ;;  %s6478_s3 = inlined_call_operand.vmem [shape: f32[1,128], index: 3, kind: input, shape index: {}]   ;;  %s6479_s4 = inlined_call_operand.vmem [shape: bf16[2048,128], index: 4, kind: output, shape index: {}]  }
   0x1 LB: > { %s4181_s16 = sadd.s32 4294967295, %s5686_s15   ;;  %p4185_p0 = scmp.ge.s32.totalorder %s5686_s15, 1  ;;  %s5686_s15 = sphi %s5714_s15, %s14_s15  }
   0x2   : > { %p164_p1 = scmp.lt.s32.totalorder %s5686_s15, 3 }
   0x4   : > { %p165_p2 = pnand %p4185_p0, %p164_p1 }
   0x5   : > { %v5260_v0 = vld [vmem:[%s6476_s1] sm:$0xff] (!%p165_p2)   ;;  %v5688_v1 = vmov (!%p165_p2), 0   ;;  %v5262_v3 = vld [vmem:[%s6476_s1 + $0x8] sm:$0xff] (!%p165_p2)   ;;  %v5264_v5 = vld [vmem:[%s6476_s1 + $0x10] sm:$0xff] (!%p165_p2)   ;;  %s4186_s11 = sshll.u32 (!%p165_p2), %s4181_s16, 7 }
   0x6   : > { %168 = sbr.rel (%p165_p2) target bundleno = 799 (0x31f), region = 36  ;;  %1997 = vmatprep.subr.bf16.mxu1 (!%p165_p2), %v5688_v1  ;;  %2542 = vmatprep.subr.bf16.mxu0 (!%p165_p2), %v5688_v1  ;;  %v5261_v2 = vld [vmem:[%s6476_s1 + $0x80] sm:$0xff] (!%p165_p2)   ;;  %v5263_v4 = vld [vmem:[%s6476_s1 + $0x88] sm:$0xff] (!%p165_p2)   ;;  %v5265_v6 = vld [vmem:[%s6476_s1 + $0x90] sm:$0xff] (!%p165_p2)   ;;  %p192_p3 = scmp.lt.s32.totalorder (!%p165_p2), %s4186_s11, 255 }
   0x7   : > { %1998 = vmatpush1.bf16.msra.mxu1 (!%p165_p2), %v5260_v0  ;;  %2543 = vmatpush1.bf16.msra.mxu0 (!%p165_p2), %v5261_v2  ;;  %v5266_v7 = vld [vmem:[%s6476_s1 + $0x18] sm:$0xff] (!%p165_p2)   ;;  %v5268_v9 = vld [vmem:[%s6476_s1 + $0x20] sm:$0xff] (!%p165_p2)   ;;  %v5270_v11 = vld [vmem:[%s6476_s1 + $0x28] sm:$0xff] (!%p165_p2)  }
   0x8   : > { %1999 = vmatprep.subr.bf16.mxu1 (!%p165_p2), %v5688_v1  ;;  %2544 = vmatprep.subr.bf16.mxu0 (!%p165_p2), %v5688_v1  ;;  %v5267_v8 = vld [vmem:[%s6476_s1 + $0x98] sm:$0xff] (!%p165_p2)   ;;  %v5269_v10 = vld [vmem:[%s6476_s1 + $0xa0] sm:$0xff] (!%p165_p2)   ;;  %v5271_v12 = vld [vmem:[%s6476_s1 + $0xa8] sm:$0xff] (!%p165_p2)  }
   0x9   : > { %v5272_v13 = vld [vmem:[%s6476_s1 + $0x30] sm:$0xff] (!%p165_p2)   ;;  %v5274_v15 = vld [vmem:[%s6476_s1 + $0x38] sm:$0xff] (!%p165_p2)   ;;  %v5276_v17 = vld [vmem:[%s6476_s1 + $0x40] sm:$0xff] (!%p165_p2)  }
   0xa   : > { %v5273_v14 = vld [vmem:[%s6476_s1 + $0xb0] sm:$0xff] (!%p165_p2)   ;;  %v5275_v16 = vld [vmem:[%s6476_s1 + $0xb8] sm:$0xff] (!%p165_p2)   ;;  %v5277_v18 = vld [vmem:[%s6476_s1 + $0xc0] sm:$0xff] (!%p165_p2)  }
   0xb   : > { %2000 = vmatpush1.bf16.msra.mxu1 (!%p165_p2), %v5262_v3  ;;  %2545 = vmatpush1.bf16.msra.mxu0 (!%p165_p2), %v5263_v4  ;;  %v5278_v20 = vld [vmem:[%s6476_s1 + $0x48] sm:$0xff] (!%p165_p2)   ;;  %v5280_v23 = vld [vmem:[%s6476_s1 + $0x50] sm:$0xff] (!%p165_p2)   ;;  %v5282_v25 = vld [vmem:[%s6476_s1 + $0x58] sm:$0xff] (!%p165_p2)  }
   0xc   : > { %2001 = vmatprep.subr.bf16.mxu1 (!%p165_p2), %v5688_v1  ;;  %2546 = vmatprep.subr.bf16.mxu0 (!%p165_p2), %v5688_v1  ;;  %v5279_v22 = vld [vmem:[%s6476_s1 + $0xc8] sm:$0xff] (!%p165_p2)   ;;  %v5281_v24 = vld [vmem:[%s6476_s1 + $0xd0] sm:$0xff] (!%p165_p2)   ;;  %v5283_v26 = vld [vmem:[%s6476_s1 + $0xd8] sm:$0xff] (!%p165_p2)  }
   0xd   : > { %s6481_s11 = smov (!%p192_p3, %s4186_s11), 255  ;;  %v5284_v27 = vld [vmem:[%s6476_s1 + $0x60] sm:$0xff]   ;;  %v5286_v29 = vld [vmem:[%s6476_s1 + $0x68] sm:$0xff]   ;;  %v5288_v31 = vld [vmem:[%s6476_s1 + $0x70] sm:$0xff]  }
   0xe   : > { %s4611_s25 = sshll.u32 %s6481_s11, 4  ;;  %v5285_v28 = vld [vmem:[%s6476_s1 + $0xe0] sm:$0xff]   ;;  %v5287_v30 = vld [vmem:[%s6476_s1 + $0xe8] sm:$0xff]   ;;  %v5289_v32 = vld [vmem:[%s6476_s1 + $0xf0] sm:$0xff]   ;;  %s4190_s19 = sshll.u32 %s6481_s11, 2 }
   0xf   : > { %2002 = vmatpush1.bf16.msra.mxu1 %v5264_v5  ;;  %2547 = vmatpush1.bf16.msra.mxu0 %v5265_v6  ;;  %s5797_s30 = scalar_lea.vmem %s6475_s0, %s4611_s25  ;;  %v5290_v33 = vld [vmem:[%s6476_s1 + $0x78] sm:$0xff]   ;;  %s5995_s11 = scalar_lea.vmem %s6479_s4, %s4190_s19 }
  0x10   : > { %2003 = vmatprep.subr.bf16.mxu1 %v5688_v1  ;;  %2548 = vmatprep.subr.bf16.mxu0 %v5688_v1  ;;  %v5294_v19 = vld [vmem:[%s5797_s30 + $0x4] ss:$16 sps:$4 sm:$0xff]   ;;  %v5297_v21 = vld [vmem:[%s5797_s30 + $0xc] ss:$16 sps:$4 sm:$0xff]   ;;  %v5292_v35 = vld [vmem:[%s5797_s30] ss:$16 sps:$4 sm:$0xff]  }
  0x11   : > { %2029 = vmatprep.mubr.bf16.mxu1 %v5294_v19  ;;  %2574 = vmatprep.mubr.bf16.mxu0 %v5297_v21  ;;  %v5291_v34 = vld [vmem:[%s6476_s1 + $0xf8] sm:$0xff]   ;;  %v5298_v37 = vld [vmem:[%s5797_s30 + $0x24] ss:$16 sps:$4 sm:$0xff]   ;;  %v5302_v39 = vld [vmem:[%s5797_s30 + $0x20] ss:$16 sps:$4 sm:$0xff]  }
  0x12   : > { %v5295_v36 = vld [vmem:[%s5797_s30 + $0x8] ss:$16 sps:$4 sm:$0xff]   ;;  %v5300_v38 = vld [vmem:[%s5797_s30 + $0x2c] ss:$16 sps:$4 sm:$0xff]   ;;  %v5304_v41 = vld [vmem:[%s5797_s30 + $0x44] ss:$16 sps:$4 sm:$0xff]  }
  0x13   : > { %2004 = vmatpush1.bf16.msra.mxu1 %v5266_v7  ;;  %2549 = vmatpush1.bf16.msra.mxu0 %v5267_v8  ;;  %v5303_v40 = vld [vmem:[%s5797_s30 + $0x28] ss:$16 sps:$4 sm:$0xff]   ;;  %v5306_v42 = vld [vmem:[%s5797_s30 + $0x4c] ss:$16 sps:$4 sm:$0xff]   ;;  %v5308_v43 = vld [vmem:[%s5797_s30 + $0x40] ss:$16 sps:$4 sm:$0xff]  }
  0x14   : > { %2005 = vmatprep.subr.bf16.mxu1 %v5688_v1  ;;  %2550 = vmatprep.subr.bf16.mxu0 %v5688_v1  ;;  %v5309_v44 = vld [vmem:[%s5797_s30 + $0x48] ss:$16 sps:$4 sm:$0xff]   ;;  %v5310_v45 = vld [vmem:[%s5797_s30 + $0x64] ss:$16 sps:$4 sm:$0xff]   ;;  %v5312_v46 = vld [vmem:[%s5797_s30 + $0x6c] ss:$16 sps:$4 sm:$0xff]  }
  0x15   : > { %v5314_v47 = vld [vmem:[%s5797_s30 + $0x60] ss:$16 sps:$4 sm:$0xff]   ;;  %v5315_v48 = vld [vmem:[%s5797_s30 + $0x68] ss:$16 sps:$4 sm:$0xff]   ;;  %v5316_v49 = vld [vmem:[%s5797_s30 + $0x84] ss:$16 sps:$4 sm:$0xff]  }
  0x16   : > { %v5318_v50 = vld [vmem:[%s5797_s30 + $0x8c] ss:$16 sps:$4 sm:$0xff]   ;;  %v5320_v51 = vld [vmem:[%s5797_s30 + $0x80] ss:$16 sps:$4 sm:$0xff]   ;;  %v5321_v52 = vld [vmem:[%s5797_s30 + $0x88] ss:$16 sps:$4 sm:$0xff]  }
  0x17   : > { %2006 = vmatpush1.bf16.msra.mxu1 %v5268_v9  ;;  %2551 = vmatpush1.bf16.msra.mxu0 %v5269_v10  ;;  %v5322_v53 = vld [vmem:[%s5797_s30 + $0xa4] ss:$16 sps:$4 sm:$0xff]   ;;  %v5324_v54 = vld [vmem:[%s5797_s30 + $0xac] ss:$16 sps:$4 sm:$0xff]   ;;  %v5326_v55 = vld [vmem:[%s5797_s30 + $0xa0] ss:$16 sps:$4 sm:$0xff]  }
  0x18   : > { %2007 = vmatprep.subr.bf16.mxu1 %v5688_v1  ;;  %2552 = vmatprep.subr.bf16.mxu0 %v5688_v1  ;;  %v5327_v56 = vld [vmem:[%s5797_s30 + $0xa8] ss:$16 sps:$4 sm:$0xff]   ;;  %v5328_v57 = vld [vmem:[%s5797_s30 + $0xc4] ss:$16 sps:$4 sm:$0xff]   ;;  %v5330_v58 = vld [vmem:[%s5797_s30 + $0xcc] ss:$16 sps:$4 sm:$0xff]  }
  0x19   : > { %v5332_v59 = vld [vmem:[%s5797_s30 + $0xc0] ss:$16 sps:$4 sm:$0xff]   ;;  %v5333_v60 = vld [vmem:[%s5797_s30 + $0xc8] ss:$16 sps:$4 sm:$0xff]   ;;  %v5334_v61 = vld [vmem:[%s5797_s30 + $0xe4] ss:$16 sps:$4 sm:$0xff]  }
  0x1a   : > { %v5336_v62 = vld [vmem:[%s5797_s30 + $0xec] ss:$16 sps:$4 sm:$0xff]   ;;  %v5338_v63 = vld [vmem:[%s5797_s30 + $0xe0] ss:$16 sps:$4 sm:$0xff]   ;;  %v5339_v0 = vld [vmem:[%s5797_s30 + $0xe8] ss:$16 sps:$4 sm:$0xff]  }
  0x1b   : > { %2008 = vmatpush1.bf16.msra.mxu1 %v5270_v11  ;;  %2553 = vmatpush1.bf16.msra.mxu0 %v5271_v12  ;;  %v5342_v2 = vld [vmem:[%s5797_s30 + $0x10c] ss:$16 sps:$4 sm:$0xff]   ;;  %v5344_v3 = vld [vmem:[%s5797_s30 + $0x100] ss:$16 sps:$4 sm:$0xff]   ;;  %v5345_v4 = vld [vmem:[%s5797_s30 + $0x108] ss:$16 sps:$4 sm:$0xff]  }
  0x1c   : > { %2009 = vmatprep.subr.bf16.mxu1 %v5688_v1  ;;  %2554 = vmatprep.subr.bf16.mxu0 %v5688_v1  ;;  %v5346_v5 = vld [vmem:[%s5797_s30 + $0x124] ss:$16 sps:$4 sm:$0xff]   ;;  %v5348_v6 = vld [vmem:[%s5797_s30 + $0x12c] ss:$16 sps:$4 sm:$0xff]   ;;  %v5350_v7 = vld [vmem:[%s5797_s30 + $0x120] ss:$16 sps:$4 sm:$0xff]  }
  0x1d   : > { %v5351_v8 = vld [vmem:[%s5797_s30 + $0x128] ss:$16 sps:$4 sm:$0xff]   ;;  %v5352_v9 = vld [vmem:[%s5797_s30 + $0x144] ss:$16 sps:$4 sm:$0xff]   ;;  %v5354_v10 = vld [vmem:[%s5797_s30 + $0x14c] ss:$16 sps:$4 sm:$0xff]  }
  0x1e   : > { %v5356_v11 = vld [vmem:[%s5797_s30 + $0x140] ss:$16 sps:$4 sm:$0xff]   ;;  %v5357_v12 = vld [vmem:[%s5797_s30 + $0x148] ss:$16 sps:$4 sm:$0xff]   ;;  %v5370_v21 = vld [vmem:[%s5797_s30 + $0x1a4] ss:$16 sps:$4 sm:$0xff]  }
  0x1f   : > { %2010 = vmatpush1.bf16.msra.mxu1 %v5272_v13  ;;  %2555 = vmatpush1.bf16.msra.mxu0 %v5273_v14  ;;  %v5358_v13 = vld [vmem:[%s5797_s30 + $0x164] ss:$16 sps:$4 sm:$0xff]   ;;  %v5360_v14 = vld [vmem:[%s5797_s30 + $0x16c] ss:$16 sps:$4 sm:$0xff]   ;;  %v5368_v19 = vld [vmem:[%s5797_s30 + $0x180] ss:$16 sps:$4 sm:$0xff]  }
  0x20   : > { %2011 = vmatprep.subr.bf16.mxu1 %v5688_v1  ;;  %2556 = vmatprep.subr.bf16.mxu0 %v5688_v1 }
  0x23   : > { %2012 = vmatpush1.bf16.msra.mxu1 %v5274_v15  ;;  %2557 = vmatpush1.bf16.msra.mxu0 %v5275_v16  ;;  %v5362_v15 = vld [vmem:[%s5797_s30 + $0x160] ss:$16 sps:$4 sm:$0xff]   ;;  %v5363_v16 = vld [vmem:[%s5797_s30 + $0x168] ss:$16 sps:$4 sm:$0xff]  }
  0x24   : > { %2013 = vmatprep.subr.bf16.mxu1 %v5688_v1  ;;  %2558 = vmatprep.subr.bf16.mxu0 %v5688_v1 }
  0x27   : > { %2014 = vmatpush1.bf16.msra.mxu1 %v5276_v17  ;;  %2559 = vmatpush1.bf16.msra.mxu0 %v5277_v18  ;;  %v5364_v17 = vld [vmem:[%s5797_s30 + $0x184] ss:$16 sps:$4 sm:$0xff]   ;;  %v5366_v18 = vld [vmem:[%s5797_s30 + $0x18c] ss:$16 sps:$4 sm:$0xff]  }
  0x28   : > { %2015 = vmatprep.subr.bf16.mxu1 %v5688_v1  ;;  %2560 = vmatprep.subr.bf16.mxu0 %v5688_v1 }
  0x2b   : > { %2016 = vmatpush1.bf16.msra.mxu1 %v5278_v20  ;;  %2561 = vmatpush1.bf16.msra.mxu0 %v5279_v22  ;;  %v5369_v20 = vld [vmem:[%s5797_s30 + $0x188] ss:$16 sps:$4 sm:$0xff]   ;;  %v5372_v22 = vld [vmem:[%s5797_s30 + $0x1ac] ss:$16 sps:$4 sm:$0xff]  }
  0x2c   : > { %2017 = vmatprep.subr.bf16.mxu1 %v5688_v1  ;;  %2562 = vmatprep.subr.bf16.mxu0 %v5688_v1 }
  0x2f   : > { %2018 = vmatpush1.bf16.msra.mxu1 %v5280_v23  ;;  %2563 = vmatpush1.bf16.msra.mxu0 %v5281_v24  ;;  %v5374_v23 = vld [vmem:[%s5797_s30 + $0x1a0] ss:$16 sps:$4 sm:$0xff]   ;;  %v5375_v24 = vld [vmem:[%s5797_s30 + $0x1a8] ss:$16 sps:$4 sm:$0xff]  }
  0x30   : > { %2019 = vmatprep.subr.bf16.mxu1 %v5688_v1  ;;  %2564 = vmatprep.subr.bf16.mxu0 %v5688_v1 }
  0x33   : > { %2020 = vmatpush1.bf16.msra.mxu1 %v5282_v25  ;;  %2565 = vmatpush1.bf16.msra.mxu0 %v5283_v26  ;;  %v5376_v25 = vld [vmem:[%s5797_s30 + $0x1c4] ss:$16 sps:$4 sm:$0xff]   ;;  %v5378_v26 = vld [vmem:[%s5797_s30 + $0x1cc] ss:$16 sps:$4 sm:$0xff]  }
  0x34   : > { %2021 = vmatprep.subr.bf16.mxu1 %v5688_v1  ;;  %2566 = vmatprep.subr.bf16.mxu0 %v5688_v1 }
  0x37   : > { %2022 = vmatpush1.bf16.msra.mxu1 %v5284_v27  ;;  %2567 = vmatpush1.bf16.msra.mxu0 %v5285_v28  ;;  %v5380_v27 = vld [vmem:[%s5797_s30 + $0x1c0] ss:$16 sps:$4 sm:$0xff]   ;;  %v5381_v28 = vld [vmem:[%s5797_s30 + $0x1c8] ss:$16 sps:$4 sm:$0xff]  }
  0x38   : > { %2023 = vmatprep.subr.bf16.mxu1 %v5688_v1  ;;  %2568 = vmatprep.subr.bf16.mxu0 %v5688_v1 }
  0x3b   : > { %2024 = vmatpush1.bf16.msra.mxu1 %v5286_v29  ;;  %2569 = vmatpush1.bf16.msra.mxu0 %v5287_v30  ;;  %v5382_v29 = vld [vmem:[%s5797_s30 + $0x1e4] ss:$16 sps:$4 sm:$0xff]   ;;  %v5384_v30 = vld [vmem:[%s5797_s30 + $0x1ec] ss:$16 sps:$4 sm:$0xff]  }
  0x3c   : > { %2025 = vmatprep.subr.bf16.mxu1 %v5688_v1  ;;  %2570 = vmatprep.subr.bf16.mxu0 %v5688_v1 }
  0x3f   : > { %2026 = vmatpush1.bf16.msra.mxu1 %v5288_v31  ;;  %2571 = vmatpush1.bf16.msra.mxu0 %v5289_v32  ;;  %v5386_v31 = vld [vmem:[%s5797_s30 + $0x1e0] ss:$16 sps:$4 sm:$0xff]   ;;  %v5387_v32 = vld [vmem:[%s5797_s30 + $0x1e8] ss:$16 sps:$4 sm:$0xff]  }
  0x40   : > { %2027 = vmatprep.subr.bf16.mxu1 %v5688_v1  ;;  %2572 = vmatprep.subr.bf16.mxu0 %v5688_v1  ;;  %v5340_v1 = vld [vmem:[%s5797_s30 + $0x104] ss:$16 sps:$4 sm:$0xff]  }
  0x43   : > { %2028 = vmatpush1.bf16.msra.mxu1 %v5290_v33  ;;  %2573 = vmatpush1.bf16.msra.mxu0 %v5291_v34  ;;  %v5388_v33 = vld [vmem:[%s5797_s30 + $0x204] ss:$16 sps:$4 sm:$0xff]   ;;  %v5390_v34 = vld [vmem:[%s5797_s30 + $0x20c] ss:$16 sps:$4 sm:$0xff]  }
  0x46   : > { %2030 = vmatmul.mubr.bf16.vlgmr.msra.gmra.mrb[0].mxu1 %v5292_v35  ;;  %2575 = vmatmul.mubr.bf16.vlgmr.msra.gmra.mrb[0].mxu0 %v5295_v36  ;;  %v5392_v35 = vld [vmem:[%s5797_s30 + $0x200] ss:$16 sps:$4 sm:$0xff]   ;;  %v5393_v36 = vld [vmem:[%s5797_s30 + $0x208] ss:$16 sps:$4 sm:$0xff]  }
  0x47   : > { %2037 = vmatprep.mubr.bf16.mxu1 %v5298_v37  ;;  %2582 = vmatprep.mubr.bf16.mxu0 %v5300_v38  ;;  %v5394_v37 = vld [vmem:[%s5797_s30 + $0x224] ss:$16 sps:$4 sm:$0xff]   ;;  %v5396_v38 = vld [vmem:[%s5797_s30 + $0x22c] ss:$16 sps:$4 sm:$0xff]  }
  0x4e   : > { %2038 = vmatmul.mubr.bf16.gmra.mrb[4].mxu1 %v5302_v39  ;;  %2583 = vmatmul.mubr.bf16.gmra.mrb[4].mxu0 %v5303_v40  ;;  %v5398_v39 = vld [vmem:[%s5797_s30 + $0x220] ss:$16 sps:$4 sm:$0xff]   ;;  %v5399_v40 = vld [vmem:[%s5797_s30 + $0x228] ss:$16 sps:$4 sm:$0xff]  }
  0x4f   : > { %2045 = vmatprep.mubr.bf16.mxu1 %v5304_v41  ;;  %2590 = vmatprep.mubr.bf16.mxu0 %v5306_v42  ;;  %v5400_v41 = vld [vmem:[%s5797_s30 + $0x244] ss:$16 sps:$4 sm:$0xff]   ;;  %v5402_v42 = vld [vmem:[%s5797_s30 + $0x24c] ss:$16 sps:$4 sm:$0xff]  }
  0x56   : > { %2046 = vmatmul.mubr.bf16.gmra.mrb[8].mxu1 %v5308_v43  ;;  %2591 = vmatmul.mubr.bf16.gmra.mrb[8].mxu0 %v5309_v44  ;;  %v5404_v43 = vld [vmem:[%s5797_s30 + $0x240] ss:$16 sps:$4 sm:$0xff]   ;;  %v5405_v44 = vld [vmem:[%s5797_s30 + $0x248] ss:$16 sps:$4 sm:$0xff]  }
  0x57   : > { %2053 = vmatprep.mubr.bf16.mxu1 %v5310_v45  ;;  %2598 = vmatprep.mubr.bf16.mxu0 %v5312_v46  ;;  %v5406_v45 = vld [vmem:[%s5797_s30 + $0x264] ss:$16 sps:$4 sm:$0xff]   ;;  %v5408_v46 = vld [vmem:[%s5797_s30 + $0x26c] ss:$16 sps:$4 sm:$0xff]  }
  0x5e   : > { %2054 = vmatmul.mubr.bf16.gmra.mrb[12].mxu1 %v5314_v47  ;;  %2599 = vmatmul.mubr.bf16.gmra.mrb[12].mxu0 %v5315_v48  ;;  %v5410_v47 = vld [vmem:[%s5797_s30 + $0x260] ss:$16 sps:$4 sm:$0xff]   ;;  %v5411_v48 = vld [vmem:[%s5797_s30 + $0x268] ss:$16 sps:$4 sm:$0xff]  }
  0x5f   : > { %2061 = vmatprep.mubr.bf16.mxu1 %v5316_v49  ;;  %2606 = vmatprep.mubr.bf16.mxu0 %v5318_v50  ;;  %v5412_v49 = vld [vmem:[%s5797_s30 + $0x284] ss:$16 sps:$4 sm:$0xff]   ;;  %v5414_v50 = vld [vmem:[%s5797_s30 + $0x28c] ss:$16 sps:$4 sm:$0xff]  }
  0x66   : > { %2062 = vmatmul.mubr.bf16.gmra.mrb[16].mxu1 %v5320_v51  ;;  %2607 = vmatmul.mubr.bf16.gmra.mrb[16].mxu0 %v5321_v52  ;;  %v5416_v51 = vld [vmem:[%s5797_s30 + $0x280] ss:$16 sps:$4 sm:$0xff]   ;;  %v5417_v52 = vld [vmem:[%s5797_s30 + $0x288] ss:$16 sps:$4 sm:$0xff]  }
  0x67   : > { %2069 = vmatprep.mubr.bf16.mxu1 %v5322_v53  ;;  %2614 = vmatprep.mubr.bf16.mxu0 %v5324_v54  ;;  %v5418_v53 = vld [vmem:[%s5797_s30 + $0x2a4] ss:$16 sps:$4 sm:$0xff]   ;;  %v5420_v54 = vld [vmem:[%s5797_s30 + $0x2ac] ss:$16 sps:$4 sm:$0xff]  }
  0x6e   : > { %2070 = vmatmul.mubr.bf16.gmra.mrb[20].mxu1 %v5326_v55  ;;  %2615 = vmatmul.mubr.bf16.gmra.mrb[20].mxu0 %v5327_v56  ;;  %v5422_v55 = vld [vmem:[%s5797_s30 + $0x2a0] ss:$16 sps:$4 sm:$0xff]   ;;  %v5423_v56 = vld [vmem:[%s5797_s30 + $0x2a8] ss:$16 sps:$4 sm:$0xff]  }
  0x6f   : > { %2077 = vmatprep.mubr.bf16.mxu1 %v5328_v57  ;;  %2622 = vmatprep.mubr.bf16.mxu0 %v5330_v58  ;;  %v5424_v57 = vld [vmem:[%s5797_s30 + $0x2c4] ss:$16 sps:$4 sm:$0xff]   ;;  %v5426_v58 = vld [vmem:[%s5797_s30 + $0x2cc] ss:$16 sps:$4 sm:$0xff]  }
  0x76   : > { %2078 = vmatmul.mubr.bf16.gmra.mrb[24].mxu1 %v5332_v59  ;;  %2623 = vmatmul.mubr.bf16.gmra.mrb[24].mxu0 %v5333_v60  ;;  %v5428_v59 = vld [vmem:[%s5797_s30 + $0x2c0] ss:$16 sps:$4 sm:$0xff]   ;;  %v5429_v60 = vld [vmem:[%s5797_s30 + $0x2c8] ss:$16 sps:$4 sm:$0xff]  }
  0x77   : > { %2085 = vmatprep.mubr.bf16.mxu1 %v5334_v61  ;;  %2630 = vmatprep.mubr.bf16.mxu0 %v5336_v62  ;;  %v5430_v61 = vld [vmem:[%s5797_s30 + $0x2e4] ss:$16 sps:$4 sm:$0xff]   ;;  %v5432_v62 = vld [vmem:[%s5797_s30 + $0x2ec] ss:$16 sps:$4 sm:$0xff]  }
  0x7e   : > { %2086 = vmatmul.mubr.bf16.gmra.mrb[28].mxu1 %v5338_v63  ;;  %2631 = vmatmul.mubr.bf16.gmra.mrb[28].mxu0 %v5339_v0  ;;  %v5434_v63 = vld [vmem:[%s5797_s30 + $0x2e0] ss:$16 sps:$4 sm:$0xff]   ;;  %v5435_v0 = vld [vmem:[%s5797_s30 + $0x2e8] ss:$16 sps:$4 sm:$0xff]  }
  0x7f   : > { %2093 = vmatprep.mubr.bf16.mxu1 %v5340_v1  ;;  %2638 = vmatprep.mubr.bf16.mxu0 %v5342_v2  ;;  %v5436_v1 = vld [vmem:[%s5797_s30 + $0x304] ss:$16 sps:$4 sm:$0xff]   ;;  %v5438_v2 = vld [vmem:[%s5797_s30 + $0x30c] ss:$16 sps:$4 sm:$0xff]  }
  0x86   : > { %2094 = vmatmul.mubr.bf16.gmra.mrb[32].mxu1 %v5344_v3  ;;  %2639 = vmatmul.mubr.bf16.gmra.mrb[32].mxu0 %v5345_v4  ;;  %v5440_v3 = vld [vmem:[%s5797_s30 + $0x300] ss:$16 sps:$4 sm:$0xff]   ;;  %v5441_v4 = vld [vmem:[%s5797_s30 + $0x308] ss:$16 sps:$4 sm:$0xff]  }
  0x87   : > { %2101 = vmatprep.mubr.bf16.mxu1 %v5346_v5  ;;  %2646 = vmatprep.mubr.bf16.mxu0 %v5348_v6  ;;  %v5442_v5 = vld [vmem:[%s5797_s30 + $0x324] ss:$16 sps:$4 sm:$0xff]   ;;  %v5444_v6 = vld [vmem:[%s5797_s30 + $0x32c] ss:$16 sps:$4 sm:$0xff]  }
  0x8e   : > { %2102 = vmatmul.mubr.bf16.gmra.mrb[36].mxu1 %v5350_v7  ;;  %2647 = vmatmul.mubr.bf16.gmra.mrb[36].mxu0 %v5351_v8  ;;  %v5446_v7 = vld [vmem:[%s5797_s30 + $0x320] ss:$16 sps:$4 sm:$0xff]   ;;  %v5447_v8 = vld [vmem:[%s5797_s30 + $0x328] ss:$16 sps:$4 sm:$0xff]  }
  0x8f   : > { %2109 = vmatprep.mubr.bf16.mxu1 %v5352_v9  ;;  %2654 = vmatprep.mubr.bf16.mxu0 %v5354_v10  ;;  %v5448_v9 = vld [vmem:[%s5797_s30 + $0x344] ss:$16 sps:$4 sm:$0xff]   ;;  %v5450_v10 = vld [vmem:[%s5797_s30 + $0x34c] ss:$16 sps:$4 sm:$0xff]  }
  0x96   : > { %2110 = vmatmul.mubr.bf16.gmra.mrb[40].mxu1 %v5356_v11  ;;  %2655 = vmatmul.mubr.bf16.gmra.mrb[40].mxu0 %v5357_v12  ;;  %v5452_v11 = vld [vmem:[%s5797_s30 + $0x340] ss:$16 sps:$4 sm:$0xff]   ;;  %v5453_v12 = vld [vmem:[%s5797_s30 + $0x348] ss:$16 sps:$4 sm:$0xff]  }
  0x97   : > { %2117 = vmatprep.mubr.bf16.mxu1 %v5358_v13  ;;  %2662 = vmatprep.mubr.bf16.mxu0 %v5360_v14  ;;  %v5454_v13 = vld [vmem:[%s5797_s30 + $0x364] ss:$16 sps:$4 sm:$0xff]   ;;  %v5456_v14 = vld [vmem:[%s5797_s30 + $0x36c] ss:$16 sps:$4 sm:$0xff]  }
  0x9e   : > { %2118 = vmatmul.mubr.bf16.gmra.mrb[44].mxu1 %v5362_v15  ;;  %2663 = vmatmul.mubr.bf16.gmra.mrb[44].mxu0 %v5363_v16 }
  0x9f   : > { %2125 = vmatprep.mubr.bf16.mxu1 %v5364_v17  ;;  %2670 = vmatprep.mubr.bf16.mxu0 %v5366_v18  ;;  %v5458_v18 = vld [vmem:[%s5797_s30 + $0x360] ss:$16 sps:$4 sm:$0xff]  }
  0xa6   : > { %2126 = vmatmul.mubr.bf16.gmra.mrb[48].mxu1 %v5368_v19  ;;  %2671 = vmatmul.mubr.bf16.gmra.mrb[48].mxu0 %v5369_v20 }
  0xa7   : > { %2133 = vmatprep.mubr.bf16.mxu1 %v5370_v21  ;;  %2678 = vmatprep.mubr.bf16.mxu0 %v5372_v22  ;;  %v5459_v22 = vld [vmem:[%s5797_s30 + $0x368] ss:$16 sps:$4 sm:$0xff]  }
  0xae   : > { %2134 = vmatmul.mubr.bf16.gmra.mrb[52].mxu1 %v5374_v23  ;;  %2679 = vmatmul.mubr.bf16.gmra.mrb[52].mxu0 %v5375_v24  ;;  %v5460_v23 = vld [vmem:[%s5797_s30 + $0x384] ss:$16 sps:$4 sm:$0xff]   ;;  %v5976_v24 = vld [vmem:[%s6477_s2] ss:$0 sm:$0xff] }
  0xaf   : > { %2141 = vmatprep.mubr.bf16.mxu1 %v5376_v25  ;;  %2686 = vmatprep.mubr.bf16.mxu0 %v5378_v26 }
  0xb6   : > { %2142 = vmatmul.mubr.bf16.gmra.mrb[56].mxu1 %v5380_v27  ;;  %2687 = vmatmul.mubr.bf16.gmra.mrb[56].mxu0 %v5381_v28  ;;  %v5462_v27 = vld [vmem:[%s5797_s30 + $0x38c] ss:$16 sps:$4 sm:$0xff]  }
  0xb7   : > { %2149 = vmatprep.mubr.bf16.mxu1 %v5382_v29  ;;  %2694 = vmatprep.mubr.bf16.mxu0 %v5384_v30 }
  0xbe   : > { %2150 = vmatmul.mubr.bf16.gmra.mrb[60].mxu1 %v5386_v31  ;;  %2695 = vmatmul.mubr.bf16.gmra.mrb[60].mxu0 %v5387_v32 }
  0xbf   : > { %2157 = vmatprep.mubr.bf16.mxu1 %v5388_v33  ;;  %2702 = vmatprep.mubr.bf16.mxu0 %v5390_v34  ;;  %v5983_v33 = vld [vmem:[%s6478_s3] ss:$0 sm:$0xff] }
  0xc6   : > { %2158 = vmatmul.mubr.bf16.gmra.mrb[64].mxu1 %v5392_v35  ;;  %2703 = vmatmul.mubr.bf16.gmra.mrb[64].mxu0 %v5393_v36 }
  0xc7   : > { %2165 = vmatprep.mubr.bf16.mxu1 %v5394_v37  ;;  %2710 = vmatprep.mubr.bf16.mxu0 %v5396_v38  ;;  %v5464_v38 = vld [vmem:[%s5797_s30 + $0x380] ss:$16 sps:$4 sm:$0xff]  }
  0xce   : > { %2166 = vmatmul.mubr.bf16.gmra.mrb[68].mxu1 %v5398_v39  ;;  %2711 = vmatmul.mubr.bf16.gmra.mrb[68].mxu0 %v5399_v40 }
  0xcf   : > { %2173 = vmatprep.mubr.bf16.mxu1 %v5400_v41  ;;  %2718 = vmatprep.mubr.bf16.mxu0 %v5402_v42 }
  0xd6   : > { %2174 = vmatmul.mubr.bf16.gmra.mrb[72].mxu1 %v5404_v43  ;;  %2719 = vmatmul.mubr.bf16.gmra.mrb[72].mxu0 %v5405_v44  ;;  %v5465_v44 = vld [vmem:[%s5797_s30 + $0x388] ss:$16 sps:$4 sm:$0xff]  }
  0xd7   : > { %2181 = vmatprep.mubr.bf16.mxu1 %v5406_v45  ;;  %2726 = vmatprep.mubr.bf16.mxu0 %v5408_v46  ;;  %v5466_v45 = vld [vmem:[%s5797_s30 + $0x3a4] ss:$16 sps:$4 sm:$0xff]  }
  0xde   : > { %2182 = vmatmul.mubr.bf16.gmra.mrb[76].mxu1 %v5410_v47  ;;  %2727 = vmatmul.mubr.bf16.gmra.mrb[76].mxu0 %v5411_v48  ;;  %v5468_v48 = vld [vmem:[%s5797_s30 + $0x3ac] ss:$16 sps:$4 sm:$0xff]  }
  0xdf   : > { %2189 = vmatprep.mubr.bf16.mxu1 %v5412_v49  ;;  %2734 = vmatprep.mubr.bf16.mxu0 %v5414_v50 }
  0xe6   : > { %2190 = vmatmul.mubr.bf16.gmra.mrb[80].mxu1 %v5416_v51  ;;  %2735 = vmatmul.mubr.bf16.gmra.mrb[80].mxu0 %v5417_v52 }
  0xe7   : > { %2197 = vmatprep.mubr.bf16.mxu1 %v5418_v53  ;;  %2742 = vmatprep.mubr.bf16.mxu0 %v5420_v54 }
  0xee   : > { %2198 = vmatmul.mubr.bf16.gmra.mrb[84].mxu1 %v5422_v55  ;;  %2743 = vmatmul.mubr.bf16.gmra.mrb[84].mxu0 %v5423_v56 }
  0xef   : > { %2205 = vmatprep.mubr.bf16.mxu1 %v5424_v57  ;;  %2750 = vmatprep.mubr.bf16.mxu0 %v5426_v58 }
  0xf6   : > { %2206 = vmatmul.mubr.bf16.gmra.mrb[88].mxu1 %v5428_v59  ;;  %2751 = vmatmul.mubr.bf16.gmra.mrb[88].mxu0 %v5429_v60  ;;  %v5470_v59 = vld [vmem:[%s5797_s30 + $0x3a0] ss:$16 sps:$4 sm:$0xff]  }
  0xf7   : > { %2213 = vmatprep.mubr.bf16.mxu1 %v5430_v61  ;;  %2758 = vmatprep.mubr.bf16.mxu0 %v5432_v62 }
  0xfe   : > { %2214 = vmatmul.mubr.bf16.gmra.mrb[92].mxu1 %v5434_v63  ;;  %2759 = vmatmul.mubr.bf16.gmra.mrb[92].mxu0 %v5435_v0 }
  0xff   : > { %2221 = vmatprep.mubr.bf16.mxu1 %v5436_v1  ;;  %2766 = vmatprep.mubr.bf16.mxu0 %v5438_v2  ;;  %v5471_v1 = vld [vmem:[%s5797_s30 + $0x3a8] ss:$16 sps:$4 sm:$0xff]   ;;  %v5472_v2 = vld [vmem:[%s5797_s30 + $0x3c4] ss:$16 sps:$4 sm:$0xff]  }
 0x106   : > { %2222 = vmatmul.mubr.bf16.gmra.mrb[96].mxu1 %v5440_v3  ;;  %2767 = vmatmul.mubr.bf16.gmra.mrb[96].mxu0 %v5441_v4 }
 0x107   : > { %2229 = vmatprep.mubr.bf16.mxu1 %v5442_v5  ;;  %2774 = vmatprep.mubr.bf16.mxu0 %v5444_v6  ;;  %v5474_v5 = vld [vmem:[%s5797_s30 + $0x3cc] ss:$16 sps:$4 sm:$0xff]  }
 0x10e   : > { %2230 = vmatmul.mubr.bf16.gmra.mrb[100].mxu1 %v5446_v7  ;;  %2775 = vmatmul.mubr.bf16.gmra.mrb[100].mxu0 %v5447_v8 }
 0x10f   : > { %2237 = vmatprep.mubr.bf16.mxu1 %v5448_v9  ;;  %2782 = vmatprep.mubr.bf16.mxu0 %v5450_v10 }
 0x116   : > { %2238 = vmatmul.mubr.bf16.gmra.mrb[104].mxu1 %v5452_v11  ;;  %2783 = vmatmul.mubr.bf16.gmra.mrb[104].mxu0 %v5453_v12 }
 0x117   : > { %2245 = vmatprep.mubr.bf16.mxu1 %v5454_v13  ;;  %2790 = vmatprep.mubr.bf16.mxu0 %v5456_v14 }
 0x119   : > { %v2031_v15 = vpop.f32.mrb[0].mxu1  ;;  %v2576_v16 = vpop.f32.mrb[0].mxu0 }
 0x11a   : > { %v2033_v17 = vpop.f32.mrb[1].mxu1  ;;  %v2577_v19 = vadd.f32 %v2576_v16, %v2031_v15  ;;  %v2578_v20 = vpop.f32.mrb[1].mxu0  ;;  %v5476_v16 = vld [vmem:[%s5797_s30 + $0x3c0] ss:$16 sps:$4 sm:$0xff]  }
 0x11b   : > { %v2034_v21 = vpop.f32.mrb[2].mxu1  ;;  %v2579_v25 = vpop.f32.mrb[2].mxu0 }
 0x11c   : > { %v2036_v26 = vpop.f32.mrb[3].mxu1  ;;  %v3087_v28 = vmax.f32 %v2577_v19, 0.0  ;;  %v2580_v29 = vadd.f32 %v2579_v25, %v2034_v21  ;;  %v2581_v30 = vpop.f32.mrb[3].mxu0 }
 0x11e   : > { %2246 = vmatmul.mubr.bf16.gmra.mrb[108].mxu1 %v5458_v18  ;;  %v3222_v31 = vmul.f32 %v5976_v24, %v3087_v28  ;;  %v3088_v32 = vmax.f32 %v2580_v29, 0.0  ;;  %2791 = vmatmul.mubr.bf16.gmra.mrb[108].mxu0 %v5459_v22  ;;  %v5477_v22 = vld [vmem:[%s5797_s30 + $0x3c8] ss:$16 sps:$4 sm:$0xff]  }
 0x11f   : > { %2253 = vmatprep.mubr.bf16.mxu1 %v5460_v23  ;;  %2798 = vmatprep.mubr.bf16.mxu0 %v5462_v27  ;;  %v5478_v23 = vld [vmem:[%s5797_s30 + $0x3e4] ss:$16 sps:$4 sm:$0xff]   ;;  %v5480_v27 = vld [vmem:[%s5797_s30 + $0x3ec] ss:$16 sps:$4 sm:$0xff]  }
 0x120   : > { %v3223_v34 = vmul.f32 %v5976_v24, %v3088_v32  ;;  %v3357_v39 = vadd.f32 %v5983_v33, %v3222_v31 }
 0x121   : > { %v2039_v35 = vpop.f32.mrb[4].mxu1  ;;  %v2584_v36 = vpop.f32.mrb[4].mxu0 }
 0x122   : > { %v2041_v37 = vpop.f32.mrb[5].mxu1  ;;  %v3358_v40 = vadd.f32 %v5983_v33, %v3223_v34  ;;  %v2585_v41 = vadd.f32 %v2584_v36, %v2039_v35  ;;  %v2586_v42 = vpop.f32.mrb[5].mxu0 }
 0x123   : > { %v2042_v43 = vpop.f32.mrb[6].mxu1  ;;  %v2587_v46 = vpop.f32.mrb[6].mxu0 }
 0x124   : > { %v2044_v47 = vpop.f32.mrb[7].mxu1  ;;  %v4743_v49 = vpack.c.bf16 %v3358_v40, %v3357_v39  ;;  %v3089_v50 = vmax.f32 %v2585_v41, 0.0  ;;  %v2588_v51 = vadd.f32 %v2587_v46, %v2042_v43  ;;  %v2589_v52 = vpop.f32.mrb[7].mxu0  ;;  %v5482_v39 = vld [vmem:[%s5797_s30 + $0x3e0] ss:$16 sps:$4 sm:$0xff]  }
 0x125   : > { %v5484_v46 = vld [vmem:[%s5797_s30 + $0x404] ss:$16 sps:$4 sm:$0xff]  }
 0x126   : > { %2254 = vmatmul.mubr.bf16.gmra.mrb[112].mxu1 %v5464_v38  ;;  %4744 = vst [vmem:[%s5995_s11] sm:$0xff] %v4743_v49   ;;  %v3224_v53 = vmul.f32 %v5976_v24, %v3089_v50  ;;  %v3090_v54 = vmax.f32 %v2588_v51, 0.0  ;;  %2799 = vmatmul.mubr.bf16.gmra.mrb[112].mxu0 %v5465_v44  ;;  %v5486_v49 = vld [vmem:[%s5797_s30 + $0x40c] ss:$16 sps:$4 sm:$0xff]  }
 0x127   : > { %2261 = vmatprep.mubr.bf16.mxu1 %v5466_v45  ;;  %2806 = vmatprep.mubr.bf16.mxu0 %v5468_v48  ;;  %v5483_v45 = vld [vmem:[%s5797_s30 + $0x3e8] ss:$16 sps:$4 sm:$0xff]  }
 0x128   : > { %v3225_v55 = vmul.f32 %v5976_v24, %v3090_v54  ;;  %v3359_v60 = vadd.f32 %v5983_v33, %v3224_v53 }
 0x129   : > { %v2047_v56 = vpop.f32.mrb[8].mxu1  ;;  %v2592_v57 = vpop.f32.mrb[8].mxu0 }
 0x12a   : > { %v2049_v58 = vpop.f32.mrb[9].mxu1  ;;  %v3360_v61 = vadd.f32 %v5983_v33, %v3225_v55  ;;  %v2593_v62 = vadd.f32 %v2592_v57, %v2047_v56  ;;  %v2594_v63 = vpop.f32.mrb[9].mxu0 }
 0x12b   : > { %v2050_v0 = vpop.f32.mrb[10].mxu1  ;;  %v2595_v3 = vpop.f32.mrb[10].mxu0 }
 0x12c   : > { %v2052_v4 = vpop.f32.mrb[11].mxu1  ;;  %v4748_v6 = vpack.c.bf16 %v3360_v61, %v3359_v60  ;;  %v3091_v7 = vmax.f32 %v2593_v62, 0.0  ;;  %v2596_v8 = vadd.f32 %v2595_v3, %v2050_v0  ;;  %v2597_v9 = vpop.f32.mrb[11].mxu0  ;;  %v5488_v60 = vld [vmem:[%s5797_s30 + $0x400] ss:$16 sps:$4 sm:$0xff]  }
 0x12d   : > { %v5490_v3 = vld [vmem:[%s5797_s30 + $0x424] ss:$16 sps:$4 sm:$0xff]  }
 0x12e   : > { %2262 = vmatmul.mubr.bf16.gmra.mrb[116].mxu1 %v5470_v59  ;;  %5060 = vst [vmem:[%s5995_s11 + $0x8] sm:$0xff] %v4748_v6   ;;  %v3226_v10 = vmul.f32 %v5976_v24, %v3091_v7  ;;  %v3092_v11 = vmax.f32 %v2596_v8, 0.0  ;;  %2807 = vmatmul.mubr.bf16.gmra.mrb[116].mxu0 %v5471_v1  ;;  %v5492_v6 = vld [vmem:[%s5797_s30 + $0x42c] ss:$16 sps:$4 sm:$0xff]  }
 0x12f   : > { %2269 = vmatprep.mubr.bf16.mxu1 %v5472_v2  ;;  %2814 = vmatprep.mubr.bf16.mxu0 %v5474_v5  ;;  %v5489_v2 = vld [vmem:[%s5797_s30 + $0x408] ss:$16 sps:$4 sm:$0xff]  }
 0x130   : > { %v3227_v12 = vmul.f32 %v5976_v24, %v3092_v11  ;;  %v3361_v17 = vadd.f32 %v5983_v33, %v3226_v10 }
 0x131   : > { %v2055_v13 = vpop.f32.mrb[12].mxu1  ;;  %v2600_v14 = vpop.f32.mrb[12].mxu0 }
 0x132   : > { %v2057_v15 = vpop.f32.mrb[13].mxu1  ;;  %v3362_v18 = vadd.f32 %v5983_v33, %v3227_v12  ;;  %v2601_v19 = vadd.f32 %v2600_v14, %v2055_v13  ;;  %v2602_v20 = vpop.f32.mrb[13].mxu0 }
 0x133   : > { %v2058_v21 = vpop.f32.mrb[14].mxu1  ;;  %v2603_v25 = vpop.f32.mrb[14].mxu0 }
 0x134   : > { %v2060_v26 = vpop.f32.mrb[15].mxu1  ;;  %v4753_v28 = vpack.c.bf16 %v3362_v18, %v3361_v17  ;;  %v3093_v29 = vmax.f32 %v2601_v19, 0.0  ;;  %v2604_v30 = vadd.f32 %v2603_v25, %v2058_v21  ;;  %v2605_v31 = vpop.f32.mrb[15].mxu0  ;;  %v5494_v17 = vld [vmem:[%s5797_s30 + $0x420] ss:$16 sps:$4 sm:$0xff]  }
 0x135   : > { %v5496_v25 = vld [vmem:[%s5797_s30 + $0x444] ss:$16 sps:$4 sm:$0xff]  }
 0x136   : > { %2270 = vmatmul.mubr.bf16.gmra.mrb[120].mxu1 %v5476_v16  ;;  %5061 = vst [vmem:[%s5995_s11 + $0x10] sm:$0xff] %v4753_v28   ;;  %v3228_v32 = vmul.f32 %v5976_v24, %v3093_v29  ;;  %v3094_v34 = vmax.f32 %v2604_v30, 0.0  ;;  %2815 = vmatmul.mubr.bf16.gmra.mrb[120].mxu0 %v5477_v22  ;;  %v5498_v28 = vld [vmem:[%s5797_s30 + $0x44c] ss:$16 sps:$4 sm:$0xff]  }
 0x137   : > { %2277 = vmatprep.mubr.bf16.mxu1 %v5478_v23  ;;  %2822 = vmatprep.mubr.bf16.mxu0 %v5480_v27  ;;  %v5495_v23 = vld [vmem:[%s5797_s30 + $0x428] ss:$16 sps:$4 sm:$0xff]  }
 0x138   : > { %v3229_v35 = vmul.f32 %v5976_v24, %v3094_v34  ;;  %v3363_v40 = vadd.f32 %v5983_v33, %v3228_v32 }
 0x139   : > { %v2063_v36 = vpop.f32.mrb[16].mxu1  ;;  %v2608_v37 = vpop.f32.mrb[16].mxu0 }
 0x13a   : > { %v2065_v38 = vpop.f32.mrb[17].mxu1  ;;  %v3364_v41 = vadd.f32 %v5983_v33, %v3229_v35  ;;  %v2609_v42 = vadd.f32 %v2608_v37, %v2063_v36  ;;  %v2610_v43 = vpop.f32.mrb[17].mxu0 }
 0x13b   : > { %v2066_v44 = vpop.f32.mrb[18].mxu1  ;;  %v2611_v47 = vpop.f32.mrb[18].mxu0 }
 0x13c   : > { %v2068_v48 = vpop.f32.mrb[19].mxu1  ;;  %v4758_v50 = vpack.c.bf16 %v3364_v41, %v3363_v40  ;;  %v3095_v51 = vmax.f32 %v2609_v42, 0.0  ;;  %v2612_v52 = vadd.f32 %v2611_v47, %v2066_v44  ;;  %v2613_v53 = vpop.f32.mrb[19].mxu0  ;;  %v5500_v40 = vld [vmem:[%s5797_s30 + $0x440] ss:$16 sps:$4 sm:$0xff]  }
 0x13d   : > { %v5502_v47 = vld [vmem:[%s5797_s30 + $0x464] ss:$16 sps:$4 sm:$0xff]  }
 0x13e   : > { %2278 = vmatmul.mubr.bf16.gmra.mrb[124].mxu1 %v5482_v39  ;;  %5062 = vst [vmem:[%s5995_s11 + $0x18] sm:$0xff] %v4758_v50   ;;  %v3230_v54 = vmul.f32 %v5976_v24, %v3095_v51  ;;  %v3096_v55 = vmax.f32 %v2612_v52, 0.0  ;;  %2823 = vmatmul.mubr.bf16.gmra.mrb[124].mxu0 %v5483_v45  ;;  %v5504_v50 = vld [vmem:[%s5797_s30 + $0x46c] ss:$16 sps:$4 sm:$0xff]  }
 0x13f   : > { %2285 = vmatprep.mubr.bf16.mxu1 %v5484_v46  ;;  %2830 = vmatprep.mubr.bf16.mxu0 %v5486_v49  ;;  %v5501_v46 = vld [vmem:[%s5797_s30 + $0x448] ss:$16 sps:$4 sm:$0xff]  }
 0x140   : > { %v3231_v56 = vmul.f32 %v5976_v24, %v3096_v55  ;;  %v3365_v61 = vadd.f32 %v5983_v33, %v3230_v54 }
 0x141   : > { %v2071_v57 = vpop.f32.mrb[20].mxu1  ;;  %v2616_v58 = vpop.f32.mrb[20].mxu0 }
 0x142   : > { %v2073_v59 = vpop.f32.mrb[21].mxu1  ;;  %v3366_v62 = vadd.f32 %v5983_v33, %v3231_v56  ;;  %v2617_v63 = vadd.f32 %v2616_v58, %v2071_v57  ;;  %v2618_v0 = vpop.f32.mrb[21].mxu0 }
 0x143   : > { %v2074_v1 = vpop.f32.mrb[22].mxu1  ;;  %v2619_v4 = vpop.f32.mrb[22].mxu0 }
 0x144   : > { %v2076_v5 = vpop.f32.mrb[23].mxu1  ;;  %v4763_v7 = vpack.c.bf16 %v3366_v62, %v3365_v61  ;;  %v3097_v8 = vmax.f32 %v2617_v63, 0.0  ;;  %v2620_v9 = vadd.f32 %v2619_v4, %v2074_v1  ;;  %v2621_v10 = vpop.f32.mrb[23].mxu0  ;;  %v5506_v61 = vld [vmem:[%s5797_s30 + $0x460] ss:$16 sps:$4 sm:$0xff]  }
 0x145   : > { %v5508_v4 = vld [vmem:[%s5797_s30 + $0x484] ss:$16 sps:$4 sm:$0xff]  }
 0x146   : > { %2286 = vmatmul.mubr.bf16.gmra.mrb[128].mxu1 %v5488_v60  ;;  %5063 = vst [vmem:[%s5995_s11 + $0x20] sm:$0xff] %v4763_v7   ;;  %v3232_v11 = vmul.f32 %v5976_v24, %v3097_v8  ;;  %v3098_v12 = vmax.f32 %v2620_v9, 0.0  ;;  %2831 = vmatmul.mubr.bf16.gmra.mrb[128].mxu0 %v5489_v2  ;;  %v5510_v7 = vld [vmem:[%s5797_s30 + $0x48c] ss:$16 sps:$4 sm:$0xff]  }
 0x147   : > { %2293 = vmatprep.mubr.bf16.mxu1 %v5490_v3  ;;  %2838 = vmatprep.mubr.bf16.mxu0 %v5492_v6  ;;  %v5507_v3 = vld [vmem:[%s5797_s30 + $0x468] ss:$16 sps:$4 sm:$0xff]  }
 0x148   : > { %v3233_v13 = vmul.f32 %v5976_v24, %v3098_v12  ;;  %v3367_v18 = vadd.f32 %v5983_v33, %v3232_v11 }
 0x149   : > { %v2079_v14 = vpop.f32.mrb[24].mxu1  ;;  %v2624_v15 = vpop.f32.mrb[24].mxu0 }
 0x14a   : > { %v2081_v16 = vpop.f32.mrb[25].mxu1  ;;  %v3368_v19 = vadd.f32 %v5983_v33, %v3233_v13  ;;  %v2625_v20 = vadd.f32 %v2624_v15, %v2079_v14  ;;  %v2626_v21 = vpop.f32.mrb[25].mxu0 }
 0x14b   : > { %v2082_v22 = vpop.f32.mrb[26].mxu1  ;;  %v2627_v26 = vpop.f32.mrb[26].mxu0 }
 0x14c   : > { %v2084_v27 = vpop.f32.mrb[27].mxu1  ;;  %v4768_v29 = vpack.c.bf16 %v3368_v19, %v3367_v18  ;;  %v3099_v30 = vmax.f32 %v2625_v20, 0.0  ;;  %v2628_v31 = vadd.f32 %v2627_v26, %v2082_v22  ;;  %v2629_v32 = vpop.f32.mrb[27].mxu0  ;;  %v5512_v18 = vld [vmem:[%s5797_s30 + $0x480] ss:$16 sps:$4 sm:$0xff]  }
 0x14d   : > { %v5514_v26 = vld [vmem:[%s5797_s30 + $0x4a4] ss:$16 sps:$4 sm:$0xff]  }
 0x14e   : > { %2294 = vmatmul.mubr.bf16.gmra.mrb[132].mxu1 %v5494_v17  ;;  %5064 = vst [vmem:[%s5995_s11 + $0x28] sm:$0xff] %v4768_v29   ;;  %v3234_v34 = vmul.f32 %v5976_v24, %v3099_v30  ;;  %v3100_v35 = vmax.f32 %v2628_v31, 0.0  ;;  %2839 = vmatmul.mubr.bf16.gmra.mrb[132].mxu0 %v5495_v23  ;;  %v5516_v29 = vld [vmem:[%s5797_s30 + $0x4ac] ss:$16 sps:$4 sm:$0xff]  }
 0x14f   : > { %2301 = vmatprep.mubr.bf16.mxu1 %v5496_v25  ;;  %2846 = vmatprep.mubr.bf16.mxu0 %v5498_v28  ;;  %v5513_v25 = vld [vmem:[%s5797_s30 + $0x488] ss:$16 sps:$4 sm:$0xff]  }
 0x150   : > { %v3235_v36 = vmul.f32 %v5976_v24, %v3100_v35  ;;  %v3369_v41 = vadd.f32 %v5983_v33, %v3234_v34 }
 0x151   : > { %v2087_v37 = vpop.f32.mrb[28].mxu1  ;;  %v2632_v38 = vpop.f32.mrb[28].mxu0 }
 0x152   : > { %v2089_v39 = vpop.f32.mrb[29].mxu1  ;;  %v3370_v42 = vadd.f32 %v5983_v33, %v3235_v36  ;;  %v2633_v43 = vadd.f32 %v2632_v38, %v2087_v37  ;;  %v2634_v44 = vpop.f32.mrb[29].mxu0 }
 0x153   : > { %v2090_v45 = vpop.f32.mrb[30].mxu1  ;;  %v2635_v48 = vpop.f32.mrb[30].mxu0 }
 0x154   : > { %v2092_v49 = vpop.f32.mrb[31].mxu1  ;;  %v4773_v51 = vpack.c.bf16 %v3370_v42, %v3369_v41  ;;  %v3101_v52 = vmax.f32 %v2633_v43, 0.0  ;;  %v2636_v53 = vadd.f32 %v2635_v48, %v2090_v45  ;;  %v2637_v54 = vpop.f32.mrb[31].mxu0  ;;  %v5518_v41 = vld [vmem:[%s5797_s30 + $0x4a0] ss:$16 sps:$4 sm:$0xff]  }
 0x155   : > { %v5520_v48 = vld [vmem:[%s5797_s30 + $0x4c4] ss:$16 sps:$4 sm:$0xff]  }
 0x156   : > { %2302 = vmatmul.mubr.bf16.gmra.mrb[136].mxu1 %v5500_v40  ;;  %5065 = vst [vmem:[%s5995_s11 + $0x30] sm:$0xff] %v4773_v51   ;;  %v3236_v55 = vmul.f32 %v5976_v24, %v3101_v52  ;;  %v3102_v56 = vmax.f32 %v2636_v53, 0.0  ;;  %2847 = vmatmul.mubr.bf16.gmra.mrb[136].mxu0 %v5501_v46  ;;  %v5522_v51 = vld [vmem:[%s5797_s30 + $0x4cc] ss:$16 sps:$4 sm:$0xff]  }
 0x157   : > { %2309 = vmatprep.mubr.bf16.mxu1 %v5502_v47  ;;  %2854 = vmatprep.mubr.bf16.mxu0 %v5504_v50  ;;  %v5519_v47 = vld [vmem:[%s5797_s30 + $0x4a8] ss:$16 sps:$4 sm:$0xff]  }
 0x158   : > { %v3237_v57 = vmul.f32 %v5976_v24, %v3102_v56  ;;  %v3371_v62 = vadd.f32 %v5983_v33, %v3236_v55 }
 0x159   : > { %v2095_v58 = vpop.f32.mrb[32].mxu1  ;;  %v2640_v59 = vpop.f32.mrb[32].mxu0 }
 0x15a   : > { %v2097_v60 = vpop.f32.mrb[33].mxu1  ;;  %v3372_v63 = vadd.f32 %v5983_v33, %v3237_v57  ;;  %v2641_v0 = vadd.f32 %v2640_v59, %v2095_v58  ;;  %v2642_v1 = vpop.f32.mrb[33].mxu0 }
 0x15b   : > { %v2098_v2 = vpop.f32.mrb[34].mxu1  ;;  %v2643_v5 = vpop.f32.mrb[34].mxu0 }
 0x15c   : > { %v2100_v6 = vpop.f32.mrb[35].mxu1  ;;  %v4778_v8 = vpack.c.bf16 %v3372_v63, %v3371_v62  ;;  %v3103_v9 = vmax.f32 %v2641_v0, 0.0  ;;  %v2644_v10 = vadd.f32 %v2643_v5, %v2098_v2  ;;  %v2645_v11 = vpop.f32.mrb[35].mxu0  ;;  %v5524_v62 = vld [vmem:[%s5797_s30 + $0x4c0] ss:$16 sps:$4 sm:$0xff]  }
 0x15d   : > { %v5526_v5 = vld [vmem:[%s5797_s30 + $0x4e4] ss:$16 sps:$4 sm:$0xff]  }
 0x15e   : > { %2310 = vmatmul.mubr.bf16.gmra.mrb[140].mxu1 %v5506_v61  ;;  %5066 = vst [vmem:[%s5995_s11 + $0x38] sm:$0xff] %v4778_v8   ;;  %v3238_v12 = vmul.f32 %v5976_v24, %v3103_v9  ;;  %v3104_v13 = vmax.f32 %v2644_v10, 0.0  ;;  %2855 = vmatmul.mubr.bf16.gmra.mrb[140].mxu0 %v5507_v3  ;;  %v5528_v8 = vld [vmem:[%s5797_s30 + $0x4ec] ss:$16 sps:$4 sm:$0xff]  }
 0x15f   : > { %2317 = vmatprep.mubr.bf16.mxu1 %v5508_v4  ;;  %2862 = vmatprep.mubr.bf16.mxu0 %v5510_v7  ;;  %v5525_v4 = vld [vmem:[%s5797_s30 + $0x4c8] ss:$16 sps:$4 sm:$0xff]  }
 0x160   : > { %v3239_v14 = vmul.f32 %v5976_v24, %v3104_v13  ;;  %v3373_v19 = vadd.f32 %v5983_v33, %v3238_v12 }
 0x161   : > { %v2103_v15 = vpop.f32.mrb[36].mxu1  ;;  %v2648_v16 = vpop.f32.mrb[36].mxu0 }
 0x162   : > { %v2105_v17 = vpop.f32.mrb[37].mxu1  ;;  %v3374_v20 = vadd.f32 %v5983_v33, %v3239_v14  ;;  %v2649_v21 = vadd.f32 %v2648_v16, %v2103_v15  ;;  %v2650_v22 = vpop.f32.mrb[37].mxu0 }
 0x163   : > { %v2106_v23 = vpop.f32.mrb[38].mxu1  ;;  %v2651_v27 = vpop.f32.mrb[38].mxu0 }
 0x164   : > { %v2108_v28 = vpop.f32.mrb[39].mxu1  ;;  %v4783_v30 = vpack.c.bf16 %v3374_v20, %v3373_v19  ;;  %v3105_v31 = vmax.f32 %v2649_v21, 0.0  ;;  %v2652_v32 = vadd.f32 %v2651_v27, %v2106_v23  ;;  %v2653_v34 = vpop.f32.mrb[39].mxu0  ;;  %v5530_v19 = vld [vmem:[%s5797_s30 + $0x4e0] ss:$16 sps:$4 sm:$0xff]  }
 0x165   : > { %v5532_v27 = vld [vmem:[%s5797_s30 + $0x504] ss:$16 sps:$4 sm:$0xff]  }
 0x166   : > { %2318 = vmatmul.mubr.bf16.gmra.mrb[144].mxu1 %v5512_v18  ;;  %5067 = vst [vmem:[%s5995_s11 + $0x40] sm:$0xff] %v4783_v30   ;;  %v3240_v35 = vmul.f32 %v5976_v24, %v3105_v31  ;;  %v3106_v36 = vmax.f32 %v2652_v32, 0.0  ;;  %2863 = vmatmul.mubr.bf16.gmra.mrb[144].mxu0 %v5513_v25  ;;  %v5534_v30 = vld [vmem:[%s5797_s30 + $0x50c] ss:$16 sps:$4 sm:$0xff]  }
 0x167   : > { %2325 = vmatprep.mubr.bf16.mxu1 %v5514_v26  ;;  %2870 = vmatprep.mubr.bf16.mxu0 %v5516_v29  ;;  %v5531_v26 = vld [vmem:[%s5797_s30 + $0x4e8] ss:$16 sps:$4 sm:$0xff]  }
 0x168   : > { %v3241_v37 = vmul.f32 %v5976_v24, %v3106_v36  ;;  %v3375_v42 = vadd.f32 %v5983_v33, %v3240_v35 }
 0x169   : > { %v2111_v38 = vpop.f32.mrb[40].mxu1  ;;  %v2656_v39 = vpop.f32.mrb[40].mxu0 }
 0x16a   : > { %v2113_v40 = vpop.f32.mrb[41].mxu1  ;;  %v3376_v43 = vadd.f32 %v5983_v33, %v3241_v37  ;;  %v2657_v44 = vadd.f32 %v2656_v39, %v2111_v38  ;;  %v2658_v45 = vpop.f32.mrb[41].mxu0 }
 0x16b   : > { %v2114_v46 = vpop.f32.mrb[42].mxu1  ;;  %v2659_v49 = vpop.f32.mrb[42].mxu0 }
 0x16c   : > { %v2116_v50 = vpop.f32.mrb[43].mxu1  ;;  %v4788_v52 = vpack.c.bf16 %v3376_v43, %v3375_v42  ;;  %v3107_v53 = vmax.f32 %v2657_v44, 0.0  ;;  %v2660_v54 = vadd.f32 %v2659_v49, %v2114_v46  ;;  %v2661_v55 = vpop.f32.mrb[43].mxu0  ;;  %v5536_v42 = vld [vmem:[%s5797_s30 + $0x500] ss:$16 sps:$4 sm:$0xff]  }
 0x16d   : > { %v5538_v49 = vld [vmem:[%s5797_s30 + $0x524] ss:$16 sps:$4 sm:$0xff]  }
 0x16e   : > { %2326 = vmatmul.mubr.bf16.gmra.mrb[148].mxu1 %v5518_v41  ;;  %5068 = vst [vmem:[%s5995_s11 + $0x48] sm:$0xff] %v4788_v52   ;;  %v3242_v56 = vmul.f32 %v5976_v24, %v3107_v53  ;;  %v3108_v57 = vmax.f32 %v2660_v54, 0.0  ;;  %2871 = vmatmul.mubr.bf16.gmra.mrb[148].mxu0 %v5519_v47  ;;  %v5540_v52 = vld [vmem:[%s5797_s30 + $0x52c] ss:$16 sps:$4 sm:$0xff]  }
 0x16f   : > { %2333 = vmatprep.mubr.bf16.mxu1 %v5520_v48  ;;  %2878 = vmatprep.mubr.bf16.mxu0 %v5522_v51  ;;  %v5537_v48 = vld [vmem:[%s5797_s30 + $0x508] ss:$16 sps:$4 sm:$0xff]  }
 0x170   : > { %v3243_v58 = vmul.f32 %v5976_v24, %v3108_v57  ;;  %v3377_v63 = vadd.f32 %v5983_v33, %v3242_v56 }
 0x171   : > { %v2119_v59 = vpop.f32.mrb[44].mxu1  ;;  %v2664_v60 = vpop.f32.mrb[44].mxu0 }
 0x172   : > { %v2121_v61 = vpop.f32.mrb[45].mxu1  ;;  %v3378_v0 = vadd.f32 %v5983_v33, %v3243_v58  ;;  %v2665_v1 = vadd.f32 %v2664_v60, %v2119_v59  ;;  %v2666_v2 = vpop.f32.mrb[45].mxu0 }
 0x173   : > { %v2122_v3 = vpop.f32.mrb[46].mxu1  ;;  %v2667_v6 = vpop.f32.mrb[46].mxu0 }
 0x174   : > { %v2124_v7 = vpop.f32.mrb[47].mxu1  ;;  %v4793_v9 = vpack.c.bf16 %v3378_v0, %v3377_v63  ;;  %v3109_v10 = vmax.f32 %v2665_v1, 0.0  ;;  %v2668_v11 = vadd.f32 %v2667_v6, %v2122_v3  ;;  %v2669_v12 = vpop.f32.mrb[47].mxu0  ;;  %v5542_v63 = vld [vmem:[%s5797_s30 + $0x520] ss:$16 sps:$4 sm:$0xff]  }
 0x175   : > { %v5544_v6 = vld [vmem:[%s5797_s30 + $0x544] ss:$16 sps:$4 sm:$0xff]  }
 0x176   : > { %2334 = vmatmul.mubr.bf16.gmra.mrb[152].mxu1 %v5524_v62  ;;  %5069 = vst [vmem:[%s5995_s11 + $0x50] sm:$0xff] %v4793_v9   ;;  %v3244_v13 = vmul.f32 %v5976_v24, %v3109_v10  ;;  %v3110_v14 = vmax.f32 %v2668_v11, 0.0  ;;  %2879 = vmatmul.mubr.bf16.gmra.mrb[152].mxu0 %v5525_v4  ;;  %v5546_v9 = vld [vmem:[%s5797_s30 + $0x54c] ss:$16 sps:$4 sm:$0xff]  }
 0x177   : > { %2341 = vmatprep.mubr.bf16.mxu1 %v5526_v5  ;;  %2886 = vmatprep.mubr.bf16.mxu0 %v5528_v8  ;;  %v5543_v5 = vld [vmem:[%s5797_s30 + $0x528] ss:$16 sps:$4 sm:$0xff]  }
 0x178   : > { %v3245_v15 = vmul.f32 %v5976_v24, %v3110_v14  ;;  %v3379_v20 = vadd.f32 %v5983_v33, %v3244_v13 }
 0x179   : > { %v2127_v16 = vpop.f32.mrb[48].mxu1  ;;  %v2672_v17 = vpop.f32.mrb[48].mxu0 }
 0x17a   : > { %v2129_v18 = vpop.f32.mrb[49].mxu1  ;;  %v3380_v21 = vadd.f32 %v5983_v33, %v3245_v15  ;;  %v2673_v22 = vadd.f32 %v2672_v17, %v2127_v16  ;;  %v2674_v23 = vpop.f32.mrb[49].mxu0 }
 0x17b   : > { %v2130_v25 = vpop.f32.mrb[50].mxu1  ;;  %v2675_v28 = vpop.f32.mrb[50].mxu0 }
 0x17c   : > { %v2132_v29 = vpop.f32.mrb[51].mxu1  ;;  %v4798_v31 = vpack.c.bf16 %v3380_v21, %v3379_v20  ;;  %v3111_v32 = vmax.f32 %v2673_v22, 0.0  ;;  %v2676_v34 = vadd.f32 %v2675_v28, %v2130_v25  ;;  %v2677_v35 = vpop.f32.mrb[51].mxu0  ;;  %v5548_v20 = vld [vmem:[%s5797_s30 + $0x540] ss:$16 sps:$4 sm:$0xff]  }
 0x17d   : > { %v5550_v28 = vld [vmem:[%s5797_s30 + $0x564] ss:$16 sps:$4 sm:$0xff]  }
 0x17e   : > { %2342 = vmatmul.mubr.bf16.gmra.mrb[156].mxu1 %v5530_v19  ;;  %5070 = vst [vmem:[%s5995_s11 + $0x58] sm:$0xff] %v4798_v31   ;;  %v3246_v36 = vmul.f32 %v5976_v24, %v3111_v32  ;;  %v3112_v37 = vmax.f32 %v2676_v34, 0.0  ;;  %2887 = vmatmul.mubr.bf16.gmra.mrb[156].mxu0 %v5531_v26  ;;  %v5552_v31 = vld [vmem:[%s5797_s30 + $0x56c] ss:$16 sps:$4 sm:$0xff]  }
 0x17f   : > { %2349 = vmatprep.mubr.bf16.mxu1 %v5532_v27  ;;  %2894 = vmatprep.mubr.bf16.mxu0 %v5534_v30  ;;  %v5549_v27 = vld [vmem:[%s5797_s30 + $0x548] ss:$16 sps:$4 sm:$0xff]  }
 0x180   : > { %v3247_v38 = vmul.f32 %v5976_v24, %v3112_v37  ;;  %v3381_v43 = vadd.f32 %v5983_v33, %v3246_v36 }
 0x181   : > { %v2135_v39 = vpop.f32.mrb[52].mxu1  ;;  %v2680_v40 = vpop.f32.mrb[52].mxu0 }
 0x182   : > { %v2137_v41 = vpop.f32.mrb[53].mxu1  ;;  %v3382_v44 = vadd.f32 %v5983_v33, %v3247_v38  ;;  %v2681_v45 = vadd.f32 %v2680_v40, %v2135_v39  ;;  %v2682_v46 = vpop.f32.mrb[53].mxu0 }
 0x183   : > { %v2138_v47 = vpop.f32.mrb[54].mxu1  ;;  %v2683_v50 = vpop.f32.mrb[54].mxu0 }
 0x184   : > { %v2140_v51 = vpop.f32.mrb[55].mxu1  ;;  %v4803_v53 = vpack.c.bf16 %v3382_v44, %v3381_v43  ;;  %v3113_v54 = vmax.f32 %v2681_v45, 0.0  ;;  %v2684_v55 = vadd.f32 %v2683_v50, %v2138_v47  ;;  %v2685_v56 = vpop.f32.mrb[55].mxu0  ;;  %v5554_v43 = vld [vmem:[%s5797_s30 + $0x560] ss:$16 sps:$4 sm:$0xff]  }
 0x185   : > { %v5556_v50 = vld [vmem:[%s5797_s30 + $0x584] ss:$16 sps:$4 sm:$0xff]  }
 0x186   : > { %2350 = vmatmul.mubr.bf16.gmra.mrb[160].mxu1 %v5536_v42  ;;  %5071 = vst [vmem:[%s5995_s11 + $0x60] sm:$0xff] %v4803_v53   ;;  %v3248_v57 = vmul.f32 %v5976_v24, %v3113_v54  ;;  %v3114_v58 = vmax.f32 %v2684_v55, 0.0  ;;  %2895 = vmatmul.mubr.bf16.gmra.mrb[160].mxu0 %v5537_v48  ;;  %v5558_v53 = vld [vmem:[%s5797_s30 + $0x58c] ss:$16 sps:$4 sm:$0xff]  }
 0x187   : > { %2357 = vmatprep.mubr.bf16.mxu1 %v5538_v49  ;;  %2902 = vmatprep.mubr.bf16.mxu0 %v5540_v52  ;;  %v5555_v49 = vld [vmem:[%s5797_s30 + $0x568] ss:$16 sps:$4 sm:$0xff]  }
 0x188   : > { %v3249_v59 = vmul.f32 %v5976_v24, %v3114_v58  ;;  %v3383_v0 = vadd.f32 %v5983_v33, %v3248_v57 }
 0x189   : > { %v2143_v60 = vpop.f32.mrb[56].mxu1  ;;  %v2688_v61 = vpop.f32.mrb[56].mxu0 }
 0x18a   : > { %v2145_v62 = vpop.f32.mrb[57].mxu1  ;;  %v3384_v1 = vadd.f32 %v5983_v33, %v3249_v59  ;;  %v2689_v2 = vadd.f32 %v2688_v61, %v2143_v60  ;;  %v2690_v3 = vpop.f32.mrb[57].mxu0 }
 0x18b   : > { %v2146_v4 = vpop.f32.mrb[58].mxu1  ;;  %v2691_v7 = vpop.f32.mrb[58].mxu0 }
 0x18c   : > { %v2148_v8 = vpop.f32.mrb[59].mxu1  ;;  %v4808_v10 = vpack.c.bf16 %v3384_v1, %v3383_v0  ;;  %v3115_v11 = vmax.f32 %v2689_v2, 0.0  ;;  %v2692_v12 = vadd.f32 %v2691_v7, %v2146_v4  ;;  %v2693_v13 = vpop.f32.mrb[59].mxu0  ;;  %v5560_v0 = vld [vmem:[%s5797_s30 + $0x580] ss:$16 sps:$4 sm:$0xff]  }
 0x18d   : > { %v5562_v7 = vld [vmem:[%s5797_s30 + $0x5a4] ss:$16 sps:$4 sm:$0xff]  }
 0x18e   : > { %2358 = vmatmul.mubr.bf16.gmra.mrb[164].mxu1 %v5542_v63  ;;  %5072 = vst [vmem:[%s5995_s11 + $0x68] sm:$0xff] %v4808_v10   ;;  %v3250_v14 = vmul.f32 %v5976_v24, %v3115_v11  ;;  %v3116_v15 = vmax.f32 %v2692_v12, 0.0  ;;  %2903 = vmatmul.mubr.bf16.gmra.mrb[164].mxu0 %v5543_v5  ;;  %v5564_v10 = vld [vmem:[%s5797_s30 + $0x5ac] ss:$16 sps:$4 sm:$0xff]  }
 0x18f   : > { %2365 = vmatprep.mubr.bf16.mxu1 %v5544_v6  ;;  %2910 = vmatprep.mubr.bf16.mxu0 %v5546_v9  ;;  %v5561_v6 = vld [vmem:[%s5797_s30 + $0x588] ss:$16 sps:$4 sm:$0xff]  }
 0x190   : > { %v3251_v16 = vmul.f32 %v5976_v24, %v3116_v15  ;;  %v3385_v21 = vadd.f32 %v5983_v33, %v3250_v14 }
 0x191   : > { %v2151_v17 = vpop.f32.mrb[60].mxu1  ;;  %v2696_v18 = vpop.f32.mrb[60].mxu0 }
 0x192   : > { %v2153_v19 = vpop.f32.mrb[61].mxu1  ;;  %v3386_v22 = vadd.f32 %v5983_v33, %v3251_v16  ;;  %v2697_v23 = vadd.f32 %v2696_v18, %v2151_v17  ;;  %v2698_v25 = vpop.f32.mrb[61].mxu0 }
 0x193   : > { %v2154_v26 = vpop.f32.mrb[62].mxu1  ;;  %v2699_v29 = vpop.f32.mrb[62].mxu0 }
 0x194   : > { %v2156_v30 = vpop.f32.mrb[63].mxu1  ;;  %v4813_v32 = vpack.c.bf16 %v3386_v22, %v3385_v21  ;;  %v3117_v34 = vmax.f32 %v2697_v23, 0.0  ;;  %v2700_v35 = vadd.f32 %v2699_v29, %v2154_v26  ;;  %v2701_v36 = vpop.f32.mrb[63].mxu0  ;;  %v5566_v21 = vld [vmem:[%s5797_s30 + $0x5a0] ss:$16 sps:$4 sm:$0xff]  }
 0x195   : > { %v5568_v29 = vld [vmem:[%s5797_s30 + $0x5c4] ss:$16 sps:$4 sm:$0xff]  }
 0x196   : > { %2366 = vmatmul.mubr.bf16.gmra.mrb[168].mxu1 %v5548_v20  ;;  %5073 = vst [vmem:[%s5995_s11 + $0x70] sm:$0xff] %v4813_v32   ;;  %v3252_v37 = vmul.f32 %v5976_v24, %v3117_v34  ;;  %v3118_v38 = vmax.f32 %v2700_v35, 0.0  ;;  %2911 = vmatmul.mubr.bf16.gmra.mrb[168].mxu0 %v5549_v27  ;;  %v5570_v32 = vld [vmem:[%s5797_s30 + $0x5cc] ss:$16 sps:$4 sm:$0xff]  }
 0x197   : > { %2373 = vmatprep.mubr.bf16.mxu1 %v5550_v28  ;;  %2918 = vmatprep.mubr.bf16.mxu0 %v5552_v31  ;;  %v5567_v28 = vld [vmem:[%s5797_s30 + $0x5a8] ss:$16 sps:$4 sm:$0xff]  }
 0x198   : > { %v3253_v39 = vmul.f32 %v5976_v24, %v3118_v38  ;;  %v3387_v44 = vadd.f32 %v5983_v33, %v3252_v37 }
 0x199   : > { %v2159_v40 = vpop.f32.mrb[64].mxu1  ;;  %v2704_v41 = vpop.f32.mrb[64].mxu0 }
 0x19a   : > { %v2161_v42 = vpop.f32.mrb[65].mxu1  ;;  %v3388_v45 = vadd.f32 %v5983_v33, %v3253_v39  ;;  %v2705_v46 = vadd.f32 %v2704_v41, %v2159_v40  ;;  %v2706_v47 = vpop.f32.mrb[65].mxu0 }
 0x19b   : > { %v2162_v48 = vpop.f32.mrb[66].mxu1  ;;  %v2707_v51 = vpop.f32.mrb[66].mxu0 }
 0x19c   : > { %v2164_v52 = vpop.f32.mrb[67].mxu1  ;;  %v4818_v54 = vpack.c.bf16 %v3388_v45, %v3387_v44  ;;  %v3119_v55 = vmax.f32 %v2705_v46, 0.0  ;;  %v2708_v56 = vadd.f32 %v2707_v51, %v2162_v48  ;;  %v2709_v57 = vpop.f32.mrb[67].mxu0  ;;  %v5572_v44 = vld [vmem:[%s5797_s30 + $0x5c0] ss:$16 sps:$4 sm:$0xff]  }
 0x19d   : > { %v5574_v51 = vld [vmem:[%s5797_s30 + $0x5e4] ss:$16 sps:$4 sm:$0xff]  }
 0x19e   : > { %2374 = vmatmul.mubr.bf16.gmra.mrb[172].mxu1 %v5554_v43  ;;  %5074 = vst [vmem:[%s5995_s11 + $0x78] sm:$0xff] %v4818_v54   ;;  %v3254_v58 = vmul.f32 %v5976_v24, %v3119_v55  ;;  %v3120_v59 = vmax.f32 %v2708_v56, 0.0  ;;  %2919 = vmatmul.mubr.bf16.gmra.mrb[172].mxu0 %v5555_v49  ;;  %v5576_v54 = vld [vmem:[%s5797_s30 + $0x5ec] ss:$16 sps:$4 sm:$0xff]  }
 0x19f   : > { %2381 = vmatprep.mubr.bf16.mxu1 %v5556_v50  ;;  %2926 = vmatprep.mubr.bf16.mxu0 %v5558_v53  ;;  %v5573_v50 = vld [vmem:[%s5797_s30 + $0x5c8] ss:$16 sps:$4 sm:$0xff]  }
 0x1a0   : > { %v3255_v60 = vmul.f32 %v5976_v24, %v3120_v59  ;;  %v3389_v1 = vadd.f32 %v5983_v33, %v3254_v58 }
 0x1a1   : > { %v2167_v61 = vpop.f32.mrb[68].mxu1  ;;  %v2712_v62 = vpop.f32.mrb[68].mxu0 }
 0x1a2   : > { %v2169_v63 = vpop.f32.mrb[69].mxu1  ;;  %v3390_v2 = vadd.f32 %v5983_v33, %v3255_v60  ;;  %v2713_v3 = vadd.f32 %v2712_v62, %v2167_v61  ;;  %v2714_v4 = vpop.f32.mrb[69].mxu0 }
 0x1a3   : > { %v2170_v5 = vpop.f32.mrb[70].mxu1  ;;  %v2715_v8 = vpop.f32.mrb[70].mxu0 }
 0x1a4   : > { %v2172_v9 = vpop.f32.mrb[71].mxu1  ;;  %v4823_v11 = vpack.c.bf16 %v3390_v2, %v3389_v1  ;;  %v3121_v12 = vmax.f32 %v2713_v3, 0.0  ;;  %v2716_v13 = vadd.f32 %v2715_v8, %v2170_v5  ;;  %v2717_v14 = vpop.f32.mrb[71].mxu0  ;;  %v5578_v1 = vld [vmem:[%s5797_s30 + $0x5e0] ss:$16 sps:$4 sm:$0xff]  }
 0x1a5   : > { %v5580_v8 = vld [vmem:[%s5797_s30 + $0x604] ss:$16 sps:$4 sm:$0xff]  }
 0x1a6   : > { %2382 = vmatmul.mubr.bf16.gmra.mrb[176].mxu1 %v5560_v0  ;;  %5075 = vst [vmem:[%s5995_s11 + $0x80] sm:$0xff] %v4823_v11   ;;  %v3256_v15 = vmul.f32 %v5976_v24, %v3121_v12  ;;  %v3122_v16 = vmax.f32 %v2716_v13, 0.0  ;;  %2927 = vmatmul.mubr.bf16.gmra.mrb[176].mxu0 %v5561_v6  ;;  %v5582_v11 = vld [vmem:[%s5797_s30 + $0x60c] ss:$16 sps:$4 sm:$0xff]  }
 0x1a7   : > { %2389 = vmatprep.mubr.bf16.mxu1 %v5562_v7  ;;  %2934 = vmatprep.mubr.bf16.mxu0 %v5564_v10  ;;  %v5579_v7 = vld [vmem:[%s5797_s30 + $0x5e8] ss:$16 sps:$4 sm:$0xff]  }
 0x1a8   : > { %v3257_v17 = vmul.f32 %v5976_v24, %v3122_v16  ;;  %v3391_v22 = vadd.f32 %v5983_v33, %v3256_v15  ;;  %v6173_v15 = vld [vmem:[%s6477_s2] ss:$0 sm:$0xff] }
 0x1a9   : > { %v2175_v18 = vpop.f32.mrb[72].mxu1  ;;  %v2720_v19 = vpop.f32.mrb[72].mxu0 }
 0x1aa   : > { %v2177_v20 = vpop.f32.mrb[73].mxu1  ;;  %v3392_v23 = vadd.f32 %v5983_v33, %v3257_v17  ;;  %v2721_v25 = vadd.f32 %v2720_v19, %v2175_v18  ;;  %v2722_v26 = vpop.f32.mrb[73].mxu0 }
 0x1ab   : > { %v2178_v27 = vpop.f32.mrb[74].mxu1  ;;  %v2723_v30 = vpop.f32.mrb[74].mxu0 }
 0x1ac   : > { %v2180_v31 = vpop.f32.mrb[75].mxu1  ;;  %v4828_v34 = vpack.c.bf16 %v3392_v23, %v3391_v22  ;;  %v3123_v35 = vmax.f32 %v2721_v25, 0.0  ;;  %v2724_v36 = vadd.f32 %v2723_v30, %v2178_v27  ;;  %v2725_v37 = vpop.f32.mrb[75].mxu0  ;;  %v6181_v22 = vld [vmem:[%s6478_s3] ss:$0 sm:$0xff] }
 0x1ad   : > { %v5586_v30 = vld [vmem:[%s5797_s30 + $0x624] ss:$16 sps:$4 sm:$0xff]  }
 0x1ae   : > { %2390 = vmatmul.mubr.bf16.gmra.mrb[180].mxu1 %v5566_v21  ;;  %5076 = vst [vmem:[%s5995_s11 + $0x88] sm:$0xff] %v4828_v34   ;;  %v3258_v38 = vmul.f32 %v5976_v24, %v3123_v35  ;;  %v3124_v39 = vmax.f32 %v2724_v36, 0.0  ;;  %2935 = vmatmul.mubr.bf16.gmra.mrb[180].mxu0 %v5567_v28  ;;  %v5584_v21 = vld [vmem:[%s5797_s30 + $0x600] ss:$16 sps:$4 sm:$0xff]   ;;  %v5588_v34 = vld [vmem:[%s5797_s30 + $0x62c] ss:$16 sps:$4 sm:$0xff]  }
 0x1af   : > { %2397 = vmatprep.mubr.bf16.mxu1 %v5568_v29  ;;  %2942 = vmatprep.mubr.bf16.mxu0 %v5570_v32  ;;  %v5585_v29 = vld [vmem:[%s5797_s30 + $0x608] ss:$16 sps:$4 sm:$0xff]  }
 0x1b0   : > { %v3259_v40 = vmul.f32 %v5976_v24, %v3124_v39  ;;  %v3393_v45 = vadd.f32 %v5983_v33, %v3258_v38 }
 0x1b1   : > { %v2183_v41 = vpop.f32.mrb[76].mxu1  ;;  %v2728_v42 = vpop.f32.mrb[76].mxu0 }
 0x1b2   : > { %v2185_v43 = vpop.f32.mrb[77].mxu1  ;;  %v3394_v46 = vadd.f32 %v5983_v33, %v3259_v40  ;;  %v2729_v47 = vadd.f32 %v2728_v42, %v2183_v41  ;;  %v2730_v48 = vpop.f32.mrb[77].mxu0 }
 0x1b3   : > { %v2186_v49 = vpop.f32.mrb[78].mxu1  ;;  %v2731_v52 = vpop.f32.mrb[78].mxu0 }
 0x1b4   : > { %v2188_v53 = vpop.f32.mrb[79].mxu1  ;;  %v4833_v55 = vpack.c.bf16 %v3394_v46, %v3393_v45  ;;  %v3125_v56 = vmax.f32 %v2729_v47, 0.0  ;;  %v2732_v57 = vadd.f32 %v2731_v52, %v2186_v49  ;;  %v2733_v58 = vpop.f32.mrb[79].mxu0  ;;  %v5590_v45 = vld [vmem:[%s5797_s30 + $0x620] ss:$16 sps:$4 sm:$0xff]  }
 0x1b5   : > { %v5592_v52 = vld [vmem:[%s5797_s30 + $0x644] ss:$16 sps:$4 sm:$0xff]  }
 0x1b6   : > { %2398 = vmatmul.mubr.bf16.gmra.mrb[184].mxu1 %v5572_v44  ;;  %5077 = vst [vmem:[%s5995_s11 + $0x90] sm:$0xff] %v4833_v55   ;;  %v3260_v59 = vmul.f32 %v5976_v24, %v3125_v56  ;;  %v3126_v60 = vmax.f32 %v2732_v57, 0.0  ;;  %2943 = vmatmul.mubr.bf16.gmra.mrb[184].mxu0 %v5573_v50  ;;  %v5594_v55 = vld [vmem:[%s5797_s30 + $0x64c] ss:$16 sps:$4 sm:$0xff]  }
 0x1b7   : > { %2405 = vmatprep.mubr.bf16.mxu1 %v5574_v51  ;;  %2950 = vmatprep.mubr.bf16.mxu0 %v5576_v54  ;;  %v5591_v51 = vld [vmem:[%s5797_s30 + $0x628] ss:$16 sps:$4 sm:$0xff]  }
 0x1b8   : > { %v3261_v61 = vmul.f32 %v5976_v24, %v3126_v60  ;;  %v3395_v2 = vadd.f32 %v5983_v33, %v3260_v59 }
 0x1b9   : > { %v2191_v62 = vpop.f32.mrb[80].mxu1  ;;  %v2736_v63 = vpop.f32.mrb[80].mxu0 }
 0x1ba   : > { %v2193_v0 = vpop.f32.mrb[81].mxu1  ;;  %v3396_v3 = vadd.f32 %v5983_v33, %v3261_v61  ;;  %v2737_v4 = vadd.f32 %v2736_v63, %v2191_v62  ;;  %v2738_v5 = vpop.f32.mrb[81].mxu0 }
 0x1bb   : > { %v2194_v6 = vpop.f32.mrb[82].mxu1  ;;  %v2739_v9 = vpop.f32.mrb[82].mxu0 }
 0x1bc   : > { %v2196_v10 = vpop.f32.mrb[83].mxu1  ;;  %v4838_v12 = vpack.c.bf16 %v3396_v3, %v3395_v2  ;;  %v3127_v24 = vmax.f32 %v2737_v4, 0.0  ;;  %v2740_v13 = vadd.f32 %v2739_v9, %v2194_v6  ;;  %v2741_v14 = vpop.f32.mrb[83].mxu0  ;;  %v5596_v2 = vld [vmem:[%s5797_s30 + $0x640] ss:$16 sps:$4 sm:$0xff]  }
 0x1bd   : > { %v5598_v9 = vld [vmem:[%s5797_s30 + $0x664] ss:$16 sps:$4 sm:$0xff]  }
 0x1be   : > { %2406 = vmatmul.mubr.bf16.gmra.mrb[188].mxu1 %v5578_v1  ;;  %5078 = vst [vmem:[%s5995_s11 + $0x98] sm:$0xff] %v4838_v12   ;;  %v3262_v33 = vmul.f32 %v6173_v15, %v3127_v24  ;;  %v3128_v16 = vmax.f32 %v2740_v13, 0.0  ;;  %2951 = vmatmul.mubr.bf16.gmra.mrb[188].mxu0 %v5579_v7  ;;  %v5600_v12 = vld [vmem:[%s5797_s30 + $0x66c] ss:$16 sps:$4 sm:$0xff]  }
 0x1bf   : > { %2413 = vmatprep.mubr.bf16.mxu1 %v5580_v8  ;;  %2958 = vmatprep.mubr.bf16.mxu0 %v5582_v11  ;;  %v5597_v8 = vld [vmem:[%s5797_s30 + $0x648] ss:$16 sps:$4 sm:$0xff]  }
 0x1c0   : > { %v3263_v17 = vmul.f32 %v6173_v15, %v3128_v16  ;;  %v3397_v23 = vadd.f32 %v6181_v22, %v3262_v33 }
 0x1c1   : > { %v2199_v18 = vpop.f32.mrb[84].mxu1  ;;  %v2744_v19 = vpop.f32.mrb[84].mxu0 }
 0x1c2   : > { %v2201_v20 = vpop.f32.mrb[85].mxu1  ;;  %v3398_v25 = vadd.f32 %v6181_v22, %v3263_v17  ;;  %v2745_v26 = vadd.f32 %v2744_v19, %v2199_v18  ;;  %v2746_v27 = vpop.f32.mrb[85].mxu0 }
 0x1c3   : > { %v2202_v28 = vpop.f32.mrb[86].mxu1  ;;  %v2747_v31 = vpop.f32.mrb[86].mxu0 }
 0x1c4   : > { %v2204_v32 = vpop.f32.mrb[87].mxu1  ;;  %v4843_v35 = vpack.c.bf16 %v3398_v25, %v3397_v23  ;;  %v3129_v36 = vmax.f32 %v2745_v26, 0.0  ;;  %v2748_v37 = vadd.f32 %v2747_v31, %v2202_v28  ;;  %v2749_v38 = vpop.f32.mrb[87].mxu0  ;;  %v5602_v23 = vld [vmem:[%s5797_s30 + $0x660] ss:$16 sps:$4 sm:$0xff]  }
 0x1c5   : > { %v5604_v31 = vld [vmem:[%s5797_s30 + $0x684] ss:$16 sps:$4 sm:$0xff]  }
 0x1c6   : > { %2414 = vmatmul.mubr.bf16.gmra.mrb[192].mxu1 %v5584_v21  ;;  %5079 = vst [vmem:[%s5995_s11 + $0xa0] sm:$0xff] %v4843_v35   ;;  %v3264_v39 = vmul.f32 %v6173_v15, %v3129_v36  ;;  %v3130_v40 = vmax.f32 %v2748_v37, 0.0  ;;  %2959 = vmatmul.mubr.bf16.gmra.mrb[192].mxu0 %v5585_v29  ;;  %v5606_v35 = vld [vmem:[%s5797_s30 + $0x68c] ss:$16 sps:$4 sm:$0xff]  }
 0x1c7   : > { %2421 = vmatprep.mubr.bf16.mxu1 %v5586_v30  ;;  %2966 = vmatprep.mubr.bf16.mxu0 %v5588_v34  ;;  %v5603_v30 = vld [vmem:[%s5797_s30 + $0x668] ss:$16 sps:$4 sm:$0xff]  }
 0x1c8   : > { %v3265_v41 = vmul.f32 %v6173_v15, %v3130_v40  ;;  %v3399_v46 = vadd.f32 %v6181_v22, %v3264_v39 }
 0x1c9   : > { %v2207_v42 = vpop.f32.mrb[88].mxu1  ;;  %v2752_v43 = vpop.f32.mrb[88].mxu0 }
 0x1ca   : > { %v2209_v44 = vpop.f32.mrb[89].mxu1  ;;  %v3400_v47 = vadd.f32 %v6181_v22, %v3265_v41  ;;  %v2753_v48 = vadd.f32 %v2752_v43, %v2207_v42  ;;  %v2754_v49 = vpop.f32.mrb[89].mxu0 }
 0x1cb   : > { %v2210_v50 = vpop.f32.mrb[90].mxu1  ;;  %v2755_v53 = vpop.f32.mrb[90].mxu0 }
 0x1cc   : > { %v2212_v54 = vpop.f32.mrb[91].mxu1  ;;  %v4848_v56 = vpack.c.bf16 %v3400_v47, %v3399_v46  ;;  %v3131_v57 = vmax.f32 %v2753_v48, 0.0  ;;  %v2756_v58 = vadd.f32 %v2755_v53, %v2210_v50  ;;  %v2757_v59 = vpop.f32.mrb[91].mxu0  ;;  %v5608_v46 = vld [vmem:[%s5797_s30 + $0x680] ss:$16 sps:$4 sm:$0xff]  }
 0x1cd   : > { %v5610_v53 = vld [vmem:[%s5797_s30 + $0x6a4] ss:$16 sps:$4 sm:$0xff]  }
 0x1ce   : > { %2422 = vmatmul.mubr.bf16.gmra.mrb[196].mxu1 %v5590_v45  ;;  %5080 = vst [vmem:[%s5995_s11 + $0xa8] sm:$0xff] %v4848_v56   ;;  %v3266_v60 = vmul.f32 %v6173_v15, %v3131_v57  ;;  %v3132_v61 = vmax.f32 %v2756_v58, 0.0  ;;  %2967 = vmatmul.mubr.bf16.gmra.mrb[196].mxu0 %v5591_v51  ;;  %v5612_v56 = vld [vmem:[%s5797_s30 + $0x6ac] ss:$16 sps:$4 sm:$0xff]  }
 0x1cf   : > { %2429 = vmatprep.mubr.bf16.mxu1 %v5592_v52  ;;  %2974 = vmatprep.mubr.bf16.mxu0 %v5594_v55  ;;  %v5609_v52 = vld [vmem:[%s5797_s30 + $0x688] ss:$16 sps:$4 sm:$0xff]  }
 0x1d0   : > { %v3267_v62 = vmul.f32 %v6173_v15, %v3132_v61  ;;  %v3401_v3 = vadd.f32 %v6181_v22, %v3266_v60 }
 0x1d1   : > { %v2215_v63 = vpop.f32.mrb[92].mxu1  ;;  %v2760_v0 = vpop.f32.mrb[92].mxu0 }
 0x1d2   : > { %v2217_v1 = vpop.f32.mrb[93].mxu1  ;;  %v3402_v4 = vadd.f32 %v6181_v22, %v3267_v62  ;;  %v2761_v5 = vadd.f32 %v2760_v0, %v2215_v63  ;;  %v2762_v6 = vpop.f32.mrb[93].mxu0 }
 0x1d3   : > { %v2218_v7 = vpop.f32.mrb[94].mxu1  ;;  %v2763_v10 = vpop.f32.mrb[94].mxu0 }
 0x1d4   : > { %v2220_v11 = vpop.f32.mrb[95].mxu1  ;;  %v4853_v24 = vpack.c.bf16 %v3402_v4, %v3401_v3  ;;  %v3133_v13 = vmax.f32 %v2761_v5, 0.0  ;;  %v2764_v14 = vadd.f32 %v2763_v10, %v2218_v7  ;;  %v2765_v33 = vpop.f32.mrb[95].mxu0  ;;  %v5614_v3 = vld [vmem:[%s5797_s30 + $0x6a0] ss:$16 sps:$4 sm:$0xff]  }
 0x1d5   : > { %v5616_v10 = vld [vmem:[%s5797_s30 + $0x6c4] ss:$16 sps:$4 sm:$0xff]  }
 0x1d6   : > { %2430 = vmatmul.mubr.bf16.gmra.mrb[200].mxu1 %v5596_v2  ;;  %5081 = vst [vmem:[%s5995_s11 + $0xb0] sm:$0xff] %v4853_v24   ;;  %v3268_v16 = vmul.f32 %v6173_v15, %v3133_v13  ;;  %v3134_v17 = vmax.f32 %v2764_v14, 0.0  ;;  %2975 = vmatmul.mubr.bf16.gmra.mrb[200].mxu0 %v5597_v8  ;;  %v5618_v24 = vld [vmem:[%s5797_s30 + $0x6cc] ss:$16 sps:$4 sm:$0xff]  }
 0x1d7   : > { %2437 = vmatprep.mubr.bf16.mxu1 %v5598_v9  ;;  %2982 = vmatprep.mubr.bf16.mxu0 %v5600_v12  ;;  %v5615_v9 = vld [vmem:[%s5797_s30 + $0x6a8] ss:$16 sps:$4 sm:$0xff]  }
 0x1d8   : > { %v3269_v18 = vmul.f32 %v6173_v15, %v3134_v17  ;;  %v3403_v25 = vadd.f32 %v6181_v22, %v3268_v16 }
 0x1d9   : > { %v2223_v19 = vpop.f32.mrb[96].mxu1  ;;  %v2768_v20 = vpop.f32.mrb[96].mxu0 }
 0x1da   : > { %v2225_v21 = vpop.f32.mrb[97].mxu1  ;;  %v3404_v26 = vadd.f32 %v6181_v22, %v3269_v18  ;;  %v2769_v27 = vadd.f32 %v2768_v20, %v2223_v19  ;;  %v2770_v28 = vpop.f32.mrb[97].mxu0 }
 0x1db   : > { %v2226_v29 = vpop.f32.mrb[98].mxu1  ;;  %v2771_v32 = vpop.f32.mrb[98].mxu0 }
 0x1dc   : > { %v2228_v34 = vpop.f32.mrb[99].mxu1  ;;  %v4858_v36 = vpack.c.bf16 %v3404_v26, %v3403_v25  ;;  %v3135_v37 = vmax.f32 %v2769_v27, 0.0  ;;  %v2772_v38 = vadd.f32 %v2771_v32, %v2226_v29  ;;  %v2773_v39 = vpop.f32.mrb[99].mxu0  ;;  %v5620_v25 = vld [vmem:[%s5797_s30 + $0x6c0] ss:$16 sps:$4 sm:$0xff]  }
 0x1dd   : > { %v5622_v32 = vld [vmem:[%s5797_s30 + $0x6e4] ss:$16 sps:$4 sm:$0xff]  }
 0x1de   : > { %2438 = vmatmul.mubr.bf16.gmra.mrb[204].mxu1 %v5602_v23  ;;  %5082 = vst [vmem:[%s5995_s11 + $0xb8] sm:$0xff] %v4858_v36   ;;  %v3270_v40 = vmul.f32 %v6173_v15, %v3135_v37  ;;  %v3136_v41 = vmax.f32 %v2772_v38, 0.0  ;;  %2983 = vmatmul.mubr.bf16.gmra.mrb[204].mxu0 %v5603_v30  ;;  %v5624_v36 = vld [vmem:[%s5797_s30 + $0x6ec] ss:$16 sps:$4 sm:$0xff]  }
 0x1df   : > { %2445 = vmatprep.mubr.bf16.mxu1 %v5604_v31  ;;  %2990 = vmatprep.mubr.bf16.mxu0 %v5606_v35  ;;  %v5621_v31 = vld [vmem:[%s5797_s30 + $0x6c8] ss:$16 sps:$4 sm:$0xff]  }
 0x1e0   : > { %v3271_v42 = vmul.f32 %v6173_v15, %v3136_v41  ;;  %v3405_v47 = vadd.f32 %v6181_v22, %v3270_v40 }
 0x1e1   : > { %v2231_v43 = vpop.f32.mrb[100].mxu1  ;;  %v2776_v44 = vpop.f32.mrb[100].mxu0 }
 0x1e2   : > { %v2233_v45 = vpop.f32.mrb[101].mxu1  ;;  %v3406_v48 = vadd.f32 %v6181_v22, %v3271_v42  ;;  %v2777_v49 = vadd.f32 %v2776_v44, %v2231_v43  ;;  %v2778_v50 = vpop.f32.mrb[101].mxu0 }
 0x1e3   : > { %v2234_v51 = vpop.f32.mrb[102].mxu1  ;;  %v2779_v54 = vpop.f32.mrb[102].mxu0 }
 0x1e4   : > { %v2236_v55 = vpop.f32.mrb[103].mxu1  ;;  %v4863_v57 = vpack.c.bf16 %v3406_v48, %v3405_v47  ;;  %v3137_v58 = vmax.f32 %v2777_v49, 0.0  ;;  %v2780_v59 = vadd.f32 %v2779_v54, %v2234_v51  ;;  %v2781_v60 = vpop.f32.mrb[103].mxu0  ;;  %v5626_v47 = vld [vmem:[%s5797_s30 + $0x6e0] ss:$16 sps:$4 sm:$0xff]  }
 0x1e5   : > { %v5628_v54 = vld [vmem:[%s5797_s30 + $0x704] ss:$16 sps:$4 sm:$0xff]  }
 0x1e6   : > { %2446 = vmatmul.mubr.bf16.gmra.mrb[208].mxu1 %v5608_v46  ;;  %5083 = vst [vmem:[%s5995_s11 + $0xc0] sm:$0xff] %v4863_v57   ;;  %v3272_v61 = vmul.f32 %v6173_v15, %v3137_v58  ;;  %v3138_v62 = vmax.f32 %v2780_v59, 0.0  ;;  %2991 = vmatmul.mubr.bf16.gmra.mrb[208].mxu0 %v5609_v52  ;;  %v5630_v57 = vld [vmem:[%s5797_s30 + $0x70c] ss:$16 sps:$4 sm:$0xff]  }
 0x1e7   : > { %2453 = vmatprep.mubr.bf16.mxu1 %v5610_v53  ;;  %2998 = vmatprep.mubr.bf16.mxu0 %v5612_v56  ;;  %v5627_v53 = vld [vmem:[%s5797_s30 + $0x6e8] ss:$16 sps:$4 sm:$0xff]  }
 0x1e8   : > { %v3273_v63 = vmul.f32 %v6173_v15, %v3138_v62  ;;  %v3407_v4 = vadd.f32 %v6181_v22, %v3272_v61 }
 0x1e9   : > { %v2239_v0 = vpop.f32.mrb[104].mxu1  ;;  %v2784_v1 = vpop.f32.mrb[104].mxu0 }
 0x1ea   : > { %v2241_v2 = vpop.f32.mrb[105].mxu1  ;;  %v3408_v5 = vadd.f32 %v6181_v22, %v3273_v63  ;;  %v2785_v6 = vadd.f32 %v2784_v1, %v2239_v0  ;;  %v2786_v7 = vpop.f32.mrb[105].mxu0 }
 0x1eb   : > { %v2242_v8 = vpop.f32.mrb[106].mxu1  ;;  %v2787_v11 = vpop.f32.mrb[106].mxu0 }
 0x1ec   : > { %v2244_v12 = vpop.f32.mrb[107].mxu1  ;;  %v4868_v13 = vpack.c.bf16 %v3408_v5, %v3407_v4  ;;  %v3139_v14 = vmax.f32 %v2785_v6, 0.0  ;;  %v2788_v33 = vadd.f32 %v2787_v11, %v2242_v8  ;;  %v2789_v16 = vpop.f32.mrb[107].mxu0  ;;  %v5632_v4 = vld [vmem:[%s5797_s30 + $0x700] ss:$16 sps:$4 sm:$0xff]  }
 0x1ed   : > { %v5634_v11 = vld [vmem:[%s5797_s30 + $0x724] ss:$16 sps:$4 sm:$0xff]  }
 0x1ee   : > { %2454 = vmatmul.mubr.bf16.gmra.mrb[212].mxu1 %v5614_v3  ;;  %5084 = vst [vmem:[%s5995_s11 + $0xc8] sm:$0xff] %v4868_v13   ;;  %v3274_v17 = vmul.f32 %v6173_v15, %v3139_v14  ;;  %v3140_v18 = vmax.f32 %v2788_v33, 0.0  ;;  %2999 = vmatmul.mubr.bf16.gmra.mrb[212].mxu0 %v5615_v9  ;;  %v5636_v13 = vld [vmem:[%s5797_s30 + $0x72c] ss:$16 sps:$4 sm:$0xff]  }
 0x1ef   : > { %2461 = vmatprep.mubr.bf16.mxu1 %v5616_v10  ;;  %3006 = vmatprep.mubr.bf16.mxu0 %v5618_v24  ;;  %v5633_v10 = vld [vmem:[%s5797_s30 + $0x708] ss:$16 sps:$4 sm:$0xff]  }
 0x1f0   : > { %v3275_v19 = vmul.f32 %v6173_v15, %v3140_v18  ;;  %v3409_v26 = vadd.f32 %v6181_v22, %v3274_v17 }
 0x1f1   : > { %v2247_v20 = vpop.f32.mrb[108].mxu1  ;;  %v2792_v21 = vpop.f32.mrb[108].mxu0 }
 0x1f2   : > { %v2249_v23 = vpop.f32.mrb[109].mxu1  ;;  %v3410_v27 = vadd.f32 %v6181_v22, %v3275_v19  ;;  %v2793_v28 = vadd.f32 %v2792_v21, %v2247_v20  ;;  %v2794_v29 = vpop.f32.mrb[109].mxu0 }
 0x1f3   : > { %v2250_v30 = vpop.f32.mrb[110].mxu1  ;;  %v2795_v34 = vpop.f32.mrb[110].mxu0 }
 0x1f4   : > { %v2252_v35 = vpop.f32.mrb[111].mxu1  ;;  %v4873_v37 = vpack.c.bf16 %v3410_v27, %v3409_v26  ;;  %v3141_v38 = vmax.f32 %v2793_v28, 0.0  ;;  %v2796_v39 = vadd.f32 %v2795_v34, %v2250_v30  ;;  %v2797_v40 = vpop.f32.mrb[111].mxu0  ;;  %v5638_v26 = vld [vmem:[%s5797_s30 + $0x720] ss:$16 sps:$4 sm:$0xff]  }
 0x1f5   : > { %v5640_v34 = vld [vmem:[%s5797_s30 + $0x744] ss:$16 sps:$4 sm:$0xff]  }
 0x1f6   : > { %2462 = vmatmul.mubr.bf16.gmra.mrb[216].mxu1 %v5620_v25  ;;  %5085 = vst [vmem:[%s5995_s11 + $0xd0] sm:$0xff] %v4873_v37   ;;  %v3276_v41 = vmul.f32 %v6173_v15, %v3141_v38  ;;  %v3142_v42 = vmax.f32 %v2796_v39, 0.0  ;;  %3007 = vmatmul.mubr.bf16.gmra.mrb[216].mxu0 %v5621_v31  ;;  %v5642_v37 = vld [vmem:[%s5797_s30 + $0x74c] ss:$16 sps:$4 sm:$0xff]  }
 0x1f7   : > { %2469 = vmatprep.mubr.bf16.mxu1 %v5622_v32  ;;  %3014 = vmatprep.mubr.bf16.mxu0 %v5624_v36  ;;  %v5639_v32 = vld [vmem:[%s5797_s30 + $0x728] ss:$16 sps:$4 sm:$0xff]  }
 0x1f8   : > { %v3277_v43 = vmul.f32 %v6173_v15, %v3142_v42  ;;  %v3411_v48 = vadd.f32 %v6181_v22, %v3276_v41 }
 0x1f9   : > { %v2255_v44 = vpop.f32.mrb[112].mxu1  ;;  %v2800_v45 = vpop.f32.mrb[112].mxu0 }
 0x1fa   : > { %v2257_v46 = vpop.f32.mrb[113].mxu1  ;;  %v3412_v49 = vadd.f32 %v6181_v22, %v3277_v43  ;;  %v2801_v50 = vadd.f32 %v2800_v45, %v2255_v44  ;;  %v2802_v51 = vpop.f32.mrb[113].mxu0 }
 0x1fb   : > { %v2258_v52 = vpop.f32.mrb[114].mxu1  ;;  %v2803_v55 = vpop.f32.mrb[114].mxu0 }
 0x1fc   : > { %v2260_v56 = vpop.f32.mrb[115].mxu1  ;;  %v4878_v58 = vpack.c.bf16 %v3412_v49, %v3411_v48  ;;  %v3143_v59 = vmax.f32 %v2801_v50, 0.0  ;;  %v2804_v60 = vadd.f32 %v2803_v55, %v2258_v52  ;;  %v2805_v61 = vpop.f32.mrb[115].mxu0  ;;  %v5644_v48 = vld [vmem:[%s5797_s30 + $0x740] ss:$16 sps:$4 sm:$0xff]  }
 0x1fd   : > { %v5646_v55 = vld [vmem:[%s5797_s30 + $0x764] ss:$16 sps:$4 sm:$0xff]  }
 0x1fe   : > { %2470 = vmatmul.mubr.bf16.gmra.mrb[220].mxu1 %v5626_v47  ;;  %5086 = vst [vmem:[%s5995_s11 + $0xd8] sm:$0xff] %v4878_v58   ;;  %v3278_v62 = vmul.f32 %v6173_v15, %v3143_v59  ;;  %v3144_v63 = vmax.f32 %v2804_v60, 0.0  ;;  %3015 = vmatmul.mubr.bf16.gmra.mrb[220].mxu0 %v5627_v53  ;;  %v5648_v58 = vld [vmem:[%s5797_s30 + $0x76c] ss:$16 sps:$4 sm:$0xff]  }
 0x1ff   : > { %2477 = vmatprep.mubr.bf16.mxu1 %v5628_v54  ;;  %3022 = vmatprep.mubr.bf16.mxu0 %v5630_v57  ;;  %v5645_v54 = vld [vmem:[%s5797_s30 + $0x748] ss:$16 sps:$4 sm:$0xff]  }
 0x200   : > { %v3279_v0 = vmul.f32 %v6173_v15, %v3144_v63  ;;  %v3413_v5 = vadd.f32 %v6181_v22, %v3278_v62 }
 0x201   : > { %v2263_v1 = vpop.f32.mrb[116].mxu1  ;;  %v2808_v2 = vpop.f32.mrb[116].mxu0 }
 0x202   : > { %v2265_v3 = vpop.f32.mrb[117].mxu1  ;;  %v3414_v6 = vadd.f32 %v6181_v22, %v3279_v0  ;;  %v2809_v7 = vadd.f32 %v2808_v2, %v2263_v1  ;;  %v2810_v8 = vpop.f32.mrb[117].mxu0 }
 0x203   : > { %v2266_v9 = vpop.f32.mrb[118].mxu1  ;;  %v2811_v12 = vpop.f32.mrb[118].mxu0 }
 0x204   : > { %v2268_v24 = vpop.f32.mrb[119].mxu1  ;;  %v4883_v14 = vpack.c.bf16 %v3414_v6, %v3413_v5  ;;  %v3145_v33 = vmax.f32 %v2809_v7, 0.0  ;;  %v2812_v16 = vadd.f32 %v2811_v12, %v2266_v9  ;;  %v2813_v17 = vpop.f32.mrb[119].mxu0  ;;  %v5650_v5 = vld [vmem:[%s5797_s30 + $0x760] ss:$16 sps:$4 sm:$0xff]  }
 0x205   : > { %v5652_v12 = vld [vmem:[%s5797_s30 + $0x784] ss:$16 sps:$4 sm:$0xff]  }
 0x206   : > { %2478 = vmatmul.mubr.bf16.gmra.mrb[224].mxu1 %v5632_v4  ;;  %5087 = vst [vmem:[%s5995_s11 + $0xe0] sm:$0xff] %v4883_v14   ;;  %v3280_v18 = vmul.f32 %v6173_v15, %v3145_v33  ;;  %v3146_v19 = vmax.f32 %v2812_v16, 0.0  ;;  %3023 = vmatmul.mubr.bf16.gmra.mrb[224].mxu0 %v5633_v10  ;;  %v5654_v14 = vld [vmem:[%s5797_s30 + $0x78c] ss:$16 sps:$4 sm:$0xff]  }
 0x207   : > { %2485 = vmatprep.mubr.bf16.mxu1 %v5634_v11  ;;  %3030 = vmatprep.mubr.bf16.mxu0 %v5636_v13  ;;  %v5651_v11 = vld [vmem:[%s5797_s30 + $0x768] ss:$16 sps:$4 sm:$0xff]  }
 0x208   : > { %v3281_v20 = vmul.f32 %v6173_v15, %v3146_v19  ;;  %v3415_v27 = vadd.f32 %v6181_v22, %v3280_v18 }
 0x209   : > { %v2271_v21 = vpop.f32.mrb[120].mxu1  ;;  %v2816_v23 = vpop.f32.mrb[120].mxu0 }
 0x20a   : > { %v2273_v25 = vpop.f32.mrb[121].mxu1  ;;  %v3416_v28 = vadd.f32 %v6181_v22, %v3281_v20  ;;  %v2817_v29 = vadd.f32 %v2816_v23, %v2271_v21  ;;  %v2818_v30 = vpop.f32.mrb[121].mxu0 }
 0x20b   : > { %v2274_v31 = vpop.f32.mrb[122].mxu1  ;;  %v2819_v35 = vpop.f32.mrb[122].mxu0 }
 0x20c   : > { %v2276_v36 = vpop.f32.mrb[123].mxu1  ;;  %v4888_v38 = vpack.c.bf16 %v3416_v28, %v3415_v27  ;;  %v3147_v39 = vmax.f32 %v2817_v29, 0.0  ;;  %v2820_v40 = vadd.f32 %v2819_v35, %v2274_v31  ;;  %v2821_v41 = vpop.f32.mrb[123].mxu0  ;;  %v5656_v27 = vld [vmem:[%s5797_s30 + $0x780] ss:$16 sps:$4 sm:$0xff]  }
 0x20d   : > { %v5658_v35 = vld [vmem:[%s5797_s30 + $0x7a4] ss:$16 sps:$4 sm:$0xff]  }
 0x20e   : > { %2486 = vmatmul.mubr.bf16.gmra.mrb[228].mxu1 %v5638_v26  ;;  %5088 = vst [vmem:[%s5995_s11 + $0xe8] sm:$0xff] %v4888_v38   ;;  %v3282_v42 = vmul.f32 %v6173_v15, %v3147_v39  ;;  %v3148_v43 = vmax.f32 %v2820_v40, 0.0  ;;  %3031 = vmatmul.mubr.bf16.gmra.mrb[228].mxu0 %v5639_v32  ;;  %v5660_v38 = vld [vmem:[%s5797_s30 + $0x7ac] ss:$16 sps:$4 sm:$0xff]  }
 0x20f   : > { %2493 = vmatprep.mubr.bf16.mxu1 %v5640_v34  ;;  %3038 = vmatprep.mubr.bf16.mxu0 %v5642_v37  ;;  %v5657_v34 = vld [vmem:[%s5797_s30 + $0x788] ss:$16 sps:$4 sm:$0xff]  }
 0x210   : > { %v3283_v44 = vmul.f32 %v6173_v15, %v3148_v43  ;;  %v3417_v49 = vadd.f32 %v6181_v22, %v3282_v42 }
 0x211   : > { %v2279_v45 = vpop.f32.mrb[124].mxu1  ;;  %v2824_v46 = vpop.f32.mrb[124].mxu0 }
 0x212   : > { %v2281_v47 = vpop.f32.mrb[125].mxu1  ;;  %v3418_v50 = vadd.f32 %v6181_v22, %v3283_v44  ;;  %v2825_v51 = vadd.f32 %v2824_v46, %v2279_v45  ;;  %v2826_v52 = vpop.f32.mrb[125].mxu0 }
 0x213   : > { %v2282_v53 = vpop.f32.mrb[126].mxu1  ;;  %v2827_v56 = vpop.f32.mrb[126].mxu0 }
 0x214   : > { %v2284_v57 = vpop.f32.mrb[127].mxu1  ;;  %v4893_v59 = vpack.c.bf16 %v3418_v50, %v3417_v49  ;;  %v3149_v60 = vmax.f32 %v2825_v51, 0.0  ;;  %v2828_v61 = vadd.f32 %v2827_v56, %v2282_v53  ;;  %v2829_v62 = vpop.f32.mrb[127].mxu0  ;;  %v5662_v49 = vld [vmem:[%s5797_s30 + $0x7a0] ss:$16 sps:$4 sm:$0xff]  }
 0x215   : > { %v5664_v56 = vld [vmem:[%s5797_s30 + $0x7c4] ss:$16 sps:$4 sm:$0xff]  }
 0x216   : > { %2494 = vmatmul.mubr.bf16.gmra.mrb[232].mxu1 %v5644_v48  ;;  %5089 = vst [vmem:[%s5995_s11 + $0xf0] sm:$0xff] %v4893_v59   ;;  %v3284_v63 = vmul.f32 %v6173_v15, %v3149_v60  ;;  %v3150_v0 = vmax.f32 %v2828_v61, 0.0  ;;  %3039 = vmatmul.mubr.bf16.gmra.mrb[232].mxu0 %v5645_v54  ;;  %v5666_v59 = vld [vmem:[%s5797_s30 + $0x7cc] ss:$16 sps:$4 sm:$0xff]  }
 0x217   : > { %2501 = vmatprep.mubr.bf16.mxu1 %v5646_v55  ;;  %3046 = vmatprep.mubr.bf16.mxu0 %v5648_v58  ;;  %v5663_v55 = vld [vmem:[%s5797_s30 + $0x7a8] ss:$16 sps:$4 sm:$0xff]  }
 0x218   : > { %v3285_v1 = vmul.f32 %v6173_v15, %v3150_v0  ;;  %v3419_v6 = vadd.f32 %v6181_v22, %v3284_v63 }
 0x219   : > { %v2287_v2 = vpop.f32.mrb[128].mxu1  ;;  %v2832_v3 = vpop.f32.mrb[128].mxu0 }
 0x21a   : > { %v2289_v4 = vpop.f32.mrb[129].mxu1  ;;  %v3420_v7 = vadd.f32 %v6181_v22, %v3285_v1  ;;  %v2833_v8 = vadd.f32 %v2832_v3, %v2287_v2  ;;  %v2834_v9 = vpop.f32.mrb[129].mxu0 }
 0x21b   : > { %v2290_v10 = vpop.f32.mrb[130].mxu1  ;;  %v2835_v24 = vpop.f32.mrb[130].mxu0 }
 0x21c   : > { %v2292_v13 = vpop.f32.mrb[131].mxu1  ;;  %v4898_v33 = vpack.c.bf16 %v3420_v7, %v3419_v6  ;;  %v3151_v16 = vmax.f32 %v2833_v8, 0.0  ;;  %v2836_v17 = vadd.f32 %v2835_v24, %v2290_v10  ;;  %v2837_v18 = vpop.f32.mrb[131].mxu0  ;;  %v5668_v6 = vld [vmem:[%s5797_s30 + $0x7c0] ss:$16 sps:$4 sm:$0xff]  }
 0x21d   : > { %v5670_v24 = vld [vmem:[%s5797_s30 + $0x7e4] ss:$16 sps:$4 sm:$0xff]  }
 0x21e   : > { %2502 = vmatmul.mubr.bf16.gmra.mrb[236].mxu1 %v5650_v5  ;;  %5090 = vst [vmem:[%s5995_s11 + $0xf8] sm:$0xff] %v4898_v33   ;;  %v3286_v19 = vmul.f32 %v6173_v15, %v3151_v16  ;;  %v3152_v20 = vmax.f32 %v2836_v17, 0.0  ;;  %3047 = vmatmul.mubr.bf16.gmra.mrb[236].mxu0 %v5651_v11  ;;  %v5672_v33 = vld [vmem:[%s5797_s30 + $0x7ec] ss:$16 sps:$4 sm:$0xff]  }
 0x21f   : > { %2509 = vmatprep.mubr.bf16.mxu1 %v5652_v12  ;;  %3054 = vmatprep.mubr.bf16.mxu0 %v5654_v14  ;;  %v5669_v12 = vld [vmem:[%s5797_s30 + $0x7c8] ss:$16 sps:$4 sm:$0xff]  }
 0x220   : > { %v3287_v21 = vmul.f32 %v6173_v15, %v3152_v20  ;;  %v3421_v28 = vadd.f32 %v6181_v22, %v3286_v19 }
 0x221   : > { %v2295_v23 = vpop.f32.mrb[132].mxu1  ;;  %v2840_v25 = vpop.f32.mrb[132].mxu0 }
 0x222   : > { %v2297_v26 = vpop.f32.mrb[133].mxu1  ;;  %v3422_v29 = vadd.f32 %v6181_v22, %v3287_v21  ;;  %v2841_v30 = vadd.f32 %v2840_v25, %v2295_v23  ;;  %v2842_v31 = vpop.f32.mrb[133].mxu0 }
 0x223   : > { %v2298_v32 = vpop.f32.mrb[134].mxu1  ;;  %v2843_v36 = vpop.f32.mrb[134].mxu0 }
 0x224   : > { %v2300_v37 = vpop.f32.mrb[135].mxu1  ;;  %v4903_v39 = vpack.c.bf16 %v3422_v29, %v3421_v28  ;;  %v3153_v40 = vmax.f32 %v2841_v30, 0.0  ;;  %v2844_v41 = vadd.f32 %v2843_v36, %v2298_v32  ;;  %v2845_v42 = vpop.f32.mrb[135].mxu0  ;;  %v5674_v28 = vld [vmem:[%s5797_s30 + $0x7e0] ss:$16 sps:$4 sm:$0xff]  }
 0x226   : > { %2510 = vmatmul.mubr.bf16.gmra.mrb[240].mxu1 %v5656_v27  ;;  %5091 = vst [vmem:[%s5995_s11 + $0x100] sm:$0xff] %v4903_v39   ;;  %v3288_v43 = vmul.f32 %v6173_v15, %v3153_v40  ;;  %v3154_v44 = vmax.f32 %v2844_v41, 0.0  ;;  %3055 = vmatmul.mubr.bf16.gmra.mrb[240].mxu0 %v5657_v34 }
 0x227   : > { %2517 = vmatprep.mubr.bf16.mxu1 %v5658_v35  ;;  %3062 = vmatprep.mubr.bf16.mxu0 %v5660_v38  ;;  %v5675_v35 = vld [vmem:[%s5797_s30 + $0x7e8] ss:$16 sps:$4 sm:$0xff]  }
 0x228   : > { %v3289_v45 = vmul.f32 %v6173_v15, %v3154_v44  ;;  %v3423_v50 = vadd.f32 %v6181_v22, %v3288_v43 }
 0x229   : > { %v2303_v46 = vpop.f32.mrb[136].mxu1  ;;  %v2848_v47 = vpop.f32.mrb[136].mxu0 }
 0x22a   : > { %v2305_v48 = vpop.f32.mrb[137].mxu1  ;;  %v3424_v51 = vadd.f32 %v6181_v22, %v3289_v45  ;;  %v2849_v52 = vadd.f32 %v2848_v47, %v2303_v46  ;;  %v2850_v53 = vpop.f32.mrb[137].mxu0 }
 0x22b   : > { %v2306_v54 = vpop.f32.mrb[138].mxu1  ;;  %v2851_v57 = vpop.f32.mrb[138].mxu0 }
 0x22c   : > { %v2308_v58 = vpop.f32.mrb[139].mxu1  ;;  %v4908_v60 = vpack.c.bf16 %v3424_v51, %v3423_v50  ;;  %v3155_v61 = vmax.f32 %v2849_v52, 0.0  ;;  %v2852_v62 = vadd.f32 %v2851_v57, %v2306_v54  ;;  %v2853_v63 = vpop.f32.mrb[139].mxu0 }
 0x22e   : > { %2518 = vmatmul.mubr.bf16.gmra.mrb[244].mxu1 %v5662_v49  ;;  %5092 = vst [vmem:[%s5995_s11 + $0x108] sm:$0xff] %v4908_v60   ;;  %v3290_v0 = vmul.f32 %v6173_v15, %v3155_v61  ;;  %v3156_v1 = vmax.f32 %v2852_v62, 0.0  ;;  %3063 = vmatmul.mubr.bf16.gmra.mrb[244].mxu0 %v5663_v55 }
 0x22f   : > { %2525 = vmatprep.mubr.bf16.mxu1 %v5664_v56  ;;  %3070 = vmatprep.mubr.bf16.mxu0 %v5666_v59 }
 0x230   : > { %v3291_v2 = vmul.f32 %v6173_v15, %v3156_v1  ;;  %v3425_v7 = vadd.f32 %v6181_v22, %v3290_v0 }
 0x231   : > { %v2311_v3 = vpop.f32.mrb[140].mxu1  ;;  %v2856_v4 = vpop.f32.mrb[140].mxu0 }
 0x232   : > { %v2313_v5 = vpop.f32.mrb[141].mxu1  ;;  %v3426_v8 = vadd.f32 %v6181_v22, %v3291_v2  ;;  %v2857_v9 = vadd.f32 %v2856_v4, %v2311_v3  ;;  %v2858_v10 = vpop.f32.mrb[141].mxu0 }
 0x233   : > { %v2314_v11 = vpop.f32.mrb[142].mxu1  ;;  %v2859_v13 = vpop.f32.mrb[142].mxu0 }
 0x234   : > { %v2316_v14 = vpop.f32.mrb[143].mxu1  ;;  %v4913_v16 = vpack.c.bf16 %v3426_v8, %v3425_v7  ;;  %v3157_v17 = vmax.f32 %v2857_v9, 0.0  ;;  %v2860_v18 = vadd.f32 %v2859_v13, %v2314_v11  ;;  %v2861_v19 = vpop.f32.mrb[143].mxu0 }
 0x236   : > { %2526 = vmatmul.mubr.bf16.gmra.mrb[248].mxu1 %v5668_v6  ;;  %5093 = vst [vmem:[%s5995_s11 + $0x110] sm:$0xff] %v4913_v16   ;;  %v3292_v20 = vmul.f32 %v6173_v15, %v3157_v17  ;;  %v3158_v21 = vmax.f32 %v2860_v18, 0.0  ;;  %3071 = vmatmul.mubr.bf16.gmra.mrb[248].mxu0 %v5669_v12 }
 0x237   : > { %2533 = vmatprep.mubr.bf16.mxu1 %v5670_v24  ;;  %3078 = vmatprep.mubr.bf16.mxu0 %v5672_v33 }
 0x238   : > { %v3293_v23 = vmul.f32 %v6173_v15, %v3158_v21  ;;  %v3427_v29 = vadd.f32 %v6181_v22, %v3292_v20 }
 0x239   : > { %v2319_v25 = vpop.f32.mrb[144].mxu1  ;;  %v2864_v26 = vpop.f32.mrb[144].mxu0 }
 0x23a   : > { %v2321_v27 = vpop.f32.mrb[145].mxu1  ;;  %v3428_v30 = vadd.f32 %v6181_v22, %v3293_v23  ;;  %v2865_v31 = vadd.f32 %v2864_v26, %v2319_v25  ;;  %v2866_v32 = vpop.f32.mrb[145].mxu0 }
 0x23b   : > { %v2322_v34 = vpop.f32.mrb[146].mxu1  ;;  %v2867_v36 = vpop.f32.mrb[146].mxu0 }
 0x23c   : > { %v2324_v37 = vpop.f32.mrb[147].mxu1  ;;  %v4918_v38 = vpack.c.bf16 %v3428_v30, %v3427_v29  ;;  %v3159_v39 = vmax.f32 %v2865_v31, 0.0  ;;  %v2868_v40 = vadd.f32 %v2867_v36, %v2322_v34  ;;  %v2869_v41 = vpop.f32.mrb[147].mxu0 }
 0x23e   : > { %2534 = vmatmul.mubr.bf16.gmra.mrb[252].mxu1 %v5674_v28  ;;  %5094 = vst [vmem:[%s5995_s11 + $0x118] sm:$0xff] %v4918_v38   ;;  %v3294_v42 = vmul.f32 %v6173_v15, %v3159_v39  ;;  %v3160_v43 = vmax.f32 %v2868_v40, 0.0  ;;  %3079 = vmatmul.mubr.bf16.gmra.mrb[252].mxu0 %v5675_v35 }
 0x240   : > { %v3295_v44 = vmul.f32 %v6173_v15, %v3160_v43  ;;  %v3429_v48 = vadd.f32 %v6181_v22, %v3294_v42 }
 0x241   : > { %v2327_v45 = vpop.f32.mrb[148].mxu1  ;;  %v2872_v46 = vpop.f32.mrb[148].mxu0 }
 0x242   : > { %v2329_v47 = vpop.f32.mrb[149].mxu1  ;;  %v3430_v49 = vadd.f32 %v6181_v22, %v3295_v44  ;;  %v2873_v50 = vadd.f32 %v2872_v46, %v2327_v45  ;;  %v2874_v51 = vpop.f32.mrb[149].mxu0 }
 0x243   : > { %v2330_v52 = vpop.f32.mrb[150].mxu1  ;;  %v2875_v53 = vpop.f32.mrb[150].mxu0 }
 0x244   : > { %v2332_v54 = vpop.f32.mrb[151].mxu1  ;;  %v4923_v55 = vpack.c.bf16 %v3430_v49, %v3429_v48  ;;  %v3161_v56 = vmax.f32 %v2873_v50, 0.0  ;;  %v2876_v57 = vadd.f32 %v2875_v53, %v2330_v52  ;;  %v2877_v58 = vpop.f32.mrb[151].mxu0 }
 0x246   : > { %5095 = vst [vmem:[%s5995_s11 + $0x120] sm:$0xff] %v4923_v55   ;;  %v3296_v59 = vmul.f32 %v6173_v15, %v3161_v56  ;;  %v3162_v60 = vmax.f32 %v2876_v57, 0.0 }
 0x248   : > { %v3297_v61 = vmul.f32 %v6173_v15, %v3162_v60  ;;  %v3431_v1 = vadd.f32 %v6181_v22, %v3296_v59 }
 0x249   : > { %v2335_v62 = vpop.f32.mrb[152].mxu1  ;;  %v2880_v63 = vpop.f32.mrb[152].mxu0 }
 0x24a   : > { %v2337_v0 = vpop.f32.mrb[153].mxu1  ;;  %v3432_v2 = vadd.f32 %v6181_v22, %v3297_v61  ;;  %v2881_v3 = vadd.f32 %v2880_v63, %v2335_v62  ;;  %v2882_v4 = vpop.f32.mrb[153].mxu0 }
 0x24b   : > { %v2338_v5 = vpop.f32.mrb[154].mxu1  ;;  %v2883_v6 = vpop.f32.mrb[154].mxu0 }
 0x24c   : > { %v2340_v7 = vpop.f32.mrb[155].mxu1  ;;  %v4928_v8 = vpack.c.bf16 %v3432_v2, %v3431_v1  ;;  %v3163_v9 = vmax.f32 %v2881_v3, 0.0  ;;  %v2884_v10 = vadd.f32 %v2883_v6, %v2338_v5  ;;  %v2885_v11 = vpop.f32.mrb[155].mxu0 }
 0x24e   : > { %5096 = vst [vmem:[%s5995_s11 + $0x128] sm:$0xff] %v4928_v8   ;;  %v3298_v12 = vmul.f32 %v6173_v15, %v3163_v9  ;;  %v3164_v24 = vmax.f32 %v2884_v10, 0.0 }
 0x250   : > { %v3299_v13 = vmul.f32 %v6173_v15, %v3164_v24  ;;  %v3433_v17 = vadd.f32 %v6181_v22, %v3298_v12 }
 0x251   : > { %v2343_v14 = vpop.f32.mrb[156].mxu1  ;;  %v2888_v33 = vpop.f32.mrb[156].mxu0 }
 0x252   : > { %v2345_v16 = vpop.f32.mrb[157].mxu1  ;;  %v3434_v18 = vadd.f32 %v6181_v22, %v3299_v13  ;;  %v2889_v19 = vadd.f32 %v2888_v33, %v2343_v14  ;;  %v2890_v20 = vpop.f32.mrb[157].mxu0 }
 0x253   : > { %v2346_v21 = vpop.f32.mrb[158].mxu1  ;;  %v2891_v23 = vpop.f32.mrb[158].mxu0 }
 0x254   : > { %v2348_v25 = vpop.f32.mrb[159].mxu1  ;;  %v4933_v26 = vpack.c.bf16 %v3434_v18, %v3433_v17  ;;  %v3165_v27 = vmax.f32 %v2889_v19, 0.0  ;;  %v2892_v28 = vadd.f32 %v2891_v23, %v2346_v21  ;;  %v2893_v29 = vpop.f32.mrb[159].mxu0  ;;  %v6362_v23 = vld [vmem:[%s6478_s3] ss:$0 sm:$0xff] }
 0x256   : > { %5097 = vst [vmem:[%s5995_s11 + $0x130] sm:$0xff] %v4933_v26   ;;  %v3300_v30 = vmul.f32 %v6173_v15, %v3165_v27  ;;  %v3166_v31 = vmax.f32 %v2892_v28, 0.0 }
 0x258   : > { %v3301_v32 = vmul.f32 %v6173_v15, %v3166_v31  ;;  %v3435_v37 = vadd.f32 %v6181_v22, %v3300_v30 }
 0x259   : > { %v2351_v34 = vpop.f32.mrb[160].mxu1  ;;  %v2896_v35 = vpop.f32.mrb[160].mxu0 }
 0x25a   : > { %v2353_v36 = vpop.f32.mrb[161].mxu1  ;;  %v3436_v38 = vadd.f32 %v6181_v22, %v3301_v32  ;;  %v2897_v39 = vadd.f32 %v2896_v35, %v2351_v34  ;;  %v2898_v40 = vpop.f32.mrb[161].mxu0 }
 0x25b   : > { %v2354_v41 = vpop.f32.mrb[162].mxu1  ;;  %v2899_v42 = vpop.f32.mrb[162].mxu0 }
 0x25c   : > { %v2356_v43 = vpop.f32.mrb[163].mxu1  ;;  %v4938_v44 = vpack.c.bf16 %v3436_v38, %v3435_v37  ;;  %v3167_v45 = vmax.f32 %v2897_v39, 0.0  ;;  %v2900_v46 = vadd.f32 %v2899_v42, %v2354_v41  ;;  %v2901_v47 = vpop.f32.mrb[163].mxu0 }
 0x25e   : > { %5098 = vst [vmem:[%s5995_s11 + $0x138] sm:$0xff] %v4938_v44   ;;  %v3302_v48 = vmul.f32 %v6173_v15, %v3167_v45  ;;  %v3168_v49 = vmax.f32 %v2900_v46, 0.0 }
 0x260   : > { %v3303_v50 = vmul.f32 %v6173_v15, %v3168_v49  ;;  %v3437_v54 = vadd.f32 %v6181_v22, %v3302_v48 }
 0x261   : > { %v2359_v51 = vpop.f32.mrb[164].mxu1  ;;  %v2904_v52 = vpop.f32.mrb[164].mxu0 }
 0x262   : > { %v2361_v53 = vpop.f32.mrb[165].mxu1  ;;  %v3438_v55 = vadd.f32 %v6181_v22, %v3303_v50  ;;  %v2905_v56 = vadd.f32 %v2904_v52, %v2359_v51  ;;  %v2906_v57 = vpop.f32.mrb[165].mxu0 }
 0x263   : > { %v2362_v58 = vpop.f32.mrb[166].mxu1  ;;  %v2907_v59 = vpop.f32.mrb[166].mxu0 }
 0x264   : > { %v2364_v60 = vpop.f32.mrb[167].mxu1  ;;  %v4943_v61 = vpack.c.bf16 %v3438_v55, %v3437_v54  ;;  %v3169_v62 = vmax.f32 %v2905_v56, 0.0  ;;  %v2908_v63 = vadd.f32 %v2907_v59, %v2362_v58  ;;  %v2909_v0 = vpop.f32.mrb[167].mxu0 }
 0x266   : > { %5099 = vst [vmem:[%s5995_s11 + $0x140] sm:$0xff] %v4943_v61   ;;  %v3304_v1 = vmul.f32 %v6173_v15, %v3169_v62  ;;  %v3170_v2 = vmax.f32 %v2908_v63, 0.0 }
 0x268   : > { %v3305_v3 = vmul.f32 %v6173_v15, %v3170_v2  ;;  %v3439_v7 = vadd.f32 %v6181_v22, %v3304_v1  ;;  %v6355_v15 = vld [vmem:[%s6477_s2] ss:$0 sm:$0xff] }
 0x269   : > { %v2367_v4 = vpop.f32.mrb[168].mxu1  ;;  %v2912_v5 = vpop.f32.mrb[168].mxu0 }
 0x26a   : > { %v2369_v6 = vpop.f32.mrb[169].mxu1  ;;  %v3440_v8 = vadd.f32 %v6181_v22, %v3305_v3  ;;  %v2913_v9 = vadd.f32 %v2912_v5, %v2367_v4  ;;  %v2914_v10 = vpop.f32.mrb[169].mxu0 }
 0x26b   : > { %v2370_v11 = vpop.f32.mrb[170].mxu1  ;;  %v2915_v12 = vpop.f32.mrb[170].mxu0 }
 0x26c   : > { %v2372_v24 = vpop.f32.mrb[171].mxu1  ;;  %v4948_v13 = vpack.c.bf16 %v3440_v8, %v3439_v7  ;;  %v3171_v14 = vmax.f32 %v2913_v9, 0.0  ;;  %v2916_v33 = vadd.f32 %v2915_v12, %v2370_v11  ;;  %v2917_v16 = vpop.f32.mrb[171].mxu0 }
 0x26e   : > { %5100 = vst [vmem:[%s5995_s11 + $0x148] sm:$0xff] %v4948_v13   ;;  %v3306_v17 = vmul.f32 %v6355_v15, %v3171_v14  ;;  %v3172_v18 = vmax.f32 %v2916_v33, 0.0 }
 0x270   : > { %v3307_v22 = vmul.f32 %v6355_v15, %v3172_v18  ;;  %v3441_v25 = vadd.f32 %v6362_v23, %v3306_v17 }
 0x271   : > { %v2375_v19 = vpop.f32.mrb[172].mxu1  ;;  %v2920_v20 = vpop.f32.mrb[172].mxu0 }
 0x272   : > { %v2377_v21 = vpop.f32.mrb[173].mxu1  ;;  %v3442_v26 = vadd.f32 %v6362_v23, %v3307_v22  ;;  %v2921_v27 = vadd.f32 %v2920_v20, %v2375_v19  ;;  %v2922_v28 = vpop.f32.mrb[173].mxu0 }
 0x273   : > { %v2378_v29 = vpop.f32.mrb[174].mxu1  ;;  %v2923_v30 = vpop.f32.mrb[174].mxu0 }
 0x274   : > { %v2380_v31 = vpop.f32.mrb[175].mxu1  ;;  %v4953_v32 = vpack.c.bf16 %v3442_v26, %v3441_v25  ;;  %v3173_v34 = vmax.f32 %v2921_v27, 0.0  ;;  %v2924_v35 = vadd.f32 %v2923_v30, %v2378_v29  ;;  %v2925_v36 = vpop.f32.mrb[175].mxu0 }
 0x276   : > { %5101 = vst [vmem:[%s5995_s11 + $0x150] sm:$0xff] %v4953_v32   ;;  %v3308_v37 = vmul.f32 %v6355_v15, %v3173_v34  ;;  %v3174_v38 = vmax.f32 %v2924_v35, 0.0 }
 0x278   : > { %v3309_v39 = vmul.f32 %v6355_v15, %v3174_v38  ;;  %v3443_v43 = vadd.f32 %v6362_v23, %v3308_v37 }
 0x279   : > { %v2383_v40 = vpop.f32.mrb[176].mxu1  ;;  %v2928_v41 = vpop.f32.mrb[176].mxu0 }
 0x27a   : > { %v2385_v42 = vpop.f32.mrb[177].mxu1  ;;  %v3444_v44 = vadd.f32 %v6362_v23, %v3309_v39  ;;  %v2929_v45 = vadd.f32 %v2928_v41, %v2383_v40  ;;  %v2930_v46 = vpop.f32.mrb[177].mxu0 }
 0x27b   : > { %v2386_v47 = vpop.f32.mrb[178].mxu1  ;;  %v2931_v48 = vpop.f32.mrb[178].mxu0 }
 0x27c   : > { %v2388_v49 = vpop.f32.mrb[179].mxu1  ;;  %v4958_v50 = vpack.c.bf16 %v3444_v44, %v3443_v43  ;;  %v3175_v51 = vmax.f32 %v2929_v45, 0.0  ;;  %v2932_v52 = vadd.f32 %v2931_v48, %v2386_v47  ;;  %v2933_v53 = vpop.f32.mrb[179].mxu0 }
 0x27e   : > { %5102 = vst [vmem:[%s5995_s11 + $0x158] sm:$0xff] %v4958_v50   ;;  %v3310_v54 = vmul.f32 %v6355_v15, %v3175_v51  ;;  %v3176_v55 = vmax.f32 %v2932_v52, 0.0 }
 0x280   : > { %v3311_v56 = vmul.f32 %v6355_v15, %v3176_v55  ;;  %v3445_v60 = vadd.f32 %v6362_v23, %v3310_v54 }
 0x281   : > { %v2391_v57 = vpop.f32.mrb[180].mxu1  ;;  %v2936_v58 = vpop.f32.mrb[180].mxu0 }
 0x282   : > { %v2393_v59 = vpop.f32.mrb[181].mxu1  ;;  %v3446_v61 = vadd.f32 %v6362_v23, %v3311_v56  ;;  %v2937_v62 = vadd.f32 %v2936_v58, %v2391_v57  ;;  %v2938_v63 = vpop.f32.mrb[181].mxu0 }
 0x283   : > { %v2394_v0 = vpop.f32.mrb[182].mxu1  ;;  %v2939_v1 = vpop.f32.mrb[182].mxu0 }
 0x284   : > { %v2396_v2 = vpop.f32.mrb[183].mxu1  ;;  %v4963_v3 = vpack.c.bf16 %v3446_v61, %v3445_v60  ;;  %v3177_v4 = vmax.f32 %v2937_v62, 0.0  ;;  %v2940_v5 = vadd.f32 %v2939_v1, %v2394_v0  ;;  %v2941_v6 = vpop.f32.mrb[183].mxu0 }
 0x286   : > { %5103 = vst [vmem:[%s5995_s11 + $0x160] sm:$0xff] %v4963_v3   ;;  %v3312_v7 = vmul.f32 %v6355_v15, %v3177_v4  ;;  %v3178_v8 = vmax.f32 %v2940_v5, 0.0 }
 0x288   : > { %v3313_v9 = vmul.f32 %v6355_v15, %v3178_v8  ;;  %v3447_v24 = vadd.f32 %v6362_v23, %v3312_v7 }
 0x289   : > { %v2399_v10 = vpop.f32.mrb[184].mxu1  ;;  %v2944_v11 = vpop.f32.mrb[184].mxu0 }
 0x28a   : > { %v2401_v12 = vpop.f32.mrb[185].mxu1  ;;  %v3448_v13 = vadd.f32 %v6362_v23, %v3313_v9  ;;  %v2945_v14 = vadd.f32 %v2944_v11, %v2399_v10  ;;  %v2946_v33 = vpop.f32.mrb[185].mxu0 }
 0x28b   : > { %v2402_v16 = vpop.f32.mrb[186].mxu1  ;;  %v2947_v17 = vpop.f32.mrb[186].mxu0 }
 0x28c   : > { %v2404_v18 = vpop.f32.mrb[187].mxu1  ;;  %v4968_v22 = vpack.c.bf16 %v3448_v13, %v3447_v24  ;;  %v3179_v19 = vmax.f32 %v2945_v14, 0.0  ;;  %v2948_v20 = vadd.f32 %v2947_v17, %v2402_v16  ;;  %v2949_v21 = vpop.f32.mrb[187].mxu0 }
 0x28e   : > { %5104 = vst [vmem:[%s5995_s11 + $0x168] sm:$0xff] %v4968_v22   ;;  %v3314_v25 = vmul.f32 %v6355_v15, %v3179_v19  ;;  %v3180_v26 = vmax.f32 %v2948_v20, 0.0 }
 0x290   : > { %v3315_v27 = vmul.f32 %v6355_v15, %v3180_v26  ;;  %v3449_v31 = vadd.f32 %v6362_v23, %v3314_v25 }
 0x291   : > { %v2407_v28 = vpop.f32.mrb[188].mxu1  ;;  %v2952_v29 = vpop.f32.mrb[188].mxu0 }
 0x292   : > { %v2409_v30 = vpop.f32.mrb[189].mxu1  ;;  %v3450_v32 = vadd.f32 %v6362_v23, %v3315_v27  ;;  %v2953_v34 = vadd.f32 %v2952_v29, %v2407_v28  ;;  %v2954_v35 = vpop.f32.mrb[189].mxu0 }
 0x293   : > { %v2410_v36 = vpop.f32.mrb[190].mxu1  ;;  %v2955_v37 = vpop.f32.mrb[190].mxu0 }
 0x294   : > { %v2412_v38 = vpop.f32.mrb[191].mxu1  ;;  %v4973_v39 = vpack.c.bf16 %v3450_v32, %v3449_v31  ;;  %v3181_v40 = vmax.f32 %v2953_v34, 0.0  ;;  %v2956_v41 = vadd.f32 %v2955_v37, %v2410_v36  ;;  %v2957_v42 = vpop.f32.mrb[191].mxu0 }
 0x296   : > { %5105 = vst [vmem:[%s5995_s11 + $0x170] sm:$0xff] %v4973_v39   ;;  %v3316_v43 = vmul.f32 %v6355_v15, %v3181_v40  ;;  %v3182_v44 = vmax.f32 %v2956_v41, 0.0 }
 0x298   : > { %v3317_v45 = vmul.f32 %v6355_v15, %v3182_v44  ;;  %v3451_v49 = vadd.f32 %v6362_v23, %v3316_v43 }
 0x299   : > { %v2415_v46 = vpop.f32.mrb[192].mxu1  ;;  %v2960_v47 = vpop.f32.mrb[192].mxu0 }
 0x29a   : > { %v2417_v48 = vpop.f32.mrb[193].mxu1  ;;  %v3452_v50 = vadd.f32 %v6362_v23, %v3317_v45  ;;  %v2961_v51 = vadd.f32 %v2960_v47, %v2415_v46  ;;  %v2962_v52 = vpop.f32.mrb[193].mxu0 }
 0x29b   : > { %v2418_v53 = vpop.f32.mrb[194].mxu1  ;;  %v2963_v54 = vpop.f32.mrb[194].mxu0 }
 0x29c   : > { %v2420_v55 = vpop.f32.mrb[195].mxu1  ;;  %v4978_v56 = vpack.c.bf16 %v3452_v50, %v3451_v49  ;;  %v3183_v57 = vmax.f32 %v2961_v51, 0.0  ;;  %v2964_v58 = vadd.f32 %v2963_v54, %v2418_v53  ;;  %v2965_v59 = vpop.f32.mrb[195].mxu0 }
 0x29e   : > { %5106 = vst [vmem:[%s5995_s11 + $0x178] sm:$0xff] %v4978_v56   ;;  %v3318_v60 = vmul.f32 %v6355_v15, %v3183_v57  ;;  %v3184_v61 = vmax.f32 %v2964_v58, 0.0 }
 0x2a0   : > { %v3319_v62 = vmul.f32 %v6355_v15, %v3184_v61  ;;  %v3453_v2 = vadd.f32 %v6362_v23, %v3318_v60 }
 0x2a1   : > { %v2423_v63 = vpop.f32.mrb[196].mxu1  ;;  %v2968_v0 = vpop.f32.mrb[196].mxu0 }
 0x2a2   : > { %v2425_v1 = vpop.f32.mrb[197].mxu1  ;;  %v3454_v3 = vadd.f32 %v6362_v23, %v3319_v62  ;;  %v2969_v4 = vadd.f32 %v2968_v0, %v2423_v63  ;;  %v2970_v5 = vpop.f32.mrb[197].mxu0 }
 0x2a3   : > { %v2426_v6 = vpop.f32.mrb[198].mxu1  ;;  %v2971_v7 = vpop.f32.mrb[198].mxu0 }
 0x2a4   : > { %v2428_v8 = vpop.f32.mrb[199].mxu1  ;;  %v4983_v9 = vpack.c.bf16 %v3454_v3, %v3453_v2  ;;  %v3185_v10 = vmax.f32 %v2969_v4, 0.0  ;;  %v2972_v11 = vadd.f32 %v2971_v7, %v2426_v6  ;;  %v2973_v12 = vpop.f32.mrb[199].mxu0 }
 0x2a6   : > { %5107 = vst [vmem:[%s5995_s11 + $0x180] sm:$0xff] %v4983_v9   ;;  %v3320_v24 = vmul.f32 %v6355_v15, %v3185_v10  ;;  %v3186_v13 = vmax.f32 %v2972_v11, 0.0 }
 0x2a8   : > { %v3321_v14 = vmul.f32 %v6355_v15, %v3186_v13  ;;  %v3455_v18 = vadd.f32 %v6362_v23, %v3320_v24 }
 0x2a9   : > { %v2431_v33 = vpop.f32.mrb[200].mxu1  ;;  %v2976_v16 = vpop.f32.mrb[200].mxu0 }
 0x2aa   : > { %v2433_v17 = vpop.f32.mrb[201].mxu1  ;;  %v3456_v22 = vadd.f32 %v6362_v23, %v3321_v14  ;;  %v2977_v19 = vadd.f32 %v2976_v16, %v2431_v33  ;;  %v2978_v20 = vpop.f32.mrb[201].mxu0 }
 0x2ab   : > { %v2434_v21 = vpop.f32.mrb[202].mxu1  ;;  %v2979_v25 = vpop.f32.mrb[202].mxu0 }
 0x2ac   : > { %v2436_v26 = vpop.f32.mrb[203].mxu1  ;;  %v4988_v27 = vpack.c.bf16 %v3456_v22, %v3455_v18  ;;  %v3187_v28 = vmax.f32 %v2977_v19, 0.0  ;;  %v2980_v29 = vadd.f32 %v2979_v25, %v2434_v21  ;;  %v2981_v30 = vpop.f32.mrb[203].mxu0 }
 0x2ae   : > { %5108 = vst [vmem:[%s5995_s11 + $0x188] sm:$0xff] %v4988_v27   ;;  %v3322_v31 = vmul.f32 %v6355_v15, %v3187_v28  ;;  %v3188_v32 = vmax.f32 %v2980_v29, 0.0 }
 0x2b0   : > { %v3323_v34 = vmul.f32 %v6355_v15, %v3188_v32  ;;  %v3457_v38 = vadd.f32 %v6362_v23, %v3322_v31 }
 0x2b1   : > { %v2439_v35 = vpop.f32.mrb[204].mxu1  ;;  %v2984_v36 = vpop.f32.mrb[204].mxu0 }
 0x2b2   : > { %v2441_v37 = vpop.f32.mrb[205].mxu1  ;;  %v3458_v39 = vadd.f32 %v6362_v23, %v3323_v34  ;;  %v2985_v40 = vadd.f32 %v2984_v36, %v2439_v35  ;;  %v2986_v41 = vpop.f32.mrb[205].mxu0 }
 0x2b3   : > { %v2442_v42 = vpop.f32.mrb[206].mxu1  ;;  %v2987_v43 = vpop.f32.mrb[206].mxu0 }
 0x2b4   : > { %v2444_v44 = vpop.f32.mrb[207].mxu1  ;;  %v4993_v45 = vpack.c.bf16 %v3458_v39, %v3457_v38  ;;  %v3189_v46 = vmax.f32 %v2985_v40, 0.0  ;;  %v2988_v47 = vadd.f32 %v2987_v43, %v2442_v42  ;;  %v2989_v48 = vpop.f32.mrb[207].mxu0 }
 0x2b6   : > { %5109 = vst [vmem:[%s5995_s11 + $0x190] sm:$0xff] %v4993_v45   ;;  %v3324_v49 = vmul.f32 %v6355_v15, %v3189_v46  ;;  %v3190_v50 = vmax.f32 %v2988_v47, 0.0 }
 0x2b8   : > { %v3325_v51 = vmul.f32 %v6355_v15, %v3190_v50  ;;  %v3459_v55 = vadd.f32 %v6362_v23, %v3324_v49 }
 0x2b9   : > { %v2447_v52 = vpop.f32.mrb[208].mxu1  ;;  %v2992_v53 = vpop.f32.mrb[208].mxu0 }
 0x2ba   : > { %v2449_v54 = vpop.f32.mrb[209].mxu1  ;;  %v3460_v56 = vadd.f32 %v6362_v23, %v3325_v51  ;;  %v2993_v57 = vadd.f32 %v2992_v53, %v2447_v52  ;;  %v2994_v58 = vpop.f32.mrb[209].mxu0 }
 0x2bb   : > { %v2450_v59 = vpop.f32.mrb[210].mxu1  ;;  %v2995_v60 = vpop.f32.mrb[210].mxu0 }
 0x2bc   : > { %v2452_v61 = vpop.f32.mrb[211].mxu1  ;;  %v4998_v62 = vpack.c.bf16 %v3460_v56, %v3459_v55  ;;  %v3191_v63 = vmax.f32 %v2993_v57, 0.0  ;;  %v2996_v0 = vadd.f32 %v2995_v60, %v2450_v59  ;;  %v2997_v1 = vpop.f32.mrb[211].mxu0 }
 0x2be   : > { %5110 = vst [vmem:[%s5995_s11 + $0x198] sm:$0xff] %v4998_v62   ;;  %v3326_v2 = vmul.f32 %v6355_v15, %v3191_v63  ;;  %v3192_v3 = vmax.f32 %v2996_v0, 0.0 }
 0x2c0   : > { %v3327_v4 = vmul.f32 %v6355_v15, %v3192_v3  ;;  %v3461_v8 = vadd.f32 %v6362_v23, %v3326_v2 }
 0x2c1   : > { %v2455_v5 = vpop.f32.mrb[212].mxu1  ;;  %v3000_v6 = vpop.f32.mrb[212].mxu0 }
 0x2c2   : > { %v2457_v7 = vpop.f32.mrb[213].mxu1  ;;  %v3462_v9 = vadd.f32 %v6362_v23, %v3327_v4  ;;  %v3001_v10 = vadd.f32 %v3000_v6, %v2455_v5  ;;  %v3002_v11 = vpop.f32.mrb[213].mxu0 }
 0x2c3   : > { %v2458_v12 = vpop.f32.mrb[214].mxu1  ;;  %v3003_v24 = vpop.f32.mrb[214].mxu0 }
 0x2c4   : > { %v2460_v13 = vpop.f32.mrb[215].mxu1  ;;  %v5003_v14 = vpack.c.bf16 %v3462_v9, %v3461_v8  ;;  %v3193_v33 = vmax.f32 %v3001_v10, 0.0  ;;  %v3004_v16 = vadd.f32 %v3003_v24, %v2458_v12  ;;  %v3005_v17 = vpop.f32.mrb[215].mxu0 }
 0x2c6   : > { %5111 = vst [vmem:[%s5995_s11 + $0x1a0] sm:$0xff] %v5003_v14   ;;  %v3328_v18 = vmul.f32 %v6355_v15, %v3193_v33  ;;  %v3194_v22 = vmax.f32 %v3004_v16, 0.0 }
 0x2c8   : > { %v3329_v19 = vmul.f32 %v6355_v15, %v3194_v22  ;;  %v3463_v26 = vadd.f32 %v6362_v23, %v3328_v18 }
 0x2c9   : > { %v2463_v20 = vpop.f32.mrb[216].mxu1  ;;  %v3008_v21 = vpop.f32.mrb[216].mxu0 }
 0x2ca   : > { %v2465_v25 = vpop.f32.mrb[217].mxu1  ;;  %v3464_v27 = vadd.f32 %v6362_v23, %v3329_v19  ;;  %v3009_v28 = vadd.f32 %v3008_v21, %v2463_v20  ;;  %v3010_v29 = vpop.f32.mrb[217].mxu0 }
 0x2cb   : > { %v2466_v30 = vpop.f32.mrb[218].mxu1  ;;  %v3011_v31 = vpop.f32.mrb[218].mxu0 }
 0x2cc   : > { %v2468_v32 = vpop.f32.mrb[219].mxu1  ;;  %v5008_v34 = vpack.c.bf16 %v3464_v27, %v3463_v26  ;;  %v3195_v35 = vmax.f32 %v3009_v28, 0.0  ;;  %v3012_v36 = vadd.f32 %v3011_v31, %v2466_v30  ;;  %v3013_v37 = vpop.f32.mrb[219].mxu0 }
 0x2ce   : > { %5112 = vst [vmem:[%s5995_s11 + $0x1a8] sm:$0xff] %v5008_v34   ;;  %v3330_v38 = vmul.f32 %v6355_v15, %v3195_v35  ;;  %v3196_v39 = vmax.f32 %v3012_v36, 0.0 }
 0x2d0   : > { %v3331_v40 = vmul.f32 %v6355_v15, %v3196_v39  ;;  %v3465_v44 = vadd.f32 %v6362_v23, %v3330_v38 }
 0x2d1   : > { %v2471_v41 = vpop.f32.mrb[220].mxu1  ;;  %v3016_v42 = vpop.f32.mrb[220].mxu0 }
 0x2d2   : > { %v2473_v43 = vpop.f32.mrb[221].mxu1  ;;  %v3466_v45 = vadd.f32 %v6362_v23, %v3331_v40  ;;  %v3017_v46 = vadd.f32 %v3016_v42, %v2471_v41  ;;  %v3018_v47 = vpop.f32.mrb[221].mxu0 }
 0x2d3   : > { %v2474_v48 = vpop.f32.mrb[222].mxu1  ;;  %v3019_v49 = vpop.f32.mrb[222].mxu0 }
 0x2d4   : > { %v2476_v50 = vpop.f32.mrb[223].mxu1  ;;  %v5013_v51 = vpack.c.bf16 %v3466_v45, %v3465_v44  ;;  %v3197_v52 = vmax.f32 %v3017_v46, 0.0  ;;  %v3020_v53 = vadd.f32 %v3019_v49, %v2474_v48  ;;  %v3021_v54 = vpop.f32.mrb[223].mxu0 }
 0x2d6   : > { %5113 = vst [vmem:[%s5995_s11 + $0x1b0] sm:$0xff] %v5013_v51   ;;  %v3332_v55 = vmul.f32 %v6355_v15, %v3197_v52  ;;  %v3198_v56 = vmax.f32 %v3020_v53, 0.0 }
 0x2d8   : > { %v3333_v57 = vmul.f32 %v6355_v15, %v3198_v56  ;;  %v3467_v61 = vadd.f32 %v6362_v23, %v3332_v55 }
 0x2d9   : > { %v2479_v58 = vpop.f32.mrb[224].mxu1  ;;  %v3024_v59 = vpop.f32.mrb[224].mxu0 }
 0x2da   : > { %v2481_v60 = vpop.f32.mrb[225].mxu1  ;;  %v3468_v62 = vadd.f32 %v6362_v23, %v3333_v57  ;;  %v3025_v63 = vadd.f32 %v3024_v59, %v2479_v58  ;;  %v3026_v0 = vpop.f32.mrb[225].mxu0 }
 0x2db   : > { %v2482_v1 = vpop.f32.mrb[226].mxu1  ;;  %v3027_v2 = vpop.f32.mrb[226].mxu0 }
 0x2dc   : > { %v2484_v3 = vpop.f32.mrb[227].mxu1  ;;  %v5018_v4 = vpack.c.bf16 %v3468_v62, %v3467_v61  ;;  %v3199_v5 = vmax.f32 %v3025_v63, 0.0  ;;  %v3028_v6 = vadd.f32 %v3027_v2, %v2482_v1  ;;  %v3029_v7 = vpop.f32.mrb[227].mxu0 }
 0x2de   : > { %5114 = vst [vmem:[%s5995_s11 + $0x1b8] sm:$0xff] %v5018_v4   ;;  %v3334_v8 = vmul.f32 %v6355_v15, %v3199_v5  ;;  %v3200_v9 = vmax.f32 %v3028_v6, 0.0 }
 0x2e0   : > { %v3335_v10 = vmul.f32 %v6355_v15, %v3200_v9  ;;  %v3469_v13 = vadd.f32 %v6362_v23, %v3334_v8 }
 0x2e1   : > { %v2487_v11 = vpop.f32.mrb[228].mxu1  ;;  %v3032_v12 = vpop.f32.mrb[228].mxu0 }
 0x2e2   : > { %v2489_v24 = vpop.f32.mrb[229].mxu1  ;;  %v3470_v14 = vadd.f32 %v6362_v23, %v3335_v10  ;;  %v3033_v33 = vadd.f32 %v3032_v12, %v2487_v11  ;;  %v3034_v16 = vpop.f32.mrb[229].mxu0 }
 0x2e3   : > { %v2490_v17 = vpop.f32.mrb[230].mxu1  ;;  %v3035_v18 = vpop.f32.mrb[230].mxu0 }
 0x2e4   : > { %v2492_v22 = vpop.f32.mrb[231].mxu1  ;;  %v5023_v19 = vpack.c.bf16 %v3470_v14, %v3469_v13  ;;  %v3201_v20 = vmax.f32 %v3033_v33, 0.0  ;;  %v3036_v21 = vadd.f32 %v3035_v18, %v2490_v17  ;;  %v3037_v25 = vpop.f32.mrb[231].mxu0 }
 0x2e6   : > { %5115 = vst [vmem:[%s5995_s11 + $0x1c0] sm:$0xff] %v5023_v19   ;;  %v3336_v26 = vmul.f32 %v6355_v15, %v3201_v20  ;;  %v3202_v27 = vmax.f32 %v3036_v21, 0.0 }
 0x2e8   : > { %v3337_v28 = vmul.f32 %v6355_v15, %v3202_v27  ;;  %v3471_v32 = vadd.f32 %v6362_v23, %v3336_v26 }
 0x2e9   : > { %v2495_v29 = vpop.f32.mrb[232].mxu1  ;;  %v3040_v30 = vpop.f32.mrb[232].mxu0 }
 0x2ea   : > { %v2497_v31 = vpop.f32.mrb[233].mxu1  ;;  %v3472_v34 = vadd.f32 %v6362_v23, %v3337_v28  ;;  %v3041_v35 = vadd.f32 %v3040_v30, %v2495_v29  ;;  %v3042_v36 = vpop.f32.mrb[233].mxu0 }
 0x2eb   : > { %v2498_v37 = vpop.f32.mrb[234].mxu1  ;;  %v3043_v38 = vpop.f32.mrb[234].mxu0 }
 0x2ec   : > { %v2500_v39 = vpop.f32.mrb[235].mxu1  ;;  %v5028_v40 = vpack.c.bf16 %v3472_v34, %v3471_v32  ;;  %v3203_v41 = vmax.f32 %v3041_v35, 0.0  ;;  %v3044_v42 = vadd.f32 %v3043_v38, %v2498_v37  ;;  %v3045_v43 = vpop.f32.mrb[235].mxu0 }
 0x2ee   : > { %5116 = vst [vmem:[%s5995_s11 + $0x1c8] sm:$0xff] %v5028_v40   ;;  %v3338_v44 = vmul.f32 %v6355_v15, %v3203_v41  ;;  %v3204_v45 = vmax.f32 %v3044_v42, 0.0 }
 0x2f0   : > { %v3339_v46 = vmul.f32 %v6355_v15, %v3204_v45  ;;  %v3473_v50 = vadd.f32 %v6362_v23, %v3338_v44 }
 0x2f1   : > { %v2503_v47 = vpop.f32.mrb[236].mxu1  ;;  %v3048_v48 = vpop.f32.mrb[236].mxu0 }
 0x2f2   : > { %v2505_v49 = vpop.f32.mrb[237].mxu1  ;;  %v3474_v51 = vadd.f32 %v6362_v23, %v3339_v46  ;;  %v3049_v52 = vadd.f32 %v3048_v48, %v2503_v47  ;;  %v3050_v53 = vpop.f32.mrb[237].mxu0 }
 0x2f3   : > { %v2506_v54 = vpop.f32.mrb[238].mxu1  ;;  %v3051_v55 = vpop.f32.mrb[238].mxu0 }
 0x2f4   : > { %v2508_v56 = vpop.f32.mrb[239].mxu1  ;;  %v5033_v57 = vpack.c.bf16 %v3474_v51, %v3473_v50  ;;  %v3205_v58 = vmax.f32 %v3049_v52, 0.0  ;;  %v3052_v59 = vadd.f32 %v3051_v55, %v2506_v54  ;;  %v3053_v60 = vpop.f32.mrb[239].mxu0 }
 0x2f6   : > { %5117 = vst [vmem:[%s5995_s11 + $0x1d0] sm:$0xff] %v5033_v57   ;;  %v3340_v61 = vmul.f32 %v6355_v15, %v3205_v58  ;;  %v3206_v62 = vmax.f32 %v3052_v59, 0.0 }
 0x2f8   : > { %v3341_v63 = vmul.f32 %v6355_v15, %v3206_v62  ;;  %v3475_v3 = vadd.f32 %v6362_v23, %v3340_v61 }
 0x2f9   : > { %v2511_v0 = vpop.f32.mrb[240].mxu1  ;;  %v3056_v1 = vpop.f32.mrb[240].mxu0 }
 0x2fa   : > { %v2513_v2 = vpop.f32.mrb[241].mxu1  ;;  %v3476_v4 = vadd.f32 %v6362_v23, %v3341_v63  ;;  %v3057_v5 = vadd.f32 %v3056_v1, %v2511_v0  ;;  %v3058_v6 = vpop.f32.mrb[241].mxu0 }
 0x2fb   : > { %v2514_v7 = vpop.f32.mrb[242].mxu1  ;;  %v3059_v8 = vpop.f32.mrb[242].mxu0 }
 0x2fc   : > { %v2516_v9 = vpop.f32.mrb[243].mxu1  ;;  %v5038_v10 = vpack.c.bf16 %v3476_v4, %v3475_v3  ;;  %v3207_v11 = vmax.f32 %v3057_v5, 0.0  ;;  %v3060_v12 = vadd.f32 %v3059_v8, %v2514_v7  ;;  %v3061_v24 = vpop.f32.mrb[243].mxu0 }
 0x2fe   : > { %5118 = vst [vmem:[%s5995_s11 + $0x1d8] sm:$0xff] %v5038_v10   ;;  %v3342_v13 = vmul.f32 %v6355_v15, %v3207_v11  ;;  %v3208_v14 = vmax.f32 %v3060_v12, 0.0 }
 0x300   : > { %v3343_v33 = vmul.f32 %v6355_v15, %v3208_v14  ;;  %v3477_v22 = vadd.f32 %v6362_v23, %v3342_v13 }
 0x301   : > { %v2519_v16 = vpop.f32.mrb[244].mxu1  ;;  %v3064_v17 = vpop.f32.mrb[244].mxu0 }
 0x302   : > { %v2521_v18 = vpop.f32.mrb[245].mxu1  ;;  %v3478_v19 = vadd.f32 %v6362_v23, %v3343_v33  ;;  %v3065_v20 = vadd.f32 %v3064_v17, %v2519_v16  ;;  %v3066_v21 = vpop.f32.mrb[245].mxu0 }
 0x303   : > { %v2522_v25 = vpop.f32.mrb[246].mxu1  ;;  %v3067_v26 = vpop.f32.mrb[246].mxu0 }
 0x304   : > { %v2524_v27 = vpop.f32.mrb[247].mxu1  ;;  %v5043_v28 = vpack.c.bf16 %v3478_v19, %v3477_v22  ;;  %v3209_v29 = vmax.f32 %v3065_v20, 0.0  ;;  %v3068_v30 = vadd.f32 %v3067_v26, %v2522_v25  ;;  %v3069_v31 = vpop.f32.mrb[247].mxu0 }
 0x306   : > { %5119 = vst [vmem:[%s5995_s11 + $0x1e0] sm:$0xff] %v5043_v28   ;;  %v3344_v32 = vmul.f32 %v6355_v15, %v3209_v29  ;;  %v3210_v34 = vmax.f32 %v3068_v30, 0.0 }
 0x308   : > { %v3345_v35 = vmul.f32 %v6355_v15, %v3210_v34  ;;  %v3479_v39 = vadd.f32 %v6362_v23, %v3344_v32 }
 0x309   : > { %v2527_v36 = vpop.f32.mrb[248].mxu1  ;;  %v3072_v37 = vpop.f32.mrb[248].mxu0 }
 0x30a   : > { %v2529_v38 = vpop.f32.mrb[249].mxu1  ;;  %v3480_v40 = vadd.f32 %v6362_v23, %v3345_v35  ;;  %v3073_v41 = vadd.f32 %v3072_v37, %v2527_v36  ;;  %v3074_v42 = vpop.f32.mrb[249].mxu0 }
 0x30b   : > { %v2530_v43 = vpop.f32.mrb[250].mxu1  ;;  %v3075_v44 = vpop.f32.mrb[250].mxu0 }
 0x30c   : > { %v2532_v45 = vpop.f32.mrb[251].mxu1  ;;  %v5048_v46 = vpack.c.bf16 %v3480_v40, %v3479_v39  ;;  %v3211_v47 = vmax.f32 %v3073_v41, 0.0  ;;  %v3076_v48 = vadd.f32 %v3075_v44, %v2530_v43  ;;  %v3077_v49 = vpop.f32.mrb[251].mxu0 }
 0x30e   : > { %5120 = vst [vmem:[%s5995_s11 + $0x1e8] sm:$0xff] %v5048_v46   ;;  %v3346_v50 = vmul.f32 %v6355_v15, %v3211_v47  ;;  %v3212_v51 = vmax.f32 %v3076_v48, 0.0 }
 0x310   : > { %v3347_v52 = vmul.f32 %v6355_v15, %v3212_v51  ;;  %v3481_v56 = vadd.f32 %v6362_v23, %v3346_v50 }
 0x311   : > { %v2535_v53 = vpop.f32.mrb[252].mxu1  ;;  %v3080_v54 = vpop.f32.mrb[252].mxu0 }
 0x312   : > { %v2537_v55 = vpop.f32.mrb[253].mxu1  ;;  %v3482_v57 = vadd.f32 %v6362_v23, %v3347_v52  ;;  %v3081_v58 = vadd.f32 %v3080_v54, %v2535_v53  ;;  %v3082_v59 = vpop.f32.mrb[253].mxu0 }
 0x313   : > { %v2538_v60 = vpop.f32.mrb[254].mxu1  ;;  %v3083_v61 = vpop.f32.mrb[254].mxu0 }
 0x314   : > { %v2540_v62 = vpop.f32.mrb[255].mxu1  ;;  %v5053_v63 = vpack.c.bf16 %v3482_v57, %v3481_v56  ;;  %v3213_v0 = vmax.f32 %v3081_v58, 0.0  ;;  %v3084_v1 = vadd.f32 %v3083_v61, %v2538_v60  ;;  %v3085_v2 = vpop.f32.mrb[255].mxu0 }
 0x316   : > { %5121 = vst [vmem:[%s5995_s11 + $0x1f0] sm:$0xff] %v5053_v63   ;;  %v3348_v3 = vmul.f32 %v6355_v15, %v3213_v0  ;;  %v3214_v4 = vmax.f32 %v3084_v1, 0.0 }
 0x318   : > { %v3349_v5 = vmul.f32 %v6355_v15, %v3214_v4  ;;  %v3483_v6 = vadd.f32 %v6362_v23, %v3348_v3 }
 0x31a   : > { %v3484_v7 = vadd.f32 %v6362_v23, %v3349_v5 }
 0x31c   : > { %v5058_v8 = vpack.c.bf16 %v3484_v7, %v3483_v6 }
 0x31e   : > { %5122 = vst [vmem:[%s5995_s11 + $0x1f8] sm:$0xff] %v5058_v8  }
 0x31f PF: > { %s14_s15 = sadd.s32 1, %s5686_s15  }
 0x320   : > { %p11_p4 = scmp.ge.s32.totalorder %s14_s15, 4  }
 0x322   :  { %13 = sbr.rel (!%p11_p4) target bundleno = 1 (0x1), region = 66 }

// kernel: meso4_forward.9
= control target key start
LH: loop header
LB: loop body
LE: loop exit
PB: predicated region body
PF: predicated region fallthrough
CT: control target
= control target key end

     0   :  { %vm1147_vm0 = vmmov 0   ;;  %s1440_s1 = inlined_call_operand.vmem [shape: bf16[1024,128], index: 1, kind: input, shape index: {}]   ;;  %s1441_s0 = inlined_call_operand.vmem [shape: bf16[8,1024], index: 0, kind: input, shape index: {}]   ;;  %s1442_s3 = inlined_call_operand.vmem [shape: f32[128,128], index: 3, kind: input, shape index: {}]   ;;  %s1443_s2 = inlined_call_operand.vmem [shape: f32[1,128], index: 2, kind: input, shape index: {}]   ;;  %s1444_s4 = inlined_call_operand.vmem [shape: f32[1,128], index: 4, kind: input, shape index: {}]   ;;  %s1445_s5 = inlined_call_operand.vmem [shape: f32[8,128], index: 5, kind: output, shape index: {}]  }
   0x1   :  { %v1074_v0 = vld [vmem:[%s1440_s1 + $0x40] sm:$0xff]   ;;  %v1078_v4 = vld [vmem:[%s1440_s1 + $0x48] sm:$0xff]   ;;  %v1082_v8 = vld [vmem:[%s1440_s1 + $0x50] sm:$0xff]  }
   0x2   :  { %v1075_v1 = vld [vmem:[%s1440_s1 + $0xc0] sm:$0xff]   ;;  %907 = vmatprep.subr.bf16.mxu0 %v1074_v0  ;;  %v1079_v5 = vld [vmem:[%s1440_s1 + $0xc8] sm:$0xff]   ;;  %v1083_v9 = vld [vmem:[%s1440_s1 + $0xd0] sm:$0xff]  }
   0x3   :  { %v1076_v2 = vld [vmem:[%s1440_s1] sm:$0xff]   ;;  %929 = vmatprep.subr.bf16.mxu1 %v1075_v1  ;;  %v1080_v6 = vld [vmem:[%s1440_s1 + $0x8] sm:$0xff]   ;;  %v1084_v10 = vld [vmem:[%s1440_s1 + $0x10] sm:$0xff]  }
   0x4   :  { %v1077_v3 = vld [vmem:[%s1440_s1 + $0x80] sm:$0xff]   ;;  %908 = vmatpush3.bf16.msra.mxu0 %v1076_v2  ;;  %v1081_v7 = vld [vmem:[%s1440_s1 + $0x88] sm:$0xff]   ;;  %v1085_v11 = vld [vmem:[%s1440_s1 + $0x90] sm:$0xff]  }
   0x5   :  { %930 = vmatpush3.bf16.msra.mxu1 %v1077_v3  ;;  %909 = vmatprep.subr.bf16.mxu0 %v1078_v4  ;;  %v1086_v12 = vld [vmem:[%s1440_s1 + $0x58] sm:$0xff]   ;;  %v1090_v16 = vld [vmem:[%s1440_s1 + $0x60] sm:$0xff]   ;;  %v1094_v20 = vld [vmem:[%s1440_s1 + $0x68] sm:$0xff]  }
   0x6   :  { %931 = vmatprep.subr.bf16.mxu1 %v1079_v5  ;;  %v1087_v13 = vld [vmem:[%s1440_s1 + $0xd8] sm:$0xff]   ;;  %v1091_v17 = vld [vmem:[%s1440_s1 + $0xe0] sm:$0xff]   ;;  %v1095_v21 = vld [vmem:[%s1440_s1 + $0xe8] sm:$0xff]  }
   0x7   :  { %v1088_v14 = vld [vmem:[%s1440_s1 + $0x18] sm:$0xff]   ;;  %v1092_v18 = vld [vmem:[%s1440_s1 + $0x20] sm:$0xff]   ;;  %v1096_v22 = vld [vmem:[%s1440_s1 + $0x28] sm:$0xff]  }
   0x8   :  { %910 = vmatpush3.bf16.msra.mxu0 %v1080_v6  ;;  %v1089_v15 = vld [vmem:[%s1440_s1 + $0x98] sm:$0xff]   ;;  %v1093_v19 = vld [vmem:[%s1440_s1 + $0xa0] sm:$0xff]   ;;  %v1097_v23 = vld [vmem:[%s1440_s1 + $0xa8] sm:$0xff]  }
   0x9   :  { %932 = vmatpush3.bf16.msra.mxu1 %v1081_v7  ;;  %911 = vmatprep.subr.bf16.mxu0 %v1082_v8  ;;  %v1098_v24 = vld [vmem:[%s1440_s1 + $0x70] sm:$0xff]   ;;  %v1102_v28 = vld [vmem:[%s1440_s1 + $0x78] sm:$0xff]   ;;  %v21_v32 = vld [vmem:[%s1441_s0] sm:$0xff] }
   0xa   :  { %933 = vmatprep.subr.bf16.mxu1 %v1083_v9  ;;  %v1099_v25 = vld [vmem:[%s1440_s1 + $0xf0] sm:$0xff]   ;;  %v1103_v29 = vld [vmem:[%s1440_s1 + $0xf8] sm:$0xff]   ;;  %v22_v33 = vld [vmem:[%s1441_s0 + $0x8] sm:$0xff]  ;;  %v834_v34 = vcombine.low %v21_v32, %v21_v32  ;;  %v835_v35 = vcombine.high %v21_v32, %v21_v32 }
   0xb   :  { %v1100_v26 = vld [vmem:[%s1440_s1 + $0x30] sm:$0xff]   ;;  %v1104_v30 = vld [vmem:[%s1440_s1 + $0x38] sm:$0xff]   ;;  %v836_v36 = vcombine.low %v22_v33, %v22_v33  ;;  %v837_v37 = vcombine.high %v22_v33, %v22_v33  ;;  %v1110_v38 = vld [vmem:[%s1440_s1 + $0x140] sm:$0xff]  }
   0xc   :  { %912 = vmatpush3.bf16.msra.mxu0 %v1084_v10  ;;  %v1101_v27 = vld [vmem:[%s1440_s1 + $0xb0] sm:$0xff]   ;;  %v1105_v31 = vld [vmem:[%s1440_s1 + $0xb8] sm:$0xff]   ;;  %v1111_v39 = vld [vmem:[%s1440_s1 + $0x1c0] sm:$0xff]   ;;  %604 = vmatprep.mubr.bf16.mxu0 %v835_v35 }
   0xd   :  { %934 = vmatpush3.bf16.msra.mxu1 %v1085_v11  ;;  %913 = vmatprep.subr.bf16.mxu0 %v1086_v12  ;;  %v1112_v40 = vld [vmem:[%s1440_s1 + $0x100] sm:$0xff]   ;;  %v1114_v42 = vld [vmem:[%s1440_s1 + $0x148] sm:$0xff]   ;;  %v1118_v46 = vld [vmem:[%s1440_s1 + $0x150] sm:$0xff]   ;;  %v1146_v12 = vmov 0.0|0.0  }
   0xe   :  { %935 = vmatprep.subr.bf16.mxu1 %v1087_v13  ;;  %644 = vmatprep.mubr.bf16.mxu1 %v837_v37  ;;  %v1113_v41 = vld [vmem:[%s1440_s1 + $0x180] sm:$0xff]   ;;  %v1115_v43 = vld [vmem:[%s1440_s1 + $0x1c8] sm:$0xff]   ;;  %v1119_v47 = vld [vmem:[%s1440_s1 + $0x1d0] sm:$0xff]   ;;  %v1148_v37 = vmov 0.0  }
   0xf   :  { %v1116_v44 = vld [vmem:[%s1440_s1 + $0x108] sm:$0xff]   ;;  %v1120_v48 = vld [vmem:[%s1440_s1 + $0x110] sm:$0xff]   ;;  %v1122_v50 = vld [vmem:[%s1440_s1 + $0x158] sm:$0xff]  }
  0x10   :  { %914 = vmatpush3.bf16.msra.mxu0 %v1088_v14  ;;  %v1117_v45 = vld [vmem:[%s1440_s1 + $0x188] sm:$0xff]   ;;  %v1121_v49 = vld [vmem:[%s1440_s1 + $0x190] sm:$0xff]   ;;  %v1123_v51 = vld [vmem:[%s1440_s1 + $0x1d8] sm:$0xff]  }
  0x11   :  { %936 = vmatpush3.bf16.msra.mxu1 %v1089_v15  ;;  %915 = vmatprep.subr.bf16.mxu0 %v1090_v16  ;;  %v1124_v52 = vld [vmem:[%s1440_s1 + $0x118] sm:$0xff]   ;;  %v1126_v54 = vld [vmem:[%s1440_s1 + $0x160] sm:$0xff]   ;;  %v1130_v58 = vld [vmem:[%s1440_s1 + $0x168] sm:$0xff]  }
  0x12   :  { %937 = vmatprep.subr.bf16.mxu1 %v1091_v17  ;;  %v1125_v53 = vld [vmem:[%s1440_s1 + $0x198] sm:$0xff]   ;;  %v1127_v55 = vld [vmem:[%s1440_s1 + $0x1e0] sm:$0xff]   ;;  %v1131_v59 = vld [vmem:[%s1440_s1 + $0x1e8] sm:$0xff]  }
  0x13   :  { %v1128_v56 = vld [vmem:[%s1440_s1 + $0x120] sm:$0xff]   ;;  %v1132_v60 = vld [vmem:[%s1440_s1 + $0x128] sm:$0xff]   ;;  %v1134_v62 = vld [vmem:[%s1440_s1 + $0x170] sm:$0xff]  }
  0x14   :  { %916 = vmatpush3.bf16.msra.mxu0 %v1092_v18  ;;  %v1129_v57 = vld [vmem:[%s1440_s1 + $0x1a0] sm:$0xff]   ;;  %v1133_v61 = vld [vmem:[%s1440_s1 + $0x1a8] sm:$0xff]   ;;  %v1135_v63 = vld [vmem:[%s1440_s1 + $0x1f0] sm:$0xff]  }
  0x15   :  { %938 = vmatpush3.bf16.msra.mxu1 %v1093_v19  ;;  %917 = vmatprep.subr.bf16.mxu0 %v1094_v20  ;;  %v1136_v0 = vld [vmem:[%s1440_s1 + $0x130] sm:$0xff]   ;;  %v1138_v2 = vld [vmem:[%s1440_s1 + $0x178] sm:$0xff]   ;;  %v735_v13 = vld [vmem:[%s1442_s3] sm:$0xff] }
  0x16   :  { %939 = vmatprep.subr.bf16.mxu1 %v1095_v21  ;;  %v1137_v1 = vld [vmem:[%s1440_s1 + $0x1b0] sm:$0xff]   ;;  %v1139_v3 = vld [vmem:[%s1440_s1 + $0x1f8] sm:$0xff]   ;;  %v736_v14 = vld [vmem:[%s1442_s3 + $0x8] sm:$0xff] }
  0x17   :  { %v1140_v4 = vld [vmem:[%s1440_s1 + $0x138] sm:$0xff]   ;;  %v23_v6 = vld [vmem:[%s1441_s0 + $0x10] sm:$0xff]  ;;  %v1048_v16 = vpack.c.bf16 %v736_v14, %v735_v13  ;;  %v739_v19 = vld [vmem:[%s1442_s3 + $0x20] sm:$0xff] }
  0x18   :  { %918 = vmatpush3.bf16.msra.mxu0 %v1096_v22  ;;  %v1141_v5 = vld [vmem:[%s1440_s1 + $0x1b8] sm:$0xff]   ;;  %v838_v7 = vcombine.low %v23_v6, %v23_v6  ;;  %v839_v8 = vcombine.high %v23_v6, %v23_v6  ;;  %v737_v15 = vld [vmem:[%s1442_s3 + $0x10] sm:$0xff]  ;;  %v740_v20 = vld [vmem:[%s1442_s3 + $0x28] sm:$0xff] }
  0x19   :  { %940 = vmatpush3.bf16.msra.mxu1 %v1097_v23  ;;  %919 = vmatprep.subr.bf16.mxu0 %v1098_v24  ;;  %v24_v9 = vld [vmem:[%s1441_s0 + $0x18] sm:$0xff]  ;;  %v1054_v21 = vpack.c.bf16 %v740_v20, %v739_v19  ;;  %v741_v22 = vld [vmem:[%s1442_s3 + $0x30] sm:$0xff]  ;;  %v748_v32 = vld [vmem:[%s1442_s3 + $0x68] sm:$0xff] }
  0x1a   :  { %941 = vmatprep.subr.bf16.mxu1 %v1099_v25  ;;  %v840_v10 = vcombine.low %v24_v9, %v24_v9  ;;  %v841_v11 = vcombine.high %v24_v9, %v24_v9  ;;  %v738_v17 = vld [vmem:[%s1442_s3 + $0x18] sm:$0xff]  ;;  %v743_v25 = vld [vmem:[%s1442_s3 + $0x40] sm:$0xff] }
  0x1b   :  { %v1051_v18 = vpack.c.bf16 %v738_v17, %v737_v15  ;;  %v742_v23 = vld [vmem:[%s1442_s3 + $0x38] sm:$0xff] }
  0x1c   :  { %920 = vmatpush3.bf16.msra.mxu0 %v1100_v26  ;;  %v1057_v24 = vpack.c.bf16 %v742_v23, %v741_v22  ;;  %v744_v26 = vld [vmem:[%s1442_s3 + $0x48] sm:$0xff]  ;;  %v750_v35 = vld [vmem:[%s1442_s3 + $0x78] sm:$0xff] }
  0x1d   :  { %942 = vmatpush3.bf16.msra.mxu1 %v1101_v27  ;;  %921 = vmatprep.subr.bf16.mxu0 %v1102_v28  ;;  %v1060_v27 = vpack.c.bf16 %v744_v26, %v743_v25  ;;  %v745_v28 = vld [vmem:[%s1442_s3 + $0x50] sm:$0xff] }
  0x1e   :  { %943 = vmatprep.subr.bf16.mxu1 %v1103_v29  ;;  %v746_v29 = vld [vmem:[%s1442_s3 + $0x58] sm:$0xff] }
  0x20   :  { %922 = vmatpush3.bf16.msra.mxu0 %v1104_v30  ;;  %v1063_v30 = vpack.c.bf16 %v746_v29, %v745_v28 }
  0x21   :  { %944 = vmatpush3.bf16.msra.mxu1 %v1105_v31  ;;  %951 = vmatprep.subr.bf16.mxu0 %v1110_v38  ;;  %v747_v31 = vld [vmem:[%s1442_s3 + $0x60] sm:$0xff] }
  0x22   :  { %973 = vmatprep.subr.bf16.mxu1 %v1111_v39  ;;  %v1066_v33 = vpack.c.bf16 %v748_v32, %v747_v31 }
  0x23   :  { %605 = vmatmul.mubr.bf16.vlgmr.msra.gmra.mrb[0].mxu0 %v834_v34  ;;  %v749_v34 = vld [vmem:[%s1442_s3 + $0x70] sm:$0xff] }
  0x24   :  { %645 = vmatmul.mubr.bf16.vlgmr.msra.gmra.mrb[0].mxu1 %v836_v36  ;;  %952 = vmatpush3.bf16.msra.mxu0 %v1112_v40  ;;  %v1069_v36 = vpack.c.bf16 %v750_v35, %v749_v34  ;;  %v833_v40 = vld [vmem:[%s1443_s2] ss:$0 sm:$0xff] }
  0x25   :  { %974 = vmatpush3.bf16.msra.mxu1 %v1113_v41  ;;  %953 = vmatprep.subr.bf16.mxu0 %v1114_v42 }
  0x26   :  { %975 = vmatprep.subr.bf16.mxu1 %v1115_v43  ;;  %684 = vmatprep.mubr.bf16.mxu0 %v839_v8 }
  0x27   :  { %724 = vmatprep.mubr.bf16.mxu1 %v841_v11 }
  0x28   :  { %954 = vmatpush3.bf16.msra.mxu0 %v1116_v44 }
  0x29   :  { %976 = vmatpush3.bf16.msra.mxu1 %v1117_v45  ;;  %955 = vmatprep.subr.bf16.mxu0 %v1118_v46 }
  0x2a   :  { %977 = vmatprep.subr.bf16.mxu1 %v1119_v47 }
  0x2c   :  { %956 = vmatpush3.bf16.msra.mxu0 %v1120_v48 }
  0x2d   :  { %978 = vmatpush3.bf16.msra.mxu1 %v1121_v49  ;;  %957 = vmatprep.subr.bf16.mxu0 %v1122_v50 }
  0x2e   :  { %979 = vmatprep.subr.bf16.mxu1 %v1123_v51 }
  0x30   :  { %958 = vmatpush3.bf16.msra.mxu0 %v1124_v52 }
  0x31   :  { %980 = vmatpush3.bf16.msra.mxu1 %v1125_v53  ;;  %959 = vmatprep.subr.bf16.mxu0 %v1126_v54 }
  0x32   :  { %981 = vmatprep.subr.bf16.mxu1 %v1127_v55 }
  0x34   :  { %960 = vmatpush3.bf16.msra.mxu0 %v1128_v56 }
  0x35   :  { %982 = vmatpush3.bf16.msra.mxu1 %v1129_v57  ;;  %961 = vmatprep.subr.bf16.mxu0 %v1130_v58 }
  0x36   :  { %983 = vmatprep.subr.bf16.mxu1 %v1131_v59 }
  0x38   :  { %962 = vmatpush3.bf16.msra.mxu0 %v1132_v60 }
  0x39   :  { %984 = vmatpush3.bf16.msra.mxu1 %v1133_v61  ;;  %963 = vmatprep.subr.bf16.mxu0 %v1134_v62 }
  0x3a   :  { %985 = vmatprep.subr.bf16.mxu1 %v1135_v63 }
  0x3c   :  { %964 = vmatpush3.bf16.msra.mxu0 %v1136_v0 }
  0x3d   :  { %986 = vmatpush3.bf16.msra.mxu1 %v1137_v1  ;;  %965 = vmatprep.subr.bf16.mxu0 %v1138_v2  ;;  %v906_v1 = vld [vmem:[%s1444_s4] ss:$0 sm:$0xff] }
  0x3e   :  { %987 = vmatprep.subr.bf16.mxu1 %v1139_v3 }
  0x40   :  { %966 = vmatpush3.bf16.msra.mxu0 %v1140_v4 }
  0x41   :  { %988 = vmatpush3.bf16.msra.mxu1 %v1141_v5  ;;  %1047 = vmatprep.subr.bf16.mxu0 %v1146_v12 }
  0x43   :  { %685 = vmatmul.mubr.bf16.vlgmr.msra.gmra.mrb[4].mxu0 %v838_v7 }
  0x44   :  { %725 = vmatmul.mubr.bf16.vlgmr.msra.gmra.mrb[4].mxu1 %v840_v10  ;;  %1049 = vmatpush3.bf16.msra.mxu0 %v1048_v16 }
  0x45   :  { %1050 = vmatprep.subr.bf16.mxu0 %v1146_v12  ;;  %1044 = vmatprep.mubr.msk.f32.mxu0 %vm1147_vm0, %v1148_v37 }
  0x48   :  { %1052 = vmatpush3.bf16.msra.mxu0 %v1051_v18 }
  0x49   :  { %1053 = vmatprep.subr.bf16.mxu0 %v1146_v12 }
  0x4c   :  { %1055 = vmatpush3.bf16.msra.mxu0 %v1054_v21 }
  0x4d   :  { %1056 = vmatprep.subr.bf16.mxu0 %v1146_v12 }
  0x50   :  { %1058 = vmatpush3.bf16.msra.mxu0 %v1057_v24 }
  0x51   :  { %1059 = vmatprep.subr.bf16.mxu0 %v1146_v12 }
  0x54   :  { %1061 = vmatpush3.bf16.msra.mxu0 %v1060_v27 }
  0x55   :  { %1062 = vmatprep.subr.bf16.mxu0 %v1146_v12 }
  0x58   :  { %1064 = vmatpush3.bf16.msra.mxu0 %v1063_v30 }
  0x59   :  { %1065 = vmatprep.subr.bf16.mxu0 %v1146_v12 }
  0x5c   :  { %1067 = vmatpush3.bf16.msra.mxu0 %v1066_v33 }
  0x5d   :  { %1068 = vmatprep.subr.bf16.mxu0 %v1146_v12 }
  0x60   :  { %1070 = vmatpush3.bf16.msra.mxu0 %v1069_v36 }
  0xf6   :  { %v923_v38 = vpop.f32.mrb[0].mxu0 }
  0xf7   :  { %v945_v39 = vpop.f32.mrb[0].mxu1  ;;  %v924_v41 = vpop.f32.mrb[1].mxu0 }
  0xf8   :  { %v946_v42 = vpop.f32.mrb[1].mxu1  ;;  %v925_v43 = vadd.f32 %v924_v41, %v923_v38  ;;  %v926_v45 = vpop.f32.mrb[2].mxu0 }
  0xf9   :  { %v947_v44 = vadd.f32 %v946_v42, %v945_v39  ;;  %v948_v46 = vpop.f32.mrb[2].mxu1  ;;  %v927_v47 = vpop.f32.mrb[3].mxu0 }
  0xfa   :  { %v949_v48 = vpop.f32.mrb[3].mxu1  ;;  %v607_v49 = vadd.f32 %v925_v43, %v833_v40 }
  0xfc   :  { %v647_v50 = vadd.f32 %v947_v44, %v607_v49 }
 0x116   :  { %v967_v51 = vpop.f32.mrb[4].mxu0 }
 0x117   :  { %v989_v52 = vpop.f32.mrb[4].mxu1  ;;  %v968_v53 = vpop.f32.mrb[5].mxu0 }
 0x118   :  { %v990_v54 = vpop.f32.mrb[5].mxu1  ;;  %v969_v55 = vadd.f32 %v968_v53, %v967_v51  ;;  %v970_v57 = vpop.f32.mrb[6].mxu0 }
 0x119   :  { %v991_v56 = vadd.f32 %v990_v54, %v989_v52  ;;  %v992_v58 = vpop.f32.mrb[6].mxu1  ;;  %v971_v59 = vpop.f32.mrb[7].mxu0 }
 0x11a   :  { %v993_v60 = vpop.f32.mrb[7].mxu1  ;;  %v687_v61 = vadd.f32 %v969_v55, %v647_v50 }
 0x11c   :  { %v727_v62 = vadd.f32 %v991_v56, %v687_v61 }
 0x11e   :  { %v733_v63 = vmul.f32 0.1, %v727_v62  ;;  %vm732_vm1 = vcmp.gt.f32.partialorder %v727_v62, 0.0 }
 0x120   :  { %v734_v0 = vsel %vm732_vm1, %v727_v62, %v733_v63 }
 0x121   :  { %1045 = vmatmul.mubr.f32.vlgmr.msra.gmra.mrb[8].mxu0 %v734_v0 }
 0x1f4   :  { %v824_v2 = vpop.f32.mrb[8].mxu0 }
 0x1f5   :  { %v825_v3 = vadd.f32 %v906_v1, %v824_v2  ;;  %v1046_v4 = vpop.f32.mrb[9].mxu0 }
 0x1f7   :  { %828 = vst [vmem:[%s1445_s5] sm:$0xff] %v825_v3 }

</bundles_post_ra>
